<compile_context>
chip_gen: v7x
topology: tpu7x:2x2x1
jax: 0.10.0
libtpu: 0.0.40
codegen_flags: <defaults>
</compile_context>

<pallas_src>
import functools

import numpy as np

import jax
import jax.numpy as jnp
from jax.experimental import pallas as pl
from jax.experimental.pallas import tpu as pltpu


# ----------------------------- "FLAGS" ------------------------------------- #
class _Flags:
    BATCH_NORM = True


FLAGS = _Flags()
BN_EPS = 1e-5

_MAX_TS_OUT = 2048           # max output lane-tile width
_MAX_SEL_ELEMS = 1 << 21     # max ts_in*ts_out elements (~8 MiB f32 of temporaries)


def _pick_rows(Dout, Hout, Wout, kD):
    """Output (dout, ho) rows handled per grid step.

    R divides Dout*Hout (kD==1) or Hout (kD>1) so all tiles are exact, and
    R*Wout is a multiple of 128 (lane-dense stores) or the full output axis.
    """
    total = Dout * Hout
    max_r = Hout if kD > 1 else total
    cands = []
    for r in range(1, max_r + 1):
        if (Hout % r) if kD > 1 else (total % r):
            continue
        full = (kD == 1 and r == total)
        if (r * Wout) % 128 != 0 and not full:
            continue
        cands.append(r)
    if not cands:
        # TODO(synk): exotic shapes whose exact tiles cannot hit the 128-lane
        # rule; fall back to the largest exact tile.
        return max_r
    within = [r for r in cands
              if r * Wout <= _MAX_TS_OUT
              and (4 * r * Wout) * (r * Wout) <= _MAX_SEL_ELEMS]
    return max(within) if within else min(cands)


# --------------------------- Pallas kernel ---------------------------------- #
def _conv_ds_kernel(*refs, kd_steps, width, relu, emit_out, emit_stats,
                    has_bias, ts_in, ts_out):
    i = 0
    base_ref = refs[i]; i += 1          # (1, ts_out) int32 lane map
    w_ref = refs[i]; i += 1             # (4, Cout, Cin) taps for this kd
    bias_ref = None
    if has_bias:
        bias_ref = refs[i]; i += 1      # (Cout, 1) folded BN shift
    x_ref = refs[i]; i += 1             # (Cin, ts_in)
    out_ref = None
    if emit_out:
        out_ref = refs[i]; i += 1       # (Cout, ts_out)
    s1_ref = s2_ref = None
    if emit_stats:
        s1_ref, s2_ref = refs[i], refs[i + 1]; i += 2   # (Cout, 1) each
    acc_ref = refs[i]                   # VMEM scratch (Cout, ts_out) f32

    q = pl.program_id(2)                # kd phase (reduction axis, innermost)

    @pl.when(q == 0)
    def _():
        acc_ref[...] = jnp.zeros_like(acc_ref)

    x2d = x_ref[...]                                        # (Cin, ts_in) f32
    base = base_ref[...]                                    # (1, ts_out) int32
    lane = jax.lax.broadcasted_iota(jnp.int32, (ts_in, ts_out), 0)

    contrib = None
    # The four (kh, kw) taps of the 2x2/stride-2 window are gathered from the
    # interleaved lane axis with 0/1 selection matmuls (MXU): no HBM im2col
    # pass, no strided lane loads.
    for j, (kh, kw) in enumerate(((0, 0), (0, 1), (1, 0), (1, 1))):
        sel = (lane == base + (kh * width + kw)).astype(x2d.dtype)   # (ts_in, ts_out)
        taps = jnp.dot(x2d, sel, preferred_element_type=jnp.float32)        # (Cin, ts_out)
        part = jnp.dot(w_ref[j], taps, preferred_element_type=jnp.float32)  # (Cout, ts_out)
        contrib = part if contrib is None else contrib + part
    acc_ref[...] += contrib

    @pl.when(q == kd_steps - 1)
    def _():
        y = acc_ref[...]
        if emit_stats:
            s1_ref[...] = jnp.sum(y, axis=1, keepdims=True)
            s2_ref[...] = jnp.sum(y * y, axis=1, keepdims=True)
        if emit_out:
            if has_bias:
                y = y + bias_ref[...]
            if relu:
                y = jnp.maximum(y, 0.0)
            out_ref[...] = y.astype(out_ref.dtype)


# --------------------------- pallas_call wrapper ----------------------------- #
def _conv_ds_pass(x3, wtaps, base, bias, *, emit_out, emit_stats, relu,
                  kD, width, R, Hout, Wout, Dout):
    N, Cin, _ = x3.shape
    Cout = wtaps.shape[2]
    ts_out = R * Wout
    ts_in = 2 * R * width
    S_out = Dout * Hout * Wout
    nT = (Dout * Hout) // R

    kern = functools.partial(
        _conv_ds_kernel, kd_steps=kD, width=width, relu=relu,
        emit_out=emit_out, emit_stats=emit_stats, has_bias=bias is not None,
        ts_in=ts_in, ts_out=ts_out)

    in_specs = [
        pl.BlockSpec((1, ts_out), lambda n, t, q: (0, 0)),                 # base
        pl.BlockSpec((None, 4, Cout, Cin), lambda n, t, q: (q, 0, 0, 0)),  # taps
    ]
    args = [base, wtaps]
    if bias is not None:
        in_specs.append(pl.BlockSpec((Cout, 1), lambda n, t, q: (0, 0)))
        args.append(bias)
    if kD == 1:
        x_map = lambda n, t, q: (n, 0, t)
    else:
        q_stride = Hout // R
        x_map = lambda n, t, q: (n, 0, t + q * q_stride)
    in_specs.append(pl.BlockSpec((None, Cin, ts_in), x_map))
    args.append(x3)

    out_shape, out_specs = [], []
    if emit_out:
        out_shape.append(jax.ShapeDtypeStruct((N, Cout, S_out), jnp.float32))
        out_specs.append(pl.BlockSpec((None, Cout, ts_out),
                                      lambda n, t, q: (n, 0, t)))
    if emit_stats:
        stat_shape = jax.ShapeDtypeStruct((N, nT, Cout, 1), jnp.float32)
        stat_spec = pl.BlockSpec((None, None, Cout, 1),
                                 lambda n, t, q: (n, t, 0, 0))
        out_shape += [stat_shape, stat_shape]
        out_specs += [stat_spec, stat_spec]

    return pl.pallas_call(
        kern,
        out_shape=tuple(out_shape),
        grid_spec=pltpu.PrefetchScalarGridSpec(
            num_scalar_prefetch=0,
            grid=(N, nT, kD),
            in_specs=in_specs,
            out_specs=tuple(out_specs),
            scratch_shapes=[pltpu.VMEM((Cout, ts_out), jnp.float32)]),
        compiler_params=pltpu.CompilerParams(
            dimension_semantics=("parallel", "parallel", "arbitrary")),
    )(*args)


# ------------------------------ Wrapper ------------------------------------- #
@functools.partial(jax.jit, static_argnames=("batch_norm",))
def convolution_downsample(x, weight, gamma, beta, *,
                           batch_norm=FLAGS.BATCH_NORM):
    """x: (N, Cin, D, H, W) f32; weight: (Cout, Cin, kD, 2, 2) f32."""
    N, Cin, D, H, W = x.shape
    Cout, _, kD, kH, kW = weight.shape
    assert (kH, kW) == (2, 2)
    Dout, Hout, Wout = D - kD + 1, H // 2, W // 2
    if H % 2 or W % 2:   # stride-2 VALID conv ignores a trailing odd row/col
        x = x[:, :, :, :2 * Hout, :2 * Wout]
        H, W = 2 * Hout, 2 * Wout
    S_out = Dout * Hout * Wout

    R = _pick_rows(Dout, Hout, Wout, kD)
    ts_out = R * Wout

    # Free reshape (no transpose, no im2col copy): the kernel de-interleaves.
    x3 = x.astype(jnp.float32).reshape(N, Cin, D * H * W)
    # TODO(synk): bf16 x/weights would halve HBM traffic and double MXU rate,
    # but misses the 1e-4 correctness check used here.

    # Per-(kd, kh, kw) weight taps: (kD, 4, Cout, Cin). Tiny.
    wtaps = jnp.transpose(weight.astype(jnp.float32),
                          (2, 3, 4, 0, 1)).reshape(kD, 4, Cout, Cin)

    # Lane index (inside an x tile) of the (kh=0, kw=0) tap of each output
    # position; the other three taps are constant lane offsets from it.
    rr = np.arange(R, dtype=np.int32)[:, None]
    wo = np.arange(Wout, dtype=np.int32)[None, :]
    base = jnp.asarray((2 * W * rr + 2 * wo).reshape(1, ts_out), dtype=jnp.int32)

    common = dict(kD=kD, width=W, R=R, Hout=Hout, Wout=Wout, Dout=Dout)

    if batch_norm:
        # Pass 1: batch statistics only -- y is never written to HBM.
        s1, s2 = _conv_ds_pass(x3, wtaps, base, None, emit_out=False,
                               emit_stats=True, relu=False, **common)
        cnt = jnp.float32(N * S_out)
        mean = jnp.sum(s1, axis=(0, 1))[:, 0] / cnt
        # NOTE: E[y^2]-mean^2 in f32 (training-mode biased variance); adequate
        # for zero-ish-mean conv activations (meets the 1e-4 check here).
        var = jnp.maximum(jnp.sum(s2, axis=(0, 1))[:, 0] / cnt - mean * mean, 0.0)
        scale = gamma / jnp.sqrt(var + BN_EPS)
        shift = beta - mean * scale
        # Fold BN scale into the conv weights; single fused conv+affine+ReLU pass.
        out = _conv_ds_pass(x3, wtaps * scale[None, None, :, None], base,
                            shift.astype(jnp.float32)[:, None],
                            emit_out=True, emit_stats=False, relu=True,
                            **common)[0]
    else:
        out = _conv_ds_pass(x3, wtaps, base, None, emit_out=True,
                            emit_stats=False, relu=True, **common)[0]

    # (N, Cout, Dout*Hout*Wout) -> NCDHW is a free contiguous reshape.
    return out.reshape(N, Cout, Dout, Hout, Wout)


# ------------------------------ Reference ----------------------------------- #
def _reference(x, weight, gamma, beta, *, batch_norm):
    out = jax.lax.conv_general_dilated(
        x, weight, window_strides=(1, 2, 2), padding="VALID",
        dimension_numbers=("NCDHW", "OIDHW", "NCDHW"))
    if batch_norm:
        mean = jnp.mean(out, axis=(0, 2, 3, 4), keepdims=True)
        var = jnp.mean(jnp.square(out - mean), axis=(0, 2, 3, 4), keepdims=True)
        out = (out - mean) / jnp.sqrt(var + BN_EPS)
        out = out * gamma[None, :, None, None, None] + beta[None, :, None, None, None]
    return jnp.maximum(out, 0.0)


# -------------------------------- Main -------------------------------------- #
if __name__ == "__main__":
    # small shapes: batch=2, inplanes=4, outplanes=8, D=4, H=W=16, nplanes=1
    N, Cin, Cout, D, H, W, nplanes = 2, 4, 8, 4, 16, 16, 1

    key = jax.random.PRNGKey(0)
    kx, kw = jax.random.split(key)
    x = jax.random.normal(kx, (N, Cin, D, H, W), dtype=jnp.float32)
    weight = 0.1 * jax.random.normal(kw, (Cout, Cin, nplanes, 2, 2),
                                     dtype=jnp.float32)
    gamma = jnp.ones((Cout,), jnp.float32)   # BatchNorm weight
    beta = jnp.zeros((Cout,), jnp.float32)   # BatchNorm bias

    out = convolution_downsample(x, weight, gamma, beta)
    out = jax.block_until_ready(out)

    ref = _reference(x, weight, gamma, beta, batch_norm=FLAGS.BATCH_NORM)
    assert out.shape == (N, Cout, D - nplanes + 1, H // 2, W // 2)
    assert jnp.allclose(out, ref, rtol=1e-4, atol=1e-4), float(
        jnp.max(jnp.abs(out - ref)))

    print("KERNEL_OK")
</pallas_src>

<mosaic_0001>
module attributes {stable_mosaic.version = 11 : i64} {
  func.func @_conv_ds_kernel(%arg0: i32, %arg1: i32, %arg2: i32, %arg3: memref<1x256xi32, #tpu.memory_space<vmem>>, %arg4: memref<1x4x8x4xf32, #tpu.memory_space<vmem>>, %arg5: memref<1x4x1024xf32, #tpu.memory_space<vmem>>, %arg6: memref<1x1x8x1xf32, #tpu.memory_space<vmem>>, %arg7: memref<1x1x8x1xf32, #tpu.memory_space<vmem>>, %arg8: memref<8x256xf32, #tpu.memory_space<vmem>>) attributes {dimension_semantics = [#tpu.dimension_semantics<parallel>, #tpu.dimension_semantics<parallel>, #tpu.dimension_semantics<arbitrary>], iteration_bounds = array<i64: 2, 1, 1>, scalar_prefetch = 0 : i64, scratch_operands = 1 : i64, tpu.core_type = #tpu.core_type<tc>, window_params = [{pipeline_mode = #tpu.pipeline_mode<synchronous>, transform_indices = @transform_0, window_bounds = array<i64: 1, 256>}, {transform_indices = @transform_1, window_bounds = array<i64: 1, 4, 8, 4>}, {transform_indices = @transform_2, window_bounds = array<i64: 1, 4, 1024>}, {transform_indices = @transform_3, window_bounds = array<i64: 1, 1, 8, 1>}, {transform_indices = @transform_4, window_bounds = array<i64: 1, 1, 8, 1>}]} {
    %c0_i32 = arith.constant 0 : i32
    %0 = arith.cmpi eq, %arg2, %c0_i32 : i32
    %1 = arith.extui %0 : i1 to i32
    %c0_i32_0 = arith.constant 0 : i32
    %2 = arith.cmpi ne, %1, %c0_i32_0 : i32
    scf.if %2 {
      %cst_32 = arith.constant 0.000000e+00 : f32
      %56 = vector.broadcast %cst_32 : f32 to vector<8x256xf32>
      %c0_33 = arith.constant 0 : index
      %c0_34 = arith.constant 0 : index
      %57 = vector.load %arg8[%c0_33, %c0_34] : memref<8x256xf32, #tpu.memory_space<vmem>>, vector<8x256xf32>
      tpu.vector_store %arg8[%c0_33, %c0_34], %56 {strides = array<i32>} : memref<8x256xf32, #tpu.memory_space<vmem>>, vector<8x256xf32>,
    } else {
    }
    %c0 = arith.constant 0 : index
    %c0_1 = arith.constant 0 : index
    %c0_2 = arith.constant 0 : index
    %3 = vector.load %arg5[%c0, %c0_1, %c0_2] : memref<1x4x1024xf32, #tpu.memory_space<vmem>>, vector<1x4x1024xf32>
    %4 = vector.shape_cast %3 : vector<1x4x1024xf32> to vector<4x1024xf32>
    %c0_3 = arith.constant 0 : index
    %c0_4 = arith.constant 0 : index
    %5 = vector.load %arg3[%c0_3, %c0_4] : memref<1x256xi32, #tpu.memory_space<vmem>>, vector<1x256xi32>
    %6 = tpu.iota {dimensions = array<i32: 0>} : vector<1024x256xi32>
    %c0_i32_5 = arith.constant 0 : i32
    %7 = vector.broadcast %c0_i32_5 : i32 to vector<1x256xi32>
    %8 = arith.addi %5, %7 : vector<1x256xi32>
    %9 = vector.broadcast %8 : vector<1x256xi32> to vector<1024x256xi32>
    %10 = arith.cmpi eq, %6, %9 : vector<1024x256xi32>
    %11 = arith.extui %10 : vector<1024x256xi1> to vector<1024x256xi32>
    %12 = arith.sitofp %11 : vector<1024x256xi32> to vector<1024x256xf32>
    %cst = arith.constant dense<0.000000e+00> : vector<4x256xf32>
    %13 = tpu.matmul %4, %12, %cst {dimension_numbers = #tpu.dot_dimension_numbers<[1], [0], [0], [1], [0, 0, 1, 1], [], []>} : vector<4x1024xf32>, vector<1024x256xf32>, vector<4x256xf32> -> vector<4x256xf32>
    %c0_6 = arith.constant 0 : index
    %c0_7 = arith.constant 0 : index
    %c0_8 = arith.constant 0 : index
    %c0_9 = arith.constant 0 : index
    %14 = vector.load %arg4[%c0_6, %c0_7, %c0_8, %c0_9] : memref<1x4x8x4xf32, #tpu.memory_space<vmem>>, vector<1x1x8x4xf32>
    %15 = vector.shape_cast %14 : vector<1x1x8x4xf32> to vector<8x4xf32>
    %cst_10 = arith.constant dense<0.000000e+00> : vector<8x256xf32>
    %16 = tpu.matmul %15, %13, %cst_10 {dimension_numbers = #tpu.dot_dimension_numbers<[1], [0], [0], [1], [0, 0, 1, 1], [], []>} : vector<8x4xf32>, vector<4x256xf32>, vector<8x256xf32> -> vector<8x256xf32>
    %c1_i32 = arith.constant 1 : i32
    %17 = vector.broadcast %c1_i32 : i32 to vector<1x256xi32>
    %18 = arith.addi %5, %17 : vector<1x256xi32>
    %19 = vector.broadcast %18 : vector<1x256xi32> to vector<1024x256xi32>
    %20 = arith.cmpi eq, %6, %19 : vector<1024x256xi32>
    %21 = arith.extui %20 : vector<1024x256xi1> to vector<1024x256xi32>
    %22 = arith.sitofp %21 : vector<1024x256xi32> to vector<1024x256xf32>
    %cst_11 = arith.constant dense<0.000000e+00> : vector<4x256xf32>
    %23 = tpu.matmul %4, %22, %cst_11 {dimension_numbers = #tpu.dot_dimension_numbers<[1], [0], [0], [1], [0, 0, 1, 1], [], []>} : vector<4x1024xf32>, vector<1024x256xf32>, vector<4x256xf32> -> vector<4x256xf32>
    %c0_12 = arith.constant 0 : index
    %c1 = arith.constant 1 : index
    %c0_13 = arith.constant 0 : index
    %c0_14 = arith.constant 0 : index
    %24 = vector.load %arg4[%c0_12, %c1, %c0_13, %c0_14] : memref<1x4x8x4xf32, #tpu.memory_space<vmem>>, vector<1x1x8x4xf32>
    %25 = vector.shape_cast %24 : vector<1x1x8x4xf32> to vector<8x4xf32>
    %cst_15 = arith.constant dense<0.000000e+00> : vector<8x256xf32>
    %26 = tpu.matmul %25, %23, %cst_15 {dimension_numbers = #tpu.dot_dimension_numbers<[1], [0], [0], [1], [0, 0, 1, 1], [], []>} : vector<8x4xf32>, vector<4x256xf32>, vector<8x256xf32> -> vector<8x256xf32>
    %27 = arith.addf %16, %26 : vector<8x256xf32>
    %c16_i32 = arith.constant 16 : i32
    %28 = vector.broadcast %c16_i32 : i32 to vector<1x256xi32>
    %29 = arith.addi %5, %28 : vector<1x256xi32>
    %30 = vector.broadcast %29 : vector<1x256xi32> to vector<1024x256xi32>
    %31 = arith.cmpi eq, %6, %30 : vector<1024x256xi32>
    %32 = arith.extui %31 : vector<1024x256xi1> to vector<1024x256xi32>
    %33 = arith.sitofp %32 : vector<1024x256xi32> to vector<1024x256xf32>
    %cst_16 = arith.constant dense<0.000000e+00> : vector<4x256xf32>
    %34 = tpu.matmul %4, %33, %cst_16 {dimension_numbers = #tpu.dot_dimension_numbers<[1], [0], [0], [1], [0, 0, 1, 1], [], []>} : vector<4x1024xf32>, vector<1024x256xf32>, vector<4x256xf32> -> vector<4x256xf32>
    %c0_17 = arith.constant 0 : index
    %c2 = arith.constant 2 : index
    %c0_18 = arith.constant 0 : index
    %c0_19 = arith.constant 0 : index
    %35 = vector.load %arg4[%c0_17, %c2, %c0_18, %c0_19] : memref<1x4x8x4xf32, #tpu.memory_space<vmem>>, vector<1x1x8x4xf32>
    %36 = vector.shape_cast %35 : vector<1x1x8x4xf32> to vector<8x4xf32>
    %cst_20 = arith.constant dense<0.000000e+00> : vector<8x256xf32>
    %37 = tpu.matmul %36, %34, %cst_20 {dimension_numbers = #tpu.dot_dimension_numbers<[1], [0], [0], [1], [0, 0, 1, 1], [], []>} : vector<8x4xf32>, vector<4x256xf32>, vector<8x256xf32> -> vector<8x256xf32>
    %38 = arith.addf %27, %37 : vector<8x256xf32>
    %c17_i32 = arith.constant 17 : i32
    %39 = vector.broadcast %c17_i32 : i32 to vector<1x256xi32>
    %40 = arith.addi %5, %39 : vector<1x256xi32>
    %41 = vector.broadcast %40 : vector<1x256xi32> to vector<1024x256xi32>
    %42 = arith.cmpi eq, %6, %41 : vector<1024x256xi32>
    %43 = arith.extui %42 : vector<1024x256xi1> to vector<1024x256xi32>
    %44 = arith.sitofp %43 : vector<1024x256xi32> to vector<1024x256xf32>
    %cst_21 = arith.constant dense<0.000000e+00> : vector<4x256xf32>
    %45 = tpu.matmul %4, %44, %cst_21 {dimension_numbers = #tpu.dot_dimension_numbers<[1], [0], [0], [1], [0, 0, 1, 1], [], []>} : vector<4x1024xf32>, vector<1024x256xf32>, vector<4x256xf32> -> vector<4x256xf32>
    %c0_22 = arith.constant 0 : index
    %c3 = arith.constant 3 : index
    %c0_23 = arith.constant 0 : index
    %c0_24 = arith.constant 0 : index
    %46 = vector.load %arg4[%c0_22, %c3, %c0_23, %c0_24] : memref<1x4x8x4xf32, #tpu.memory_space<vmem>>, vector<1x1x8x4xf32>
    %47 = vector.shape_cast %46 : vector<1x1x8x4xf32> to vector<8x4xf32>
    %cst_25 = arith.constant dense<0.000000e+00> : vector<8x256xf32>
    %48 = tpu.matmul %47, %45, %cst_25 {dimension_numbers = #tpu.dot_dimension_numbers<[1], [0], [0], [1], [0, 0, 1, 1], [], []>} : vector<8x4xf32>, vector<4x256xf32>, vector<8x256xf32> -> vector<8x256xf32>
    %49 = arith.addf %38, %48 : vector<8x256xf32>
    %c0_26 = arith.constant 0 : index
    %c0_27 = arith.constant 0 : index
    %50 = vector.load %arg8[%c0_26, %c0_27] : memref<8x256xf32, #tpu.memory_space<vmem>>, vector<8x256xf32>
    %51 = arith.addf %50, %49 : vector<8x256xf32>
    %c0_28 = arith.constant 0 : index
    %c0_29 = arith.constant 0 : index
    %52 = vector.load %arg8[%c0_28, %c0_29] : memref<8x256xf32, #tpu.memory_space<vmem>>, vector<8x256xf32>
    tpu.vector_store %arg8[%c0_28, %c0_29], %51 {strides = array<i32>} : memref<8x256xf32, #tpu.memory_space<vmem>>, vector<8x256xf32>,
    %c0_i32_30 = arith.constant 0 : i32
    %53 = arith.cmpi eq, %arg2, %c0_i32_30 : i32
    %54 = arith.extui %53 : i1 to i32
    %c0_i32_31 = arith.constant 0 : i32
    %55 = arith.cmpi ne, %54, %c0_i32_31 : i32
    scf.if %55 {
      %c0_32 = arith.constant 0 : index
      %c0_33 = arith.constant 0 : index
      %56 = vector.load %arg8[%c0_32, %c0_33] : memref<8x256xf32, #tpu.memory_space<vmem>>, vector<8x256xf32>
      %cst_34 = arith.constant dense<0.000000e+00> : vector<8xf32>
      %57 = vector.multi_reduction <add>, %56, %cst_34 [1] : vector<8x256xf32> to vector<8xf32>
      %58 = vector.shape_cast %57 : vector<8xf32> to vector<8x1xf32>
      %c0_35 = arith.constant 0 : index
      %c0_36 = arith.constant 0 : index
      %c0_37 = arith.constant 0 : index
      %c0_38 = arith.constant 0 : index
      %59 = vector.load %arg6[%c0_35, %c0_36, %c0_37, %c0_38] : memref<1x1x8x1xf32, #tpu.memory_space<vmem>>, vector<1x1x8x1xf32>
      %60 = vector.shape_cast %59 : vector<1x1x8x1xf32> to vector<8x1xf32>
      %61 = vector.shape_cast %58 : vector<8x1xf32> to vector<1x1x8x1xf32>
      tpu.vector_store %arg6[%c0_35, %c0_36, %c0_37, %c0_38], %61 {strides = array<i32>} : memref<1x1x8x1xf32, #tpu.memory_space<vmem>>, vector<1x1x8x1xf32>,
      %62 = arith.mulf %56, %56 : vector<8x256xf32>
      %cst_39 = arith.constant dense<0.000000e+00> : vector<8xf32>
      %63 = vector.multi_reduction <add>, %62, %cst_39 [1] : vector<8x256xf32> to vector<8xf32>
      %64 = vector.shape_cast %63 : vector<8xf32> to vector<8x1xf32>
      %c0_40 = arith.constant 0 : index
      %c0_41 = arith.constant 0 : index
      %c0_42 = arith.constant 0 : index
      %c0_43 = arith.constant 0 : index
      %65 = vector.load %arg7[%c0_40, %c0_41, %c0_42, %c0_43] : memref<1x1x8x1xf32, #tpu.memory_space<vmem>>, vector<1x1x8x1xf32>
      %66 = vector.shape_cast %65 : vector<1x1x8x1xf32> to vector<8x1xf32>
      %67 = vector.shape_cast %64 : vector<8x1xf32> to vector<1x1x8x1xf32>
      tpu.vector_store %arg7[%c0_40, %c0_41, %c0_42, %c0_43], %67 {strides = array<i32>} : memref<1x1x8x1xf32, #tpu.memory_space<vmem>>, vector<1x1x8x1xf32>,
    } else {
    }
    return
  }
  func.func @transform_0(%arg0: i32, %arg1: i32, %arg2: i32) -> (i32, i32) {
    %c0_i32 = arith.constant 0 : i32
    %c0_i32_0 = arith.constant 0 : i32
    %c0_i32_1 = arith.constant 0 : i32
    return %c0_i32, %c0_i32_0 : i32, i32
  }
  func.func @transform_1(%arg0: i32, %arg1: i32, %arg2: i32) -> (i32, i32, i32, i32) {
    %c0_i32 = arith.constant 0 : i32
    %c0_i32_0 = arith.constant 0 : i32
    %c0_i32_1 = arith.constant 0 : i32
    %c0_i32_2 = arith.constant 0 : i32
    return %arg2, %c0_i32, %c0_i32_0, %c0_i32_1 : i32, i32, i32, i32
  }
  func.func @transform_2(%arg0: i32, %arg1: i32, %arg2: i32) -> (i32, i32, i32) {
    %c0_i32 = arith.constant 0 : i32
    %c0_i32_0 = arith.constant 0 : i32
    return %arg0, %c0_i32, %arg1 : i32, i32, i32
  }
  func.func @transform_3(%arg0: i32, %arg1: i32, %arg2: i32) -> (i32, i32, i32, i32) {
    %c0_i32 = arith.constant 0 : i32
    %c0_i32_0 = arith.constant 0 : i32
    %c0_i32_1 = arith.constant 0 : i32
    return %arg0, %arg1, %c0_i32, %c0_i32_0 : i32, i32, i32, i32
  }
  func.func @transform_4(%arg0: i32, %arg1: i32, %arg2: i32) -> (i32, i32, i32, i32) {
    %c0_i32 = arith.constant 0 : i32
    %c0_i32_0 = arith.constant 0 : i32
    %c0_i32_1 = arith.constant 0 : i32
    return %arg0, %arg1, %c0_i32, %c0_i32_0 : i32, i32, i32, i32
  }
}

module attributes {stable_mosaic.version = 11 : i64} {
  func.func @_conv_ds_kernel(%arg0: i32, %arg1: i32, %arg2: i32, %arg3: memref<1x256xi32, #tpu.memory_space<vmem>>, %arg4: memref<1x4x8x4xf32, #tpu.memory_space<vmem>>, %arg5: memref<8x1xf32, #tpu.memory_space<vmem>>, %arg6: memref<1x4x1024xf32, #tpu.memory_space<vmem>>, %arg7: memref<1x8x256xf32, #tpu.memory_space<vmem>>, %arg8: memref<8x256xf32, #tpu.memory_space<vmem>>) attributes {dimension_semantics = [#tpu.dimension_semantics<parallel>, #tpu.dimension_semantics<parallel>, #tpu.dimension_semantics<arbitrary>], iteration_bounds = array<i64: 2, 1, 1>, scalar_prefetch = 0 : i64, scratch_operands = 1 : i64, tpu.core_type = #tpu.core_type<tc>, window_params = [{pipeline_mode = #tpu.pipeline_mode<synchronous>, transform_indices = @transform_0, window_bounds = array<i64: 1, 256>}, {transform_indices = @transform_1, window_bounds = array<i64: 1, 4, 8, 4>}, {pipeline_mode = #tpu.pipeline_mode<synchronous>, transform_indices = @transform_2, window_bounds = array<i64: 8, 1>}, {transform_indices = @transform_3, window_bounds = array<i64: 1, 4, 1024>}, {transform_indices = @transform_4, window_bounds = array<i64: 1, 8, 256>}]} {
    %c0_i32 = arith.constant 0 : i32
    %0 = arith.cmpi eq, %arg2, %c0_i32 : i32
    %1 = arith.extui %0 : i1 to i32
    %c0_i32_0 = arith.constant 0 : i32
    %2 = arith.cmpi ne, %1, %c0_i32_0 : i32
    scf.if %2 {
      %cst_32 = arith.constant 0.000000e+00 : f32
      %56 = vector.broadcast %cst_32 : f32 to vector<8x256xf32>
      %c0_33 = arith.constant 0 : index
      %c0_34 = arith.constant 0 : index
      %57 = vector.load %arg8[%c0_33, %c0_34] : memref<8x256xf32, #tpu.memory_space<vmem>>, vector<8x256xf32>
      tpu.vector_store %arg8[%c0_33, %c0_34], %56 {strides = array<i32>} : memref<8x256xf32, #tpu.memory_space<vmem>>, vector<8x256xf32>,
    } else {
    }
    %c0 = arith.constant 0 : index
    %c0_1 = arith.constant 0 : index
    %c0_2 = arith.constant 0 : index
    %3 = vector.load %arg6[%c0, %c0_1, %c0_2] : memref<1x4x1024xf32, #tpu.memory_space<vmem>>, vector<1x4x1024xf32>
    %4 = vector.shape_cast %3 : vector<1x4x1024xf32> to vector<4x1024xf32>
    %c0_3 = arith.constant 0 : index
    %c0_4 = arith.constant 0 : index
    %5 = vector.load %arg3[%c0_3, %c0_4] : memref<1x256xi32, #tpu.memory_space<vmem>>, vector<1x256xi32>
    %6 = tpu.iota {dimensions = array<i32: 0>} : vector<1024x256xi32>
    %c0_i32_5 = arith.constant 0 : i32
    %7 = vector.broadcast %c0_i32_5 : i32 to vector<1x256xi32>
    %8 = arith.addi %5, %7 : vector<1x256xi32>
    %9 = vector.broadcast %8 : vector<1x256xi32> to vector<1024x256xi32>
    %10 = arith.cmpi eq, %6, %9 : vector<1024x256xi32>
    %11 = arith.extui %10 : vector<1024x256xi1> to vector<1024x256xi32>
    %12 = arith.sitofp %11 : vector<1024x256xi32> to vector<1024x256xf32>
    %cst = arith.constant dense<0.000000e+00> : vector<4x256xf32>
    %13 = tpu.matmul %4, %12, %cst {dimension_numbers = #tpu.dot_dimension_numbers<[1], [0], [0], [1], [0, 0, 1, 1], [], []>} : vector<4x1024xf32>, vector<1024x256xf32>, vector<4x256xf32> -> vector<4x256xf32>
    %c0_6 = arith.constant 0 : index
    %c0_7 = arith.constant 0 : index
    %c0_8 = arith.constant 0 : index
    %c0_9 = arith.constant 0 : index
    %14 = vector.load %arg4[%c0_6, %c0_7, %c0_8, %c0_9] : memref<1x4x8x4xf32, #tpu.memory_space<vmem>>, vector<1x1x8x4xf32>
    %15 = vector.shape_cast %14 : vector<1x1x8x4xf32> to vector<8x4xf32>
    %cst_10 = arith.constant dense<0.000000e+00> : vector<8x256xf32>
    %16 = tpu.matmul %15, %13, %cst_10 {dimension_numbers = #tpu.dot_dimension_numbers<[1], [0], [0], [1], [0, 0, 1, 1], [], []>} : vector<8x4xf32>, vector<4x256xf32>, vector<8x256xf32> -> vector<8x256xf32>
    %c1_i32 = arith.constant 1 : i32
    %17 = vector.broadcast %c1_i32 : i32 to vector<1x256xi32>
    %18 = arith.addi %5, %17 : vector<1x256xi32>
    %19 = vector.broadcast %18 : vector<1x256xi32> to vector<1024x256xi32>
    %20 = arith.cmpi eq, %6, %19 : vector<1024x256xi32>
    %21 = arith.extui %20 : vector<1024x256xi1> to vector<1024x256xi32>
    %22 = arith.sitofp %21 : vector<1024x256xi32> to vector<1024x256xf32>
    %cst_11 = arith.constant dense<0.000000e+00> : vector<4x256xf32>
    %23 = tpu.matmul %4, %22, %cst_11 {dimension_numbers = #tpu.dot_dimension_numbers<[1], [0], [0], [1], [0, 0, 1, 1], [], []>} : vector<4x1024xf32>, vector<1024x256xf32>, vector<4x256xf32> -> vector<4x256xf32>
    %c0_12 = arith.constant 0 : index
    %c1 = arith.constant 1 : index
    %c0_13 = arith.constant 0 : index
    %c0_14 = arith.constant 0 : index
    %24 = vector.load %arg4[%c0_12, %c1, %c0_13, %c0_14] : memref<1x4x8x4xf32, #tpu.memory_space<vmem>>, vector<1x1x8x4xf32>
    %25 = vector.shape_cast %24 : vector<1x1x8x4xf32> to vector<8x4xf32>
    %cst_15 = arith.constant dense<0.000000e+00> : vector<8x256xf32>
    %26 = tpu.matmul %25, %23, %cst_15 {dimension_numbers = #tpu.dot_dimension_numbers<[1], [0], [0], [1], [0, 0, 1, 1], [], []>} : vector<8x4xf32>, vector<4x256xf32>, vector<8x256xf32> -> vector<8x256xf32>
    %27 = arith.addf %16, %26 : vector<8x256xf32>
    %c16_i32 = arith.constant 16 : i32
    %28 = vector.broadcast %c16_i32 : i32 to vector<1x256xi32>
    %29 = arith.addi %5, %28 : vector<1x256xi32>
    %30 = vector.broadcast %29 : vector<1x256xi32> to vector<1024x256xi32>
    %31 = arith.cmpi eq, %6, %30 : vector<1024x256xi32>
    %32 = arith.extui %31 : vector<1024x256xi1> to vector<1024x256xi32>
    %33 = arith.sitofp %32 : vector<1024x256xi32> to vector<1024x256xf32>
    %cst_16 = arith.constant dense<0.000000e+00> : vector<4x256xf32>
    %34 = tpu.matmul %4, %33, %cst_16 {dimension_numbers = #tpu.dot_dimension_numbers<[1], [0], [0], [1], [0, 0, 1, 1], [], []>} : vector<4x1024xf32>, vector<1024x256xf32>, vector<4x256xf32> -> vector<4x256xf32>
    %c0_17 = arith.constant 0 : index
    %c2 = arith.constant 2 : index
    %c0_18 = arith.constant 0 : index
    %c0_19 = arith.constant 0 : index
    %35 = vector.load %arg4[%c0_17, %c2, %c0_18, %c0_19] : memref<1x4x8x4xf32, #tpu.memory_space<vmem>>, vector<1x1x8x4xf32>
    %36 = vector.shape_cast %35 : vector<1x1x8x4xf32> to vector<8x4xf32>
    %cst_20 = arith.constant dense<0.000000e+00> : vector<8x256xf32>
    %37 = tpu.matmul %36, %34, %cst_20 {dimension_numbers = #tpu.dot_dimension_numbers<[1], [0], [0], [1], [0, 0, 1, 1], [], []>} : vector<8x4xf32>, vector<4x256xf32>, vector<8x256xf32> -> vector<8x256xf32>
    %38 = arith.addf %27, %37 : vector<8x256xf32>
    %c17_i32 = arith.constant 17 : i32
    %39 = vector.broadcast %c17_i32 : i32 to vector<1x256xi32>
    %40 = arith.addi %5, %39 : vector<1x256xi32>
    %41 = vector.broadcast %40 : vector<1x256xi32> to vector<1024x256xi32>
    %42 = arith.cmpi eq, %6, %41 : vector<1024x256xi32>
    %43 = arith.extui %42 : vector<1024x256xi1> to vector<1024x256xi32>
    %44 = arith.sitofp %43 : vector<1024x256xi32> to vector<1024x256xf32>
    %cst_21 = arith.constant dense<0.000000e+00> : vector<4x256xf32>
    %45 = tpu.matmul %4, %44, %cst_21 {dimension_numbers = #tpu.dot_dimension_numbers<[1], [0], [0], [1], [0, 0, 1, 1], [], []>} : vector<4x1024xf32>, vector<1024x256xf32>, vector<4x256xf32> -> vector<4x256xf32>
    %c0_22 = arith.constant 0 : index
    %c3 = arith.constant 3 : index
    %c0_23 = arith.constant 0 : index
    %c0_24 = arith.constant 0 : index
    %46 = vector.load %arg4[%c0_22, %c3, %c0_23, %c0_24] : memref<1x4x8x4xf32, #tpu.memory_space<vmem>>, vector<1x1x8x4xf32>
    %47 = vector.shape_cast %46 : vector<1x1x8x4xf32> to vector<8x4xf32>
    %cst_25 = arith.constant dense<0.000000e+00> : vector<8x256xf32>
    %48 = tpu.matmul %47, %45, %cst_25 {dimension_numbers = #tpu.dot_dimension_numbers<[1], [0], [0], [1], [0, 0, 1, 1], [], []>} : vector<8x4xf32>, vector<4x256xf32>, vector<8x256xf32> -> vector<8x256xf32>
    %49 = arith.addf %38, %48 : vector<8x256xf32>
    %c0_26 = arith.constant 0 : index
    %c0_27 = arith.constant 0 : index
    %50 = vector.load %arg8[%c0_26, %c0_27] : memref<8x256xf32, #tpu.memory_space<vmem>>, vector<8x256xf32>
    %51 = arith.addf %50, %49 : vector<8x256xf32>
    %c0_28 = arith.constant 0 : index
    %c0_29 = arith.constant 0 : index
    %52 = vector.load %arg8[%c0_28, %c0_29] : memref<8x256xf32, #tpu.memory_space<vmem>>, vector<8x256xf32>
    tpu.vector_store %arg8[%c0_28, %c0_29], %51 {strides = array<i32>} : memref<8x256xf32, #tpu.memory_space<vmem>>, vector<8x256xf32>,
    %c0_i32_30 = arith.constant 0 : i32
    %53 = arith.cmpi eq, %arg2, %c0_i32_30 : i32
    %54 = arith.extui %53 : i1 to i32
    %c0_i32_31 = arith.constant 0 : i32
    %55 = arith.cmpi ne, %54, %c0_i32_31 : i32
    scf.if %55 {
      %c0_32 = arith.constant 0 : index
      %c0_33 = arith.constant 0 : index
      %56 = vector.load %arg8[%c0_32, %c0_33] : memref<8x256xf32, #tpu.memory_space<vmem>>, vector<8x256xf32>
      %c0_34 = arith.constant 0 : index
      %c0_35 = arith.constant 0 : index
      %57 = vector.load %arg5[%c0_34, %c0_35] : memref<8x1xf32, #tpu.memory_space<vmem>>, vector<8x1xf32>
      %58 = vector.broadcast %57 : vector<8x1xf32> to vector<8x256xf32>
      %59 = arith.addf %56, %58 : vector<8x256xf32>
      %cst_36 = arith.constant 0.000000e+00 : f32
      %60 = vector.broadcast %cst_36 : f32 to vector<8x256xf32>
      %61 = arith.maximumf %59, %60 : vector<8x256xf32>
      %c0_37 = arith.constant 0 : index
      %c0_38 = arith.constant 0 : index
      %c0_39 = arith.constant 0 : index
      %62 = vector.load %arg7[%c0_37, %c0_38, %c0_39] : memref<1x8x256xf32, #tpu.memory_space<vmem>>, vector<1x8x256xf32>
      %63 = vector.shape_cast %62 : vector<1x8x256xf32> to vector<8x256xf32>
      %64 = vector.shape_cast %61 : vector<8x256xf32> to vector<1x8x256xf32>
      tpu.vector_store %arg7[%c0_37, %c0_38, %c0_39], %64 {strides = array<i32>} : memref<1x8x256xf32, #tpu.memory_space<vmem>>, vector<1x8x256xf32>,
    } else {
    }
    return
  }
  func.func @transform_0(%arg0: i32, %arg1: i32, %arg2: i32) -> (i32, i32) {
    %c0_i32 = arith.constant 0 : i32
    %c0_i32_0 = arith.constant 0 : i32
    %c0_i32_1 = arith.constant 0 : i32
    return %c0_i32, %c0_i32_0 : i32, i32
  }
  func.func @transform_1(%arg0: i32, %arg1: i32, %arg2: i32) -> (i32, i32, i32, i32) {
    %c0_i32 = arith.constant 0 : i32
    %c0_i32_0 = arith.constant 0 : i32
    %c0_i32_1 = arith.constant 0 : i32
    %c0_i32_2 = arith.constant 0 : i32
    return %arg2, %c0_i32, %c0_i32_0, %c0_i32_1 : i32, i32, i32, i32
  }
  func.func @transform_2(%arg0: i32, %arg1: i32, %arg2: i32) -> (i32, i32) {
    %c0_i32 = arith.constant 0 : i32
    %c0_i32_0 = arith.constant 0 : i32
    %c0_i32_1 = arith.constant 0 : i32
    return %c0_i32, %c0_i32_0 : i32, i32
  }
  func.func @transform_3(%arg0: i32, %arg1: i32, %arg2: i32) -> (i32, i32, i32) {
    %c0_i32 = arith.constant 0 : i32
    %c0_i32_0 = arith.constant 0 : i32
    return %arg0, %c0_i32, %arg1 : i32, i32, i32
  }
  func.func @transform_4(%arg0: i32, %arg1: i32, %arg2: i32) -> (i32, i32, i32) {
    %c0_i32 = arith.constant 0 : i32
    %c0_i32_0 = arith.constant 0 : i32
    return %arg0, %c0_i32, %arg1 : i32, i32, i32
  }
}

</mosaic_0001>

<bundles_post_ra>
// kernel: convolution_downsample.3
= control target key start
LH: loop header
LB: loop body
LE: loop exit
PB: predicated region body
PF: predicated region fallthrough
CT: control target
= control target key end

     0   :  { %s8345_s15 = smov 0   ;;  %s8347_s16 = smov 0   ;;  %s11526_s0 = inlined_call_operand.vmem [shape: s32[1,256], index: 0, kind: input, shape index: {}]   ;;  %s11527_s1 = inlined_call_operand.vmem [shape: f32[1,4,8,4], index: 1, kind: input, shape index: {}]   ;;  %s11528_s2 = inlined_call_operand.vmem [shape: f32[8,1], index: 2, kind: input, shape index: {}]   ;;  %s11529_s3 = inlined_call_operand.vmem [shape: f32[2,4,1024], index: 3, kind: input, shape index: {}]   ;;  %s11530_s4 = inlined_call_operand.vmem [shape: f32[2,8,256], index: 4, kind: output, shape index: {}]  }
   0x1   :  { %s8349_s17 = smov 0  }
   0x2 LB: > { %s33_s18 = sadd.s32 1, %s8311_s16  ;;  %p5125_p0 = scmp.ge.s32.totalorder %s8315_s17, 1  ;;  %s8315_s17 = sphi %s8349_s17, %s14_s17   ;;  %s8311_s16 = sphi %s8347_s16, %s12024_s16   ;;  %s8307_s15 = sphi %s8345_s15, %s12023_s15  }
   0x3   : > { %p35_p1 = scmp.ge.s32.totalorder %s33_s18, 2  ;;  %p200_p2 = scmp.lt.s32.totalorder %s8315_s17, 3 }
   0x5   : > { %s12026_s18 = smov (%p35_p1, %s33_s18), 0  ;;  %p201_p3 = pnand %p5125_p0, %p200_p2 }
   0x7   : > { %204 = sbr.rel (%p201_p3) target bundleno = 1667 (0x683), region = 36 }
   0xe   : > { %v274_v0 = vld [vmem:[%s11526_s0] sm:$0x3]  ;;  %v275_v1 = vlaneseq  ;;  %v11685_v13 = vmov 1.0|1.0   ;;  %p245_p4 = scmp.lt.s32.totalorder %s8307_s15, 1 }
   0xf   : > { %v1477_v3 = vadd.s32 1, %v274_v0 }
  0x10   : > { %v8368_v2 = vshrl.u32 %v275_v1, 7  ;;  %s12028_s15 = smov (!%p245_p4, %s8307_s15), 1 }
  0x11   : > { %s7195_s21 = sshll.u32 %s12028_s15, 5  ;;  %s7196_s13 = sshll.u32 %s12028_s15, 4 }
  0x12   : > { %v8371_v4 = vadd.s32 8, %v8368_v2  ;;  %v8374_v5 = vsub.s32 1, %v8368_v2  ;;  %v8377_v6 = vsub.s32 0, %v8368_v2  ;;  %v8380_v7 = vadd.s32 16, %v8368_v2  ;;  %s8616_s24 = scalar_lea.vmem %s11529_s3, %s7195_s21  ;;  %s262_s20 = scalar_lea.vmem %s11530_s4, %s7196_s13 }
  0x13   : > { %v8383_v8 = vadd.s32 24, %v8368_v2  ;;  %v8419_v14 = vadd.s32 32, %v8368_v2  ;;  %v8422_v15 = vadd.s32 40, %v8368_v2  ;;  %v8445_v16 = vadd.s32 48, %v8368_v2  ;;  %v8634_v30 = vld [vmem:[%s8616_s24] sm:$0xff]  ;;  %v8910_v52 = vld [vmem:[%s8616_s24 + $0x8] sm:$0xff] }
  0x14   : > { %11774 = vst [vmem:[#allocation3_spill] sm:$0xff] %v8374_v5  ;;  %v8386_v9 = vrot.slane %v274_v0, %v8374_v5  ;;  %v8389_v10 = vrot.slane %v1477_v3, %v8374_v5  ;;  %v8392_v11 = vrot.slane %v274_v0, %v8377_v6  ;;  %v8395_v12 = vrot.slane %v1477_v3, %v8377_v6 }
  0x15   : > { %v8448_v17 = vadd.s32 56, %v8368_v2  ;;  %v8471_v18 = vadd.s32 64, %v8368_v2  ;;  %v8474_v19 = vadd.s32 72, %v8368_v2  ;;  %v8497_v20 = vadd.s32 80, %v8368_v2 }
  0x16   : > { %vm413_vm0 = vcmp.eq.s32.totalorder %v8368_v2, %v8386_v9  ;;  %vm415_vm1 = vcmp.eq.s32.totalorder %v8371_v4, %v8386_v9  ;;  %vm1487_vm2 = vcmp.eq.s32.totalorder %v8368_v2, %v8389_v10  ;;  %vm1489_vm3 = vcmp.eq.s32.totalorder %v8371_v4, %v8389_v10 }
  0x17   : > { %vm7197_vm4 = vmpackc.low %vm415_vm1, %vm413_vm0  ;;  %vm412_vm5 = vcmp.eq.s32.totalorder %v8368_v2, %v8392_v11  ;;  %vm414_vm6 = vcmp.eq.s32.totalorder %v8371_v4, %v8392_v11  ;;  %vm1486_vm7 = vcmp.eq.s32.totalorder %v8368_v2, %v8395_v12  ;;  %vm1488_vm8 = vcmp.eq.s32.totalorder %v8371_v4, %v8395_v12 }
  0x18   : > { %7198 = vmatprep.subr.msk.bf16.mxu0 %vm7197_vm4, %v11685_v13  ;;  %vm7453_vm9 = vmpackc.low %vm1489_vm3, %vm1487_vm2  ;;  %vm417_vm10 = vcmp.eq.s32.totalorder %v8380_v7, %v8386_v9  ;;  %vm419_vm11 = vcmp.eq.s32.totalorder %v8383_v8, %v8386_v9  ;;  %vm1491_vm13 = vcmp.eq.s32.totalorder %v8380_v7, %v8389_v10  ;;  %vm1493_vm14 = vcmp.eq.s32.totalorder %v8383_v8, %v8389_v10 }
  0x19   : > { %7454 = vmatprep.subr.msk.bf16.mxu1 %vm7453_vm9, %v11685_v13  ;;  %vm7199_vm12 = vmpackc.low %vm414_vm6, %vm412_vm5  ;;  %vm416_vm0 = vcmp.eq.s32.totalorder %v8380_v7, %v8392_v11  ;;  %vm418_vm1 = vcmp.eq.s32.totalorder %v8383_v8, %v8392_v11  ;;  %vm1490_vm3 = vcmp.eq.s32.totalorder %v8380_v7, %v8395_v12  ;;  %vm1492_vm4 = vcmp.eq.s32.totalorder %v8383_v8, %v8395_v12 }
  0x1a   : > { %7200 = vmatpush1.bf16.msk.msra.mxu0 %vm7199_vm12, %v11685_v13  ;;  %vm7455_vm15 = vmpackc.low %vm1488_vm8, %vm1486_vm7  ;;  %vm421_vm6 = vcmp.eq.s32.totalorder %v8419_v14, %v8386_v9  ;;  %vm423_vm7 = vcmp.eq.s32.totalorder %v8422_v15, %v8386_v9  ;;  %vm1495_vm9 = vcmp.eq.s32.totalorder %v8419_v14, %v8389_v10  ;;  %vm420_vm12 = vcmp.eq.s32.totalorder %v8419_v14, %v8392_v11 }
  0x1b   : > { %7456 = vmatpush1.bf16.msk.msra.mxu1 %vm7455_vm15, %v11685_v13  ;;  %vm7201_vm2 = vmpackc.low %vm419_vm11, %vm417_vm10  ;;  %vm1497_vm10 = vcmp.eq.s32.totalorder %v8422_v15, %v8389_v10  ;;  %vm1494_vm15 = vcmp.eq.s32.totalorder %v8419_v14, %v8395_v12  ;;  %v8500_v21 = vadd.s32 88, %v8368_v2  ;;  %v8523_v22 = vadd.s32 96, %v8368_v2 }
  0x1c   : > { %7202 = vmatprep.subr.msk.bf16.mxu0 %vm7201_vm2, %v11685_v13  ;;  %vm7457_vm5 = vmpackc.low %vm1493_vm14, %vm1491_vm13  ;;  %vm422_vm13 = vcmp.eq.s32.totalorder %v8422_v15, %v8392_v11  ;;  %vm425_vm2 = vcmp.eq.s32.totalorder %v8445_v16, %v8386_v9  ;;  %v8526_v23 = vadd.s32 104, %v8368_v2  ;;  %v8550_v24 = vadd.s32 112, %v8368_v2 }
  0x1d   : > { %7458 = vmatprep.subr.msk.bf16.mxu1 %vm7457_vm5, %v11685_v13  ;;  %vm7203_vm8 = vmpackc.low %vm418_vm1, %vm416_vm0  ;;  %vm1496_vm0 = vcmp.eq.s32.totalorder %v8422_v15, %v8395_v12  ;;  %vm1499_vm5 = vcmp.eq.s32.totalorder %v8445_v16, %v8389_v10  ;;  %v8553_v25 = vadd.s32 120, %v8368_v2  ;;  %v8581_v26 = vadd.s32 128, %v8368_v2 }
  0x1e   : > { %7204 = vmatpush1.bf16.msk.msra.mxu0 %vm7203_vm8, %v11685_v13  ;;  %vm7459_vm11 = vmpackc.low %vm1492_vm4, %vm1490_vm3  ;;  %vm427_vm3 = vcmp.eq.s32.totalorder %v8448_v17, %v8386_v9  ;;  %vm424_vm8 = vcmp.eq.s32.totalorder %v8445_v16, %v8392_v11  ;;  %v8584_v27 = vadd.s32 136, %v8368_v2  ;;  %v8608_v28 = vadd.s32 144, %v8368_v2 }
  0x1f   : > { %7460 = vmatpush1.bf16.msk.msra.mxu1 %vm7459_vm11, %v11685_v13  ;;  %vm7205_vm14 = vmpackc.low %vm423_vm7, %vm421_vm6  ;;  %vm1501_vm6 = vcmp.eq.s32.totalorder %v8448_v17, %v8389_v10  ;;  %vm1498_vm11 = vcmp.eq.s32.totalorder %v8445_v16, %v8395_v12  ;;  %v8611_v29 = vadd.s32 152, %v8368_v2  ;;  %v8642_v31 = vadd.s32 160, %v8368_v2 }
  0x20   : > { %7206 = vmatprep.subr.msk.bf16.mxu0 %vm7205_vm14, %v11685_v13  ;;  %vm7461_vm1 = vmpackc.low %vm1497_vm10, %vm1495_vm9  ;;  %vm426_vm9 = vcmp.eq.s32.totalorder %v8448_v17, %v8392_v11  ;;  %vm429_vm14 = vcmp.eq.s32.totalorder %v8471_v18, %v8386_v9  ;;  %v8645_v32 = vadd.s32 168, %v8368_v2  ;;  %v8659_v33 = vcombine.high %v8634_v30, %v8634_v30 }
  0x21   : > { %7462 = vmatprep.subr.msk.bf16.mxu1 %vm7461_vm1, %v11685_v13  ;;  %vm7207_vm4 = vmpackc.low %vm422_vm13, %vm420_vm12  ;;  %vm1500_vm12 = vcmp.eq.s32.totalorder %v8448_v17, %v8395_v12  ;;  %vm1503_vm1 = vcmp.eq.s32.totalorder %v8471_v18, %v8389_v10  ;;  %v8672_v34 = vadd.s32 176, %v8368_v2  ;;  %v8675_v35 = vadd.s32 184, %v8368_v2 }
  0x22   : > { %7208 = vmatpush1.bf16.msk.msra.mxu0 %vm7207_vm4, %v11685_v13  ;;  %vm7463_vm7 = vmpackc.low %vm1496_vm0, %vm1494_vm15  ;;  %vm431_vm15 = vcmp.eq.s32.totalorder %v8474_v19, %v8386_v9  ;;  %vm428_vm4 = vcmp.eq.s32.totalorder %v8471_v18, %v8392_v11  ;;  %1256 = vmatprep.mubr.f32.mxu0 %v8659_v33  ;;  %v8709_v36 = vadd.s32 192, %v8368_v2  ;;  %v8712_v37 = vadd.s32 200, %v8368_v2 }
  0x23   : > { %7464 = vmatpush1.bf16.msk.msra.mxu1 %vm7463_vm7, %v11685_v13  ;;  %vm7209_vm10 = vmpackc.low %vm427_vm3, %vm425_vm2  ;;  %vm1505_vm2 = vcmp.eq.s32.totalorder %v8474_v19, %v8389_v10  ;;  %vm1502_vm7 = vcmp.eq.s32.totalorder %v8471_v18, %v8395_v12  ;;  %2318 = vmatprep.mubr.f32.mxu1 %v8659_v33  ;;  %v8735_v38 = vadd.s32 208, %v8368_v2  ;;  %v8738_v39 = vadd.s32 216, %v8368_v2 }
  0x24   : > { %7210 = vmatprep.subr.msk.bf16.mxu0 %vm7209_vm10, %v11685_v13  ;;  %vm7465_vm13 = vmpackc.low %vm1501_vm6, %vm1499_vm5  ;;  %vm430_vm5 = vcmp.eq.s32.totalorder %v8474_v19, %v8392_v11  ;;  %vm433_vm10 = vcmp.eq.s32.totalorder %v8497_v20, %v8386_v9  ;;  %v8761_v40 = vadd.s32 224, %v8368_v2  ;;  %v8764_v41 = vadd.s32 232, %v8368_v2 }
  0x25   : > { %7466 = vmatprep.subr.msk.bf16.mxu1 %vm7465_vm13, %v11685_v13  ;;  %vm7211_vm0 = vmpackc.low %vm426_vm9, %vm424_vm8  ;;  %vm1504_vm8 = vcmp.eq.s32.totalorder %v8474_v19, %v8395_v12  ;;  %vm1507_vm13 = vcmp.eq.s32.totalorder %v8497_v20, %v8389_v10  ;;  %v8787_v42 = vadd.s32 240, %v8368_v2  ;;  %v8790_v43 = vadd.s32 248, %v8368_v2 }
  0x26   : > { %7212 = vmatpush1.bf16.msk.msra.mxu0 %vm7211_vm0, %v11685_v13  ;;  %vm7467_vm3 = vmpackc.low %vm1500_vm12, %vm1498_vm11  ;;  %vm435_vm11 = vcmp.eq.s32.totalorder %v8500_v21, %v8386_v9  ;;  %vm432_vm0 = vcmp.eq.s32.totalorder %v8497_v20, %v8392_v11  ;;  %v8813_v44 = vadd.s32 256, %v8368_v2  ;;  %v8816_v45 = vadd.s32 264, %v8368_v2 }
  0x27   : > { %7468 = vmatpush1.bf16.msk.msra.mxu1 %vm7467_vm3, %v11685_v13  ;;  %vm7213_vm6 = vmpackc.low %vm431_vm15, %vm429_vm14  ;;  %vm1509_vm14 = vcmp.eq.s32.totalorder %v8500_v21, %v8389_v10  ;;  %vm1506_vm3 = vcmp.eq.s32.totalorder %v8497_v20, %v8395_v12  ;;  %v8839_v46 = vadd.s32 272, %v8368_v2  ;;  %v8842_v47 = vadd.s32 280, %v8368_v2 }
  0x28   : > { %7214 = vmatprep.subr.msk.bf16.mxu0 %vm7213_vm6, %v11685_v13  ;;  %vm7469_vm9 = vmpackc.low %vm1505_vm2, %vm1503_vm1  ;;  %vm434_vm1 = vcmp.eq.s32.totalorder %v8500_v21, %v8392_v11  ;;  %vm437_vm6 = vcmp.eq.s32.totalorder %v8523_v22, %v8386_v9  ;;  %v8865_v48 = vadd.s32 288, %v8368_v2  ;;  %v8868_v49 = vadd.s32 296, %v8368_v2 }
  0x29   : > { %7470 = vmatprep.subr.msk.bf16.mxu1 %vm7469_vm9, %v11685_v13  ;;  %vm7215_vm12 = vmpackc.low %vm430_vm5, %vm428_vm4  ;;  %vm1508_vm4 = vcmp.eq.s32.totalorder %v8500_v21, %v8395_v12  ;;  %vm1511_vm9 = vcmp.eq.s32.totalorder %v8523_v22, %v8389_v10  ;;  %v8899_v50 = vadd.s32 304, %v8368_v2  ;;  %v8902_v51 = vadd.s32 312, %v8368_v2 }
  0x2a   : > { %7216 = vmatpush1.bf16.msk.msra.mxu0 %vm7215_vm12, %v11685_v13  ;;  %vm7471_vm15 = vmpackc.low %vm1504_vm8, %vm1502_vm7  ;;  %vm439_vm7 = vcmp.eq.s32.totalorder %v8526_v23, %v8386_v9  ;;  %vm436_vm12 = vcmp.eq.s32.totalorder %v8523_v22, %v8392_v11  ;;  %v8923_v53 = vadd.s32 320, %v8368_v2  ;;  %v8931_v54 = vadd.s32 328, %v8368_v2 }
  0x2b   : > { %7472 = vmatpush1.bf16.msk.msra.mxu1 %vm7471_vm15, %v11685_v13  ;;  %vm7217_vm2 = vmpackc.low %vm435_vm11, %vm433_vm10  ;;  %vm1513_vm10 = vcmp.eq.s32.totalorder %v8526_v23, %v8389_v10  ;;  %vm1510_vm15 = vcmp.eq.s32.totalorder %v8523_v22, %v8395_v12  ;;  %v8935_v55 = vcombine.high %v8910_v52, %v8910_v52  ;;  %v8958_v56 = vadd.s32 336, %v8368_v2 }
  0x2c   : > { %7218 = vmatprep.subr.msk.bf16.mxu0 %vm7217_vm2, %v11685_v13  ;;  %vm7473_vm5 = vmpackc.low %vm1509_vm14, %vm1507_vm13  ;;  %vm438_vm13 = vcmp.eq.s32.totalorder %v8526_v23, %v8392_v11  ;;  %vm441_vm2 = vcmp.eq.s32.totalorder %v8550_v24, %v8386_v9  ;;  %v8961_v57 = vadd.s32 344, %v8368_v2  ;;  %v8992_v58 = vadd.s32 352, %v8368_v2 }
  0x2d   : > { %7474 = vmatprep.subr.msk.bf16.mxu1 %vm7473_vm5, %v11685_v13  ;;  %vm7219_vm8 = vmpackc.low %vm434_vm1, %vm432_vm0  ;;  %vm1512_vm0 = vcmp.eq.s32.totalorder %v8526_v23, %v8395_v12  ;;  %vm1515_vm5 = vcmp.eq.s32.totalorder %v8550_v24, %v8389_v10  ;;  %v8995_v59 = vadd.s32 360, %v8368_v2  ;;  %v9018_v60 = vadd.s32 368, %v8368_v2 }
  0x2e   : > { %7220 = vmatpush1.bf16.msk.msra.mxu0 %vm7219_vm8, %v11685_v13  ;;  %vm7475_vm11 = vmpackc.low %vm1508_vm4, %vm1506_vm3  ;;  %vm443_vm3 = vcmp.eq.s32.totalorder %v8553_v25, %v8386_v9  ;;  %vm440_vm8 = vcmp.eq.s32.totalorder %v8550_v24, %v8392_v11  ;;  %v9021_v61 = vadd.s32 376, %v8368_v2  ;;  %v9044_v62 = vadd.s32 384, %v8368_v2 }
  0x2f   : > { %7476 = vmatpush1.bf16.msk.msra.mxu1 %vm7475_vm11, %v11685_v13  ;;  %vm7221_vm14 = vmpackc.low %vm439_vm7, %vm437_vm6  ;;  %vm1517_vm6 = vcmp.eq.s32.totalorder %v8553_v25, %v8389_v10  ;;  %vm1514_vm11 = vcmp.eq.s32.totalorder %v8550_v24, %v8395_v12  ;;  %11775 = vst [vmem:[#allocation4_spill] sm:$0xff] %v9018_v60  ;;  %v9047_v63 = vadd.s32 392, %v8368_v2  ;;  %v9070_v0 = vadd.s32 400, %v8368_v2 }
  0x30   : > { %7222 = vmatprep.subr.msk.bf16.mxu0 %vm7221_vm14, %v11685_v13  ;;  %vm7477_vm1 = vmpackc.low %vm1513_vm10, %vm1511_vm9  ;;  %vm442_vm9 = vcmp.eq.s32.totalorder %v8553_v25, %v8392_v11  ;;  %vm445_vm14 = vcmp.eq.s32.totalorder %v8581_v26, %v8386_v9  ;;  %11776 = vst [vmem:[#allocation5_spill] sm:$0xff] %v9021_v61  ;;  %v9073_v1 = vadd.s32 408, %v8368_v2  ;;  %v9096_v3 = vadd.s32 416, %v8368_v2 }
  0x31   : > { %7478 = vmatprep.subr.msk.bf16.mxu1 %vm7477_vm1, %v11685_v13  ;;  %vm7223_vm4 = vmpackc.low %vm438_vm13, %vm436_vm12  ;;  %vm1516_vm12 = vcmp.eq.s32.totalorder %v8553_v25, %v8395_v12  ;;  %vm1519_vm1 = vcmp.eq.s32.totalorder %v8581_v26, %v8389_v10  ;;  %11777 = vst [vmem:[#allocation6_spill] sm:$0xff] %v9044_v62 }
  0x32   : > { %7224 = vmatpush1.bf16.msk.msra.mxu0 %vm7223_vm4, %v11685_v13  ;;  %vm7479_vm7 = vmpackc.low %vm1512_vm0, %vm1510_vm15  ;;  %vm447_vm15 = vcmp.eq.s32.totalorder %v8584_v27, %v8386_v9  ;;  %vm444_vm4 = vcmp.eq.s32.totalorder %v8581_v26, %v8392_v11  ;;  %11778 = vst [vmem:[#allocation7_spill] sm:$0xff] %v9047_v63 }
  0x33   : > { %7480 = vmatpush1.bf16.msk.msra.mxu1 %vm7479_vm7, %v11685_v13  ;;  %vm7225_vm10 = vmpackc.low %vm443_vm3, %vm441_vm2  ;;  %vm1521_vm2 = vcmp.eq.s32.totalorder %v8584_v27, %v8389_v10  ;;  %vm1518_vm7 = vcmp.eq.s32.totalorder %v8581_v26, %v8395_v12  ;;  %11779 = vst [vmem:[#allocation8_spill] sm:$0xff] %v9070_v0 }
  0x34   : > { %7226 = vmatprep.subr.msk.bf16.mxu0 %vm7225_vm10, %v11685_v13  ;;  %vm7481_vm13 = vmpackc.low %vm1517_vm6, %vm1515_vm5  ;;  %vm446_vm5 = vcmp.eq.s32.totalorder %v8584_v27, %v8392_v11  ;;  %vm449_vm10 = vcmp.eq.s32.totalorder %v8608_v28, %v8386_v9  ;;  %11780 = vst [vmem:[#allocation9_spill] sm:$0xff] %v9073_v1 }
  0x35   : > { %7482 = vmatprep.subr.msk.bf16.mxu1 %vm7481_vm13, %v11685_v13  ;;  %vm7227_vm0 = vmpackc.low %vm442_vm9, %vm440_vm8  ;;  %vm1520_vm8 = vcmp.eq.s32.totalorder %v8584_v27, %v8395_v12  ;;  %vm1523_vm13 = vcmp.eq.s32.totalorder %v8608_v28, %v8389_v10  ;;  %11781 = vst [vmem:[#allocation10_spill] sm:$0xff] %v9096_v3 }
  0x36   : > { %7228 = vmatpush1.bf16.msk.msra.mxu0 %vm7227_vm0, %v11685_v13  ;;  %vm7483_vm3 = vmpackc.low %vm1516_vm12, %vm1514_vm11  ;;  %vm451_vm11 = vcmp.eq.s32.totalorder %v8611_v29, %v8386_v9  ;;  %vm448_vm0 = vcmp.eq.s32.totalorder %v8608_v28, %v8392_v11 }
  0x37   : > { %7484 = vmatpush1.bf16.msk.msra.mxu1 %vm7483_vm3, %v11685_v13  ;;  %vm7229_vm6 = vmpackc.low %vm447_vm15, %vm445_vm14  ;;  %vm1525_vm14 = vcmp.eq.s32.totalorder %v8611_v29, %v8389_v10  ;;  %vm1522_vm3 = vcmp.eq.s32.totalorder %v8608_v28, %v8395_v12 }
  0x38   : > { %7230 = vmatprep.subr.msk.bf16.mxu0 %vm7229_vm6, %v11685_v13  ;;  %vm7485_vm9 = vmpackc.low %vm1521_vm2, %vm1519_vm1  ;;  %vm450_vm1 = vcmp.eq.s32.totalorder %v8611_v29, %v8392_v11  ;;  %vm453_vm6 = vcmp.eq.s32.totalorder %v8642_v31, %v8386_v9 }
  0x39   : > { %7486 = vmatprep.subr.msk.bf16.mxu1 %vm7485_vm9, %v11685_v13  ;;  %vm7231_vm12 = vmpackc.low %vm446_vm5, %vm444_vm4  ;;  %vm1524_vm4 = vcmp.eq.s32.totalorder %v8611_v29, %v8395_v12  ;;  %vm1527_vm9 = vcmp.eq.s32.totalorder %v8642_v31, %v8389_v10 }
  0x3a   : > { %7232 = vmatpush1.bf16.msk.msra.mxu0 %vm7231_vm12, %v11685_v13  ;;  %vm7487_vm15 = vmpackc.low %vm1520_vm8, %vm1518_vm7  ;;  %vm455_vm7 = vcmp.eq.s32.totalorder %v8645_v32, %v8386_v9  ;;  %vm452_vm12 = vcmp.eq.s32.totalorder %v8642_v31, %v8392_v11 }
  0x3b   : > { %7488 = vmatpush1.bf16.msk.msra.mxu1 %vm7487_vm15, %v11685_v13  ;;  %vm7233_vm2 = vmpackc.low %vm451_vm11, %vm449_vm10  ;;  %vm1529_vm10 = vcmp.eq.s32.totalorder %v8645_v32, %v8389_v10  ;;  %vm1526_vm15 = vcmp.eq.s32.totalorder %v8642_v31, %v8395_v12 }
  0x3c   : > { %7234 = vmatprep.subr.msk.bf16.mxu0 %vm7233_vm2, %v11685_v13  ;;  %vm7489_vm5 = vmpackc.low %vm1525_vm14, %vm1523_vm13  ;;  %vm454_vm13 = vcmp.eq.s32.totalorder %v8645_v32, %v8392_v11  ;;  %vm457_vm2 = vcmp.eq.s32.totalorder %v8672_v34, %v8386_v9 }
  0x3d   : > { %7490 = vmatprep.subr.msk.bf16.mxu1 %vm7489_vm5, %v11685_v13  ;;  %vm7235_vm8 = vmpackc.low %vm450_vm1, %vm448_vm0  ;;  %vm1528_vm0 = vcmp.eq.s32.totalorder %v8645_v32, %v8395_v12  ;;  %vm1531_vm5 = vcmp.eq.s32.totalorder %v8672_v34, %v8389_v10 }
  0x3e   : > { %7236 = vmatpush1.bf16.msk.msra.mxu0 %vm7235_vm8, %v11685_v13  ;;  %vm7491_vm11 = vmpackc.low %vm1524_vm4, %vm1522_vm3  ;;  %vm459_vm3 = vcmp.eq.s32.totalorder %v8675_v35, %v8386_v9  ;;  %vm456_vm8 = vcmp.eq.s32.totalorder %v8672_v34, %v8392_v11 }
  0x3f   : > { %7492 = vmatpush1.bf16.msk.msra.mxu1 %vm7491_vm11, %v11685_v13  ;;  %vm7237_vm14 = vmpackc.low %vm455_vm7, %vm453_vm6  ;;  %vm1533_vm6 = vcmp.eq.s32.totalorder %v8675_v35, %v8389_v10  ;;  %vm1530_vm11 = vcmp.eq.s32.totalorder %v8672_v34, %v8395_v12 }
  0x40   : > { %7238 = vmatprep.subr.msk.bf16.mxu0 %vm7237_vm14, %v11685_v13  ;;  %vm7493_vm1 = vmpackc.low %vm1529_vm10, %vm1527_vm9  ;;  %vm458_vm9 = vcmp.eq.s32.totalorder %v8675_v35, %v8392_v11  ;;  %vm461_vm14 = vcmp.eq.s32.totalorder %v8709_v36, %v8386_v9 }
  0x41   : > { %7494 = vmatprep.subr.msk.bf16.mxu1 %vm7493_vm1, %v11685_v13  ;;  %vm7239_vm4 = vmpackc.low %vm454_vm13, %vm452_vm12  ;;  %vm1532_vm12 = vcmp.eq.s32.totalorder %v8675_v35, %v8395_v12  ;;  %vm1535_vm1 = vcmp.eq.s32.totalorder %v8709_v36, %v8389_v10 }
  0x42   : > { %7240 = vmatpush1.bf16.msk.msra.mxu0 %vm7239_vm4, %v11685_v13  ;;  %vm7495_vm7 = vmpackc.low %vm1528_vm0, %vm1526_vm15  ;;  %vm463_vm15 = vcmp.eq.s32.totalorder %v8712_v37, %v8386_v9  ;;  %vm460_vm4 = vcmp.eq.s32.totalorder %v8709_v36, %v8392_v11 }
  0x43   : > { %7496 = vmatpush1.bf16.msk.msra.mxu1 %vm7495_vm7, %v11685_v13  ;;  %vm7241_vm10 = vmpackc.low %vm459_vm3, %vm457_vm2  ;;  %vm1537_vm2 = vcmp.eq.s32.totalorder %v8712_v37, %v8389_v10  ;;  %vm1534_vm7 = vcmp.eq.s32.totalorder %v8709_v36, %v8395_v12 }
  0x44   : > { %7242 = vmatprep.subr.msk.bf16.mxu0 %vm7241_vm10, %v11685_v13  ;;  %vm7497_vm13 = vmpackc.low %vm1533_vm6, %vm1531_vm5  ;;  %vm462_vm5 = vcmp.eq.s32.totalorder %v8712_v37, %v8392_v11  ;;  %vm465_vm10 = vcmp.eq.s32.totalorder %v8735_v38, %v8386_v9 }
  0x45   : > { %7498 = vmatprep.subr.msk.bf16.mxu1 %vm7497_vm13, %v11685_v13  ;;  %vm7243_vm0 = vmpackc.low %vm458_vm9, %vm456_vm8  ;;  %vm1536_vm8 = vcmp.eq.s32.totalorder %v8712_v37, %v8395_v12  ;;  %vm1539_vm13 = vcmp.eq.s32.totalorder %v8735_v38, %v8389_v10 }
  0x46   : > { %7244 = vmatpush1.bf16.msk.msra.mxu0 %vm7243_vm0, %v11685_v13  ;;  %vm7499_vm3 = vmpackc.low %vm1532_vm12, %vm1530_vm11  ;;  %vm467_vm11 = vcmp.eq.s32.totalorder %v8738_v39, %v8386_v9  ;;  %vm464_vm0 = vcmp.eq.s32.totalorder %v8735_v38, %v8392_v11 }
  0x47   : > { %7500 = vmatpush1.bf16.msk.msra.mxu1 %vm7499_vm3, %v11685_v13  ;;  %vm7245_vm6 = vmpackc.low %vm463_vm15, %vm461_vm14  ;;  %vm1541_vm14 = vcmp.eq.s32.totalorder %v8738_v39, %v8389_v10  ;;  %vm1538_vm3 = vcmp.eq.s32.totalorder %v8735_v38, %v8395_v12 }
  0x48   : > { %7246 = vmatprep.subr.msk.bf16.mxu0 %vm7245_vm6, %v11685_v13  ;;  %vm7501_vm9 = vmpackc.low %vm1537_vm2, %vm1535_vm1  ;;  %vm466_vm1 = vcmp.eq.s32.totalorder %v8738_v39, %v8392_v11  ;;  %vm469_vm6 = vcmp.eq.s32.totalorder %v8761_v40, %v8386_v9 }
  0x49   : > { %7502 = vmatprep.subr.msk.bf16.mxu1 %vm7501_vm9, %v11685_v13  ;;  %vm7247_vm12 = vmpackc.low %vm462_vm5, %vm460_vm4  ;;  %vm1540_vm4 = vcmp.eq.s32.totalorder %v8738_v39, %v8395_v12  ;;  %vm1543_vm9 = vcmp.eq.s32.totalorder %v8761_v40, %v8389_v10 }
  0x4a   : > { %7248 = vmatpush1.bf16.msk.msra.mxu0 %vm7247_vm12, %v11685_v13  ;;  %vm7503_vm15 = vmpackc.low %vm1536_vm8, %vm1534_vm7  ;;  %vm471_vm7 = vcmp.eq.s32.totalorder %v8764_v41, %v8386_v9  ;;  %vm468_vm12 = vcmp.eq.s32.totalorder %v8761_v40, %v8392_v11 }
  0x4b   : > { %7504 = vmatpush1.bf16.msk.msra.mxu1 %vm7503_vm15, %v11685_v13  ;;  %vm7249_vm2 = vmpackc.low %vm467_vm11, %vm465_vm10  ;;  %vm1545_vm10 = vcmp.eq.s32.totalorder %v8764_v41, %v8389_v10  ;;  %vm1542_vm15 = vcmp.eq.s32.totalorder %v8761_v40, %v8395_v12 }
  0x4c   : > { %7250 = vmatprep.subr.msk.bf16.mxu0 %vm7249_vm2, %v11685_v13  ;;  %vm7505_vm5 = vmpackc.low %vm1541_vm14, %vm1539_vm13  ;;  %vm470_vm13 = vcmp.eq.s32.totalorder %v8764_v41, %v8392_v11  ;;  %vm473_vm2 = vcmp.eq.s32.totalorder %v8787_v42, %v8386_v9 }
  0x4d   : > { %7506 = vmatprep.subr.msk.bf16.mxu1 %vm7505_vm5, %v11685_v13  ;;  %vm7251_vm8 = vmpackc.low %vm466_vm1, %vm464_vm0  ;;  %vm1544_vm0 = vcmp.eq.s32.totalorder %v8764_v41, %v8395_v12  ;;  %vm1547_vm5 = vcmp.eq.s32.totalorder %v8787_v42, %v8389_v10 }
  0x4e   : > { %7252 = vmatpush1.bf16.msk.msra.mxu0 %vm7251_vm8, %v11685_v13  ;;  %vm7507_vm11 = vmpackc.low %vm1540_vm4, %vm1538_vm3  ;;  %vm475_vm3 = vcmp.eq.s32.totalorder %v8790_v43, %v8386_v9  ;;  %vm472_vm8 = vcmp.eq.s32.totalorder %v8787_v42, %v8392_v11 }
  0x4f   : > { %7508 = vmatpush1.bf16.msk.msra.mxu1 %vm7507_vm11, %v11685_v13  ;;  %vm7253_vm14 = vmpackc.low %vm471_vm7, %vm469_vm6  ;;  %vm1549_vm6 = vcmp.eq.s32.totalorder %v8790_v43, %v8389_v10  ;;  %vm1546_vm11 = vcmp.eq.s32.totalorder %v8787_v42, %v8395_v12 }
  0x50   : > { %7254 = vmatprep.subr.msk.bf16.mxu0 %vm7253_vm14, %v11685_v13  ;;  %vm7509_vm1 = vmpackc.low %vm1545_vm10, %vm1543_vm9  ;;  %vm474_vm9 = vcmp.eq.s32.totalorder %v8790_v43, %v8392_v11  ;;  %vm477_vm14 = vcmp.eq.s32.totalorder %v8813_v44, %v8386_v9 }
  0x51   : > { %7510 = vmatprep.subr.msk.bf16.mxu1 %vm7509_vm1, %v11685_v13  ;;  %vm7255_vm4 = vmpackc.low %vm470_vm13, %vm468_vm12  ;;  %vm1548_vm12 = vcmp.eq.s32.totalorder %v8790_v43, %v8395_v12  ;;  %vm1551_vm1 = vcmp.eq.s32.totalorder %v8813_v44, %v8389_v10 }
  0x52   : > { %7256 = vmatpush1.bf16.msk.msra.mxu0 %vm7255_vm4, %v11685_v13  ;;  %vm7511_vm7 = vmpackc.low %vm1544_vm0, %vm1542_vm15  ;;  %vm479_vm15 = vcmp.eq.s32.totalorder %v8816_v45, %v8386_v9  ;;  %vm476_vm4 = vcmp.eq.s32.totalorder %v8813_v44, %v8392_v11 }
  0x53   : > { %7512 = vmatpush1.bf16.msk.msra.mxu1 %vm7511_vm7, %v11685_v13  ;;  %vm7257_vm10 = vmpackc.low %vm475_vm3, %vm473_vm2  ;;  %vm1553_vm2 = vcmp.eq.s32.totalorder %v8816_v45, %v8389_v10  ;;  %vm1550_vm7 = vcmp.eq.s32.totalorder %v8813_v44, %v8395_v12 }
  0x54   : > { %7258 = vmatprep.subr.msk.bf16.mxu0 %vm7257_vm10, %v11685_v13  ;;  %vm7513_vm13 = vmpackc.low %vm1549_vm6, %vm1547_vm5  ;;  %vm478_vm5 = vcmp.eq.s32.totalorder %v8816_v45, %v8392_v11  ;;  %vm481_vm10 = vcmp.eq.s32.totalorder %v8839_v46, %v8386_v9 }
  0x55   : > { %7514 = vmatprep.subr.msk.bf16.mxu1 %vm7513_vm13, %v11685_v13  ;;  %vm7259_vm0 = vmpackc.low %vm474_vm9, %vm472_vm8  ;;  %vm1552_vm8 = vcmp.eq.s32.totalorder %v8816_v45, %v8395_v12  ;;  %vm1555_vm13 = vcmp.eq.s32.totalorder %v8839_v46, %v8389_v10 }
  0x56   : > { %7260 = vmatpush1.bf16.msk.msra.mxu0 %vm7259_vm0, %v11685_v13  ;;  %vm7515_vm3 = vmpackc.low %vm1548_vm12, %vm1546_vm11  ;;  %vm483_vm11 = vcmp.eq.s32.totalorder %v8842_v47, %v8386_v9  ;;  %vm480_vm0 = vcmp.eq.s32.totalorder %v8839_v46, %v8392_v11 }
  0x57   : > { %7516 = vmatpush1.bf16.msk.msra.mxu1 %vm7515_vm3, %v11685_v13  ;;  %vm7261_vm6 = vmpackc.low %vm479_vm15, %vm477_vm14  ;;  %vm1557_vm14 = vcmp.eq.s32.totalorder %v8842_v47, %v8389_v10  ;;  %vm1554_vm3 = vcmp.eq.s32.totalorder %v8839_v46, %v8395_v12 }
  0x58   : > { %7262 = vmatprep.subr.msk.bf16.mxu0 %vm7261_vm6, %v11685_v13  ;;  %vm7517_vm9 = vmpackc.low %vm1553_vm2, %vm1551_vm1  ;;  %vm482_vm1 = vcmp.eq.s32.totalorder %v8842_v47, %v8392_v11  ;;  %vm485_vm6 = vcmp.eq.s32.totalorder %v8865_v48, %v8386_v9 }
  0x59   : > { %7518 = vmatprep.subr.msk.bf16.mxu1 %vm7517_vm9, %v11685_v13  ;;  %1257 = vmatmul.mubr.f32.vlgmr.msra.gmra.mrb[0].mxu0 %v8634_v30  ;;  %vm7263_vm12 = vmpackc.low %vm478_vm5, %vm476_vm4  ;;  %vm1556_vm4 = vcmp.eq.s32.totalorder %v8842_v47, %v8395_v12  ;;  %vm1559_vm9 = vcmp.eq.s32.totalorder %v8865_v48, %v8389_v10 }
  0x5a   : > { %7264 = vmatpush1.bf16.msk.msra.mxu0 %vm7263_vm12, %v11685_v13  ;;  %2319 = vmatmul.mubr.f32.vlgmr.msra.gmra.mrb[0].mxu1 %v8634_v30  ;;  %vm7519_vm15 = vmpackc.low %vm1552_vm8, %vm1550_vm7  ;;  %vm487_vm7 = vcmp.eq.s32.totalorder %v8868_v49, %v8386_v9  ;;  %vm484_vm12 = vcmp.eq.s32.totalorder %v8865_v48, %v8392_v11  ;;  %v9099_v30 = vadd.s32 424, %v8368_v2 }
  0x5b   : > { %7520 = vmatpush1.bf16.msk.msra.mxu1 %vm7519_vm15, %v11685_v13  ;;  %vm7265_vm2 = vmpackc.low %vm483_vm11, %vm481_vm10  ;;  %vm1561_vm10 = vcmp.eq.s32.totalorder %v8868_v49, %v8389_v10  ;;  %vm1558_vm15 = vcmp.eq.s32.totalorder %v8865_v48, %v8395_v12  ;;  %1327 = vmatprep.mubr.f32.mxu0 %v8935_v55 }
  0x5c   : > { %7266 = vmatprep.subr.msk.bf16.mxu0 %vm7265_vm2, %v11685_v13  ;;  %vm7521_vm5 = vmpackc.low %vm1557_vm14, %vm1555_vm13  ;;  %vm486_vm13 = vcmp.eq.s32.totalorder %v8868_v49, %v8392_v11  ;;  %vm489_vm2 = vcmp.eq.s32.totalorder %v8899_v50, %v8386_v9  ;;  %2389 = vmatprep.mubr.f32.mxu1 %v8935_v55  ;;  %11782 = vst [vmem:[#allocation11_spill] sm:$0xff] %v9099_v30 }
  0x5d   : > { %7522 = vmatprep.subr.msk.bf16.mxu1 %vm7521_vm5, %v11685_v13  ;;  %vm7267_vm8 = vmpackc.low %vm482_vm1, %vm480_vm0  ;;  %vm1560_vm0 = vcmp.eq.s32.totalorder %v8868_v49, %v8395_v12  ;;  %vm1563_vm5 = vcmp.eq.s32.totalorder %v8899_v50, %v8389_v10 }
  0x5e   : > { %7268 = vmatpush1.bf16.msk.msra.mxu0 %vm7267_vm8, %v11685_v13  ;;  %vm7523_vm11 = vmpackc.low %vm1556_vm4, %vm1554_vm3  ;;  %vm491_vm3 = vcmp.eq.s32.totalorder %v8902_v51, %v8386_v9  ;;  %vm488_vm8 = vcmp.eq.s32.totalorder %v8899_v50, %v8392_v11 }
  0x5f   : > { %7524 = vmatpush1.bf16.msk.msra.mxu1 %vm7523_vm11, %v11685_v13  ;;  %vm7269_vm14 = vmpackc.low %vm487_vm7, %vm485_vm6  ;;  %vm1565_vm6 = vcmp.eq.s32.totalorder %v8902_v51, %v8389_v10  ;;  %vm1562_vm11 = vcmp.eq.s32.totalorder %v8899_v50, %v8395_v12 }
  0x60   : > { %7270 = vmatprep.subr.msk.bf16.mxu0 %vm7269_vm14, %v11685_v13  ;;  %vm7525_vm1 = vmpackc.low %vm1561_vm10, %vm1559_vm9  ;;  %vm490_vm9 = vcmp.eq.s32.totalorder %v8902_v51, %v8392_v11  ;;  %vm493_vm14 = vcmp.eq.s32.totalorder %v8923_v53, %v8386_v9 }
  0x61   : > { %7526 = vmatprep.subr.msk.bf16.mxu1 %vm7525_vm1, %v11685_v13  ;;  %vm7271_vm4 = vmpackc.low %vm486_vm13, %vm484_vm12  ;;  %vm1564_vm12 = vcmp.eq.s32.totalorder %v8902_v51, %v8395_v12  ;;  %vm1567_vm1 = vcmp.eq.s32.totalorder %v8923_v53, %v8389_v10 }
  0x62   : > { %7272 = vmatpush1.bf16.msk.msra.mxu0 %vm7271_vm4, %v11685_v13  ;;  %vm7527_vm7 = vmpackc.low %vm1560_vm0, %vm1558_vm15  ;;  %vm495_vm15 = vcmp.eq.s32.totalorder %v8931_v54, %v8386_v9  ;;  %vm492_vm4 = vcmp.eq.s32.totalorder %v8923_v53, %v8392_v11 }
  0x63   : > { %7528 = vmatpush1.bf16.msk.msra.mxu1 %vm7527_vm7, %v11685_v13  ;;  %vm7273_vm10 = vmpackc.low %vm491_vm3, %vm489_vm2  ;;  %vm1569_vm2 = vcmp.eq.s32.totalorder %v8931_v54, %v8389_v10  ;;  %vm1566_vm7 = vcmp.eq.s32.totalorder %v8923_v53, %v8395_v12 }
  0x64   : > { %7274 = vmatprep.subr.msk.bf16.mxu0 %vm7273_vm10, %v11685_v13  ;;  %vm7529_vm13 = vmpackc.low %vm1565_vm6, %vm1563_vm5  ;;  %vm494_vm5 = vcmp.eq.s32.totalorder %v8931_v54, %v8392_v11  ;;  %vm497_vm10 = vcmp.eq.s32.totalorder %v8958_v56, %v8386_v9 }
  0x65   : > { %7530 = vmatprep.subr.msk.bf16.mxu1 %vm7529_vm13, %v11685_v13  ;;  %vm7275_vm0 = vmpackc.low %vm490_vm9, %vm488_vm8  ;;  %vm1568_vm8 = vcmp.eq.s32.totalorder %v8931_v54, %v8395_v12  ;;  %vm1571_vm13 = vcmp.eq.s32.totalorder %v8958_v56, %v8389_v10 }
  0x66   : > { %7276 = vmatpush1.bf16.msk.msra.mxu0 %vm7275_vm0, %v11685_v13  ;;  %vm7531_vm3 = vmpackc.low %vm1564_vm12, %vm1562_vm11  ;;  %vm499_vm11 = vcmp.eq.s32.totalorder %v8961_v57, %v8386_v9  ;;  %vm496_vm0 = vcmp.eq.s32.totalorder %v8958_v56, %v8392_v11 }
  0x67   : > { %7532 = vmatpush1.bf16.msk.msra.mxu1 %vm7531_vm3, %v11685_v13  ;;  %vm7277_vm6 = vmpackc.low %vm495_vm15, %vm493_vm14  ;;  %vm1573_vm14 = vcmp.eq.s32.totalorder %v8961_v57, %v8389_v10  ;;  %vm1570_vm3 = vcmp.eq.s32.totalorder %v8958_v56, %v8395_v12 }
  0x68   : > { %7278 = vmatprep.subr.msk.bf16.mxu0 %vm7277_vm6, %v11685_v13  ;;  %vm7533_vm9 = vmpackc.low %vm1569_vm2, %vm1567_vm1  ;;  %vm498_vm1 = vcmp.eq.s32.totalorder %v8961_v57, %v8392_v11  ;;  %vm501_vm6 = vcmp.eq.s32.totalorder %v8992_v58, %v8386_v9 }
  0x69   : > { %7534 = vmatprep.subr.msk.bf16.mxu1 %vm7533_vm9, %v11685_v13  ;;  %vm7279_vm12 = vmpackc.low %vm494_vm5, %vm492_vm4  ;;  %vm1572_vm4 = vcmp.eq.s32.totalorder %v8961_v57, %v8395_v12  ;;  %vm1575_vm9 = vcmp.eq.s32.totalorder %v8992_v58, %v8389_v10 }
  0x6a   : > { %7280 = vmatpush1.bf16.msk.msra.mxu0 %vm7279_vm12, %v11685_v13  ;;  %vm7535_vm15 = vmpackc.low %vm1568_vm8, %vm1566_vm7  ;;  %vm503_vm7 = vcmp.eq.s32.totalorder %v8995_v59, %v8386_v9  ;;  %vm500_vm12 = vcmp.eq.s32.totalorder %v8992_v58, %v8392_v11 }
  0x6b   : > { %7536 = vmatpush1.bf16.msk.msra.mxu1 %vm7535_vm15, %v11685_v13  ;;  %vm7281_vm2 = vmpackc.low %vm499_vm11, %vm497_vm10  ;;  %vm1577_vm10 = vcmp.eq.s32.totalorder %v8995_v59, %v8389_v10  ;;  %vm1574_vm15 = vcmp.eq.s32.totalorder %v8992_v58, %v8395_v12 }
  0x6c   : > { %7282 = vmatprep.subr.msk.bf16.mxu0 %vm7281_vm2, %v11685_v13  ;;  %vm7537_vm5 = vmpackc.low %vm1573_vm14, %vm1571_vm13  ;;  %vm502_vm13 = vcmp.eq.s32.totalorder %v8995_v59, %v8392_v11  ;;  %vm505_vm2 = vcmp.eq.s32.totalorder %v9018_v60, %v8386_v9 }
  0x6d   : > { %7538 = vmatprep.subr.msk.bf16.mxu1 %vm7537_vm5, %v11685_v13  ;;  %vm7283_vm8 = vmpackc.low %vm498_vm1, %vm496_vm0  ;;  %vm1576_vm0 = vcmp.eq.s32.totalorder %v8995_v59, %v8395_v12  ;;  %vm1579_vm5 = vcmp.eq.s32.totalorder %v9018_v60, %v8389_v10 }
  0x6e   : > { %7284 = vmatpush1.bf16.msk.msra.mxu0 %vm7283_vm8, %v11685_v13  ;;  %vm7539_vm11 = vmpackc.low %vm1572_vm4, %vm1570_vm3  ;;  %vm507_vm3 = vcmp.eq.s32.totalorder %v9021_v61, %v8386_v9  ;;  %vm504_vm8 = vcmp.eq.s32.totalorder %v9018_v60, %v8392_v11 }
  0x6f   : > { %7540 = vmatpush1.bf16.msk.msra.mxu1 %vm7539_vm11, %v11685_v13  ;;  %vm7285_vm14 = vmpackc.low %vm503_vm7, %vm501_vm6  ;;  %vm1581_vm6 = vcmp.eq.s32.totalorder %v9021_v61, %v8389_v10  ;;  %vm1578_vm11 = vcmp.eq.s32.totalorder %v9018_v60, %v8395_v12  ;;  %v9314_v60 = vadd.s32 552, %v8368_v2 }
  0x70   : > { %7286 = vmatprep.subr.msk.bf16.mxu0 %vm7285_vm14, %v11685_v13  ;;  %vm7541_vm1 = vmpackc.low %vm1577_vm10, %vm1575_vm9  ;;  %vm506_vm9 = vcmp.eq.s32.totalorder %v9021_v61, %v8392_v11  ;;  %vm509_vm14 = vcmp.eq.s32.totalorder %v9044_v62, %v8386_v9 }
  0x71   : > { %7542 = vmatprep.subr.msk.bf16.mxu1 %vm7541_vm1, %v11685_v13  ;;  %vm7287_vm4 = vmpackc.low %vm502_vm13, %vm500_vm12  ;;  %vm1580_vm12 = vcmp.eq.s32.totalorder %v9021_v61, %v8395_v12  ;;  %vm1583_vm1 = vcmp.eq.s32.totalorder %v9044_v62, %v8389_v10  ;;  %v9284_v61 = vld [vmem:[%s8616_s24 + $0x10] sm:$0xff]  ;;  %11799 = vst [vmem:[#allocation28_spill] sm:$0xff] %v9314_v60 }
  0x72   : > { %7288 = vmatpush1.bf16.msk.msra.mxu0 %vm7287_vm4, %v11685_v13  ;;  %vm7543_vm7 = vmpackc.low %vm1576_vm0, %vm1574_vm15  ;;  %vm511_vm15 = vcmp.eq.s32.totalorder %v9047_v63, %v8386_v9  ;;  %vm508_vm4 = vcmp.eq.s32.totalorder %v9044_v62, %v8392_v11 }
  0x73   : > { %7544 = vmatpush1.bf16.msk.msra.mxu1 %vm7543_vm7, %v11685_v13  ;;  %vm7289_vm10 = vmpackc.low %vm507_vm3, %vm505_vm2  ;;  %vm1585_vm2 = vcmp.eq.s32.totalorder %v9047_v63, %v8389_v10  ;;  %vm1582_vm7 = vcmp.eq.s32.totalorder %v9044_v62, %v8395_v12  ;;  %v9125_v62 = vadd.s32 440, %v8368_v2 }
  0x74   : > { %7290 = vmatprep.subr.msk.bf16.mxu0 %vm7289_vm10, %v11685_v13  ;;  %vm7545_vm13 = vmpackc.low %vm1581_vm6, %vm1579_vm5  ;;  %vm510_vm5 = vcmp.eq.s32.totalorder %v9047_v63, %v8392_v11  ;;  %vm513_vm10 = vcmp.eq.s32.totalorder %v9070_v0, %v8386_v9 }
  0x75   : > { %7546 = vmatprep.subr.msk.bf16.mxu1 %vm7545_vm13, %v11685_v13  ;;  %vm7291_vm0 = vmpackc.low %vm506_vm9, %vm504_vm8  ;;  %vm1584_vm8 = vcmp.eq.s32.totalorder %v9047_v63, %v8395_v12  ;;  %vm1587_vm13 = vcmp.eq.s32.totalorder %v9070_v0, %v8389_v10  ;;  %v9122_v63 = vadd.s32 432, %v8368_v2  ;;  %11784 = vst [vmem:[#allocation13_spill] sm:$0xff] %v9125_v62 }
  0x76   : > { %7292 = vmatpush1.bf16.msk.msra.mxu0 %vm7291_vm0, %v11685_v13  ;;  %vm7547_vm3 = vmpackc.low %vm1580_vm12, %vm1578_vm11  ;;  %vm515_vm11 = vcmp.eq.s32.totalorder %v9073_v1, %v8386_v9  ;;  %vm512_vm0 = vcmp.eq.s32.totalorder %v9070_v0, %v8392_v11 }
  0x77   : > { %7548 = vmatpush1.bf16.msk.msra.mxu1 %vm7547_vm3, %v11685_v13  ;;  %vm7293_vm6 = vmpackc.low %vm511_vm15, %vm509_vm14  ;;  %vm1589_vm14 = vcmp.eq.s32.totalorder %v9073_v1, %v8389_v10  ;;  %vm1586_vm3 = vcmp.eq.s32.totalorder %v9070_v0, %v8395_v12  ;;  %11783 = vst [vmem:[#allocation12_spill] sm:$0xff] %v9122_v63  ;;  %v9151_v0 = vadd.s32 456, %v8368_v2 }
  0x78   : > { %7294 = vmatprep.subr.msk.bf16.mxu0 %vm7293_vm6, %v11685_v13  ;;  %vm7549_vm9 = vmpackc.low %vm1585_vm2, %vm1583_vm1  ;;  %vm514_vm1 = vcmp.eq.s32.totalorder %v9073_v1, %v8392_v11  ;;  %vm517_vm6 = vcmp.eq.s32.totalorder %v9096_v3, %v8386_v9 }
  0x79   : > { %7550 = vmatprep.subr.msk.bf16.mxu1 %vm7549_vm9, %v11685_v13  ;;  %vm7295_vm12 = vmpackc.low %vm510_vm5, %vm508_vm4  ;;  %vm1588_vm4 = vcmp.eq.s32.totalorder %v9073_v1, %v8395_v12  ;;  %vm1591_vm9 = vcmp.eq.s32.totalorder %v9096_v3, %v8389_v10  ;;  %v9148_v1 = vadd.s32 448, %v8368_v2  ;;  %11786 = vst [vmem:[#allocation15_spill] sm:$0xff] %v9151_v0 }
  0x7a   : > { %7296 = vmatpush1.bf16.msk.msra.mxu0 %vm7295_vm12, %v11685_v13  ;;  %vm7551_vm15 = vmpackc.low %vm1584_vm8, %vm1582_vm7  ;;  %vm519_vm7 = vcmp.eq.s32.totalorder %v9099_v30, %v8386_v9  ;;  %vm516_vm12 = vcmp.eq.s32.totalorder %v9096_v3, %v8392_v11 }
  0x7b   : > { %7552 = vmatpush1.bf16.msk.msra.mxu1 %vm7551_vm15, %v11685_v13  ;;  %vm7297_vm2 = vmpackc.low %vm515_vm11, %vm513_vm10  ;;  %vm1593_vm10 = vcmp.eq.s32.totalorder %v9099_v30, %v8389_v10  ;;  %vm1590_vm15 = vcmp.eq.s32.totalorder %v9096_v3, %v8395_v12  ;;  %11785 = vst [vmem:[#allocation14_spill] sm:$0xff] %v9148_v1  ;;  %v9177_v3 = vadd.s32 472, %v8368_v2 }
  0x7c   : > { %7298 = vmatprep.subr.msk.bf16.mxu0 %vm7297_vm2, %v11685_v13  ;;  %vm7553_vm5 = vmpackc.low %vm1589_vm14, %vm1587_vm13  ;;  %vm518_vm13 = vcmp.eq.s32.totalorder %v9099_v30, %v8392_v11  ;;  %vm521_vm2 = vcmp.eq.s32.totalorder %v9122_v63, %v8386_v9 }
  0x7d   : > { %7554 = vmatprep.subr.msk.bf16.mxu1 %vm7553_vm5, %v11685_v13  ;;  %vm7299_vm8 = vmpackc.low %vm514_vm1, %vm512_vm0  ;;  %vm1592_vm0 = vcmp.eq.s32.totalorder %v9099_v30, %v8395_v12  ;;  %vm1595_vm5 = vcmp.eq.s32.totalorder %v9122_v63, %v8389_v10  ;;  %v9174_v30 = vadd.s32 464, %v8368_v2  ;;  %11788 = vst [vmem:[#allocation17_spill] sm:$0xff] %v9177_v3 }
  0x7e   : > { %7300 = vmatpush1.bf16.msk.msra.mxu0 %vm7299_vm8, %v11685_v13  ;;  %vm7555_vm11 = vmpackc.low %vm1588_vm4, %vm1586_vm3  ;;  %vm523_vm3 = vcmp.eq.s32.totalorder %v9125_v62, %v8386_v9  ;;  %vm520_vm8 = vcmp.eq.s32.totalorder %v9122_v63, %v8392_v11 }
  0x7f   : > { %7556 = vmatpush1.bf16.msk.msra.mxu1 %vm7555_vm11, %v11685_v13  ;;  %vm7301_vm14 = vmpackc.low %vm519_vm7, %vm517_vm6  ;;  %vm1597_vm6 = vcmp.eq.s32.totalorder %v9125_v62, %v8389_v10  ;;  %vm1594_vm11 = vcmp.eq.s32.totalorder %v9122_v63, %v8395_v12  ;;  %11787 = vst [vmem:[#allocation16_spill] sm:$0xff] %v9174_v30  ;;  %v9203_v63 = vadd.s32 488, %v8368_v2 }
  0x80   : > { %7302 = vmatprep.subr.msk.bf16.mxu0 %vm7301_vm14, %v11685_v13  ;;  %vm7557_vm1 = vmpackc.low %vm1593_vm10, %vm1591_vm9  ;;  %vm522_vm9 = vcmp.eq.s32.totalorder %v9125_v62, %v8392_v11  ;;  %vm525_vm14 = vcmp.eq.s32.totalorder %v9148_v1, %v8386_v9 }
  0x81   : > { %7558 = vmatprep.subr.msk.bf16.mxu1 %vm7557_vm1, %v11685_v13  ;;  %vm7303_vm4 = vmpackc.low %vm518_vm13, %vm516_vm12  ;;  %vm1596_vm12 = vcmp.eq.s32.totalorder %v9125_v62, %v8395_v12  ;;  %vm1599_vm1 = vcmp.eq.s32.totalorder %v9148_v1, %v8389_v10  ;;  %v9200_v62 = vadd.s32 480, %v8368_v2  ;;  %11790 = vst [vmem:[#allocation19_spill] sm:$0xff] %v9203_v63 }
  0x82   : > { %7304 = vmatpush1.bf16.msk.msra.mxu0 %vm7303_vm4, %v11685_v13  ;;  %vm7559_vm7 = vmpackc.low %vm1592_vm0, %vm1590_vm15  ;;  %vm527_vm15 = vcmp.eq.s32.totalorder %v9151_v0, %v8386_v9  ;;  %vm524_vm4 = vcmp.eq.s32.totalorder %v9148_v1, %v8392_v11 }
  0x83   : > { %7560 = vmatpush1.bf16.msk.msra.mxu1 %vm7559_vm7, %v11685_v13  ;;  %vm7305_vm10 = vmpackc.low %vm523_vm3, %vm521_vm2  ;;  %vm1601_vm2 = vcmp.eq.s32.totalorder %v9151_v0, %v8389_v10  ;;  %vm1598_vm7 = vcmp.eq.s32.totalorder %v9148_v1, %v8395_v12  ;;  %11789 = vst [vmem:[#allocation18_spill] sm:$0xff] %v9200_v62  ;;  %v9229_v1 = vadd.s32 504, %v8368_v2 }
  0x84   : > { %7306 = vmatprep.subr.msk.bf16.mxu0 %vm7305_vm10, %v11685_v13  ;;  %vm7561_vm13 = vmpackc.low %vm1597_vm6, %vm1595_vm5  ;;  %vm526_vm5 = vcmp.eq.s32.totalorder %v9151_v0, %v8392_v11  ;;  %vm529_vm10 = vcmp.eq.s32.totalorder %v9174_v30, %v8386_v9 }
  0x85   : > { %7562 = vmatprep.subr.msk.bf16.mxu1 %vm7561_vm13, %v11685_v13  ;;  %vm7307_vm0 = vmpackc.low %vm522_vm9, %vm520_vm8  ;;  %vm1600_vm8 = vcmp.eq.s32.totalorder %v9151_v0, %v8395_v12  ;;  %vm1603_vm13 = vcmp.eq.s32.totalorder %v9174_v30, %v8389_v10  ;;  %v9226_v0 = vadd.s32 496, %v8368_v2  ;;  %11792 = vst [vmem:[#allocation21_spill] sm:$0xff] %v9229_v1 }
  0x86   : > { %7308 = vmatpush1.bf16.msk.msra.mxu0 %vm7307_vm0, %v11685_v13  ;;  %vm7563_vm3 = vmpackc.low %vm1596_vm12, %vm1594_vm11  ;;  %vm531_vm11 = vcmp.eq.s32.totalorder %v9177_v3, %v8386_v9  ;;  %vm528_vm0 = vcmp.eq.s32.totalorder %v9174_v30, %v8392_v11 }
  0x87   : > { %7564 = vmatpush1.bf16.msk.msra.mxu1 %vm7563_vm3, %v11685_v13  ;;  %vm7309_vm6 = vmpackc.low %vm527_vm15, %vm525_vm14  ;;  %vm1605_vm14 = vcmp.eq.s32.totalorder %v9177_v3, %v8389_v10  ;;  %vm1602_vm3 = vcmp.eq.s32.totalorder %v9174_v30, %v8395_v12  ;;  %11791 = vst [vmem:[#allocation20_spill] sm:$0xff] %v9226_v0  ;;  %v9255_v30 = vadd.s32 520, %v8368_v2 }
  0x88   : > { %7310 = vmatprep.subr.msk.bf16.mxu0 %vm7309_vm6, %v11685_v13  ;;  %vm7565_vm9 = vmpackc.low %vm1601_vm2, %vm1599_vm1  ;;  %vm530_vm1 = vcmp.eq.s32.totalorder %v9177_v3, %v8392_v11  ;;  %vm533_vm6 = vcmp.eq.s32.totalorder %v9200_v62, %v8386_v9 }
  0x89   : > { %7566 = vmatprep.subr.msk.bf16.mxu1 %vm7565_vm9, %v11685_v13  ;;  %vm7311_vm12 = vmpackc.low %vm526_vm5, %vm524_vm4  ;;  %vm1604_vm4 = vcmp.eq.s32.totalorder %v9177_v3, %v8395_v12  ;;  %vm1607_vm9 = vcmp.eq.s32.totalorder %v9200_v62, %v8389_v10  ;;  %v9252_v3 = vadd.s32 512, %v8368_v2  ;;  %11794 = vst [vmem:[#allocation23_spill] sm:$0xff] %v9255_v30 }
  0x8a   : > { %7312 = vmatpush1.bf16.msk.msra.mxu0 %vm7311_vm12, %v11685_v13  ;;  %vm7567_vm15 = vmpackc.low %vm1600_vm8, %vm1598_vm7  ;;  %vm535_vm7 = vcmp.eq.s32.totalorder %v9203_v63, %v8386_v9  ;;  %vm532_vm12 = vcmp.eq.s32.totalorder %v9200_v62, %v8392_v11 }
  0x8b   : > { %7568 = vmatpush1.bf16.msk.msra.mxu1 %vm7567_vm15, %v11685_v13  ;;  %vm7313_vm2 = vmpackc.low %vm531_vm11, %vm529_vm10  ;;  %vm1609_vm10 = vcmp.eq.s32.totalorder %v9203_v63, %v8389_v10  ;;  %vm1606_vm15 = vcmp.eq.s32.totalorder %v9200_v62, %v8395_v12  ;;  %11793 = vst [vmem:[#allocation22_spill] sm:$0xff] %v9252_v3  ;;  %v9281_v62 = vadd.s32 536, %v8368_v2 }
  0x8c   : > { %7314 = vmatprep.subr.msk.bf16.mxu0 %vm7313_vm2, %v11685_v13  ;;  %vm7569_vm5 = vmpackc.low %vm1605_vm14, %vm1603_vm13  ;;  %vm534_vm13 = vcmp.eq.s32.totalorder %v9203_v63, %v8392_v11  ;;  %vm537_vm2 = vcmp.eq.s32.totalorder %v9226_v0, %v8386_v9 }
  0x8d   : > { %7570 = vmatprep.subr.msk.bf16.mxu1 %vm7569_vm5, %v11685_v13  ;;  %vm7315_vm8 = vmpackc.low %vm530_vm1, %vm528_vm0  ;;  %vm1608_vm0 = vcmp.eq.s32.totalorder %v9203_v63, %v8395_v12  ;;  %vm1611_vm5 = vcmp.eq.s32.totalorder %v9226_v0, %v8389_v10  ;;  %v9278_v63 = vadd.s32 528, %v8368_v2  ;;  %11796 = vst [vmem:[#allocation25_spill] sm:$0xff] %v9281_v62 }
  0x8e   : > { %7316 = vmatpush1.bf16.msk.msra.mxu0 %vm7315_vm8, %v11685_v13  ;;  %vm7571_vm11 = vmpackc.low %vm1604_vm4, %vm1602_vm3  ;;  %vm539_vm3 = vcmp.eq.s32.totalorder %v9229_v1, %v8386_v9  ;;  %vm536_vm8 = vcmp.eq.s32.totalorder %v9226_v0, %v8392_v11 }
  0x8f   : > { %7572 = vmatpush1.bf16.msk.msra.mxu1 %vm7571_vm11, %v11685_v13  ;;  %vm7317_vm14 = vmpackc.low %vm535_vm7, %vm533_vm6  ;;  %vm1613_vm6 = vcmp.eq.s32.totalorder %v9229_v1, %v8389_v10  ;;  %vm1610_vm11 = vcmp.eq.s32.totalorder %v9226_v0, %v8395_v12  ;;  %11795 = vst [vmem:[#allocation24_spill] sm:$0xff] %v9278_v63  ;;  %v9311_v0 = vadd.s32 544, %v8368_v2 }
  0x90   : > { %7318 = vmatprep.subr.msk.bf16.mxu0 %vm7317_vm14, %v11685_v13  ;;  %vm7573_vm1 = vmpackc.low %vm1609_vm10, %vm1607_vm9  ;;  %vm538_vm9 = vcmp.eq.s32.totalorder %v9229_v1, %v8392_v11  ;;  %vm541_vm14 = vcmp.eq.s32.totalorder %v9252_v3, %v8386_v9 }
  0x91   : > { %7574 = vmatprep.subr.msk.bf16.mxu1 %vm7573_vm1, %v11685_v13  ;;  %vm7319_vm4 = vmpackc.low %vm534_vm13, %vm532_vm12  ;;  %vm1612_vm12 = vcmp.eq.s32.totalorder %v9229_v1, %v8395_v12  ;;  %vm1615_vm1 = vcmp.eq.s32.totalorder %v9252_v3, %v8389_v10  ;;  %v9303_v1 = vcombine.high %v9284_v61, %v9284_v61  ;;  %11798 = vst [vmem:[#allocation27_spill] sm:$0xff] %v9311_v0 }
  0x92   : > { %7320 = vmatpush1.bf16.msk.msra.mxu0 %vm7319_vm4, %v11685_v13  ;;  %vm7575_vm7 = vmpackc.low %vm1608_vm0, %vm1606_vm15  ;;  %vm543_vm15 = vcmp.eq.s32.totalorder %v9255_v30, %v8386_v9  ;;  %vm540_vm4 = vcmp.eq.s32.totalorder %v9252_v3, %v8392_v11 }
  0x93   : > { %7576 = vmatpush1.bf16.msk.msra.mxu1 %vm7575_vm7, %v11685_v13  ;;  %vm7321_vm10 = vmpackc.low %vm539_vm3, %vm537_vm2  ;;  %vm1617_vm2 = vcmp.eq.s32.totalorder %v9255_v30, %v8389_v10  ;;  %vm1614_vm7 = vcmp.eq.s32.totalorder %v9252_v3, %v8395_v12  ;;  %11797 = vst [vmem:[#allocation26_spill] sm:$0xff] %v9303_v1  ;;  %v9759_v3 = vadd.s32 808, %v8368_v2 }
  0x94   : > { %7322 = vmatprep.subr.msk.bf16.mxu0 %vm7321_vm10, %v11685_v13  ;;  %vm7577_vm13 = vmpackc.low %vm1613_vm6, %vm1611_vm5  ;;  %vm542_vm5 = vcmp.eq.s32.totalorder %v9255_v30, %v8392_v11  ;;  %vm545_vm10 = vcmp.eq.s32.totalorder %v9278_v63, %v8386_v9 }
  0x95   : > { %7578 = vmatprep.subr.msk.bf16.mxu1 %vm7577_vm13, %v11685_v13  ;;  %vm7323_vm0 = vmpackc.low %vm538_vm9, %vm536_vm8  ;;  %vm1616_vm8 = vcmp.eq.s32.totalorder %v9255_v30, %v8395_v12  ;;  %vm1619_vm13 = vcmp.eq.s32.totalorder %v9278_v63, %v8389_v10  ;;  %v9355_v30 = vadd.s32 568, %v8368_v2  ;;  %11832 = vst [vmem:[#allocation61_spill] sm:$0xff] %v9759_v3 }
  0x96   : > { %7324 = vmatpush1.bf16.msk.msra.mxu0 %vm7323_vm0, %v11685_v13  ;;  %vm7579_vm3 = vmpackc.low %vm1612_vm12, %vm1610_vm11  ;;  %vm547_vm11 = vcmp.eq.s32.totalorder %v9281_v62, %v8386_v9  ;;  %vm544_vm0 = vcmp.eq.s32.totalorder %v9278_v63, %v8392_v11 }
  0x97   : > { %7580 = vmatpush1.bf16.msk.msra.mxu1 %vm7579_vm3, %v11685_v13  ;;  %vm7325_vm6 = vmpackc.low %vm543_vm15, %vm541_vm14  ;;  %vm1621_vm14 = vcmp.eq.s32.totalorder %v9281_v62, %v8389_v10  ;;  %vm1618_vm3 = vcmp.eq.s32.totalorder %v9278_v63, %v8395_v12  ;;  %11801 = vst [vmem:[#allocation30_spill] sm:$0xff] %v9355_v30  ;;  %v9729_v63 = vld [vmem:[%s8616_s24 + $0x18] sm:$0xff] }
  0x98   : > { %7326 = vmatprep.subr.msk.bf16.mxu0 %vm7325_vm6, %v11685_v13  ;;  %vm7581_vm9 = vmpackc.low %vm1617_vm2, %vm1615_vm1  ;;  %vm546_vm1 = vcmp.eq.s32.totalorder %v9281_v62, %v8392_v11  ;;  %vm549_vm6 = vcmp.eq.s32.totalorder %v9311_v0, %v8386_v9 }
  0x99   : > { %7582 = vmatprep.subr.msk.bf16.mxu1 %vm7581_vm9, %v11685_v13  ;;  %1328 = vmatmul.mubr.f32.vlgmr.msra.gmra.mrb[0].mxu0 %v8910_v52  ;;  %vm7327_vm12 = vmpackc.low %vm542_vm5, %vm540_vm4  ;;  %vm1620_vm4 = vcmp.eq.s32.totalorder %v9281_v62, %v8395_v12  ;;  %vm1623_vm9 = vcmp.eq.s32.totalorder %v9311_v0, %v8389_v10  ;;  %v9388_v62 = vadd.s32 584, %v8368_v2 }
  0x9a   : > { %7328 = vmatpush1.bf16.msk.msra.mxu0 %vm7327_vm12, %v11685_v13  ;;  %2390 = vmatmul.mubr.f32.vlgmr.msra.gmra.mrb[0].mxu1 %v8910_v52  ;;  %vm7583_vm15 = vmpackc.low %vm1616_vm8, %vm1614_vm7  ;;  %vm551_vm7 = vcmp.eq.s32.totalorder %v9314_v60, %v8386_v9  ;;  %v9352_v52 = vadd.s32 560, %v8368_v2  ;;  %vm548_vm12 = vcmp.eq.s32.totalorder %v9311_v0, %v8392_v11 }
  0x9b   : > { %7584 = vmatpush1.bf16.msk.msra.mxu1 %vm7583_vm15, %v11685_v13  ;;  %vm7329_vm2 = vmpackc.low %vm547_vm11, %vm545_vm10  ;;  %1398 = vmatprep.mubr.f32.mxu0 %v9303_v1  ;;  %vm1625_vm10 = vcmp.eq.s32.totalorder %v9314_v60, %v8389_v10  ;;  %vm1622_vm15 = vcmp.eq.s32.totalorder %v9311_v0, %v8395_v12  ;;  %11803 = vst [vmem:[#allocation32_spill] sm:$0xff] %v9388_v62  ;;  %v9414_v0 = vadd.s32 600, %v8368_v2 }
  0x9c   : > { %7330 = vmatprep.subr.msk.bf16.mxu0 %vm7329_vm2, %v11685_v13  ;;  %vm7585_vm5 = vmpackc.low %vm1621_vm14, %vm1619_vm13  ;;  %11800 = vst [vmem:[#allocation29_spill] sm:$0xff] %v9352_v52  ;;  %2460 = vmatprep.mubr.f32.mxu1 %v9303_v1  ;;  %vm550_vm13 = vcmp.eq.s32.totalorder %v9314_v60, %v8392_v11  ;;  %vm553_vm2 = vcmp.eq.s32.totalorder %v9352_v52, %v8386_v9  ;;  %v9385_v1 = vadd.s32 576, %v8368_v2 }
  0x9d   : > { %7586 = vmatprep.subr.msk.bf16.mxu1 %vm7585_vm5, %v11685_v13  ;;  %vm7331_vm8 = vmpackc.low %vm546_vm1, %vm544_vm0  ;;  %vm1624_vm0 = vcmp.eq.s32.totalorder %v9314_v60, %v8395_v12  ;;  %vm1627_vm5 = vcmp.eq.s32.totalorder %v9352_v52, %v8389_v10  ;;  %v9411_v60 = vadd.s32 592, %v8368_v2  ;;  %11805 = vst [vmem:[#allocation34_spill] sm:$0xff] %v9414_v0 }
  0x9e   : > { %7332 = vmatpush1.bf16.msk.msra.mxu0 %vm7331_vm8, %v11685_v13  ;;  %vm7587_vm11 = vmpackc.low %vm1620_vm4, %vm1618_vm3  ;;  %vm555_vm3 = vcmp.eq.s32.totalorder %v9355_v30, %v8386_v9  ;;  %11802 = vst [vmem:[#allocation31_spill] sm:$0xff] %v9385_v1  ;;  %vm552_vm8 = vcmp.eq.s32.totalorder %v9352_v52, %v8392_v11 }
  0x9f   : > { %7588 = vmatpush1.bf16.msk.msra.mxu1 %vm7587_vm11, %v11685_v13  ;;  %vm7333_vm14 = vmpackc.low %vm551_vm7, %vm549_vm6  ;;  %vm1629_vm6 = vcmp.eq.s32.totalorder %v9355_v30, %v8389_v10  ;;  %vm1626_vm11 = vcmp.eq.s32.totalorder %v9352_v52, %v8395_v12  ;;  %11804 = vst [vmem:[#allocation33_spill] sm:$0xff] %v9411_v60  ;;  %v9440_v52 = vadd.s32 616, %v8368_v2 }
  0xa0   : > { %7334 = vmatprep.subr.msk.bf16.mxu0 %vm7333_vm14, %v11685_v13  ;;  %vm7589_vm1 = vmpackc.low %vm1625_vm10, %vm1623_vm9  ;;  %vm554_vm9 = vcmp.eq.s32.totalorder %v9355_v30, %v8392_v11  ;;  %vm557_vm14 = vcmp.eq.s32.totalorder %v9385_v1, %v8386_v9 }
  0xa1   : > { %7590 = vmatprep.subr.msk.bf16.mxu1 %vm7589_vm1, %v11685_v13  ;;  %vm7335_vm4 = vmpackc.low %vm550_vm13, %vm548_vm12  ;;  %vm1628_vm12 = vcmp.eq.s32.totalorder %v9355_v30, %v8395_v12  ;;  %vm1631_vm1 = vcmp.eq.s32.totalorder %v9385_v1, %v8389_v10  ;;  %v9437_v30 = vadd.s32 608, %v8368_v2  ;;  %11807 = vst [vmem:[#allocation36_spill] sm:$0xff] %v9440_v52 }
  0xa2   : > { %7336 = vmatpush1.bf16.msk.msra.mxu0 %vm7335_vm4, %v11685_v13  ;;  %vm7591_vm7 = vmpackc.low %vm1624_vm0, %vm1622_vm15  ;;  %vm559_vm15 = vcmp.eq.s32.totalorder %v9388_v62, %v8386_v9  ;;  %vm556_vm4 = vcmp.eq.s32.totalorder %v9385_v1, %v8392_v11 }
  0xa3   : > { %7592 = vmatpush1.bf16.msk.msra.mxu1 %vm7591_vm7, %v11685_v13  ;;  %vm7337_vm10 = vmpackc.low %vm555_vm3, %vm553_vm2  ;;  %vm1633_vm2 = vcmp.eq.s32.totalorder %v9388_v62, %v8389_v10  ;;  %vm1630_vm7 = vcmp.eq.s32.totalorder %v9385_v1, %v8395_v12  ;;  %11806 = vst [vmem:[#allocation35_spill] sm:$0xff] %v9437_v30  ;;  %v9466_v1 = vadd.s32 632, %v8368_v2 }
  0xa4   : > { %7338 = vmatprep.subr.msk.bf16.mxu0 %vm7337_vm10, %v11685_v13  ;;  %vm7593_vm13 = vmpackc.low %vm1629_vm6, %vm1627_vm5  ;;  %vm558_vm5 = vcmp.eq.s32.totalorder %v9388_v62, %v8392_v11  ;;  %vm561_vm10 = vcmp.eq.s32.totalorder %v9411_v60, %v8386_v9 }
  0xa5   : > { %7594 = vmatprep.subr.msk.bf16.mxu1 %vm7593_vm13, %v11685_v13  ;;  %vm7339_vm0 = vmpackc.low %vm554_vm9, %vm552_vm8  ;;  %vm1632_vm8 = vcmp.eq.s32.totalorder %v9388_v62, %v8395_v12  ;;  %vm1635_vm13 = vcmp.eq.s32.totalorder %v9411_v60, %v8389_v10  ;;  %v9463_v62 = vadd.s32 624, %v8368_v2  ;;  %11809 = vst [vmem:[#allocation38_spill] sm:$0xff] %v9466_v1 }
  0xa6   : > { %7340 = vmatpush1.bf16.msk.msra.mxu0 %vm7339_vm0, %v11685_v13  ;;  %vm7595_vm3 = vmpackc.low %vm1628_vm12, %vm1626_vm11  ;;  %vm563_vm11 = vcmp.eq.s32.totalorder %v9414_v0, %v8386_v9  ;;  %vm560_vm0 = vcmp.eq.s32.totalorder %v9411_v60, %v8392_v11 }
  0xa7   : > { %7596 = vmatpush1.bf16.msk.msra.mxu1 %vm7595_vm3, %v11685_v13  ;;  %vm7341_vm6 = vmpackc.low %vm559_vm15, %vm557_vm14  ;;  %vm1637_vm14 = vcmp.eq.s32.totalorder %v9414_v0, %v8389_v10  ;;  %vm1634_vm3 = vcmp.eq.s32.totalorder %v9411_v60, %v8395_v12  ;;  %11808 = vst [vmem:[#allocation37_spill] sm:$0xff] %v9463_v62  ;;  %v9492_v60 = vadd.s32 648, %v8368_v2 }
  0xa8   : > { %7342 = vmatprep.subr.msk.bf16.mxu0 %vm7341_vm6, %v11685_v13  ;;  %vm7597_vm9 = vmpackc.low %vm1633_vm2, %vm1631_vm1  ;;  %vm562_vm1 = vcmp.eq.s32.totalorder %v9414_v0, %v8392_v11  ;;  %vm565_vm6 = vcmp.eq.s32.totalorder %v9437_v30, %v8386_v9 }
  0xa9   : > { %7598 = vmatprep.subr.msk.bf16.mxu1 %vm7597_vm9, %v11685_v13  ;;  %vm7343_vm12 = vmpackc.low %vm558_vm5, %vm556_vm4  ;;  %vm1636_vm4 = vcmp.eq.s32.totalorder %v9414_v0, %v8395_v12  ;;  %vm1639_vm9 = vcmp.eq.s32.totalorder %v9437_v30, %v8389_v10  ;;  %v9489_v0 = vadd.s32 640, %v8368_v2  ;;  %11811 = vst [vmem:[#allocation40_spill] sm:$0xff] %v9492_v60 }
  0xaa   : > { %7344 = vmatpush1.bf16.msk.msra.mxu0 %vm7343_vm12, %v11685_v13  ;;  %vm7599_vm15 = vmpackc.low %vm1632_vm8, %vm1630_vm7  ;;  %vm567_vm7 = vcmp.eq.s32.totalorder %v9440_v52, %v8386_v9  ;;  %vm564_vm12 = vcmp.eq.s32.totalorder %v9437_v30, %v8392_v11 }
  0xab   : > { %7600 = vmatpush1.bf16.msk.msra.mxu1 %vm7599_vm15, %v11685_v13  ;;  %vm7345_vm2 = vmpackc.low %vm563_vm11, %vm561_vm10  ;;  %vm1641_vm10 = vcmp.eq.s32.totalorder %v9440_v52, %v8389_v10  ;;  %vm1638_vm15 = vcmp.eq.s32.totalorder %v9437_v30, %v8395_v12  ;;  %11810 = vst [vmem:[#allocation39_spill] sm:$0xff] %v9489_v0  ;;  %v9518_v30 = vadd.s32 664, %v8368_v2 }
  0xac   : > { %7346 = vmatprep.subr.msk.bf16.mxu0 %vm7345_vm2, %v11685_v13  ;;  %vm7601_vm5 = vmpackc.low %vm1637_vm14, %vm1635_vm13  ;;  %vm566_vm13 = vcmp.eq.s32.totalorder %v9440_v52, %v8392_v11  ;;  %vm569_vm2 = vcmp.eq.s32.totalorder %v9463_v62, %v8386_v9 }
  0xad   : > { %7602 = vmatprep.subr.msk.bf16.mxu1 %vm7601_vm5, %v11685_v13  ;;  %vm7347_vm8 = vmpackc.low %vm562_vm1, %vm560_vm0  ;;  %vm1640_vm0 = vcmp.eq.s32.totalorder %v9440_v52, %v8395_v12  ;;  %vm1643_vm5 = vcmp.eq.s32.totalorder %v9463_v62, %v8389_v10  ;;  %v9515_v52 = vadd.s32 656, %v8368_v2  ;;  %11813 = vst [vmem:[#allocation42_spill] sm:$0xff] %v9518_v30 }
  0xae   : > { %7348 = vmatpush1.bf16.msk.msra.mxu0 %vm7347_vm8, %v11685_v13  ;;  %vm7603_vm11 = vmpackc.low %vm1636_vm4, %vm1634_vm3  ;;  %vm571_vm3 = vcmp.eq.s32.totalorder %v9466_v1, %v8386_v9  ;;  %vm568_vm8 = vcmp.eq.s32.totalorder %v9463_v62, %v8392_v11 }
  0xaf   : > { %7604 = vmatpush1.bf16.msk.msra.mxu1 %vm7603_vm11, %v11685_v13  ;;  %vm7349_vm14 = vmpackc.low %vm567_vm7, %vm565_vm6  ;;  %vm1645_vm6 = vcmp.eq.s32.totalorder %v9466_v1, %v8389_v10  ;;  %vm1642_vm11 = vcmp.eq.s32.totalorder %v9463_v62, %v8395_v12  ;;  %11812 = vst [vmem:[#allocation41_spill] sm:$0xff] %v9515_v52  ;;  %v9544_v62 = vadd.s32 680, %v8368_v2 }
  0xb0   : > { %7350 = vmatprep.subr.msk.bf16.mxu0 %vm7349_vm14, %v11685_v13  ;;  %vm7605_vm1 = vmpackc.low %vm1641_vm10, %vm1639_vm9  ;;  %vm570_vm9 = vcmp.eq.s32.totalorder %v9466_v1, %v8392_v11  ;;  %vm573_vm14 = vcmp.eq.s32.totalorder %v9489_v0, %v8386_v9 }
  0xb1   : > { %7606 = vmatprep.subr.msk.bf16.mxu1 %vm7605_vm1, %v11685_v13  ;;  %vm7351_vm4 = vmpackc.low %vm566_vm13, %vm564_vm12  ;;  %vm1644_vm12 = vcmp.eq.s32.totalorder %v9466_v1, %v8395_v12  ;;  %vm1647_vm1 = vcmp.eq.s32.totalorder %v9489_v0, %v8389_v10  ;;  %v9541_v1 = vadd.s32 672, %v8368_v2  ;;  %11815 = vst [vmem:[#allocation44_spill] sm:$0xff] %v9544_v62 }
  0xb2   : > { %7352 = vmatpush1.bf16.msk.msra.mxu0 %vm7351_vm4, %v11685_v13  ;;  %vm7607_vm7 = vmpackc.low %vm1640_vm0, %vm1638_vm15  ;;  %vm575_vm15 = vcmp.eq.s32.totalorder %v9492_v60, %v8386_v9  ;;  %vm572_vm4 = vcmp.eq.s32.totalorder %v9489_v0, %v8392_v11 }
  0xb3   : > { %7608 = vmatpush1.bf16.msk.msra.mxu1 %vm7607_vm7, %v11685_v13  ;;  %vm7353_vm10 = vmpackc.low %vm571_vm3, %vm569_vm2  ;;  %vm1649_vm2 = vcmp.eq.s32.totalorder %v9492_v60, %v8389_v10  ;;  %vm1646_vm7 = vcmp.eq.s32.totalorder %v9489_v0, %v8395_v12  ;;  %11814 = vst [vmem:[#allocation43_spill] sm:$0xff] %v9541_v1  ;;  %v9570_v0 = vadd.s32 696, %v8368_v2 }
  0xb4   : > { %7354 = vmatprep.subr.msk.bf16.mxu0 %vm7353_vm10, %v11685_v13  ;;  %vm7609_vm13 = vmpackc.low %vm1645_vm6, %vm1643_vm5  ;;  %vm574_vm5 = vcmp.eq.s32.totalorder %v9492_v60, %v8392_v11  ;;  %vm577_vm10 = vcmp.eq.s32.totalorder %v9515_v52, %v8386_v9 }
  0xb5   : > { %7610 = vmatprep.subr.msk.bf16.mxu1 %vm7609_vm13, %v11685_v13  ;;  %vm7355_vm0 = vmpackc.low %vm570_vm9, %vm568_vm8  ;;  %vm1648_vm8 = vcmp.eq.s32.totalorder %v9492_v60, %v8395_v12  ;;  %vm1651_vm13 = vcmp.eq.s32.totalorder %v9515_v52, %v8389_v10  ;;  %v9567_v60 = vadd.s32 688, %v8368_v2  ;;  %11817 = vst [vmem:[#allocation46_spill] sm:$0xff] %v9570_v0 }
  0xb6   : > { %7356 = vmatpush1.bf16.msk.msra.mxu0 %vm7355_vm0, %v11685_v13  ;;  %vm7611_vm3 = vmpackc.low %vm1644_vm12, %vm1642_vm11  ;;  %vm579_vm11 = vcmp.eq.s32.totalorder %v9518_v30, %v8386_v9  ;;  %vm576_vm0 = vcmp.eq.s32.totalorder %v9515_v52, %v8392_v11 }
  0xb7   : > { %7612 = vmatpush1.bf16.msk.msra.mxu1 %vm7611_vm3, %v11685_v13  ;;  %vm7357_vm6 = vmpackc.low %vm575_vm15, %vm573_vm14  ;;  %vm1653_vm14 = vcmp.eq.s32.totalorder %v9518_v30, %v8389_v10  ;;  %vm1650_vm3 = vcmp.eq.s32.totalorder %v9515_v52, %v8395_v12  ;;  %11816 = vst [vmem:[#allocation45_spill] sm:$0xff] %v9567_v60  ;;  %v9596_v52 = vadd.s32 712, %v8368_v2 }
  0xb8   : > { %7358 = vmatprep.subr.msk.bf16.mxu0 %vm7357_vm6, %v11685_v13  ;;  %vm7613_vm9 = vmpackc.low %vm1649_vm2, %vm1647_vm1  ;;  %vm578_vm1 = vcmp.eq.s32.totalorder %v9518_v30, %v8392_v11  ;;  %vm581_vm6 = vcmp.eq.s32.totalorder %v9541_v1, %v8386_v9 }
  0xb9   : > { %7614 = vmatprep.subr.msk.bf16.mxu1 %vm7613_vm9, %v11685_v13  ;;  %vm7359_vm12 = vmpackc.low %vm574_vm5, %vm572_vm4  ;;  %vm1652_vm4 = vcmp.eq.s32.totalorder %v9518_v30, %v8395_v12  ;;  %vm1655_vm9 = vcmp.eq.s32.totalorder %v9541_v1, %v8389_v10  ;;  %v9593_v30 = vadd.s32 704, %v8368_v2  ;;  %11819 = vst [vmem:[#allocation48_spill] sm:$0xff] %v9596_v52 }
  0xba   : > { %7360 = vmatpush1.bf16.msk.msra.mxu0 %vm7359_vm12, %v11685_v13  ;;  %vm7615_vm15 = vmpackc.low %vm1648_vm8, %vm1646_vm7  ;;  %vm583_vm7 = vcmp.eq.s32.totalorder %v9544_v62, %v8386_v9  ;;  %vm580_vm12 = vcmp.eq.s32.totalorder %v9541_v1, %v8392_v11 }
  0xbb   : > { %7616 = vmatpush1.bf16.msk.msra.mxu1 %vm7615_vm15, %v11685_v13  ;;  %vm7361_vm2 = vmpackc.low %vm579_vm11, %vm577_vm10  ;;  %vm1657_vm10 = vcmp.eq.s32.totalorder %v9544_v62, %v8389_v10  ;;  %vm1654_vm15 = vcmp.eq.s32.totalorder %v9541_v1, %v8395_v12  ;;  %11818 = vst [vmem:[#allocation47_spill] sm:$0xff] %v9593_v30  ;;  %v9622_v1 = vadd.s32 728, %v8368_v2 }
  0xbc   : > { %7362 = vmatprep.subr.msk.bf16.mxu0 %vm7361_vm2, %v11685_v13  ;;  %vm7617_vm5 = vmpackc.low %vm1653_vm14, %vm1651_vm13  ;;  %vm582_vm13 = vcmp.eq.s32.totalorder %v9544_v62, %v8392_v11  ;;  %vm585_vm2 = vcmp.eq.s32.totalorder %v9567_v60, %v8386_v9 }
  0xbd   : > { %7618 = vmatprep.subr.msk.bf16.mxu1 %vm7617_vm5, %v11685_v13  ;;  %vm7363_vm8 = vmpackc.low %vm578_vm1, %vm576_vm0  ;;  %vm1656_vm0 = vcmp.eq.s32.totalorder %v9544_v62, %v8395_v12  ;;  %vm1659_vm5 = vcmp.eq.s32.totalorder %v9567_v60, %v8389_v10  ;;  %v9619_v62 = vadd.s32 720, %v8368_v2  ;;  %11821 = vst [vmem:[#allocation50_spill] sm:$0xff] %v9622_v1 }
  0xbe   : > { %7364 = vmatpush1.bf16.msk.msra.mxu0 %vm7363_vm8, %v11685_v13  ;;  %vm7619_vm11 = vmpackc.low %vm1652_vm4, %vm1650_vm3  ;;  %vm587_vm3 = vcmp.eq.s32.totalorder %v9570_v0, %v8386_v9  ;;  %vm584_vm8 = vcmp.eq.s32.totalorder %v9567_v60, %v8392_v11 }
  0xbf   : > { %7620 = vmatpush1.bf16.msk.msra.mxu1 %vm7619_vm11, %v11685_v13  ;;  %vm7365_vm14 = vmpackc.low %vm583_vm7, %vm581_vm6  ;;  %vm1661_vm6 = vcmp.eq.s32.totalorder %v9570_v0, %v8389_v10  ;;  %vm1658_vm11 = vcmp.eq.s32.totalorder %v9567_v60, %v8395_v12  ;;  %11820 = vst [vmem:[#allocation49_spill] sm:$0xff] %v9619_v62  ;;  %v9648_v60 = vadd.s32 744, %v8368_v2 }
  0xc0   : > { %7366 = vmatprep.subr.msk.bf16.mxu0 %vm7365_vm14, %v11685_v13  ;;  %vm7621_vm1 = vmpackc.low %vm1657_vm10, %vm1655_vm9  ;;  %vm586_vm9 = vcmp.eq.s32.totalorder %v9570_v0, %v8392_v11  ;;  %vm589_vm14 = vcmp.eq.s32.totalorder %v9593_v30, %v8386_v9 }
  0xc1   : > { %7622 = vmatprep.subr.msk.bf16.mxu1 %vm7621_vm1, %v11685_v13  ;;  %vm7367_vm4 = vmpackc.low %vm582_vm13, %vm580_vm12  ;;  %vm1660_vm12 = vcmp.eq.s32.totalorder %v9570_v0, %v8395_v12  ;;  %vm1663_vm1 = vcmp.eq.s32.totalorder %v9593_v30, %v8389_v10  ;;  %v9645_v0 = vadd.s32 736, %v8368_v2  ;;  %11823 = vst [vmem:[#allocation52_spill] sm:$0xff] %v9648_v60 }
  0xc2   : > { %7368 = vmatpush1.bf16.msk.msra.mxu0 %vm7367_vm4, %v11685_v13  ;;  %vm7623_vm7 = vmpackc.low %vm1656_vm0, %vm1654_vm15  ;;  %vm591_vm15 = vcmp.eq.s32.totalorder %v9596_v52, %v8386_v9  ;;  %vm588_vm4 = vcmp.eq.s32.totalorder %v9593_v30, %v8392_v11 }
  0xc3   : > { %7624 = vmatpush1.bf16.msk.msra.mxu1 %vm7623_vm7, %v11685_v13  ;;  %vm7369_vm10 = vmpackc.low %vm587_vm3, %vm585_vm2  ;;  %vm1665_vm2 = vcmp.eq.s32.totalorder %v9596_v52, %v8389_v10  ;;  %vm1662_vm7 = vcmp.eq.s32.totalorder %v9593_v30, %v8395_v12  ;;  %11822 = vst [vmem:[#allocation51_spill] sm:$0xff] %v9645_v0  ;;  %v9674_v30 = vadd.s32 760, %v8368_v2 }
  0xc4   : > { %7370 = vmatprep.subr.msk.bf16.mxu0 %vm7369_vm10, %v11685_v13  ;;  %vm7625_vm13 = vmpackc.low %vm1661_vm6, %vm1659_vm5  ;;  %vm590_vm5 = vcmp.eq.s32.totalorder %v9596_v52, %v8392_v11  ;;  %vm593_vm10 = vcmp.eq.s32.totalorder %v9619_v62, %v8386_v9 }
  0xc5   : > { %7626 = vmatprep.subr.msk.bf16.mxu1 %vm7625_vm13, %v11685_v13  ;;  %vm7371_vm0 = vmpackc.low %vm586_vm9, %vm584_vm8  ;;  %vm1664_vm8 = vcmp.eq.s32.totalorder %v9596_v52, %v8395_v12  ;;  %vm1667_vm13 = vcmp.eq.s32.totalorder %v9619_v62, %v8389_v10  ;;  %v9671_v52 = vadd.s32 752, %v8368_v2  ;;  %11825 = vst [vmem:[#allocation54_spill] sm:$0xff] %v9674_v30 }
  0xc6   : > { %7372 = vmatpush1.bf16.msk.msra.mxu0 %vm7371_vm0, %v11685_v13  ;;  %vm7627_vm3 = vmpackc.low %vm1660_vm12, %vm1658_vm11  ;;  %vm595_vm11 = vcmp.eq.s32.totalorder %v9622_v1, %v8386_v9  ;;  %vm592_vm0 = vcmp.eq.s32.totalorder %v9619_v62, %v8392_v11 }
  0xc7   : > { %7628 = vmatpush1.bf16.msk.msra.mxu1 %vm7627_vm3, %v11685_v13  ;;  %vm7373_vm6 = vmpackc.low %vm591_vm15, %vm589_vm14  ;;  %vm1669_vm14 = vcmp.eq.s32.totalorder %v9622_v1, %v8389_v10  ;;  %vm1666_vm3 = vcmp.eq.s32.totalorder %v9619_v62, %v8395_v12  ;;  %11824 = vst [vmem:[#allocation53_spill] sm:$0xff] %v9671_v52  ;;  %v9700_v62 = vadd.s32 776, %v8368_v2 }
  0xc8   : > { %7374 = vmatprep.subr.msk.bf16.mxu0 %vm7373_vm6, %v11685_v13  ;;  %vm7629_vm9 = vmpackc.low %vm1665_vm2, %vm1663_vm1  ;;  %vm594_vm1 = vcmp.eq.s32.totalorder %v9622_v1, %v8392_v11  ;;  %vm597_vm6 = vcmp.eq.s32.totalorder %v9645_v0, %v8386_v9 }
  0xc9   : > { %7630 = vmatprep.subr.msk.bf16.mxu1 %vm7629_vm9, %v11685_v13  ;;  %vm7375_vm12 = vmpackc.low %vm590_vm5, %vm588_vm4  ;;  %vm1668_vm4 = vcmp.eq.s32.totalorder %v9622_v1, %v8395_v12  ;;  %vm1671_vm9 = vcmp.eq.s32.totalorder %v9645_v0, %v8389_v10  ;;  %v9697_v1 = vadd.s32 768, %v8368_v2  ;;  %11827 = vst [vmem:[#allocation56_spill] sm:$0xff] %v9700_v62 }
  0xca   : > { %7376 = vmatpush1.bf16.msk.msra.mxu0 %vm7375_vm12, %v11685_v13  ;;  %vm7631_vm15 = vmpackc.low %vm1664_vm8, %vm1662_vm7  ;;  %vm599_vm7 = vcmp.eq.s32.totalorder %v9648_v60, %v8386_v9  ;;  %vm596_vm12 = vcmp.eq.s32.totalorder %v9645_v0, %v8392_v11 }
  0xcb   : > { %7632 = vmatpush1.bf16.msk.msra.mxu1 %vm7631_vm15, %v11685_v13  ;;  %vm7377_vm2 = vmpackc.low %vm595_vm11, %vm593_vm10  ;;  %vm1673_vm10 = vcmp.eq.s32.totalorder %v9648_v60, %v8389_v10  ;;  %vm1670_vm15 = vcmp.eq.s32.totalorder %v9645_v0, %v8395_v12  ;;  %11826 = vst [vmem:[#allocation55_spill] sm:$0xff] %v9697_v1  ;;  %v9726_v0 = vadd.s32 792, %v8368_v2 }
  0xcc   : > { %7378 = vmatprep.subr.msk.bf16.mxu0 %vm7377_vm2, %v11685_v13  ;;  %vm7633_vm5 = vmpackc.low %vm1669_vm14, %vm1667_vm13  ;;  %vm598_vm13 = vcmp.eq.s32.totalorder %v9648_v60, %v8392_v11  ;;  %vm601_vm2 = vcmp.eq.s32.totalorder %v9671_v52, %v8386_v9 }
  0xcd   : > { %7634 = vmatprep.subr.msk.bf16.mxu1 %vm7633_vm5, %v11685_v13  ;;  %vm7379_vm8 = vmpackc.low %vm594_vm1, %vm592_vm0  ;;  %vm1672_vm0 = vcmp.eq.s32.totalorder %v9648_v60, %v8395_v12  ;;  %vm1675_vm5 = vcmp.eq.s32.totalorder %v9671_v52, %v8389_v10  ;;  %v9723_v60 = vadd.s32 784, %v8368_v2  ;;  %11829 = vst [vmem:[#allocation58_spill] sm:$0xff] %v9726_v0 }
  0xce   : > { %7380 = vmatpush1.bf16.msk.msra.mxu0 %vm7379_vm8, %v11685_v13  ;;  %vm7635_vm11 = vmpackc.low %vm1668_vm4, %vm1666_vm3  ;;  %vm603_vm3 = vcmp.eq.s32.totalorder %v9674_v30, %v8386_v9  ;;  %vm600_vm8 = vcmp.eq.s32.totalorder %v9671_v52, %v8392_v11 }
  0xcf   : > { %7636 = vmatpush1.bf16.msk.msra.mxu1 %vm7635_vm11, %v11685_v13  ;;  %vm7381_vm14 = vmpackc.low %vm599_vm7, %vm597_vm6  ;;  %vm1677_vm6 = vcmp.eq.s32.totalorder %v9674_v30, %v8389_v10  ;;  %vm1674_vm11 = vcmp.eq.s32.totalorder %v9671_v52, %v8395_v12  ;;  %11828 = vst [vmem:[#allocation57_spill] sm:$0xff] %v9723_v60  ;;  %v9756_v52 = vadd.s32 800, %v8368_v2 }
  0xd0   : > { %7382 = vmatprep.subr.msk.bf16.mxu0 %vm7381_vm14, %v11685_v13  ;;  %vm7637_vm1 = vmpackc.low %vm1673_vm10, %vm1671_vm9  ;;  %vm602_vm9 = vcmp.eq.s32.totalorder %v9674_v30, %v8392_v11  ;;  %vm605_vm14 = vcmp.eq.s32.totalorder %v9697_v1, %v8386_v9 }
  0xd1   : > { %7638 = vmatprep.subr.msk.bf16.mxu1 %vm7637_vm1, %v11685_v13  ;;  %vm7383_vm4 = vmpackc.low %vm598_vm13, %vm596_vm12  ;;  %vm1676_vm12 = vcmp.eq.s32.totalorder %v9674_v30, %v8395_v12  ;;  %vm1679_vm1 = vcmp.eq.s32.totalorder %v9697_v1, %v8389_v10  ;;  %v9748_v30 = vcombine.high %v9729_v63, %v9729_v63  ;;  %11831 = vst [vmem:[#allocation60_spill] sm:$0xff] %v9756_v52 }
  0xd2   : > { %7384 = vmatpush1.bf16.msk.msra.mxu0 %vm7383_vm4, %v11685_v13  ;;  %vm7639_vm7 = vmpackc.low %vm1672_vm0, %vm1670_vm15  ;;  %vm607_vm15 = vcmp.eq.s32.totalorder %v9700_v62, %v8386_v9  ;;  %vm604_vm4 = vcmp.eq.s32.totalorder %v9697_v1, %v8392_v11 }
  0xd3   : > { %7640 = vmatpush1.bf16.msk.msra.mxu1 %vm7639_vm7, %v11685_v13  ;;  %vm7385_vm10 = vmpackc.low %vm603_vm3, %vm601_vm2  ;;  %vm1681_vm2 = vcmp.eq.s32.totalorder %v9700_v62, %v8389_v10  ;;  %vm1678_vm7 = vcmp.eq.s32.totalorder %v9697_v1, %v8395_v12  ;;  %11830 = vst [vmem:[#allocation59_spill] sm:$0xff] %v9748_v30 }
  0xd4   : > { %7386 = vmatprep.subr.msk.bf16.mxu0 %vm7385_vm10, %v11685_v13  ;;  %vm7641_vm13 = vmpackc.low %vm1677_vm6, %vm1675_vm5  ;;  %vm606_vm5 = vcmp.eq.s32.totalorder %v9700_v62, %v8392_v11  ;;  %vm609_vm10 = vcmp.eq.s32.totalorder %v9723_v60, %v8386_v9 }
  0xd5   : > { %7642 = vmatprep.subr.msk.bf16.mxu1 %vm7641_vm13, %v11685_v13  ;;  %vm7387_vm0 = vmpackc.low %vm602_vm9, %vm600_vm8  ;;  %vm1680_vm8 = vcmp.eq.s32.totalorder %v9700_v62, %v8395_v12  ;;  %vm1683_vm13 = vcmp.eq.s32.totalorder %v9723_v60, %v8389_v10  ;;  %v9800_v62 = vadd.s32 824, %v8368_v2 }
  0xd6   : > { %7388 = vmatpush1.bf16.msk.msra.mxu0 %vm7387_vm0, %v11685_v13  ;;  %vm7643_vm3 = vmpackc.low %vm1676_vm12, %vm1674_vm11  ;;  %vm611_vm11 = vcmp.eq.s32.totalorder %v9726_v0, %v8386_v9  ;;  %vm608_vm0 = vcmp.eq.s32.totalorder %v9723_v60, %v8392_v11 }
  0xd7   : > { %7644 = vmatpush1.bf16.msk.msra.mxu1 %vm7643_vm3, %v11685_v13  ;;  %vm7389_vm6 = vmpackc.low %vm607_vm15, %vm605_vm14  ;;  %vm1685_vm14 = vcmp.eq.s32.totalorder %v9726_v0, %v8389_v10  ;;  %vm1682_vm3 = vcmp.eq.s32.totalorder %v9723_v60, %v8395_v12  ;;  %11834 = vst [vmem:[#allocation63_spill] sm:$0xff] %v9800_v62 }
  0xd8   : > { %7390 = vmatprep.subr.msk.bf16.mxu0 %vm7389_vm6, %v11685_v13  ;;  %vm7645_vm9 = vmpackc.low %vm1681_vm2, %vm1679_vm1  ;;  %vm610_vm1 = vcmp.eq.s32.totalorder %v9726_v0, %v8392_v11  ;;  %vm613_vm6 = vcmp.eq.s32.totalorder %v9756_v52, %v8386_v9 }
  0xd9   : > { %7646 = vmatprep.subr.msk.bf16.mxu1 %vm7645_vm9, %v11685_v13  ;;  %1399 = vmatmul.mubr.f32.vlgmr.msra.gmra.mrb[0].mxu0 %v9284_v61  ;;  %vm7391_vm12 = vmpackc.low %vm606_vm5, %vm604_vm4  ;;  %vm1684_vm4 = vcmp.eq.s32.totalorder %v9726_v0, %v8395_v12  ;;  %vm1687_vm9 = vcmp.eq.s32.totalorder %v9756_v52, %v8389_v10  ;;  %v9833_v0 = vadd.s32 840, %v8368_v2 }
  0xda   : > { %7392 = vmatpush1.bf16.msk.msra.mxu0 %vm7391_vm12, %v11685_v13  ;;  %2461 = vmatmul.mubr.f32.vlgmr.msra.gmra.mrb[0].mxu1 %v9284_v61  ;;  %vm7647_vm15 = vmpackc.low %vm1680_vm8, %vm1678_vm7  ;;  %vm615_vm7 = vcmp.eq.s32.totalorder %v9759_v3, %v8386_v9  ;;  %v9797_v61 = vadd.s32 816, %v8368_v2  ;;  %vm612_vm12 = vcmp.eq.s32.totalorder %v9756_v52, %v8392_v11 }
  0xdb   : > { %7648 = vmatpush1.bf16.msk.msra.mxu1 %vm7647_vm15, %v11685_v13  ;;  %vm7393_vm2 = vmpackc.low %vm611_vm11, %vm609_vm10  ;;  %1469 = vmatprep.mubr.f32.mxu0 %v9748_v30  ;;  %vm1689_vm10 = vcmp.eq.s32.totalorder %v9759_v3, %v8389_v10  ;;  %vm1686_vm15 = vcmp.eq.s32.totalorder %v9756_v52, %v8395_v12  ;;  %11836 = vst [vmem:[#allocation65_spill] sm:$0xff] %v9833_v0  ;;  %v9859_v52 = vadd.s32 856, %v8368_v2 }
  0xdc   : > { %7394 = vmatprep.subr.msk.bf16.mxu0 %vm7393_vm2, %v11685_v13  ;;  %vm7649_vm5 = vmpackc.low %vm1685_vm14, %vm1683_vm13  ;;  %11833 = vst [vmem:[#allocation62_spill] sm:$0xff] %v9797_v61  ;;  %2531 = vmatprep.mubr.f32.mxu1 %v9748_v30  ;;  %vm614_vm13 = vcmp.eq.s32.totalorder %v9759_v3, %v8392_v11  ;;  %vm617_vm2 = vcmp.eq.s32.totalorder %v9797_v61, %v8386_v9  ;;  %v9830_v30 = vadd.s32 832, %v8368_v2 }
  0xdd   : > { %7650 = vmatprep.subr.msk.bf16.mxu1 %vm7649_vm5, %v11685_v13  ;;  %vm7395_vm8 = vmpackc.low %vm610_vm1, %vm608_vm0  ;;  %vm1688_vm0 = vcmp.eq.s32.totalorder %v9759_v3, %v8395_v12  ;;  %vm1691_vm5 = vcmp.eq.s32.totalorder %v9797_v61, %v8389_v10  ;;  %v9856_v3 = vadd.s32 848, %v8368_v2  ;;  %11838 = vst [vmem:[#allocation67_spill] sm:$0xff] %v9859_v52 }
  0xde   : > { %7396 = vmatpush1.bf16.msk.msra.mxu0 %vm7395_vm8, %v11685_v13  ;;  %vm7651_vm11 = vmpackc.low %vm1684_vm4, %vm1682_vm3  ;;  %vm619_vm3 = vcmp.eq.s32.totalorder %v9800_v62, %v8386_v9  ;;  %11835 = vst [vmem:[#allocation64_spill] sm:$0xff] %v9830_v30  ;;  %vm616_vm8 = vcmp.eq.s32.totalorder %v9797_v61, %v8392_v11 }
  0xdf   : > { %7652 = vmatpush1.bf16.msk.msra.mxu1 %vm7651_vm11, %v11685_v13  ;;  %vm7397_vm14 = vmpackc.low %vm615_vm7, %vm613_vm6  ;;  %vm1693_vm6 = vcmp.eq.s32.totalorder %v9800_v62, %v8389_v10  ;;  %vm1690_vm11 = vcmp.eq.s32.totalorder %v9797_v61, %v8395_v12  ;;  %11837 = vst [vmem:[#allocation66_spill] sm:$0xff] %v9856_v3  ;;  %v9885_v61 = vadd.s32 872, %v8368_v2 }
  0xe0   : > { %7398 = vmatprep.subr.msk.bf16.mxu0 %vm7397_vm14, %v11685_v13  ;;  %vm7653_vm1 = vmpackc.low %vm1689_vm10, %vm1687_vm9  ;;  %vm618_vm9 = vcmp.eq.s32.totalorder %v9800_v62, %v8392_v11  ;;  %vm621_vm14 = vcmp.eq.s32.totalorder %v9830_v30, %v8386_v9 }
  0xe1   : > { %7654 = vmatprep.subr.msk.bf16.mxu1 %vm7653_vm1, %v11685_v13  ;;  %vm7399_vm4 = vmpackc.low %vm614_vm13, %vm612_vm12  ;;  %vm1692_vm12 = vcmp.eq.s32.totalorder %v9800_v62, %v8395_v12  ;;  %vm1695_vm1 = vcmp.eq.s32.totalorder %v9830_v30, %v8389_v10  ;;  %v9882_v62 = vadd.s32 864, %v8368_v2  ;;  %11840 = vst [vmem:[#allocation69_spill] sm:$0xff] %v9885_v61 }
  0xe2   : > { %7400 = vmatpush1.bf16.msk.msra.mxu0 %vm7399_vm4, %v11685_v13  ;;  %vm7655_vm7 = vmpackc.low %vm1688_vm0, %vm1686_vm15  ;;  %vm623_vm15 = vcmp.eq.s32.totalorder %v9833_v0, %v8386_v9  ;;  %vm620_vm4 = vcmp.eq.s32.totalorder %v9830_v30, %v8392_v11 }
  0xe3   : > { %7656 = vmatpush1.bf16.msk.msra.mxu1 %vm7655_vm7, %v11685_v13  ;;  %vm7401_vm10 = vmpackc.low %vm619_vm3, %vm617_vm2  ;;  %vm1697_vm2 = vcmp.eq.s32.totalorder %v9833_v0, %v8389_v10  ;;  %vm1694_vm7 = vcmp.eq.s32.totalorder %v9830_v30, %v8395_v12  ;;  %11839 = vst [vmem:[#allocation68_spill] sm:$0xff] %v9882_v62  ;;  %v9911_v30 = vadd.s32 888, %v8368_v2 }
  0xe4   : > { %7402 = vmatprep.subr.msk.bf16.mxu0 %vm7401_vm10, %v11685_v13  ;;  %vm7657_vm13 = vmpackc.low %vm1693_vm6, %vm1691_vm5  ;;  %vm622_vm5 = vcmp.eq.s32.totalorder %v9833_v0, %v8392_v11  ;;  %vm625_vm10 = vcmp.eq.s32.totalorder %v9856_v3, %v8386_v9 }
  0xe5   : > { %7658 = vmatprep.subr.msk.bf16.mxu1 %vm7657_vm13, %v11685_v13  ;;  %vm7403_vm0 = vmpackc.low %vm618_vm9, %vm616_vm8  ;;  %vm1696_vm8 = vcmp.eq.s32.totalorder %v9833_v0, %v8395_v12  ;;  %vm1699_vm13 = vcmp.eq.s32.totalorder %v9856_v3, %v8389_v10  ;;  %v9908_v0 = vadd.s32 880, %v8368_v2  ;;  %11842 = vst [vmem:[#allocation71_spill] sm:$0xff] %v9911_v30 }
  0xe6   : > { %7404 = vmatpush1.bf16.msk.msra.mxu0 %vm7403_vm0, %v11685_v13  ;;  %vm7659_vm3 = vmpackc.low %vm1692_vm12, %vm1690_vm11  ;;  %vm627_vm11 = vcmp.eq.s32.totalorder %v9859_v52, %v8386_v9  ;;  %vm624_vm0 = vcmp.eq.s32.totalorder %v9856_v3, %v8392_v11 }
  0xe7   : > { %7660 = vmatpush1.bf16.msk.msra.mxu1 %vm7659_vm3, %v11685_v13  ;;  %vm7405_vm6 = vmpackc.low %vm623_vm15, %vm621_vm14  ;;  %vm1701_vm14 = vcmp.eq.s32.totalorder %v9859_v52, %v8389_v10  ;;  %vm1698_vm3 = vcmp.eq.s32.totalorder %v9856_v3, %v8395_v12  ;;  %11841 = vst [vmem:[#allocation70_spill] sm:$0xff] %v9908_v0  ;;  %v9937_v3 = vadd.s32 904, %v8368_v2 }
  0xe8   : > { %7406 = vmatprep.subr.msk.bf16.mxu0 %vm7405_vm6, %v11685_v13  ;;  %vm7661_vm9 = vmpackc.low %vm1697_vm2, %vm1695_vm1  ;;  %vm626_vm1 = vcmp.eq.s32.totalorder %v9859_v52, %v8392_v11  ;;  %vm629_vm6 = vcmp.eq.s32.totalorder %v9882_v62, %v8386_v9 }
  0xe9   : > { %7662 = vmatprep.subr.msk.bf16.mxu1 %vm7661_vm9, %v11685_v13  ;;  %vm7407_vm12 = vmpackc.low %vm622_vm5, %vm620_vm4  ;;  %vm1700_vm4 = vcmp.eq.s32.totalorder %v9859_v52, %v8395_v12  ;;  %vm1703_vm9 = vcmp.eq.s32.totalorder %v9882_v62, %v8389_v10  ;;  %v9934_v52 = vadd.s32 896, %v8368_v2  ;;  %11844 = vst [vmem:[#allocation73_spill] sm:$0xff] %v9937_v3 }
  0xea   : > { %7408 = vmatpush1.bf16.msk.msra.mxu0 %vm7407_vm12, %v11685_v13  ;;  %vm7663_vm15 = vmpackc.low %vm1696_vm8, %vm1694_vm7  ;;  %vm631_vm7 = vcmp.eq.s32.totalorder %v9885_v61, %v8386_v9  ;;  %vm628_vm12 = vcmp.eq.s32.totalorder %v9882_v62, %v8392_v11 }
  0xeb   : > { %7664 = vmatpush1.bf16.msk.msra.mxu1 %vm7663_vm15, %v11685_v13  ;;  %vm7409_vm2 = vmpackc.low %vm627_vm11, %vm625_vm10  ;;  %vm1705_vm10 = vcmp.eq.s32.totalorder %v9885_v61, %v8389_v10  ;;  %vm1702_vm15 = vcmp.eq.s32.totalorder %v9882_v62, %v8395_v12  ;;  %11843 = vst [vmem:[#allocation72_spill] sm:$0xff] %v9934_v52  ;;  %v9963_v62 = vadd.s32 920, %v8368_v2 }
  0xec   : > { %7410 = vmatprep.subr.msk.bf16.mxu0 %vm7409_vm2, %v11685_v13  ;;  %vm7665_vm5 = vmpackc.low %vm1701_vm14, %vm1699_vm13  ;;  %vm630_vm13 = vcmp.eq.s32.totalorder %v9885_v61, %v8392_v11  ;;  %vm633_vm2 = vcmp.eq.s32.totalorder %v9908_v0, %v8386_v9 }
  0xed   : > { %7666 = vmatprep.subr.msk.bf16.mxu1 %vm7665_vm5, %v11685_v13  ;;  %vm7411_vm8 = vmpackc.low %vm626_vm1, %vm624_vm0  ;;  %vm1704_vm0 = vcmp.eq.s32.totalorder %v9885_v61, %v8395_v12  ;;  %vm1707_vm5 = vcmp.eq.s32.totalorder %v9908_v0, %v8389_v10  ;;  %v9960_v61 = vadd.s32 912, %v8368_v2  ;;  %11846 = vst [vmem:[#allocation75_spill] sm:$0xff] %v9963_v62 }
  0xee   : > { %7412 = vmatpush1.bf16.msk.msra.mxu0 %vm7411_vm8, %v11685_v13  ;;  %vm7667_vm11 = vmpackc.low %vm1700_vm4, %vm1698_vm3  ;;  %vm635_vm3 = vcmp.eq.s32.totalorder %v9911_v30, %v8386_v9  ;;  %vm632_vm8 = vcmp.eq.s32.totalorder %v9908_v0, %v8392_v11 }
  0xef   : > { %7668 = vmatpush1.bf16.msk.msra.mxu1 %vm7667_vm11, %v11685_v13  ;;  %vm7413_vm14 = vmpackc.low %vm631_vm7, %vm629_vm6  ;;  %vm1709_vm6 = vcmp.eq.s32.totalorder %v9911_v30, %v8389_v10  ;;  %vm1706_vm11 = vcmp.eq.s32.totalorder %v9908_v0, %v8395_v12  ;;  %11845 = vst [vmem:[#allocation74_spill] sm:$0xff] %v9960_v61  ;;  %v9989_v0 = vadd.s32 936, %v8368_v2 }
  0xf0   : > { %7414 = vmatprep.subr.msk.bf16.mxu0 %vm7413_vm14, %v11685_v13  ;;  %vm7669_vm1 = vmpackc.low %vm1705_vm10, %vm1703_vm9  ;;  %vm634_vm9 = vcmp.eq.s32.totalorder %v9911_v30, %v8392_v11  ;;  %vm637_vm14 = vcmp.eq.s32.totalorder %v9934_v52, %v8386_v9 }
  0xf1   : > { %7670 = vmatprep.subr.msk.bf16.mxu1 %vm7669_vm1, %v11685_v13  ;;  %vm7415_vm4 = vmpackc.low %vm630_vm13, %vm628_vm12  ;;  %vm1708_vm12 = vcmp.eq.s32.totalorder %v9911_v30, %v8395_v12  ;;  %vm1711_vm1 = vcmp.eq.s32.totalorder %v9934_v52, %v8389_v10  ;;  %v9986_v30 = vadd.s32 928, %v8368_v2  ;;  %11848 = vst [vmem:[#allocation77_spill] sm:$0xff] %v9989_v0 }
  0xf2   : > { %7416 = vmatpush1.bf16.msk.msra.mxu0 %vm7415_vm4, %v11685_v13  ;;  %vm7671_vm7 = vmpackc.low %vm1704_vm0, %vm1702_vm15  ;;  %vm639_vm15 = vcmp.eq.s32.totalorder %v9937_v3, %v8386_v9  ;;  %vm636_vm4 = vcmp.eq.s32.totalorder %v9934_v52, %v8392_v11 }
  0xf3   : > { %7672 = vmatpush1.bf16.msk.msra.mxu1 %vm7671_vm7, %v11685_v13  ;;  %vm7417_vm10 = vmpackc.low %vm635_vm3, %vm633_vm2  ;;  %vm1713_vm2 = vcmp.eq.s32.totalorder %v9937_v3, %v8389_v10  ;;  %vm1710_vm7 = vcmp.eq.s32.totalorder %v9934_v52, %v8395_v12  ;;  %11847 = vst [vmem:[#allocation76_spill] sm:$0xff] %v9986_v30  ;;  %v10015_v52 = vadd.s32 952, %v8368_v2 }
  0xf4   : > { %7418 = vmatprep.subr.msk.bf16.mxu0 %vm7417_vm10, %v11685_v13  ;;  %vm7673_vm13 = vmpackc.low %vm1709_vm6, %vm1707_vm5  ;;  %vm638_vm5 = vcmp.eq.s32.totalorder %v9937_v3, %v8392_v11  ;;  %vm641_vm10 = vcmp.eq.s32.totalorder %v9960_v61, %v8386_v9 }
  0xf5   : > { %7674 = vmatprep.subr.msk.bf16.mxu1 %vm7673_vm13, %v11685_v13  ;;  %vm7419_vm0 = vmpackc.low %vm634_vm9, %vm632_vm8  ;;  %vm1712_vm8 = vcmp.eq.s32.totalorder %v9937_v3, %v8395_v12  ;;  %vm1715_vm13 = vcmp.eq.s32.totalorder %v9960_v61, %v8389_v10  ;;  %v10012_v3 = vadd.s32 944, %v8368_v2  ;;  %11850 = vst [vmem:[#allocation79_spill] sm:$0xff] %v10015_v52 }
  0xf6   : > { %7420 = vmatpush1.bf16.msk.msra.mxu0 %vm7419_vm0, %v11685_v13  ;;  %vm7675_vm3 = vmpackc.low %vm1708_vm12, %vm1706_vm11  ;;  %vm643_vm11 = vcmp.eq.s32.totalorder %v9963_v62, %v8386_v9  ;;  %vm640_vm0 = vcmp.eq.s32.totalorder %v9960_v61, %v8392_v11 }
  0xf7   : > { %7676 = vmatpush1.bf16.msk.msra.mxu1 %vm7675_vm3, %v11685_v13  ;;  %vm7421_vm6 = vmpackc.low %vm639_vm15, %vm637_vm14  ;;  %vm1717_vm14 = vcmp.eq.s32.totalorder %v9963_v62, %v8389_v10  ;;  %vm1714_vm3 = vcmp.eq.s32.totalorder %v9960_v61, %v8395_v12  ;;  %11849 = vst [vmem:[#allocation78_spill] sm:$0xff] %v10012_v3  ;;  %v10041_v61 = vadd.s32 968, %v8368_v2 }
  0xf8   : > { %7422 = vmatprep.subr.msk.bf16.mxu0 %vm7421_vm6, %v11685_v13  ;;  %vm7677_vm9 = vmpackc.low %vm1713_vm2, %vm1711_vm1  ;;  %vm642_vm1 = vcmp.eq.s32.totalorder %v9963_v62, %v8392_v11  ;;  %vm645_vm6 = vcmp.eq.s32.totalorder %v9986_v30, %v8386_v9 }
  0xf9   : > { %7678 = vmatprep.subr.msk.bf16.mxu1 %vm7677_vm9, %v11685_v13  ;;  %vm7423_vm12 = vmpackc.low %vm638_vm5, %vm636_vm4  ;;  %vm1716_vm4 = vcmp.eq.s32.totalorder %v9963_v62, %v8395_v12  ;;  %vm1719_vm9 = vcmp.eq.s32.totalorder %v9986_v30, %v8389_v10  ;;  %v10038_v62 = vadd.s32 960, %v8368_v2  ;;  %11852 = vst [vmem:[#allocation81_spill] sm:$0xff] %v10041_v61 }
  0xfa   : > { %7424 = vmatpush1.bf16.msk.msra.mxu0 %vm7423_vm12, %v11685_v13  ;;  %vm7679_vm15 = vmpackc.low %vm1712_vm8, %vm1710_vm7  ;;  %vm647_vm7 = vcmp.eq.s32.totalorder %v9989_v0, %v8386_v9  ;;  %vm644_vm12 = vcmp.eq.s32.totalorder %v9986_v30, %v8392_v11 }
  0xfb   : > { %7680 = vmatpush1.bf16.msk.msra.mxu1 %vm7679_vm15, %v11685_v13  ;;  %vm7425_vm2 = vmpackc.low %vm643_vm11, %vm641_vm10  ;;  %vm1721_vm10 = vcmp.eq.s32.totalorder %v9989_v0, %v8389_v10  ;;  %vm1718_vm15 = vcmp.eq.s32.totalorder %v9986_v30, %v8395_v12  ;;  %11851 = vst [vmem:[#allocation80_spill] sm:$0xff] %v10038_v62  ;;  %v10067_v30 = vadd.s32 984, %v8368_v2 }
  0xfc   : > { %7426 = vmatprep.subr.msk.bf16.mxu0 %vm7425_vm2, %v11685_v13  ;;  %vm7681_vm5 = vmpackc.low %vm1717_vm14, %vm1715_vm13  ;;  %vm646_vm13 = vcmp.eq.s32.totalorder %v9989_v0, %v8392_v11  ;;  %vm649_vm2 = vcmp.eq.s32.totalorder %v10012_v3, %v8386_v9 }
  0xfd   : > { %7682 = vmatprep.subr.msk.bf16.mxu1 %vm7681_vm5, %v11685_v13  ;;  %vm7427_vm8 = vmpackc.low %vm642_vm1, %vm640_vm0  ;;  %vm1720_vm0 = vcmp.eq.s32.totalorder %v9989_v0, %v8395_v12  ;;  %vm1723_vm5 = vcmp.eq.s32.totalorder %v10012_v3, %v8389_v10  ;;  %v10064_v0 = vadd.s32 976, %v8368_v2  ;;  %11854 = vst [vmem:[#allocation83_spill] sm:$0xff] %v10067_v30 }
  0xfe   : > { %7428 = vmatpush1.bf16.msk.msra.mxu0 %vm7427_vm8, %v11685_v13  ;;  %vm7683_vm11 = vmpackc.low %vm1716_vm4, %vm1714_vm3  ;;  %vm651_vm3 = vcmp.eq.s32.totalorder %v10015_v52, %v8386_v9  ;;  %vm648_vm8 = vcmp.eq.s32.totalorder %v10012_v3, %v8392_v11 }
  0xff   : > { %7684 = vmatpush1.bf16.msk.msra.mxu1 %vm7683_vm11, %v11685_v13  ;;  %vm7429_vm14 = vmpackc.low %vm647_vm7, %vm645_vm6  ;;  %vm1725_vm6 = vcmp.eq.s32.totalorder %v10015_v52, %v8389_v10  ;;  %vm1722_vm11 = vcmp.eq.s32.totalorder %v10012_v3, %v8395_v12  ;;  %11853 = vst [vmem:[#allocation82_spill] sm:$0xff] %v10064_v0  ;;  %v10093_v3 = vadd.s32 1000, %v8368_v2 }
 0x100   : > { %7430 = vmatprep.subr.msk.bf16.mxu0 %vm7429_vm14, %v11685_v13  ;;  %vm7685_vm1 = vmpackc.low %vm1721_vm10, %vm1719_vm9  ;;  %vm650_vm9 = vcmp.eq.s32.totalorder %v10015_v52, %v8392_v11  ;;  %vm653_vm14 = vcmp.eq.s32.totalorder %v10038_v62, %v8386_v9 }
 0x101   : > { %7686 = vmatprep.subr.msk.bf16.mxu1 %vm7685_vm1, %v11685_v13  ;;  %vm7431_vm4 = vmpackc.low %vm646_vm13, %vm644_vm12  ;;  %vm1724_vm12 = vcmp.eq.s32.totalorder %v10015_v52, %v8395_v12  ;;  %vm1727_vm1 = vcmp.eq.s32.totalorder %v10038_v62, %v8389_v10  ;;  %v10090_v52 = vadd.s32 992, %v8368_v2  ;;  %11856 = vst [vmem:[#allocation85_spill] sm:$0xff] %v10093_v3 }
 0x102   : > { %7432 = vmatpush1.bf16.msk.msra.mxu0 %vm7431_vm4, %v11685_v13  ;;  %vm7687_vm7 = vmpackc.low %vm1720_vm0, %vm1718_vm15  ;;  %vm655_vm15 = vcmp.eq.s32.totalorder %v10041_v61, %v8386_v9  ;;  %vm652_vm4 = vcmp.eq.s32.totalorder %v10038_v62, %v8392_v11 }
 0x103   : > { %7688 = vmatpush1.bf16.msk.msra.mxu1 %vm7687_vm7, %v11685_v13  ;;  %vm7433_vm10 = vmpackc.low %vm651_vm3, %vm649_vm2  ;;  %vm1729_vm2 = vcmp.eq.s32.totalorder %v10041_v61, %v8389_v10  ;;  %vm1726_vm7 = vcmp.eq.s32.totalorder %v10038_v62, %v8395_v12  ;;  %11855 = vst [vmem:[#allocation84_spill] sm:$0xff] %v10090_v52  ;;  %v10119_v62 = vadd.s32 1016, %v8368_v2 }
 0x104   : > { %7434 = vmatprep.subr.msk.bf16.mxu0 %vm7433_vm10, %v11685_v13  ;;  %vm7689_vm13 = vmpackc.low %vm1725_vm6, %vm1723_vm5  ;;  %vm654_vm5 = vcmp.eq.s32.totalorder %v10041_v61, %v8392_v11  ;;  %vm657_vm10 = vcmp.eq.s32.totalorder %v10064_v0, %v8386_v9 }
 0x105   : > { %7690 = vmatprep.subr.msk.bf16.mxu1 %vm7689_vm13, %v11685_v13  ;;  %vm7435_vm0 = vmpackc.low %vm650_vm9, %vm648_vm8  ;;  %vm1728_vm8 = vcmp.eq.s32.totalorder %v10041_v61, %v8395_v12  ;;  %vm1731_vm13 = vcmp.eq.s32.totalorder %v10064_v0, %v8389_v10  ;;  %v10116_v61 = vadd.s32 1008, %v8368_v2  ;;  %11858 = vst [vmem:[#allocation87_spill] sm:$0xff] %v10119_v62 }
 0x106   : > { %7436 = vmatpush1.bf16.msk.msra.mxu0 %vm7435_vm0, %v11685_v13  ;;  %vm7691_vm3 = vmpackc.low %vm1724_vm12, %vm1722_vm11  ;;  %vm659_vm11 = vcmp.eq.s32.totalorder %v10067_v30, %v8386_v9  ;;  %vm656_vm0 = vcmp.eq.s32.totalorder %v10064_v0, %v8392_v11 }
 0x107   : > { %7692 = vmatpush1.bf16.msk.msra.mxu1 %vm7691_vm3, %v11685_v13  ;;  %vm7437_vm6 = vmpackc.low %vm655_vm15, %vm653_vm14  ;;  %vm1733_vm14 = vcmp.eq.s32.totalorder %v10067_v30, %v8389_v10  ;;  %vm1730_vm3 = vcmp.eq.s32.totalorder %v10064_v0, %v8395_v12  ;;  %11857 = vst [vmem:[#allocation86_spill] sm:$0xff] %v10116_v61 }
 0x108   : > { %7438 = vmatprep.subr.msk.bf16.mxu0 %vm7437_vm6, %v11685_v13  ;;  %vm7693_vm9 = vmpackc.low %vm1729_vm2, %vm1727_vm1  ;;  %vm658_vm1 = vcmp.eq.s32.totalorder %v10067_v30, %v8392_v11  ;;  %vm661_vm6 = vcmp.eq.s32.totalorder %v10090_v52, %v8386_v9 }
 0x109   : > { %7694 = vmatprep.subr.msk.bf16.mxu1 %vm7693_vm9, %v11685_v13  ;;  %vm7439_vm12 = vmpackc.low %vm654_vm5, %vm652_vm4  ;;  %vm1732_vm4 = vcmp.eq.s32.totalorder %v10067_v30, %v8395_v12  ;;  %vm1735_vm9 = vcmp.eq.s32.totalorder %v10090_v52, %v8389_v10 }
 0x10a   : > { %7440 = vmatpush1.bf16.msk.msra.mxu0 %vm7439_vm12, %v11685_v13  ;;  %vm7695_vm15 = vmpackc.low %vm1728_vm8, %vm1726_vm7  ;;  %vm663_vm7 = vcmp.eq.s32.totalorder %v10093_v3, %v8386_v9  ;;  %vm660_vm12 = vcmp.eq.s32.totalorder %v10090_v52, %v8392_v11 }
 0x10b   : > { %7696 = vmatpush1.bf16.msk.msra.mxu1 %vm7695_vm15, %v11685_v13  ;;  %vm7441_vm2 = vmpackc.low %vm659_vm11, %vm657_vm10  ;;  %vm1737_vm10 = vcmp.eq.s32.totalorder %v10093_v3, %v8389_v10  ;;  %vm1734_vm15 = vcmp.eq.s32.totalorder %v10090_v52, %v8395_v12 }
 0x10c   : > { %7442 = vmatprep.subr.msk.bf16.mxu0 %vm7441_vm2, %v11685_v13  ;;  %vm7697_vm5 = vmpackc.low %vm1733_vm14, %vm1731_vm13  ;;  %vm662_vm13 = vcmp.eq.s32.totalorder %v10093_v3, %v8392_v11  ;;  %vm665_vm2 = vcmp.eq.s32.totalorder %v10116_v61, %v8386_v9 }
 0x10d   : > { %7698 = vmatprep.subr.msk.bf16.mxu1 %vm7697_vm5, %v11685_v13  ;;  %vm7443_vm8 = vmpackc.low %vm658_vm1, %vm656_vm0  ;;  %vm1736_vm0 = vcmp.eq.s32.totalorder %v10093_v3, %v8395_v12  ;;  %vm1739_vm5 = vcmp.eq.s32.totalorder %v10116_v61, %v8389_v10  ;;  %v11860_v3 = vmov 1.0|1.0  }
 0x10e   : > { %7444 = vmatpush1.bf16.msk.msra.mxu0 %vm7443_vm8, %v11685_v13  ;;  %vm7699_vm11 = vmpackc.low %vm1732_vm4, %vm1730_vm3  ;;  %vm667_vm3 = vcmp.eq.s32.totalorder %v10119_v62, %v8386_v9  ;;  %vm664_vm8 = vcmp.eq.s32.totalorder %v10116_v61, %v8392_v11  ;;  %v11689_v9 = vmov 0.0  }
 0x10f   : > { %7700 = vmatpush1.bf16.msk.msra.mxu1 %vm7699_vm11, %v11685_v13  ;;  %vm7445_vm14 = vmpackc.low %vm663_vm7, %vm661_vm6  ;;  %vm1741_vm6 = vcmp.eq.s32.totalorder %v10119_v62, %v8389_v10  ;;  %vm1738_vm11 = vcmp.eq.s32.totalorder %v10116_v61, %v8395_v12  ;;  %v8283_v10 = vld [vmem:[%s11526_s0] sm:$0x3] }
 0x110   : > { %7446 = vmatprep.subr.msk.bf16.mxu0 %vm7445_vm14, %v11685_v13  ;;  %vm7701_vm1 = vmpackc.low %vm1737_vm10, %vm1735_vm9  ;;  %vm666_vm9 = vcmp.eq.s32.totalorder %v10119_v62, %v8392_v11  ;;  %v2702_v11 = vadd.s32 16, %v8283_v10 }
 0x111   : > { %7702 = vmatprep.subr.msk.bf16.mxu1 %vm7701_vm1, %v11685_v13  ;;  %vm7447_vm4 = vmpackc.low %vm662_vm13, %vm660_vm12  ;;  %vm1740_vm12 = vcmp.eq.s32.totalorder %v10119_v62, %v8395_v12 }
 0x112   : > { %7448 = vmatpush1.bf16.msk.msra.mxu0 %vm7447_vm4, %v11685_v13  ;;  %vm7703_vm7 = vmpackc.low %vm1736_vm0, %vm1734_vm15  ;;  %v10168_v12 = vrot.slane %v2702_v11, %v8374_v5  ;;  %vm2544_vm0 = vcmask 1043456   ;;  %v10180_v10 = vrot.slane %v2702_v11, %v8377_v6  ;;  %v11859_v5 = vmov 0.0   ;;  %v11863_v11 = vld [vmem:[#allocation6_spill] sm:$0xff] }
 0x113   : > { %7704 = vmatpush1.bf16.msk.msra.mxu1 %vm7703_vm7, %v11685_v13  ;;  %vm7449_vm10 = vmpackc.low %vm667_vm3, %vm665_vm2  ;;  %vm2540_vm3 = vcmask 31744  }
 0x114   : > { %7450 = vmatprep.subr.msk.bf16.mxu0 %vm7449_vm10, %v11685_v13  ;;  %vm7705_vm13 = vmpackc.low %vm1741_vm6, %vm1739_vm5  ;;  %vm2712_vm1 = vcmp.eq.s32.totalorder %v8368_v2, %v10168_v12  ;;  %vm2714_vm2 = vcmp.eq.s32.totalorder %v8371_v4, %v10168_v12  ;;  %vm2711_vm5 = vcmp.eq.s32.totalorder %v8368_v2, %v10180_v10  ;;  %vm2713_vm6 = vcmp.eq.s32.totalorder %v8371_v4, %v10180_v10 }
 0x115   : > { %7706 = vmatprep.subr.msk.bf16.mxu1 %vm7705_vm13, %v11685_v13  ;;  %vm7451_vm14 = vmpackc.low %vm666_vm9, %vm664_vm8  ;;  %vm2716_vm7 = vcmp.eq.s32.totalorder %v8380_v7, %v10168_v12  ;;  %vm2718_vm8 = vcmp.eq.s32.totalorder %v8383_v8, %v10168_v12  ;;  %vm2720_vm13 = vcmp.eq.s32.totalorder %v8419_v14, %v10168_v12 }
 0x116   : > { %7452 = vmatpush1.bf16.msk.msra.mxu0 %vm7451_vm14, %v11685_v13  ;;  %vm7707_vm15 = vmpackc.low %vm1740_vm12, %vm1738_vm11  ;;  %vm2715_vm11 = vcmp.eq.s32.totalorder %v8380_v7, %v10180_v10  ;;  %vm2717_vm12 = vcmp.eq.s32.totalorder %v8383_v8, %v10180_v10  ;;  %vm2722_vm14 = vcmp.eq.s32.totalorder %v8422_v15, %v10168_v12 }
 0x117   : > { %7708 = vmatpush1.bf16.msk.msra.mxu1 %vm7707_vm15, %v11685_v13  ;;  %vm7709_vm4 = vmpackc.low %vm2714_vm2, %vm2712_vm1  ;;  %vm2719_vm2 = vcmp.eq.s32.totalorder %v8419_v14, %v10180_v10 }
 0x118   : > { %vm7711_vm9 = vmpackc.low %vm2713_vm6, %vm2711_vm5  ;;  %vm2724_vm5 = vcmp.eq.s32.totalorder %v8445_v16, %v10168_v12  ;;  %vm2726_vm6 = vcmp.eq.s32.totalorder %v8448_v17, %v10168_v12 }
 0x119   : > { %1470 = vmatmul.mubr.f32.vlgmr.msra.gmra.mrb[0].mxu0 %v9729_v63  ;;  %vm7713_vm10 = vmpackc.low %vm2718_vm8, %vm2716_vm7 }
 0x11a   : > { %2532 = vmatmul.mubr.f32.vlgmr.msra.gmra.mrb[0].mxu1 %v9729_v63  ;;  %3838 = vmatprep.mubr.f32.mxu0 %v11689_v9  ;;  %vm7715_vm15 = vmpackc.low %vm2717_vm12, %vm2715_vm11  ;;  %vm2728_vm11 = vcmp.eq.s32.totalorder %v8471_v18, %v10168_v12  ;;  %vm2730_vm12 = vcmp.eq.s32.totalorder %v8474_v19, %v10168_v12 }
 0x11b   : > { %2615 = vmatprep.mubr.f32.mxu1 %v11689_v9  ;;  %v6154_v9 = vld [vmem:[%s11527_s1 + $0x8] sm:$0xff]  ;;  %vm7717_vm1 = vmpackc.low %vm2722_vm14, %vm2720_vm13 }
 0x11c   : > { %vm7721_vm8 = vmpackc.low %vm2726_vm6, %vm2724_vm5 }
 0x11d   : > { %vm7725_vm14 = vmpackc.low %vm2730_vm12, %vm2728_vm11 }
 0x1ec   : > { %v1471_v62 = vpop.f32.mrb[0].mxu0 }
 0x1ed   : > { %v2533_v13 = vpop.f32.mrb[0].mxu1  ;;  %v1473_v61 = vpop.f32.mrb[1].mxu0 }
 0x1ee   : > { %v2535_v63 = vpop.f32.mrb[1].mxu1 }
 0x1ef   : > { %6155 = vmatprep.subr.msk.mxu1 %vm2544_vm0, %v2535_v63  ;;  %v11864_v63 = vld [vmem:[#allocation7_spill] sm:$0xff] }
 0x1f0   : > { %6156 = vmatpush1.msk.msra.mxu1 %vm2544_vm0, %v2533_v13  ;;  %v1476_v13 = vld [vmem:[%s11527_s1] sm:$0xff] }
 0x1f1   : > { %6157 = vmatmul.mubr.msk.f32.vlgmr.msra.gmra.mrb[2].mxu1 %vm2540_vm3, %v6154_v9  ;;  %6158 = vmatprep.subr.msk.mxu1 %vm2544_vm0, %v1473_v61  ;;  %v11861_v61 = vld [vmem:[#allocation4_spill] sm:$0xff]  ;;  %v11862_v9 = vld [vmem:[#allocation5_spill] sm:$0xff] }
 0x1f2   : > { %6159 = vmatpush1.msk.msra.mxu1 %vm2544_vm0, %v1471_v62  ;;  %2695 = vmatprep.mubr.f32.mxu1 %v11859_v5  ;;  %v8284_v62 = vld [vmem:[%s8616_s24] sm:$0xff]  ;;  %v11867_v5 = vld [vmem:[#allocation10_spill] sm:$0xff] }
 0x1f3   : > { %7710 = vmatprep.subr.msk.bf16.mxu1 %vm7709_vm4, %v11860_v3  ;;  %vm2721_vm4 = vcmp.eq.s32.totalorder %v8422_v15, %v10180_v10 }
 0x1f4   : > { %vm7719_vm7 = vmpackc.low %vm2721_vm4, %vm2719_vm2  ;;  %vm2732_vm2 = vcmp.eq.s32.totalorder %v8497_v20, %v10168_v12  ;;  %vm2734_vm4 = vcmp.eq.s32.totalorder %v8500_v21, %v10168_v12 }
 0x1f5   : > { %vm7729_vm6 = vmpackc.low %vm2734_vm4, %vm2732_vm2 }
 0x1f9   : > { %6160 = vmatmul.mubr.msk.f32.vlgmr.msra.gmra.mrb[2].mxu1 %vm2540_vm3, %v1476_v13  ;;  %v11865_v13 = vld [vmem:[#allocation8_spill] sm:$0xff] }
 0x1fa   : > { %7712 = vmatpush1.bf16.msk.msra.mxu1 %vm7711_vm9, %v11860_v3  ;;  %3543 = vmatprep.mubr.f32.mxu1 %v8659_v33  ;;  %vm2723_vm9 = vcmp.eq.s32.totalorder %v8445_v16, %v10180_v10 }
 0x1fb   : > { %7714 = vmatprep.subr.msk.bf16.mxu1 %vm7713_vm10, %v11860_v3  ;;  %vm2725_vm10 = vcmp.eq.s32.totalorder %v8448_v17, %v10180_v10 }
 0x1fc   : > { %vm7723_vm13 = vmpackc.low %vm2725_vm10, %vm2723_vm9  ;;  %vm2736_vm9 = vcmp.eq.s32.totalorder %v8523_v22, %v10168_v12  ;;  %vm2738_vm10 = vcmp.eq.s32.totalorder %v8526_v23, %v10168_v12 }
 0x1fd   : > { %vm7733_vm12 = vmpackc.low %vm2738_vm10, %vm2736_vm9 }
 0x1fe   : > { %7716 = vmatpush1.bf16.msk.msra.mxu1 %vm7715_vm15, %v11860_v3  ;;  %vm2727_vm15 = vcmp.eq.s32.totalorder %v8471_v18, %v10180_v10 }
 0x1ff   : > { %7718 = vmatprep.subr.msk.bf16.mxu1 %vm7717_vm1, %v11860_v3  ;;  %vm2729_vm1 = vcmp.eq.s32.totalorder %v8474_v19, %v10180_v10 }
 0x200   : > { %vm7727_vm5 = vmpackc.low %vm2729_vm1, %vm2727_vm15  ;;  %vm2740_vm15 = vcmp.eq.s32.totalorder %v8550_v24, %v10168_v12  ;;  %vm2742_vm1 = vcmp.eq.s32.totalorder %v8553_v25, %v10168_v12 }
 0x201   : > { %vm7737_vm4 = vmpackc.low %vm2742_vm1, %vm2740_vm15 }
 0x202   : > { %7720 = vmatpush1.bf16.msk.msra.mxu1 %vm7719_vm7, %v11860_v3  ;;  %vm2731_vm7 = vcmp.eq.s32.totalorder %v8497_v20, %v10180_v10 }
 0x203   : > { %7722 = vmatprep.subr.msk.bf16.mxu1 %vm7721_vm8, %v11860_v3  ;;  %vm2733_vm8 = vcmp.eq.s32.totalorder %v8500_v21, %v10180_v10 }
 0x204   : > { %vm7731_vm11 = vmpackc.low %vm2733_vm8, %vm2731_vm7  ;;  %vm2744_vm7 = vcmp.eq.s32.totalorder %v8581_v26, %v10168_v12  ;;  %vm2746_vm8 = vcmp.eq.s32.totalorder %v8584_v27, %v10168_v12 }
 0x205   : > { %vm7741_vm10 = vmpackc.low %vm2746_vm8, %vm2744_vm7 }
 0x206   : > { %7724 = vmatpush1.bf16.msk.msra.mxu1 %vm7723_vm13, %v11860_v3  ;;  %vm2735_vm13 = vcmp.eq.s32.totalorder %v8523_v22, %v10180_v10 }
 0x207   : > { %7726 = vmatprep.subr.msk.bf16.mxu1 %vm7725_vm14, %v11860_v3  ;;  %vm2737_vm14 = vcmp.eq.s32.totalorder %v8526_v23, %v10180_v10 }
 0x208   : > { %vm7735_vm2 = vmpackc.low %vm2737_vm14, %vm2735_vm13  ;;  %vm2748_vm13 = vcmp.eq.s32.totalorder %v8608_v28, %v10168_v12  ;;  %vm2750_vm14 = vcmp.eq.s32.totalorder %v8611_v29, %v10168_v12 }
 0x209   : > { %vm7745_vm1 = vmpackc.low %vm2750_vm14, %vm2748_vm13 }
 0x20a   : > { %7728 = vmatpush1.bf16.msk.msra.mxu1 %vm7727_vm5, %v11860_v3  ;;  %vm2739_vm5 = vcmp.eq.s32.totalorder %v8550_v24, %v10180_v10 }
 0x20b   : > { %7730 = vmatprep.subr.msk.bf16.mxu1 %vm7729_vm6, %v11860_v3  ;;  %vm2741_vm6 = vcmp.eq.s32.totalorder %v8553_v25, %v10180_v10 }
 0x20c   : > { %vm7739_vm9 = vmpackc.low %vm2741_vm6, %vm2739_vm5  ;;  %vm2752_vm5 = vcmp.eq.s32.totalorder %v8642_v31, %v10168_v12  ;;  %vm2754_vm6 = vcmp.eq.s32.totalorder %v8645_v32, %v10168_v12 }
 0x20d   : > { %vm7749_vm8 = vmpackc.low %vm2754_vm6, %vm2752_vm5 }
 0x20e   : > { %7732 = vmatpush1.bf16.msk.msra.mxu1 %vm7731_vm11, %v11860_v3  ;;  %vm2743_vm11 = vcmp.eq.s32.totalorder %v8581_v26, %v10180_v10 }
 0x20f   : > { %7734 = vmatprep.subr.msk.bf16.mxu1 %vm7733_vm12, %v11860_v3  ;;  %vm2745_vm12 = vcmp.eq.s32.totalorder %v8584_v27, %v10180_v10 }
 0x210   : > { %vm7743_vm15 = vmpackc.low %vm2745_vm12, %vm2743_vm11  ;;  %vm2756_vm11 = vcmp.eq.s32.totalorder %v8672_v34, %v10168_v12  ;;  %vm2758_vm12 = vcmp.eq.s32.totalorder %v8675_v35, %v10168_v12 }
 0x211   : > { %vm7753_vm14 = vmpackc.low %vm2758_vm12, %vm2756_vm11 }
 0x212   : > { %7736 = vmatpush1.bf16.msk.msra.mxu1 %vm7735_vm2, %v11860_v3  ;;  %vm2747_vm2 = vcmp.eq.s32.totalorder %v8608_v28, %v10180_v10 }
 0x213   : > { %7738 = vmatprep.subr.msk.bf16.mxu1 %vm7737_vm4, %v11860_v3  ;;  %vm2749_vm4 = vcmp.eq.s32.totalorder %v8611_v29, %v10180_v10 }
 0x214   : > { %vm7747_vm7 = vmpackc.low %vm2749_vm4, %vm2747_vm2  ;;  %vm2760_vm2 = vcmp.eq.s32.totalorder %v8709_v36, %v10168_v12  ;;  %vm2762_vm4 = vcmp.eq.s32.totalorder %v8712_v37, %v10168_v12 }
 0x215   : > { %vm7757_vm6 = vmpackc.low %vm2762_vm4, %vm2760_vm2 }
 0x216   : > { %7740 = vmatpush1.bf16.msk.msra.mxu1 %vm7739_vm9, %v11860_v3  ;;  %vm2751_vm9 = vcmp.eq.s32.totalorder %v8642_v31, %v10180_v10 }
 0x217   : > { %7742 = vmatprep.subr.msk.bf16.mxu1 %vm7741_vm10, %v11860_v3  ;;  %vm2753_vm10 = vcmp.eq.s32.totalorder %v8645_v32, %v10180_v10 }
 0x218   : > { %vm7751_vm13 = vmpackc.low %vm2753_vm10, %vm2751_vm9  ;;  %vm2764_vm9 = vcmp.eq.s32.totalorder %v8735_v38, %v10168_v12  ;;  %vm2766_vm10 = vcmp.eq.s32.totalorder %v8738_v39, %v10168_v12 }
 0x219   : > { %vm7761_vm12 = vmpackc.low %vm2766_vm10, %vm2764_vm9 }
 0x21a   : > { %7744 = vmatpush1.bf16.msk.msra.mxu1 %vm7743_vm15, %v11860_v3  ;;  %vm2755_vm15 = vcmp.eq.s32.totalorder %v8672_v34, %v10180_v10 }
 0x21b   : > { %7746 = vmatprep.subr.msk.bf16.mxu1 %vm7745_vm1, %v11860_v3  ;;  %vm2757_vm1 = vcmp.eq.s32.totalorder %v8675_v35, %v10180_v10 }
 0x21c   : > { %vm7755_vm5 = vmpackc.low %vm2757_vm1, %vm2755_vm15  ;;  %vm2768_vm15 = vcmp.eq.s32.totalorder %v8761_v40, %v10168_v12  ;;  %vm2770_vm1 = vcmp.eq.s32.totalorder %v8764_v41, %v10168_v12 }
 0x21d   : > { %vm7765_vm4 = vmpackc.low %vm2770_vm1, %vm2768_vm15 }
 0x21e   : > { %7748 = vmatpush1.bf16.msk.msra.mxu1 %vm7747_vm7, %v11860_v3  ;;  %vm2759_vm7 = vcmp.eq.s32.totalorder %v8709_v36, %v10180_v10 }
 0x21f   : > { %7750 = vmatprep.subr.msk.bf16.mxu1 %vm7749_vm8, %v11860_v3  ;;  %vm2761_vm8 = vcmp.eq.s32.totalorder %v8712_v37, %v10180_v10 }
 0x220   : > { %vm7759_vm11 = vmpackc.low %vm2761_vm8, %vm2759_vm7  ;;  %vm2772_vm7 = vcmp.eq.s32.totalorder %v8787_v42, %v10168_v12  ;;  %vm2774_vm8 = vcmp.eq.s32.totalorder %v8790_v43, %v10168_v12 }
 0x221   : > { %vm7769_vm10 = vmpackc.low %vm2774_vm8, %vm2772_vm7 }
 0x222   : > { %7752 = vmatpush1.bf16.msk.msra.mxu1 %vm7751_vm13, %v11860_v3  ;;  %vm2763_vm13 = vcmp.eq.s32.totalorder %v8735_v38, %v10180_v10 }
 0x223   : > { %7754 = vmatprep.subr.msk.bf16.mxu1 %vm7753_vm14, %v11860_v3  ;;  %vm2765_vm14 = vcmp.eq.s32.totalorder %v8738_v39, %v10180_v10 }
 0x224   : > { %vm7763_vm2 = vmpackc.low %vm2765_vm14, %vm2763_vm13  ;;  %vm2776_vm13 = vcmp.eq.s32.totalorder %v8813_v44, %v10168_v12  ;;  %vm2778_vm14 = vcmp.eq.s32.totalorder %v8816_v45, %v10168_v12 }
 0x225   : > { %vm7773_vm1 = vmpackc.low %vm2778_vm14, %vm2776_vm13 }
 0x226   : > { %7756 = vmatpush1.bf16.msk.msra.mxu1 %vm7755_vm5, %v11860_v3  ;;  %vm2767_vm5 = vcmp.eq.s32.totalorder %v8761_v40, %v10180_v10 }
 0x227   : > { %7758 = vmatprep.subr.msk.bf16.mxu1 %vm7757_vm6, %v11860_v3  ;;  %vm2769_vm6 = vcmp.eq.s32.totalorder %v8764_v41, %v10180_v10 }
 0x228   : > { %vm7767_vm9 = vmpackc.low %vm2769_vm6, %vm2767_vm5  ;;  %vm2780_vm5 = vcmp.eq.s32.totalorder %v8839_v46, %v10168_v12  ;;  %vm2782_vm6 = vcmp.eq.s32.totalorder %v8842_v47, %v10168_v12 }
 0x229   : > { %vm7777_vm8 = vmpackc.low %vm2782_vm6, %vm2780_vm5 }
 0x22a   : > { %7760 = vmatpush1.bf16.msk.msra.mxu1 %vm7759_vm11, %v11860_v3  ;;  %vm2771_vm11 = vcmp.eq.s32.totalorder %v8787_v42, %v10180_v10 }
 0x22b   : > { %7762 = vmatprep.subr.msk.bf16.mxu1 %vm7761_vm12, %v11860_v3  ;;  %vm2773_vm12 = vcmp.eq.s32.totalorder %v8790_v43, %v10180_v10 }
 0x22c   : > { %vm7771_vm15 = vmpackc.low %vm2773_vm12, %vm2771_vm11  ;;  %vm2784_vm11 = vcmp.eq.s32.totalorder %v8865_v48, %v10168_v12  ;;  %vm2786_vm12 = vcmp.eq.s32.totalorder %v8868_v49, %v10168_v12 }
 0x22d   : > { %vm7781_vm14 = vmpackc.low %vm2786_vm12, %vm2784_vm11 }
 0x22e   : > { %7764 = vmatpush1.bf16.msk.msra.mxu1 %vm7763_vm2, %v11860_v3  ;;  %vm2775_vm2 = vcmp.eq.s32.totalorder %v8813_v44, %v10180_v10 }
 0x22f   : > { %7766 = vmatprep.subr.msk.bf16.mxu1 %vm7765_vm4, %v11860_v3  ;;  %vm2777_vm4 = vcmp.eq.s32.totalorder %v8816_v45, %v10180_v10 }
 0x230   : > { %vm7775_vm7 = vmpackc.low %vm2777_vm4, %vm2775_vm2  ;;  %vm2788_vm2 = vcmp.eq.s32.totalorder %v8899_v50, %v10168_v12  ;;  %vm2790_vm4 = vcmp.eq.s32.totalorder %v8902_v51, %v10168_v12 }
 0x231   : > { %vm7785_vm6 = vmpackc.low %vm2790_vm4, %vm2788_vm2 }
 0x232   : > { %7768 = vmatpush1.bf16.msk.msra.mxu1 %vm7767_vm9, %v11860_v3  ;;  %vm2779_vm9 = vcmp.eq.s32.totalorder %v8839_v46, %v10180_v10 }
 0x233   : > { %7770 = vmatprep.subr.msk.bf16.mxu1 %vm7769_vm10, %v11860_v3  ;;  %vm2781_vm10 = vcmp.eq.s32.totalorder %v8842_v47, %v10180_v10 }
 0x234   : > { %vm7779_vm13 = vmpackc.low %vm2781_vm10, %vm2779_vm9  ;;  %vm2792_vm9 = vcmp.eq.s32.totalorder %v8923_v53, %v10168_v12  ;;  %vm2794_vm10 = vcmp.eq.s32.totalorder %v8931_v54, %v10168_v12 }
 0x235   : > { %vm7789_vm12 = vmpackc.low %vm2794_vm10, %vm2792_vm9 }
 0x236   : > { %7772 = vmatpush1.bf16.msk.msra.mxu1 %vm7771_vm15, %v11860_v3  ;;  %vm2783_vm15 = vcmp.eq.s32.totalorder %v8865_v48, %v10180_v10 }
 0x237   : > { %7774 = vmatprep.subr.msk.bf16.mxu1 %vm7773_vm1, %v11860_v3  ;;  %vm2785_vm1 = vcmp.eq.s32.totalorder %v8868_v49, %v10180_v10 }
 0x238   : > { %vm7783_vm5 = vmpackc.low %vm2785_vm1, %vm2783_vm15  ;;  %vm2796_vm15 = vcmp.eq.s32.totalorder %v8958_v56, %v10168_v12  ;;  %vm2798_vm1 = vcmp.eq.s32.totalorder %v8961_v57, %v10168_v12 }
 0x239   : > { %3544 = vmatmul.mubr.f32.vlgmr.msra.gmra.mrb[4].mxu1 %v8284_v62  ;;  %vm7793_vm4 = vmpackc.low %vm2798_vm1, %vm2796_vm15  ;;  %v11866_v62 = vld [vmem:[#allocation9_spill] sm:$0xff] }
 0x23a   : > { %7776 = vmatpush1.bf16.msk.msra.mxu1 %vm7775_vm7, %v11860_v3  ;;  %3614 = vmatprep.mubr.f32.mxu1 %v8935_v55  ;;  %vm2787_vm7 = vcmp.eq.s32.totalorder %v8899_v50, %v10180_v10 }
 0x23b   : > { %7778 = vmatprep.subr.msk.bf16.mxu1 %vm7777_vm8, %v11860_v3  ;;  %vm2789_vm8 = vcmp.eq.s32.totalorder %v8902_v51, %v10180_v10 }
 0x23c   : > { %vm7787_vm11 = vmpackc.low %vm2789_vm8, %vm2787_vm7  ;;  %vm2800_vm7 = vcmp.eq.s32.totalorder %v8992_v58, %v10168_v12  ;;  %vm2802_vm8 = vcmp.eq.s32.totalorder %v8995_v59, %v10168_v12 }
 0x23d   : > { %vm7797_vm10 = vmpackc.low %vm2802_vm8, %vm2800_vm7 }
 0x23e   : > { %7780 = vmatpush1.bf16.msk.msra.mxu1 %vm7779_vm13, %v11860_v3  ;;  %vm2791_vm13 = vcmp.eq.s32.totalorder %v8923_v53, %v10180_v10 }
 0x23f   : > { %7782 = vmatprep.subr.msk.bf16.mxu1 %vm7781_vm14, %v11860_v3  ;;  %vm2793_vm14 = vcmp.eq.s32.totalorder %v8931_v54, %v10180_v10 }
 0x240   : > { %vm7791_vm2 = vmpackc.low %vm2793_vm14, %vm2791_vm13  ;;  %vm2804_vm13 = vcmp.eq.s32.totalorder %v11861_v61, %v10168_v12  ;;  %vm2806_vm14 = vcmp.eq.s32.totalorder %v11862_v9, %v10168_v12 }
 0x241   : > { %vm7801_vm1 = vmpackc.low %vm2806_vm14, %vm2804_vm13 }
 0x242   : > { %7784 = vmatpush1.bf16.msk.msra.mxu1 %vm7783_vm5, %v11860_v3  ;;  %vm2795_vm5 = vcmp.eq.s32.totalorder %v8958_v56, %v10180_v10 }
 0x243   : > { %7786 = vmatprep.subr.msk.bf16.mxu1 %vm7785_vm6, %v11860_v3  ;;  %vm2797_vm6 = vcmp.eq.s32.totalorder %v8961_v57, %v10180_v10 }
 0x244   : > { %vm7795_vm9 = vmpackc.low %vm2797_vm6, %vm2795_vm5  ;;  %vm2808_vm5 = vcmp.eq.s32.totalorder %v11863_v11, %v10168_v12  ;;  %vm2810_vm6 = vcmp.eq.s32.totalorder %v11864_v63, %v10168_v12 }
 0x245   : > { %vm7805_vm8 = vmpackc.low %vm2810_vm6, %vm2808_vm5 }
 0x246   : > { %7788 = vmatpush1.bf16.msk.msra.mxu1 %vm7787_vm11, %v11860_v3  ;;  %vm2799_vm11 = vcmp.eq.s32.totalorder %v8992_v58, %v10180_v10 }
 0x247   : > { %7790 = vmatprep.subr.msk.bf16.mxu1 %vm7789_vm12, %v11860_v3  ;;  %vm2801_vm12 = vcmp.eq.s32.totalorder %v8995_v59, %v10180_v10 }
 0x248   : > { %vm7799_vm15 = vmpackc.low %vm2801_vm12, %vm2799_vm11  ;;  %vm2812_vm11 = vcmp.eq.s32.totalorder %v11865_v13, %v10168_v12  ;;  %vm2814_vm12 = vcmp.eq.s32.totalorder %v11866_v62, %v10168_v12 }
 0x249   : > { %vm7809_vm14 = vmpackc.low %vm2814_vm12, %vm2812_vm11 }
 0x24a   : > { %7792 = vmatpush1.bf16.msk.msra.mxu1 %vm7791_vm2, %v11860_v3  ;;  %vm2803_vm2 = vcmp.eq.s32.totalorder %v11861_v61, %v10180_v10 }
 0x24b   : > { %7794 = vmatprep.subr.msk.bf16.mxu1 %vm7793_vm4, %v11860_v3  ;;  %vm2805_vm4 = vcmp.eq.s32.totalorder %v11862_v9, %v10180_v10  ;;  %v11885_v9 = vld [vmem:[#allocation26_spill] sm:$0xff] }
 0x24c   : > { %vm7803_vm7 = vmpackc.low %vm2805_vm4, %vm2803_vm2  ;;  %vm2816_vm2 = vcmp.eq.s32.totalorder %v11867_v5, %v10168_v12 }
 0x24e   : > { %7796 = vmatpush1.bf16.msk.msra.mxu1 %vm7795_vm9, %v11860_v3  ;;  %vm2807_vm9 = vcmp.eq.s32.totalorder %v11863_v11, %v10180_v10  ;;  %v11884_v11 = vld [vmem:[#allocation28_spill] sm:$0xff] }
 0x24f   : > { %7798 = vmatprep.subr.msk.bf16.mxu1 %vm7797_vm10, %v11860_v3  ;;  %vm2809_vm10 = vcmp.eq.s32.totalorder %v11864_v63, %v10180_v10  ;;  %v11868_v63 = vld [vmem:[#allocation11_spill] sm:$0xff] }
 0x250   : > { %vm7807_vm13 = vmpackc.low %vm2809_vm10, %vm2807_vm9  ;;  %vm2818_vm4 = vcmp.eq.s32.totalorder %v11868_v63, %v10168_v12 }
 0x251   : > { %vm7813_vm6 = vmpackc.low %vm2818_vm4, %vm2816_vm2 }
 0x252   : > { %7800 = vmatpush1.bf16.msk.msra.mxu1 %vm7799_vm15, %v11860_v3  ;;  %vm2811_vm15 = vcmp.eq.s32.totalorder %v11865_v13, %v10180_v10  ;;  %v11870_v13 = vld [vmem:[#allocation13_spill] sm:$0xff] }
 0x253   : > { %7802 = vmatprep.subr.msk.bf16.mxu1 %vm7801_vm1, %v11860_v3  ;;  %vm2813_vm1 = vcmp.eq.s32.totalorder %v11866_v62, %v10180_v10  ;;  %v11869_v62 = vld [vmem:[#allocation12_spill] sm:$0xff]  ;;  %vm2822_vm10 = vcmp.eq.s32.totalorder %v11870_v13, %v10168_v12 }
 0x254   : > { %vm7811_vm5 = vmpackc.low %vm2813_vm1, %vm2811_vm15  ;;  %vm2820_vm9 = vcmp.eq.s32.totalorder %v11869_v62, %v10168_v12 }
 0x255   : > { %vm7817_vm12 = vmpackc.low %vm2822_vm10, %vm2820_vm9 }
 0x256   : > { %7804 = vmatpush1.bf16.msk.msra.mxu1 %vm7803_vm7, %v11860_v3  ;;  %vm2815_vm7 = vcmp.eq.s32.totalorder %v11867_v5, %v10180_v10  ;;  %v11872_v5 = vld [vmem:[#allocation15_spill] sm:$0xff] }
 0x257   : > { %7806 = vmatprep.subr.msk.bf16.mxu1 %vm7805_vm8, %v11860_v3  ;;  %vm2817_vm8 = vcmp.eq.s32.totalorder %v11868_v63, %v10180_v10  ;;  %v11871_v63 = vld [vmem:[#allocation14_spill] sm:$0xff]  ;;  %vm2826_vm1 = vcmp.eq.s32.totalorder %v11872_v5, %v10168_v12 }
 0x258   : > { %vm7815_vm11 = vmpackc.low %vm2817_vm8, %vm2815_vm7  ;;  %vm2824_vm15 = vcmp.eq.s32.totalorder %v11871_v63, %v10168_v12 }
 0x259   : > { %vm7821_vm4 = vmpackc.low %vm2826_vm1, %vm2824_vm15 }
 0x25a   : > { %7808 = vmatpush1.bf16.msk.msra.mxu1 %vm7807_vm13, %v11860_v3  ;;  %vm2819_vm13 = vcmp.eq.s32.totalorder %v11869_v62, %v10180_v10  ;;  %v11874_v62 = vld [vmem:[#allocation17_spill] sm:$0xff] }
 0x25b   : > { %7810 = vmatprep.subr.msk.bf16.mxu1 %vm7809_vm14, %v11860_v3  ;;  %vm2821_vm14 = vcmp.eq.s32.totalorder %v11870_v13, %v10180_v10  ;;  %v11873_v13 = vld [vmem:[#allocation16_spill] sm:$0xff]  ;;  %vm2830_vm8 = vcmp.eq.s32.totalorder %v11874_v62, %v10168_v12 }
 0x25c   : > { %vm7819_vm2 = vmpackc.low %vm2821_vm14, %vm2819_vm13  ;;  %vm2828_vm7 = vcmp.eq.s32.totalorder %v11873_v13, %v10168_v12 }
 0x25d   : > { %vm7825_vm10 = vmpackc.low %vm2830_vm8, %vm2828_vm7 }
 0x25e   : > { %7812 = vmatpush1.bf16.msk.msra.mxu1 %vm7811_vm5, %v11860_v3  ;;  %vm2823_vm5 = vcmp.eq.s32.totalorder %v11871_v63, %v10180_v10  ;;  %v11876_v63 = vld [vmem:[#allocation19_spill] sm:$0xff] }
 0x25f   : > { %7814 = vmatprep.subr.msk.bf16.mxu1 %vm7813_vm6, %v11860_v3  ;;  %vm2825_vm6 = vcmp.eq.s32.totalorder %v11872_v5, %v10180_v10  ;;  %v11875_v5 = vld [vmem:[#allocation18_spill] sm:$0xff]  ;;  %vm2834_vm14 = vcmp.eq.s32.totalorder %v11876_v63, %v10168_v12 }
 0x260   : > { %vm7823_vm9 = vmpackc.low %vm2825_vm6, %vm2823_vm5  ;;  %vm2832_vm13 = vcmp.eq.s32.totalorder %v11875_v5, %v10168_v12 }
 0x261   : > { %vm7829_vm1 = vmpackc.low %vm2834_vm14, %vm2832_vm13 }
 0x262   : > { %7816 = vmatpush1.bf16.msk.msra.mxu1 %vm7815_vm11, %v11860_v3  ;;  %vm2827_vm11 = vcmp.eq.s32.totalorder %v11873_v13, %v10180_v10  ;;  %v11878_v13 = vld [vmem:[#allocation21_spill] sm:$0xff] }
 0x263   : > { %7818 = vmatprep.subr.msk.bf16.mxu1 %vm7817_vm12, %v11860_v3  ;;  %vm2829_vm12 = vcmp.eq.s32.totalorder %v11874_v62, %v10180_v10  ;;  %v11877_v62 = vld [vmem:[#allocation20_spill] sm:$0xff]  ;;  %vm2838_vm6 = vcmp.eq.s32.totalorder %v11878_v13, %v10168_v12 }
 0x264   : > { %vm7827_vm15 = vmpackc.low %vm2829_vm12, %vm2827_vm11  ;;  %vm2836_vm5 = vcmp.eq.s32.totalorder %v11877_v62, %v10168_v12 }
 0x265   : > { %vm7833_vm8 = vmpackc.low %vm2838_vm6, %vm2836_vm5 }
 0x266   : > { %7820 = vmatpush1.bf16.msk.msra.mxu1 %vm7819_vm2, %v11860_v3  ;;  %vm2831_vm2 = vcmp.eq.s32.totalorder %v11875_v5, %v10180_v10  ;;  %v11880_v5 = vld [vmem:[#allocation23_spill] sm:$0xff] }
 0x267   : > { %7822 = vmatprep.subr.msk.bf16.mxu1 %vm7821_vm4, %v11860_v3  ;;  %vm2833_vm4 = vcmp.eq.s32.totalorder %v11876_v63, %v10180_v10  ;;  %v11879_v63 = vld [vmem:[#allocation22_spill] sm:$0xff]  ;;  %vm2842_vm12 = vcmp.eq.s32.totalorder %v11880_v5, %v10168_v12 }
 0x268   : > { %vm7831_vm7 = vmpackc.low %vm2833_vm4, %vm2831_vm2  ;;  %vm2840_vm11 = vcmp.eq.s32.totalorder %v11879_v63, %v10168_v12 }
 0x269   : > { %vm7837_vm14 = vmpackc.low %vm2842_vm12, %vm2840_vm11 }
 0x26a   : > { %7824 = vmatpush1.bf16.msk.msra.mxu1 %vm7823_vm9, %v11860_v3  ;;  %vm2835_vm9 = vcmp.eq.s32.totalorder %v11877_v62, %v10180_v10  ;;  %v11882_v62 = vld [vmem:[#allocation25_spill] sm:$0xff] }
 0x26b   : > { %7826 = vmatprep.subr.msk.bf16.mxu1 %vm7825_vm10, %v11860_v3  ;;  %vm2837_vm10 = vcmp.eq.s32.totalorder %v11878_v13, %v10180_v10  ;;  %v11881_v13 = vld [vmem:[#allocation24_spill] sm:$0xff]  ;;  %vm2846_vm4 = vcmp.eq.s32.totalorder %v11882_v62, %v10168_v12 }
 0x26c   : > { %vm7835_vm13 = vmpackc.low %vm2837_vm10, %vm2835_vm9  ;;  %vm2844_vm2 = vcmp.eq.s32.totalorder %v11881_v13, %v10168_v12  ;;  %vm2850_vm10 = vcmp.eq.s32.totalorder %v11884_v11, %v10168_v12 }
 0x26d   : > { %vm7841_vm6 = vmpackc.low %vm2846_vm4, %vm2844_vm2 }
 0x26e   : > { %7828 = vmatpush1.bf16.msk.msra.mxu1 %vm7827_vm15, %v11860_v3  ;;  %vm2839_vm15 = vcmp.eq.s32.totalorder %v11879_v63, %v10180_v10  ;;  %v8285_v63 = vld [vmem:[%s8616_s24 + $0x8] sm:$0xff] }
 0x26f   : > { %7830 = vmatprep.subr.msk.bf16.mxu1 %vm7829_vm1, %v11860_v3  ;;  %vm2841_vm1 = vcmp.eq.s32.totalorder %v11880_v5, %v10180_v10  ;;  %v11883_v5 = vld [vmem:[#allocation27_spill] sm:$0xff] }
 0x270   : > { %vm7839_vm5 = vmpackc.low %vm2841_vm1, %vm2839_vm15  ;;  %vm2848_vm9 = vcmp.eq.s32.totalorder %v11883_v5, %v10168_v12 }
 0x271   : > { %vm7845_vm12 = vmpackc.low %vm2850_vm10, %vm2848_vm9 }
 0x272   : > { %7832 = vmatpush1.bf16.msk.msra.mxu1 %vm7831_vm7, %v11860_v3  ;;  %vm2843_vm7 = vcmp.eq.s32.totalorder %v11881_v13, %v10180_v10 }
 0x273   : > { %7834 = vmatprep.subr.msk.bf16.mxu1 %vm7833_vm8, %v11860_v3  ;;  %vm2845_vm8 = vcmp.eq.s32.totalorder %v11882_v62, %v10180_v10  ;;  %v11887_v62 = vld [vmem:[#allocation30_spill] sm:$0xff] }
 0x274   : > { %vm7843_vm11 = vmpackc.low %vm2845_vm8, %vm2843_vm7  ;;  %vm2854_vm1 = vcmp.eq.s32.totalorder %v11887_v62, %v10168_v12 }
 0x276   : > { %7836 = vmatpush1.bf16.msk.msra.mxu1 %vm7835_vm13, %v11860_v3  ;;  %vm2847_vm13 = vcmp.eq.s32.totalorder %v11883_v5, %v10180_v10 }
 0x277   : > { %7838 = vmatprep.subr.msk.bf16.mxu1 %vm7837_vm14, %v11860_v3  ;;  %vm2849_vm14 = vcmp.eq.s32.totalorder %v11884_v11, %v10180_v10  ;;  %v11889_v11 = vld [vmem:[#allocation32_spill] sm:$0xff] }
 0x278   : > { %vm7847_vm2 = vmpackc.low %vm2849_vm14, %vm2847_vm13  ;;  %vm2858_vm8 = vcmp.eq.s32.totalorder %v11889_v11, %v10168_v12 }
 0x279   : > { %3615 = vmatmul.mubr.f32.vlgmr.msra.gmra.mrb[4].mxu1 %v8285_v63  ;;  %v11886_v63 = vld [vmem:[#allocation29_spill] sm:$0xff] }
 0x27a   : > { %7840 = vmatpush1.bf16.msk.msra.mxu1 %vm7839_vm5, %v11860_v3  ;;  %3685 = vmatprep.mubr.f32.mxu1 %v11885_v9  ;;  %vm2852_vm15 = vcmp.eq.s32.totalorder %v11886_v63, %v10168_v12  ;;  %vm2851_vm5 = vcmp.eq.s32.totalorder %v11886_v63, %v10180_v10  ;;  %v11888_v9 = vld [vmem:[#allocation31_spill] sm:$0xff]  ;;  %v11891_v63 = vld [vmem:[#allocation34_spill] sm:$0xff] }
 0x27b   : > { %7842 = vmatprep.subr.msk.bf16.mxu1 %vm7841_vm6, %v11860_v3  ;;  %vm7849_vm4 = vmpackc.low %vm2854_vm1, %vm2852_vm15  ;;  %vm2853_vm6 = vcmp.eq.s32.totalorder %v11887_v62, %v10180_v10  ;;  %vm2856_vm7 = vcmp.eq.s32.totalorder %v11888_v9, %v10168_v12  ;;  %v11890_v62 = vld [vmem:[#allocation33_spill] sm:$0xff]  ;;  %vm2862_vm14 = vcmp.eq.s32.totalorder %v11891_v63, %v10168_v12 }
 0x27c   : > { %vm7851_vm9 = vmpackc.low %vm2853_vm6, %vm2851_vm5  ;;  %vm2860_vm13 = vcmp.eq.s32.totalorder %v11890_v62, %v10168_v12 }
 0x27d   : > { %vm7853_vm10 = vmpackc.low %vm2858_vm8, %vm2856_vm7 }
 0x27e   : > { %7844 = vmatpush1.bf16.msk.msra.mxu1 %vm7843_vm11, %v11860_v3  ;;  %vm2855_vm11 = vcmp.eq.s32.totalorder %v11888_v9, %v10180_v10  ;;  %vm7857_vm1 = vmpackc.low %vm2862_vm14, %vm2860_vm13  ;;  %v11893_v9 = vld [vmem:[#allocation36_spill] sm:$0xff] }
 0x27f   : > { %7846 = vmatprep.subr.msk.bf16.mxu1 %vm7845_vm12, %v11860_v3  ;;  %vm2857_vm12 = vcmp.eq.s32.totalorder %v11889_v11, %v10180_v10  ;;  %v11892_v11 = vld [vmem:[#allocation35_spill] sm:$0xff]  ;;  %vm2866_vm6 = vcmp.eq.s32.totalorder %v11893_v9, %v10168_v12 }
 0x280   : > { %vm7855_vm15 = vmpackc.low %vm2857_vm12, %vm2855_vm11  ;;  %vm2864_vm5 = vcmp.eq.s32.totalorder %v11892_v11, %v10168_v12 }
 0x281   : > { %vm7861_vm8 = vmpackc.low %vm2866_vm6, %vm2864_vm5 }
 0x282   : > { %7848 = vmatpush1.bf16.msk.msra.mxu1 %vm7847_vm2, %v11860_v3  ;;  %vm2859_vm2 = vcmp.eq.s32.totalorder %v11890_v62, %v10180_v10  ;;  %v11895_v62 = vld [vmem:[#allocation38_spill] sm:$0xff] }
 0x283   : > { %7850 = vmatprep.subr.msk.bf16.mxu1 %vm7849_vm4, %v11860_v3  ;;  %vm2861_vm4 = vcmp.eq.s32.totalorder %v11891_v63, %v10180_v10  ;;  %v11894_v63 = vld [vmem:[#allocation37_spill] sm:$0xff]  ;;  %vm2870_vm12 = vcmp.eq.s32.totalorder %v11895_v62, %v10168_v12 }
 0x284   : > { %vm7859_vm7 = vmpackc.low %vm2861_vm4, %vm2859_vm2  ;;  %vm2868_vm11 = vcmp.eq.s32.totalorder %v11894_v63, %v10168_v12 }
 0x285   : > { %vm7865_vm14 = vmpackc.low %vm2870_vm12, %vm2868_vm11 }
 0x286   : > { %7852 = vmatpush1.bf16.msk.msra.mxu1 %vm7851_vm9, %v11860_v3  ;;  %vm2863_vm9 = vcmp.eq.s32.totalorder %v11892_v11, %v10180_v10  ;;  %v11897_v11 = vld [vmem:[#allocation40_spill] sm:$0xff] }
 0x287   : > { %7854 = vmatprep.subr.msk.bf16.mxu1 %vm7853_vm10, %v11860_v3  ;;  %vm2865_vm10 = vcmp.eq.s32.totalorder %v11893_v9, %v10180_v10  ;;  %v11896_v9 = vld [vmem:[#allocation39_spill] sm:$0xff]  ;;  %vm2874_vm4 = vcmp.eq.s32.totalorder %v11897_v11, %v10168_v12 }
 0x288   : > { %vm7863_vm13 = vmpackc.low %vm2865_vm10, %vm2863_vm9  ;;  %vm2872_vm2 = vcmp.eq.s32.totalorder %v11896_v9, %v10168_v12 }
 0x289   : > { %vm7869_vm6 = vmpackc.low %vm2874_vm4, %vm2872_vm2 }
 0x28a   : > { %7856 = vmatpush1.bf16.msk.msra.mxu1 %vm7855_vm15, %v11860_v3  ;;  %vm2867_vm15 = vcmp.eq.s32.totalorder %v11894_v63, %v10180_v10  ;;  %v11899_v63 = vld [vmem:[#allocation42_spill] sm:$0xff] }
 0x28b   : > { %7858 = vmatprep.subr.msk.bf16.mxu1 %vm7857_vm1, %v11860_v3  ;;  %vm2869_vm1 = vcmp.eq.s32.totalorder %v11895_v62, %v10180_v10  ;;  %v11898_v62 = vld [vmem:[#allocation41_spill] sm:$0xff]  ;;  %vm2878_vm10 = vcmp.eq.s32.totalorder %v11899_v63, %v10168_v12 }
 0x28c   : > { %vm7867_vm5 = vmpackc.low %vm2869_vm1, %vm2867_vm15  ;;  %vm2876_vm9 = vcmp.eq.s32.totalorder %v11898_v62, %v10168_v12 }
 0x28d   : > { %vm7873_vm12 = vmpackc.low %vm2878_vm10, %vm2876_vm9 }
 0x28e   : > { %7860 = vmatpush1.bf16.msk.msra.mxu1 %vm7859_vm7, %v11860_v3  ;;  %vm2871_vm7 = vcmp.eq.s32.totalorder %v11896_v9, %v10180_v10  ;;  %v11901_v9 = vld [vmem:[#allocation44_spill] sm:$0xff] }
 0x28f   : > { %7862 = vmatprep.subr.msk.bf16.mxu1 %vm7861_vm8, %v11860_v3  ;;  %vm2873_vm8 = vcmp.eq.s32.totalorder %v11897_v11, %v10180_v10  ;;  %v11900_v11 = vld [vmem:[#allocation43_spill] sm:$0xff]  ;;  %vm2882_vm1 = vcmp.eq.s32.totalorder %v11901_v9, %v10168_v12 }
 0x290   : > { %vm7871_vm11 = vmpackc.low %vm2873_vm8, %vm2871_vm7  ;;  %vm2880_vm15 = vcmp.eq.s32.totalorder %v11900_v11, %v10168_v12 }
 0x291   : > { %vm7877_vm4 = vmpackc.low %vm2882_vm1, %vm2880_vm15 }
 0x292   : > { %7864 = vmatpush1.bf16.msk.msra.mxu1 %vm7863_vm13, %v11860_v3  ;;  %vm2875_vm13 = vcmp.eq.s32.totalorder %v11898_v62, %v10180_v10  ;;  %v11903_v62 = vld [vmem:[#allocation46_spill] sm:$0xff] }
 0x293   : > { %7866 = vmatprep.subr.msk.bf16.mxu1 %vm7865_vm14, %v11860_v3  ;;  %vm2877_vm14 = vcmp.eq.s32.totalorder %v11899_v63, %v10180_v10  ;;  %v11902_v63 = vld [vmem:[#allocation45_spill] sm:$0xff]  ;;  %vm2886_vm8 = vcmp.eq.s32.totalorder %v11903_v62, %v10168_v12 }
 0x294   : > { %vm7875_vm2 = vmpackc.low %vm2877_vm14, %vm2875_vm13  ;;  %vm2884_vm7 = vcmp.eq.s32.totalorder %v11902_v63, %v10168_v12 }
 0x295   : > { %vm7881_vm10 = vmpackc.low %vm2886_vm8, %vm2884_vm7 }
 0x296   : > { %7868 = vmatpush1.bf16.msk.msra.mxu1 %vm7867_vm5, %v11860_v3  ;;  %vm2879_vm5 = vcmp.eq.s32.totalorder %v11900_v11, %v10180_v10  ;;  %v11905_v11 = vld [vmem:[#allocation48_spill] sm:$0xff] }
 0x297   : > { %7870 = vmatprep.subr.msk.bf16.mxu1 %vm7869_vm6, %v11860_v3  ;;  %vm2881_vm6 = vcmp.eq.s32.totalorder %v11901_v9, %v10180_v10  ;;  %v11904_v9 = vld [vmem:[#allocation47_spill] sm:$0xff]  ;;  %vm2890_vm14 = vcmp.eq.s32.totalorder %v11905_v11, %v10168_v12 }
 0x298   : > { %vm7879_vm9 = vmpackc.low %vm2881_vm6, %vm2879_vm5  ;;  %vm2888_vm13 = vcmp.eq.s32.totalorder %v11904_v9, %v10168_v12 }
 0x299   : > { %vm7885_vm1 = vmpackc.low %vm2890_vm14, %vm2888_vm13 }
 0x29a   : > { %7872 = vmatpush1.bf16.msk.msra.mxu1 %vm7871_vm11, %v11860_v3  ;;  %vm2883_vm11 = vcmp.eq.s32.totalorder %v11902_v63, %v10180_v10  ;;  %v11907_v63 = vld [vmem:[#allocation50_spill] sm:$0xff] }
 0x29b   : > { %7874 = vmatprep.subr.msk.bf16.mxu1 %vm7873_vm12, %v11860_v3  ;;  %vm2885_vm12 = vcmp.eq.s32.totalorder %v11903_v62, %v10180_v10  ;;  %v11906_v62 = vld [vmem:[#allocation49_spill] sm:$0xff]  ;;  %vm2894_vm6 = vcmp.eq.s32.totalorder %v11907_v63, %v10168_v12 }
 0x29c   : > { %vm7883_vm15 = vmpackc.low %vm2885_vm12, %vm2883_vm11  ;;  %vm2892_vm5 = vcmp.eq.s32.totalorder %v11906_v62, %v10168_v12 }
 0x29d   : > { %vm7889_vm8 = vmpackc.low %vm2894_vm6, %vm2892_vm5 }
 0x29e   : > { %7876 = vmatpush1.bf16.msk.msra.mxu1 %vm7875_vm2, %v11860_v3  ;;  %vm2887_vm2 = vcmp.eq.s32.totalorder %v11904_v9, %v10180_v10  ;;  %v11909_v9 = vld [vmem:[#allocation52_spill] sm:$0xff] }
 0x29f   : > { %7878 = vmatprep.subr.msk.bf16.mxu1 %vm7877_vm4, %v11860_v3  ;;  %vm2889_vm4 = vcmp.eq.s32.totalorder %v11905_v11, %v10180_v10  ;;  %v11908_v11 = vld [vmem:[#allocation51_spill] sm:$0xff]  ;;  %vm2898_vm12 = vcmp.eq.s32.totalorder %v11909_v9, %v10168_v12 }
 0x2a0   : > { %vm7887_vm7 = vmpackc.low %vm2889_vm4, %vm2887_vm2  ;;  %vm2896_vm11 = vcmp.eq.s32.totalorder %v11908_v11, %v10168_v12 }
 0x2a1   : > { %vm7893_vm14 = vmpackc.low %vm2898_vm12, %vm2896_vm11 }
 0x2a2   : > { %7880 = vmatpush1.bf16.msk.msra.mxu1 %vm7879_vm9, %v11860_v3  ;;  %vm2891_vm9 = vcmp.eq.s32.totalorder %v11906_v62, %v10180_v10  ;;  %v11911_v62 = vld [vmem:[#allocation54_spill] sm:$0xff] }
 0x2a3   : > { %7882 = vmatprep.subr.msk.bf16.mxu1 %vm7881_vm10, %v11860_v3  ;;  %vm2893_vm10 = vcmp.eq.s32.totalorder %v11907_v63, %v10180_v10  ;;  %v11910_v63 = vld [vmem:[#allocation53_spill] sm:$0xff]  ;;  %vm2902_vm4 = vcmp.eq.s32.totalorder %v11911_v62, %v10168_v12 }
 0x2a4   : > { %vm7891_vm13 = vmpackc.low %vm2893_vm10, %vm2891_vm9  ;;  %vm2900_vm2 = vcmp.eq.s32.totalorder %v11910_v63, %v10168_v12  ;;  %vm2904_vm9 = vcmp.eq.s32.totalorder %v9697_v1, %v10168_v12 }
 0x2a5   : > { %vm7897_vm6 = vmpackc.low %vm2902_vm4, %vm2900_vm2 }
 0x2a6   : > { %7884 = vmatpush1.bf16.msk.msra.mxu1 %vm7883_vm15, %v11860_v3  ;;  %vm2895_vm15 = vcmp.eq.s32.totalorder %v11908_v11, %v10180_v10  ;;  %v11916_v11 = vld [vmem:[#allocation59_spill] sm:$0xff] }
 0x2a7   : > { %7886 = vmatprep.subr.msk.bf16.mxu1 %vm7885_vm1, %v11860_v3  ;;  %vm2897_vm1 = vcmp.eq.s32.totalorder %v11909_v9, %v10180_v10  ;;  %v11912_v9 = vld [vmem:[#allocation56_spill] sm:$0xff] }
 0x2a8   : > { %vm7895_vm5 = vmpackc.low %vm2897_vm1, %vm2895_vm15  ;;  %vm2906_vm10 = vcmp.eq.s32.totalorder %v11912_v9, %v10168_v12  ;;  %vm2908_vm15 = vcmp.eq.s32.totalorder %v9723_v60, %v10168_v12 }
 0x2a9   : > { %vm7901_vm12 = vmpackc.low %vm2906_vm10, %vm2904_vm9 }
 0x2aa   : > { %7888 = vmatpush1.bf16.msk.msra.mxu1 %vm7887_vm7, %v11860_v3  ;;  %vm2899_vm7 = vcmp.eq.s32.totalorder %v11910_v63, %v10180_v10  ;;  %v11915_v63 = vld [vmem:[#allocation61_spill] sm:$0xff] }
 0x2ab   : > { %7890 = vmatprep.subr.msk.bf16.mxu1 %vm7889_vm8, %v11860_v3  ;;  %vm2901_vm8 = vcmp.eq.s32.totalorder %v11911_v62, %v10180_v10  ;;  %v11913_v62 = vld [vmem:[#allocation58_spill] sm:$0xff] }
 0x2ac   : > { %vm7899_vm11 = vmpackc.low %vm2901_vm8, %vm2899_vm7  ;;  %vm2910_vm1 = vcmp.eq.s32.totalorder %v11913_v62, %v10168_v12  ;;  %vm2914_vm8 = vcmp.eq.s32.totalorder %v11915_v63, %v10168_v12 }
 0x2ad   : > { %vm7905_vm4 = vmpackc.low %vm2910_vm1, %vm2908_vm15 }
 0x2ae   : > { %7892 = vmatpush1.bf16.msk.msra.mxu1 %vm7891_vm13, %v11860_v3  ;;  %vm2903_vm13 = vcmp.eq.s32.totalorder %v9697_v1, %v10180_v10  ;;  %v8286_v1 = vld [vmem:[%s8616_s24 + $0x10] sm:$0xff] }
 0x2af   : > { %7894 = vmatprep.subr.msk.bf16.mxu1 %vm7893_vm14, %v11860_v3  ;;  %vm2905_vm14 = vcmp.eq.s32.totalorder %v11912_v9, %v10180_v10  ;;  %v11914_v9 = vld [vmem:[#allocation60_spill] sm:$0xff] }
 0x2b0   : > { %vm7903_vm2 = vmpackc.low %vm2905_vm14, %vm2903_vm13  ;;  %vm2912_vm7 = vcmp.eq.s32.totalorder %v11914_v9, %v10168_v12 }
 0x2b1   : > { %vm7909_vm10 = vmpackc.low %vm2914_vm8, %vm2912_vm7 }
 0x2b2   : > { %7896 = vmatpush1.bf16.msk.msra.mxu1 %vm7895_vm5, %v11860_v3  ;;  %vm2907_vm5 = vcmp.eq.s32.totalorder %v9723_v60, %v10180_v10  ;;  %v11928_v60 = vld [vmem:[#allocation71_spill] sm:$0xff] }
 0x2b3   : > { %7898 = vmatprep.subr.msk.bf16.mxu1 %vm7897_vm6, %v11860_v3  ;;  %vm2909_vm6 = vcmp.eq.s32.totalorder %v11913_v62, %v10180_v10  ;;  %v11918_v62 = vld [vmem:[#allocation63_spill] sm:$0xff] }
 0x2b4   : > { %vm7907_vm9 = vmpackc.low %vm2909_vm6, %vm2907_vm5  ;;  %vm2918_vm14 = vcmp.eq.s32.totalorder %v11918_v62, %v10168_v12 }
 0x2b6   : > { %7900 = vmatpush1.bf16.msk.msra.mxu1 %vm7899_vm11, %v11860_v3  ;;  %vm2911_vm11 = vcmp.eq.s32.totalorder %v11914_v9, %v10180_v10 }
 0x2b7   : > { %7902 = vmatprep.subr.msk.bf16.mxu1 %vm7901_vm12, %v11860_v3  ;;  %vm2913_vm12 = vcmp.eq.s32.totalorder %v11915_v63, %v10180_v10  ;;  %v11920_v63 = vld [vmem:[#allocation65_spill] sm:$0xff] }
 0x2b8   : > { %vm7911_vm15 = vmpackc.low %vm2913_vm12, %vm2911_vm11  ;;  %vm2922_vm6 = vcmp.eq.s32.totalorder %v11920_v63, %v10168_v12 }
 0x2b9   : > { %3686 = vmatmul.mubr.f32.vlgmr.msra.gmra.mrb[4].mxu1 %v8286_v1  ;;  %v11917_v1 = vld [vmem:[#allocation62_spill] sm:$0xff] }
 0x2ba   : > { %7904 = vmatpush1.bf16.msk.msra.mxu1 %vm7903_vm2, %v11860_v3  ;;  %3756 = vmatprep.mubr.f32.mxu1 %v11916_v11  ;;  %vm2916_vm13 = vcmp.eq.s32.totalorder %v11917_v1, %v10168_v12  ;;  %vm2915_vm2 = vcmp.eq.s32.totalorder %v11917_v1, %v10180_v10  ;;  %v11919_v11 = vld [vmem:[#allocation64_spill] sm:$0xff]  ;;  %v11922_v1 = vld [vmem:[#allocation67_spill] sm:$0xff] }
 0x2bb   : > { %7906 = vmatprep.subr.msk.bf16.mxu1 %vm7905_vm4, %v11860_v3  ;;  %vm7913_vm1 = vmpackc.low %vm2918_vm14, %vm2916_vm13  ;;  %vm2917_vm4 = vcmp.eq.s32.totalorder %v11918_v62, %v10180_v10  ;;  %vm2920_vm5 = vcmp.eq.s32.totalorder %v11919_v11, %v10168_v12  ;;  %v11921_v62 = vld [vmem:[#allocation66_spill] sm:$0xff]  ;;  %vm2926_vm12 = vcmp.eq.s32.totalorder %v11922_v1, %v10168_v12 }
 0x2bc   : > { %vm7915_vm7 = vmpackc.low %vm2917_vm4, %vm2915_vm2  ;;  %vm2924_vm11 = vcmp.eq.s32.totalorder %v11921_v62, %v10168_v12 }
 0x2bd   : > { %vm7917_vm8 = vmpackc.low %vm2922_vm6, %vm2920_vm5 }
 0x2be   : > { %7908 = vmatpush1.bf16.msk.msra.mxu1 %vm7907_vm9, %v11860_v3  ;;  %vm2919_vm9 = vcmp.eq.s32.totalorder %v11919_v11, %v10180_v10  ;;  %vm7921_vm14 = vmpackc.low %vm2926_vm12, %vm2924_vm11  ;;  %v11924_v11 = vld [vmem:[#allocation69_spill] sm:$0xff] }
 0x2bf   : > { %7910 = vmatprep.subr.msk.bf16.mxu1 %vm7909_vm10, %v11860_v3  ;;  %vm2921_vm10 = vcmp.eq.s32.totalorder %v11920_v63, %v10180_v10  ;;  %v11923_v63 = vld [vmem:[#allocation68_spill] sm:$0xff]  ;;  %vm2930_vm4 = vcmp.eq.s32.totalorder %v11924_v11, %v10168_v12 }
 0x2c0   : > { %vm7919_vm13 = vmpackc.low %vm2921_vm10, %vm2919_vm9  ;;  %vm2928_vm2 = vcmp.eq.s32.totalorder %v11923_v63, %v10168_v12  ;;  %vm2934_vm10 = vcmp.eq.s32.totalorder %v11928_v60, %v10168_v12 }
 0x2c1   : > { %vm7925_vm6 = vmpackc.low %vm2930_vm4, %vm2928_vm2 }
 0x2c2   : > { %7912 = vmatpush1.bf16.msk.msra.mxu1 %vm7911_vm15, %v11860_v3  ;;  %vm2923_vm15 = vcmp.eq.s32.totalorder %v11921_v62, %v10180_v10  ;;  %v11927_v62 = vld [vmem:[#allocation70_spill] sm:$0xff] }
 0x2c3   : > { %7914 = vmatprep.subr.msk.bf16.mxu1 %vm7913_vm1, %v11860_v3  ;;  %vm2925_vm1 = vcmp.eq.s32.totalorder %v11922_v1, %v10180_v10  ;;  %vm2932_vm9 = vcmp.eq.s32.totalorder %v11927_v62, %v10168_v12 }
 0x2c4   : > { %vm7923_vm5 = vmpackc.low %vm2925_vm1, %vm2923_vm15 }
 0x2c5   : > { %vm7929_vm12 = vmpackc.low %vm2934_vm10, %vm2932_vm9 }
 0x2c6   : > { %7916 = vmatpush1.bf16.msk.msra.mxu1 %vm7915_vm7, %v11860_v3  ;;  %vm2927_vm7 = vcmp.eq.s32.totalorder %v11923_v63, %v10180_v10 }
 0x2c7   : > { %7918 = vmatprep.subr.msk.bf16.mxu1 %vm7917_vm8, %v11860_v3  ;;  %vm2929_vm8 = vcmp.eq.s32.totalorder %v11924_v11, %v10180_v10 }
 0x2c8   : > { %vm7927_vm11 = vmpackc.low %vm2929_vm8, %vm2927_vm7 }
 0x2ca   : > { %7920 = vmatpush1.bf16.msk.msra.mxu1 %vm7919_vm13, %v11860_v3  ;;  %vm2931_vm13 = vcmp.eq.s32.totalorder %v11927_v62, %v10180_v10  ;;  %v11932_v62 = vld [vmem:[#allocation75_spill] sm:$0xff] }
 0x2cb   : > { %7922 = vmatprep.subr.msk.bf16.mxu1 %vm7921_vm14, %v11860_v3  ;;  %vm2933_vm14 = vcmp.eq.s32.totalorder %v11928_v60, %v10180_v10  ;;  %v11931_v60 = vld [vmem:[#allocation74_spill] sm:$0xff]  ;;  %vm2942_vm8 = vcmp.eq.s32.totalorder %v11932_v62, %v10168_v12 }
 0x2cc   : > { %v10736_v9 = vpop.f32.mrb[2].mxu1  ;;  %vm7931_vm2 = vmpackc.low %vm2933_vm14, %vm2931_vm13  ;;  %vm2940_vm7 = vcmp.eq.s32.totalorder %v11931_v60, %v10168_v12 }
 0x2cd   : > { %11925 = vst [vmem:[#allocation4_spill] sm:$0xff] %v10736_v9  ;;  %v10742_v1 = vpop.f32.mrb[3].mxu1  ;;  %v11930_v9 = vld [vmem:[#allocation73_spill] sm:$0xff]  ;;  %vm7937_vm10 = vmpackc.low %vm2942_vm8, %vm2940_vm7 }
 0x2ce   : > { %11926 = vst [vmem:[#allocation24_spill] sm:$0xff] %v10742_v1  ;;  %7924 = vmatpush1.bf16.msk.msra.mxu1 %vm7923_vm5, %v11860_v3  ;;  %v11929_v1 = vld [vmem:[#allocation72_spill] sm:$0xff]  ;;  %vm2938_vm1 = vcmp.eq.s32.totalorder %v11930_v9, %v10168_v12 }
 0x2cf   : > { %7926 = vmatprep.subr.msk.bf16.mxu1 %vm7925_vm6, %v11860_v3  ;;  %vm2936_vm15 = vcmp.eq.s32.totalorder %v11929_v1, %v10168_v12  ;;  %vm2935_vm5 = vcmp.eq.s32.totalorder %v11929_v1, %v10180_v10  ;;  %vm2937_vm6 = vcmp.eq.s32.totalorder %v11930_v9, %v10180_v10  ;;  %v11933_v9 = vld [vmem:[#allocation76_spill] sm:$0xff]  ;;  %v11934_v1 = vld [vmem:[#allocation77_spill] sm:$0xff] }
 0x2d0   : > { %vm7933_vm4 = vmpackc.low %vm2938_vm1, %vm2936_vm15  ;;  %vm2944_vm13 = vcmp.eq.s32.totalorder %v11933_v9, %v10168_v12  ;;  %vm2946_vm14 = vcmp.eq.s32.totalorder %v11934_v1, %v10168_v12 }
 0x2d1   : > { %vm7935_vm9 = vmpackc.low %vm2937_vm6, %vm2935_vm5 }
 0x2d2   : > { %7928 = vmatpush1.bf16.msk.msra.mxu1 %vm7927_vm11, %v11860_v3  ;;  %vm2939_vm11 = vcmp.eq.s32.totalorder %v11931_v60, %v10180_v10  ;;  %vm7941_vm1 = vmpackc.low %vm2946_vm14, %vm2944_vm13  ;;  %v11936_v60 = vld [vmem:[#allocation79_spill] sm:$0xff] }
 0x2d3   : > { %7930 = vmatprep.subr.msk.bf16.mxu1 %vm7929_vm12, %v11860_v3  ;;  %vm2941_vm12 = vcmp.eq.s32.totalorder %v11932_v62, %v10180_v10  ;;  %v11935_v62 = vld [vmem:[#allocation78_spill] sm:$0xff]  ;;  %vm2950_vm6 = vcmp.eq.s32.totalorder %v11936_v60, %v10168_v12 }
 0x2d4   : > { %vm7939_vm15 = vmpackc.low %vm2941_vm12, %vm2939_vm11  ;;  %vm2948_vm5 = vcmp.eq.s32.totalorder %v11935_v62, %v10168_v12 }
 0x2d5   : > { %vm7945_vm8 = vmpackc.low %vm2950_vm6, %vm2948_vm5 }
 0x2d6   : > { %7932 = vmatpush1.bf16.msk.msra.mxu1 %vm7931_vm2, %v11860_v3  ;;  %vm2943_vm2 = vcmp.eq.s32.totalorder %v11933_v9, %v10180_v10  ;;  %v11938_v9 = vld [vmem:[#allocation81_spill] sm:$0xff] }
 0x2d7   : > { %7934 = vmatprep.subr.msk.bf16.mxu1 %vm7933_vm4, %v11860_v3  ;;  %vm2945_vm4 = vcmp.eq.s32.totalorder %v11934_v1, %v10180_v10  ;;  %v11937_v1 = vld [vmem:[#allocation80_spill] sm:$0xff]  ;;  %vm2954_vm12 = vcmp.eq.s32.totalorder %v11938_v9, %v10168_v12 }
 0x2d8   : > { %vm7943_vm7 = vmpackc.low %vm2945_vm4, %vm2943_vm2  ;;  %vm2952_vm11 = vcmp.eq.s32.totalorder %v11937_v1, %v10168_v12  ;;  %vm2956_vm2 = vcmp.eq.s32.totalorder %v10064_v0, %v10168_v12  ;;  %vm2958_vm4 = vcmp.eq.s32.totalorder %v10067_v30, %v10168_v12 }
 0x2d9   : > { %vm7949_vm14 = vmpackc.low %vm2954_vm12, %vm2952_vm11 }
 0x2da   : > { %7936 = vmatpush1.bf16.msk.msra.mxu1 %vm7935_vm9, %v11860_v3  ;;  %vm2947_vm9 = vcmp.eq.s32.totalorder %v11935_v62, %v10180_v10  ;;  %vm7953_vm6 = vmpackc.low %vm2958_vm4, %vm2956_vm2 }
 0x2db   : > { %7938 = vmatprep.subr.msk.bf16.mxu1 %vm7937_vm10, %v11860_v3  ;;  %vm2949_vm10 = vcmp.eq.s32.totalorder %v11936_v60, %v10180_v10 }
 0x2dc   : > { %vm7947_vm13 = vmpackc.low %vm2949_vm10, %vm2947_vm9  ;;  %vm2960_vm9 = vcmp.eq.s32.totalorder %v10090_v52, %v10168_v12 }
 0x2de   : > { %7940 = vmatpush1.bf16.msk.msra.mxu1 %vm7939_vm15, %v11860_v3  ;;  %vm2951_vm15 = vcmp.eq.s32.totalorder %v11937_v1, %v10180_v10  ;;  %v11942_v1 = vld [vmem:[#allocation3_spill] sm:$0xff] }
 0x2df   : > { %7942 = vmatprep.subr.msk.bf16.mxu1 %vm7941_vm1, %v11860_v3  ;;  %vm2953_vm1 = vcmp.eq.s32.totalorder %v11938_v9, %v10180_v10  ;;  %v11939_v9 = vld [vmem:[#allocation85_spill] sm:$0xff] }
 0x2e0   : > { %vm7951_vm5 = vmpackc.low %vm2953_vm1, %vm2951_vm15  ;;  %vm2962_vm10 = vcmp.eq.s32.totalorder %v11939_v9, %v10168_v12 }
 0x2e1   : > { %vm7957_vm12 = vmpackc.low %vm2962_vm10, %vm2960_vm9 }
 0x2e2   : > { %7944 = vmatpush1.bf16.msk.msra.mxu1 %vm7943_vm7, %v11860_v3  ;;  %vm2955_vm7 = vcmp.eq.s32.totalorder %v10064_v0, %v10180_v10  ;;  %v11941_v0 = vld [vmem:[#allocation87_spill] sm:$0xff] }
 0x2e3   : > { %7946 = vmatprep.subr.msk.bf16.mxu1 %vm7945_vm8, %v11860_v3  ;;  %vm2957_vm8 = vcmp.eq.s32.totalorder %v10067_v30, %v10180_v10  ;;  %v11940_v30 = vld [vmem:[#allocation86_spill] sm:$0xff]  ;;  %vm2966_vm1 = vcmp.eq.s32.totalorder %v11941_v0, %v10168_v12 }
 0x2e4   : > { %vm7955_vm11 = vmpackc.low %vm2957_vm8, %vm2955_vm7  ;;  %vm2964_vm15 = vcmp.eq.s32.totalorder %v11940_v30, %v10168_v12  ;;  %v8287_v12 = vld [vmem:[%s8616_s24 + $0x18] sm:$0xff] }
 0x2e5   : > { %vm7961_vm4 = vmpackc.low %vm2966_vm1, %vm2964_vm15 }
 0x2e6   : > { %7948 = vmatpush1.bf16.msk.msra.mxu1 %vm7947_vm13, %v11860_v3  ;;  %vm2959_vm13 = vcmp.eq.s32.totalorder %v10090_v52, %v10180_v10 }
 0x2e7   : > { %7950 = vmatprep.subr.msk.bf16.mxu1 %vm7949_vm14, %v11860_v3  ;;  %vm2961_vm14 = vcmp.eq.s32.totalorder %v11939_v9, %v10180_v10  ;;  %v8288_v9 = vld [vmem:[%s11526_s0] sm:$0x3] }
 0x2e8   : > { %vm7959_vm2 = vmpackc.low %vm2961_vm14, %vm2959_vm13  ;;  %v3847_v52 = vadd.s32 17, %v8288_v9  ;;  %v11991_v9 = vld [vmem:[#allocation55_spill] sm:$0xff] }
 0x2ea   : > { %7952 = vmatpush1.bf16.msk.msra.mxu1 %vm7951_vm5, %v11860_v3  ;;  %vm2963_vm5 = vcmp.eq.s32.totalorder %v11940_v30, %v10180_v10  ;;  %v10842_v60 = vrot.slane %v3847_v52, %v11942_v1  ;;  %v10845_v30 = vrot.slane %v3847_v52, %v8377_v6  ;;  %v6673_v52 = vld [vmem:[%s11527_s1 + $0x10] sm:$0xff] }
 0x2eb   : > { %7954 = vmatprep.subr.msk.bf16.mxu1 %vm7953_vm6, %v11860_v3  ;;  %vm2965_vm6 = vcmp.eq.s32.totalorder %v11941_v0, %v10180_v10  ;;  %v11993_v1 = vld [vmem:[#allocation57_spill] sm:$0xff] }
 0x2ec   : > { %vm7963_vm7 = vmpackc.low %vm2965_vm6, %vm2963_vm5  ;;  %vm3857_vm8 = vcmp.eq.s32.totalorder %v8368_v2, %v10842_v60  ;;  %vm3859_vm9 = vcmp.eq.s32.totalorder %v8371_v4, %v10842_v60  ;;  %vm3856_vm10 = vcmp.eq.s32.totalorder %v8368_v2, %v10845_v30  ;;  %vm3863_vm13 = vcmp.eq.s32.totalorder %v8383_v8, %v10842_v60  ;;  %v8289_v2 = vld [vmem:[%s8616_s24] sm:$0xff] }
 0x2ed   : > { %vm7965_vm14 = vmpackc.low %vm3859_vm9, %vm3857_vm8  ;;  %vm3865_vm5 = vcmp.eq.s32.totalorder %v8419_v14, %v10842_v60  ;;  %vm3867_vm6 = vcmp.eq.s32.totalorder %v8422_v15, %v10842_v60  ;;  %vm3864_vm9 = vcmp.eq.s32.totalorder %v8419_v14, %v10845_v30  ;;  %v11946_v14 = vld [vmem:[#allocation8_spill] sm:$0xff] }
 0x2ee   : > { %7956 = vmatpush1.bf16.msk.msra.mxu1 %vm7955_vm11, %v11860_v3  ;;  %vm3858_vm11 = vcmp.eq.s32.totalorder %v8371_v4, %v10845_v30  ;;  %vm7973_vm8 = vmpackc.low %vm3867_vm6, %vm3865_vm5  ;;  %v11943_v4 = vld [vmem:[#allocation5_spill] sm:$0xff] }
 0x2ef   : > { %7958 = vmatprep.subr.msk.bf16.mxu1 %vm7957_vm12, %v11860_v3  ;;  %vm3861_vm12 = vcmp.eq.s32.totalorder %v8380_v7, %v10842_v60  ;;  %vm7967_vm15 = vmpackc.low %vm3858_vm11, %vm3856_vm10  ;;  %vm3866_vm10 = vcmp.eq.s32.totalorder %v8422_v15, %v10845_v30  ;;  %vm3869_vm11 = vcmp.eq.s32.totalorder %v8445_v16, %v10842_v60  ;;  %v11947_v15 = vld [vmem:[#allocation9_spill] sm:$0xff] }
 0x2f0   : > { %vm7969_vm1 = vmpackc.low %vm3863_vm13, %vm3861_vm12  ;;  %vm3871_vm12 = vcmp.eq.s32.totalorder %v8448_v17, %v10842_v60 }
 0x2f1   : > { %vm7975_vm13 = vmpackc.low %vm3866_vm10, %vm3864_vm9  ;;  %vm3877_vm9 = vcmp.eq.s32.totalorder %v8497_v20, %v10842_v60  ;;  %vm3879_vm10 = vcmp.eq.s32.totalorder %v8500_v21, %v10842_v60 }
 0x2f2   : > { %7960 = vmatpush1.bf16.msk.msra.mxu1 %vm7959_vm2, %v11860_v3  ;;  %vm3860_vm2 = vcmp.eq.s32.totalorder %v8380_v7, %v10845_v30  ;;  %v11944_v7 = vld [vmem:[#allocation6_spill] sm:$0xff] }
 0x2f3   : > { %7962 = vmatprep.subr.msk.bf16.mxu1 %vm7961_vm4, %v11860_v3  ;;  %vm3862_vm4 = vcmp.eq.s32.totalorder %v8383_v8, %v10845_v30  ;;  %v11945_v8 = vld [vmem:[#allocation7_spill] sm:$0xff] }
 0x2f6   : > { %7964 = vmatpush1.bf16.msk.msra.mxu1 %vm7963_vm7, %v11860_v3  ;;  %vm7971_vm7 = vmpackc.low %vm3862_vm4, %vm3860_vm2  ;;  %vm3873_vm2 = vcmp.eq.s32.totalorder %v8471_v18, %v10842_v60  ;;  %vm3875_vm4 = vcmp.eq.s32.totalorder %v8474_v19, %v10842_v60 }
 0x2f7   : > { %vm7981_vm6 = vmpackc.low %vm3875_vm4, %vm3873_vm2 }
 0x2f9   : > { %3757 = vmatmul.mubr.f32.vlgmr.msra.gmra.mrb[4].mxu1 %v8287_v12  ;;  %v11994_v12 = vld [vmem:[#allocation58_spill] sm:$0xff] }
 0x3cc   : > { %v3758_v10 = vpop.f32.mrb[4].mxu1 }
 0x3cd   : > { %v3760_v6 = vpop.f32.mrb[5].mxu1 }
 0x3ce   : > { %6674 = vmatprep.subr.msk.mxu0 %vm2544_vm0, %v3760_v6  ;;  %v11995_v6 = vld [vmem:[#allocation60_spill] sm:$0xff] }
 0x3cf   : > { %6675 = vmatpush1.msk.msra.mxu0 %vm2544_vm0, %v3758_v10  ;;  %v8291_v10 = vld [vmem:[%s8616_s24 + $0x10] sm:$0xff] }
 0x3d0   : > { %7966 = vmatprep.subr.msk.bf16.mxu0 %vm7965_vm14, %v11860_v3  ;;  %6676 = vmatmul.mubr.msk.f32.vlgmr.msra.gmra.mrb[2].mxu0 %vm2540_vm3, %v6673_v52  ;;  %vm7977_vm14 = vmpackc.low %vm3871_vm12, %vm3869_vm11  ;;  %v11996_v52 = vld [vmem:[#allocation61_spill] sm:$0xff] }
 0x3d1   : > { %7968 = vmatpush1.bf16.msk.msra.mxu0 %vm7967_vm15, %v11860_v3  ;;  %4688 = vmatprep.mubr.f32.mxu0 %v8659_v33  ;;  %vm3868_vm15 = vcmp.eq.s32.totalorder %v8445_v16, %v10845_v30  ;;  %vm7985_vm12 = vmpackc.low %vm3879_vm10, %vm3877_vm9  ;;  %v11948_v16 = vld [vmem:[#allocation10_spill] sm:$0xff]  ;;  %v11963_v33 = vld [vmem:[#allocation28_spill] sm:$0xff] }
 0x3d2   : > { %7970 = vmatprep.subr.msk.bf16.mxu0 %vm7969_vm1, %v11860_v3  ;;  %vm3870_vm1 = vcmp.eq.s32.totalorder %v8448_v17, %v10845_v30  ;;  %v11949_v17 = vld [vmem:[#allocation11_spill] sm:$0xff] }
 0x3d3   : > { %vm7979_vm5 = vmpackc.low %vm3870_vm1, %vm3868_vm15  ;;  %vm3881_vm15 = vcmp.eq.s32.totalorder %v8523_v22, %v10842_v60  ;;  %vm3883_vm1 = vcmp.eq.s32.totalorder %v8526_v23, %v10842_v60 }
 0x3d4   : > { %vm7989_vm4 = vmpackc.low %vm3883_vm1, %vm3881_vm15 }
 0x3d5   : > { %7972 = vmatpush1.bf16.msk.msra.mxu0 %vm7971_vm7, %v11860_v3  ;;  %vm3872_vm7 = vcmp.eq.s32.totalorder %v8471_v18, %v10845_v30  ;;  %v11950_v18 = vld [vmem:[#allocation12_spill] sm:$0xff] }
 0x3d6   : > { %7974 = vmatprep.subr.msk.bf16.mxu0 %vm7973_vm8, %v11860_v3  ;;  %vm3874_vm8 = vcmp.eq.s32.totalorder %v8474_v19, %v10845_v30  ;;  %v11951_v19 = vld [vmem:[#allocation13_spill] sm:$0xff] }
 0x3d7   : > { %vm7983_vm11 = vmpackc.low %vm3874_vm8, %vm3872_vm7  ;;  %vm3885_vm7 = vcmp.eq.s32.totalorder %v8550_v24, %v10842_v60  ;;  %vm3887_vm8 = vcmp.eq.s32.totalorder %v8553_v25, %v10842_v60 }
 0x3d8   : > { %vm7993_vm10 = vmpackc.low %vm3887_vm8, %vm3885_vm7 }
 0x3d9   : > { %7976 = vmatpush1.bf16.msk.msra.mxu0 %vm7975_vm13, %v11860_v3  ;;  %vm3876_vm13 = vcmp.eq.s32.totalorder %v8497_v20, %v10845_v30  ;;  %v11952_v20 = vld [vmem:[#allocation14_spill] sm:$0xff] }
 0x3da   : > { %7978 = vmatprep.subr.msk.bf16.mxu0 %vm7977_vm14, %v11860_v3  ;;  %vm3878_vm14 = vcmp.eq.s32.totalorder %v8500_v21, %v10845_v30  ;;  %v11953_v21 = vld [vmem:[#allocation15_spill] sm:$0xff] }
 0x3db   : > { %vm7987_vm2 = vmpackc.low %vm3878_vm14, %vm3876_vm13  ;;  %vm3889_vm13 = vcmp.eq.s32.totalorder %v8581_v26, %v10842_v60  ;;  %vm3891_vm14 = vcmp.eq.s32.totalorder %v8584_v27, %v10842_v60 }
 0x3dc   : > { %vm7997_vm1 = vmpackc.low %vm3891_vm14, %vm3889_vm13 }
 0x3dd   : > { %7980 = vmatpush1.bf16.msk.msra.mxu0 %vm7979_vm5, %v11860_v3  ;;  %vm3880_vm5 = vcmp.eq.s32.totalorder %v8523_v22, %v10845_v30  ;;  %v11954_v22 = vld [vmem:[#allocation16_spill] sm:$0xff] }
 0x3de   : > { %7982 = vmatprep.subr.msk.bf16.mxu0 %vm7981_vm6, %v11860_v3  ;;  %vm3882_vm6 = vcmp.eq.s32.totalorder %v8526_v23, %v10845_v30  ;;  %v11955_v23 = vld [vmem:[#allocation17_spill] sm:$0xff] }
 0x3df   : > { %vm7991_vm9 = vmpackc.low %vm3882_vm6, %vm3880_vm5  ;;  %vm3893_vm5 = vcmp.eq.s32.totalorder %v8608_v28, %v10842_v60  ;;  %vm3895_vm6 = vcmp.eq.s32.totalorder %v8611_v29, %v10842_v60 }
 0x3e0   : > { %vm8001_vm8 = vmpackc.low %vm3895_vm6, %vm3893_vm5 }
 0x3e1   : > { %7984 = vmatpush1.bf16.msk.msra.mxu0 %vm7983_vm11, %v11860_v3  ;;  %vm3884_vm11 = vcmp.eq.s32.totalorder %v8550_v24, %v10845_v30  ;;  %v11956_v24 = vld [vmem:[#allocation18_spill] sm:$0xff] }
 0x3e2   : > { %7986 = vmatprep.subr.msk.bf16.mxu0 %vm7985_vm12, %v11860_v3  ;;  %vm3886_vm12 = vcmp.eq.s32.totalorder %v8553_v25, %v10845_v30  ;;  %v11957_v25 = vld [vmem:[#allocation19_spill] sm:$0xff] }
 0x3e3   : > { %vm7995_vm15 = vmpackc.low %vm3886_vm12, %vm3884_vm11  ;;  %vm3897_vm11 = vcmp.eq.s32.totalorder %v8642_v31, %v10842_v60  ;;  %vm3899_vm12 = vcmp.eq.s32.totalorder %v8645_v32, %v10842_v60 }
 0x3e4   : > { %vm8005_vm14 = vmpackc.low %vm3899_vm12, %vm3897_vm11 }
 0x3e5   : > { %7988 = vmatpush1.bf16.msk.msra.mxu0 %vm7987_vm2, %v11860_v3  ;;  %vm3888_vm2 = vcmp.eq.s32.totalorder %v8581_v26, %v10845_v30  ;;  %v11958_v26 = vld [vmem:[#allocation20_spill] sm:$0xff] }
 0x3e6   : > { %7990 = vmatprep.subr.msk.bf16.mxu0 %vm7989_vm4, %v11860_v3  ;;  %vm3890_vm4 = vcmp.eq.s32.totalorder %v8584_v27, %v10845_v30  ;;  %v11959_v27 = vld [vmem:[#allocation21_spill] sm:$0xff] }
 0x3e7   : > { %vm7999_vm7 = vmpackc.low %vm3890_vm4, %vm3888_vm2  ;;  %vm3901_vm2 = vcmp.eq.s32.totalorder %v8672_v34, %v10842_v60  ;;  %vm3903_vm4 = vcmp.eq.s32.totalorder %v8675_v35, %v10842_v60 }
 0x3e8   : > { %vm8009_vm6 = vmpackc.low %vm3903_vm4, %vm3901_vm2 }
 0x3e9   : > { %7992 = vmatpush1.bf16.msk.msra.mxu0 %vm7991_vm9, %v11860_v3  ;;  %vm3892_vm9 = vcmp.eq.s32.totalorder %v8608_v28, %v10845_v30  ;;  %v11960_v28 = vld [vmem:[#allocation22_spill] sm:$0xff] }
 0x3ea   : > { %7994 = vmatprep.subr.msk.bf16.mxu0 %vm7993_vm10, %v11860_v3  ;;  %vm3894_vm10 = vcmp.eq.s32.totalorder %v8611_v29, %v10845_v30  ;;  %v11961_v29 = vld [vmem:[#allocation23_spill] sm:$0xff] }
 0x3eb   : > { %vm8003_vm13 = vmpackc.low %vm3894_vm10, %vm3892_vm9  ;;  %vm3905_vm9 = vcmp.eq.s32.totalorder %v8709_v36, %v10842_v60  ;;  %vm3907_vm10 = vcmp.eq.s32.totalorder %v8712_v37, %v10842_v60 }
 0x3ec   : > { %vm8013_vm12 = vmpackc.low %vm3907_vm10, %vm3905_vm9 }
 0x3ed   : > { %7996 = vmatpush1.bf16.msk.msra.mxu0 %vm7995_vm15, %v11860_v3  ;;  %vm3896_vm15 = vcmp.eq.s32.totalorder %v8642_v31, %v10845_v30  ;;  %v11962_v31 = vld [vmem:[#allocation25_spill] sm:$0xff] }
 0x3ee   : > { %7998 = vmatprep.subr.msk.bf16.mxu0 %vm7997_vm1, %v11860_v3  ;;  %vm3898_vm1 = vcmp.eq.s32.totalorder %v8645_v32, %v10845_v30  ;;  %v8290_v32 = vld [vmem:[%s8616_s24 + $0x8] sm:$0xff] }
 0x3ef   : > { %vm8007_vm5 = vmpackc.low %vm3898_vm1, %vm3896_vm15  ;;  %vm3909_vm15 = vcmp.eq.s32.totalorder %v8735_v38, %v10842_v60  ;;  %vm3911_vm1 = vcmp.eq.s32.totalorder %v8738_v39, %v10842_v60 }
 0x3f0   : > { %vm8017_vm4 = vmpackc.low %vm3911_vm1, %vm3909_vm15 }
 0x3f1   : > { %8000 = vmatpush1.bf16.msk.msra.mxu0 %vm7999_vm7, %v11860_v3  ;;  %vm3900_vm7 = vcmp.eq.s32.totalorder %v8672_v34, %v10845_v30  ;;  %v11964_v34 = vld [vmem:[#allocation26_spill] sm:$0xff] }
 0x3f2   : > { %8002 = vmatprep.subr.msk.bf16.mxu0 %vm8001_vm8, %v11860_v3  ;;  %vm3902_vm8 = vcmp.eq.s32.totalorder %v8675_v35, %v10845_v30  ;;  %v11965_v35 = vld [vmem:[#allocation29_spill] sm:$0xff] }
 0x3f3   : > { %vm8011_vm11 = vmpackc.low %vm3902_vm8, %vm3900_vm7  ;;  %vm3913_vm7 = vcmp.eq.s32.totalorder %v8761_v40, %v10842_v60  ;;  %vm3915_vm8 = vcmp.eq.s32.totalorder %v8764_v41, %v10842_v60 }
 0x3f4   : > { %vm8021_vm10 = vmpackc.low %vm3915_vm8, %vm3913_vm7 }
 0x3f5   : > { %8004 = vmatpush1.bf16.msk.msra.mxu0 %vm8003_vm13, %v11860_v3  ;;  %vm3904_vm13 = vcmp.eq.s32.totalorder %v8709_v36, %v10845_v30  ;;  %v11966_v36 = vld [vmem:[#allocation30_spill] sm:$0xff] }
 0x3f6   : > { %8006 = vmatprep.subr.msk.bf16.mxu0 %vm8005_vm14, %v11860_v3  ;;  %vm3906_vm14 = vcmp.eq.s32.totalorder %v8712_v37, %v10845_v30  ;;  %v11968_v37 = vld [vmem:[#allocation32_spill] sm:$0xff] }
 0x3f7   : > { %vm8015_vm2 = vmpackc.low %vm3906_vm14, %vm3904_vm13  ;;  %vm3917_vm13 = vcmp.eq.s32.totalorder %v8787_v42, %v10842_v60  ;;  %vm3919_vm14 = vcmp.eq.s32.totalorder %v8790_v43, %v10842_v60 }
 0x3f8   : > { %vm8025_vm1 = vmpackc.low %vm3919_vm14, %vm3917_vm13 }
 0x3f9   : > { %8008 = vmatpush1.bf16.msk.msra.mxu0 %vm8007_vm5, %v11860_v3  ;;  %vm3908_vm5 = vcmp.eq.s32.totalorder %v8735_v38, %v10845_v30  ;;  %v11969_v38 = vld [vmem:[#allocation33_spill] sm:$0xff] }
 0x3fa   : > { %8010 = vmatprep.subr.msk.bf16.mxu0 %vm8009_vm6, %v11860_v3  ;;  %vm3910_vm6 = vcmp.eq.s32.totalorder %v8738_v39, %v10845_v30  ;;  %v11970_v39 = vld [vmem:[#allocation34_spill] sm:$0xff] }
 0x3fb   : > { %vm8019_vm9 = vmpackc.low %vm3910_vm6, %vm3908_vm5  ;;  %vm3921_vm5 = vcmp.eq.s32.totalorder %v8813_v44, %v10842_v60  ;;  %vm3923_vm6 = vcmp.eq.s32.totalorder %v8816_v45, %v10842_v60 }
 0x3fc   : > { %vm8029_vm8 = vmpackc.low %vm3923_vm6, %vm3921_vm5 }
 0x3fd   : > { %8012 = vmatpush1.bf16.msk.msra.mxu0 %vm8011_vm11, %v11860_v3  ;;  %vm3912_vm11 = vcmp.eq.s32.totalorder %v8761_v40, %v10845_v30  ;;  %v11971_v40 = vld [vmem:[#allocation35_spill] sm:$0xff] }
 0x3fe   : > { %8014 = vmatprep.subr.msk.bf16.mxu0 %vm8013_vm12, %v11860_v3  ;;  %vm3914_vm12 = vcmp.eq.s32.totalorder %v8764_v41, %v10845_v30  ;;  %v11972_v41 = vld [vmem:[#allocation36_spill] sm:$0xff] }
 0x3ff   : > { %vm8023_vm15 = vmpackc.low %vm3914_vm12, %vm3912_vm11  ;;  %vm3925_vm11 = vcmp.eq.s32.totalorder %v8839_v46, %v10842_v60  ;;  %vm3927_vm12 = vcmp.eq.s32.totalorder %v8842_v47, %v10842_v60 }
 0x400   : > { %vm8033_vm14 = vmpackc.low %vm3927_vm12, %vm3925_vm11 }
 0x401   : > { %8016 = vmatpush1.bf16.msk.msra.mxu0 %vm8015_vm2, %v11860_v3  ;;  %vm3916_vm2 = vcmp.eq.s32.totalorder %v8787_v42, %v10845_v30  ;;  %v11973_v42 = vld [vmem:[#allocation37_spill] sm:$0xff] }
 0x402   : > { %8018 = vmatprep.subr.msk.bf16.mxu0 %vm8017_vm4, %v11860_v3  ;;  %vm3918_vm4 = vcmp.eq.s32.totalorder %v8790_v43, %v10845_v30  ;;  %v11974_v43 = vld [vmem:[#allocation38_spill] sm:$0xff] }
 0x403   : > { %vm8027_vm7 = vmpackc.low %vm3918_vm4, %vm3916_vm2  ;;  %vm3929_vm2 = vcmp.eq.s32.totalorder %v8865_v48, %v10842_v60  ;;  %vm3931_vm4 = vcmp.eq.s32.totalorder %v8868_v49, %v10842_v60 }
 0x404   : > { %vm8037_vm6 = vmpackc.low %vm3931_vm4, %vm3929_vm2 }
 0x405   : > { %8020 = vmatpush1.bf16.msk.msra.mxu0 %vm8019_vm9, %v11860_v3  ;;  %vm3920_vm9 = vcmp.eq.s32.totalorder %v8813_v44, %v10845_v30  ;;  %v11975_v44 = vld [vmem:[#allocation39_spill] sm:$0xff] }
 0x406   : > { %8022 = vmatprep.subr.msk.bf16.mxu0 %vm8021_vm10, %v11860_v3  ;;  %vm3922_vm10 = vcmp.eq.s32.totalorder %v8816_v45, %v10845_v30  ;;  %v11976_v45 = vld [vmem:[#allocation40_spill] sm:$0xff] }
 0x407   : > { %vm8031_vm13 = vmpackc.low %vm3922_vm10, %vm3920_vm9  ;;  %vm3933_vm9 = vcmp.eq.s32.totalorder %v8899_v50, %v10842_v60  ;;  %vm3935_vm10 = vcmp.eq.s32.totalorder %v8902_v51, %v10842_v60 }
 0x408   : > { %vm8041_vm12 = vmpackc.low %vm3935_vm10, %vm3933_vm9 }
 0x409   : > { %8024 = vmatpush1.bf16.msk.msra.mxu0 %vm8023_vm15, %v11860_v3  ;;  %vm3924_vm15 = vcmp.eq.s32.totalorder %v8839_v46, %v10845_v30  ;;  %v11977_v46 = vld [vmem:[#allocation41_spill] sm:$0xff] }
 0x40a   : > { %8026 = vmatprep.subr.msk.bf16.mxu0 %vm8025_vm1, %v11860_v3  ;;  %vm3926_vm1 = vcmp.eq.s32.totalorder %v8842_v47, %v10845_v30  ;;  %v11978_v47 = vld [vmem:[#allocation42_spill] sm:$0xff] }
 0x40b   : > { %vm8035_vm5 = vmpackc.low %vm3926_vm1, %vm3924_vm15  ;;  %vm3937_vm15 = vcmp.eq.s32.totalorder %v8923_v53, %v10842_v60  ;;  %vm3939_vm1 = vcmp.eq.s32.totalorder %v8931_v54, %v10842_v60 }
 0x40c   : > { %vm8045_vm4 = vmpackc.low %vm3939_vm1, %vm3937_vm15 }
 0x40d   : > { %8028 = vmatpush1.bf16.msk.msra.mxu0 %vm8027_vm7, %v11860_v3  ;;  %vm3928_vm7 = vcmp.eq.s32.totalorder %v8865_v48, %v10845_v30  ;;  %v11979_v48 = vld [vmem:[#allocation43_spill] sm:$0xff] }
 0x40e   : > { %8030 = vmatprep.subr.msk.bf16.mxu0 %vm8029_vm8, %v11860_v3  ;;  %vm3930_vm8 = vcmp.eq.s32.totalorder %v8868_v49, %v10845_v30  ;;  %v11980_v49 = vld [vmem:[#allocation44_spill] sm:$0xff] }
 0x40f   : > { %vm8039_vm11 = vmpackc.low %vm3930_vm8, %vm3928_vm7  ;;  %vm3941_vm7 = vcmp.eq.s32.totalorder %v8958_v56, %v10842_v60  ;;  %vm3943_vm8 = vcmp.eq.s32.totalorder %v8961_v57, %v10842_v60 }
 0x410   : > { %4689 = vmatmul.mubr.f32.vlgmr.msra.gmra.mrb[4].mxu0 %v8289_v2  ;;  %vm8049_vm10 = vmpackc.low %vm3943_vm8, %vm3941_vm7  ;;  %v11997_v2 = vld [vmem:[#allocation59_spill] sm:$0xff] }
 0x411   : > { %8032 = vmatpush1.bf16.msk.msra.mxu0 %vm8031_vm13, %v11860_v3  ;;  %4759 = vmatprep.mubr.f32.mxu0 %v8935_v55  ;;  %vm3932_vm13 = vcmp.eq.s32.totalorder %v8899_v50, %v10845_v30  ;;  %v11981_v50 = vld [vmem:[#allocation45_spill] sm:$0xff] }
 0x412   : > { %8034 = vmatprep.subr.msk.bf16.mxu0 %vm8033_vm14, %v11860_v3  ;;  %vm3934_vm14 = vcmp.eq.s32.totalorder %v8902_v51, %v10845_v30  ;;  %v11982_v51 = vld [vmem:[#allocation46_spill] sm:$0xff]  ;;  %v11985_v55 = vld [vmem:[#allocation49_spill] sm:$0xff] }
 0x413   : > { %vm8043_vm2 = vmpackc.low %vm3934_vm14, %vm3932_vm13  ;;  %vm3945_vm13 = vcmp.eq.s32.totalorder %v8992_v58, %v10842_v60  ;;  %vm3947_vm14 = vcmp.eq.s32.totalorder %v8995_v59, %v10842_v60 }
 0x414   : > { %vm8053_vm1 = vmpackc.low %vm3947_vm14, %vm3945_vm13 }
 0x415   : > { %8036 = vmatpush1.bf16.msk.msra.mxu0 %vm8035_vm5, %v11860_v3  ;;  %vm3936_vm5 = vcmp.eq.s32.totalorder %v8923_v53, %v10845_v30  ;;  %v11983_v53 = vld [vmem:[#allocation47_spill] sm:$0xff] }
 0x416   : > { %8038 = vmatprep.subr.msk.bf16.mxu0 %vm8037_vm6, %v11860_v3  ;;  %vm3938_vm6 = vcmp.eq.s32.totalorder %v8931_v54, %v10845_v30  ;;  %v11984_v54 = vld [vmem:[#allocation48_spill] sm:$0xff] }
 0x417   : > { %vm8047_vm9 = vmpackc.low %vm3938_vm6, %vm3936_vm5  ;;  %vm3949_vm5 = vcmp.eq.s32.totalorder %v11861_v61, %v10842_v60  ;;  %vm3951_vm6 = vcmp.eq.s32.totalorder %v11943_v4, %v10842_v60 }
 0x418   : > { %vm8057_vm8 = vmpackc.low %vm3951_vm6, %vm3949_vm5 }
 0x419   : > { %8040 = vmatpush1.bf16.msk.msra.mxu0 %vm8039_vm11, %v11860_v3  ;;  %vm3940_vm11 = vcmp.eq.s32.totalorder %v8958_v56, %v10845_v30  ;;  %v11986_v56 = vld [vmem:[#allocation50_spill] sm:$0xff] }
 0x41a   : > { %8042 = vmatprep.subr.msk.bf16.mxu0 %vm8041_vm12, %v11860_v3  ;;  %vm3942_vm12 = vcmp.eq.s32.totalorder %v8961_v57, %v10845_v30  ;;  %v11987_v57 = vld [vmem:[#allocation51_spill] sm:$0xff] }
 0x41b   : > { %vm8051_vm15 = vmpackc.low %vm3942_vm12, %vm3940_vm11  ;;  %vm3953_vm11 = vcmp.eq.s32.totalorder %v11944_v7, %v10842_v60  ;;  %vm3955_vm12 = vcmp.eq.s32.totalorder %v11945_v8, %v10842_v60 }
 0x41c   : > { %vm8061_vm14 = vmpackc.low %vm3955_vm12, %vm3953_vm11 }
 0x41d   : > { %8044 = vmatpush1.bf16.msk.msra.mxu0 %vm8043_vm2, %v11860_v3  ;;  %vm3944_vm2 = vcmp.eq.s32.totalorder %v8992_v58, %v10845_v30  ;;  %v11988_v58 = vld [vmem:[#allocation52_spill] sm:$0xff] }
 0x41e   : > { %8046 = vmatprep.subr.msk.bf16.mxu0 %vm8045_vm4, %v11860_v3  ;;  %vm3946_vm4 = vcmp.eq.s32.totalorder %v8995_v59, %v10845_v30  ;;  %v11989_v59 = vld [vmem:[#allocation53_spill] sm:$0xff] }
 0x41f   : > { %vm8055_vm7 = vmpackc.low %vm3946_vm4, %vm3944_vm2  ;;  %vm3957_vm2 = vcmp.eq.s32.totalorder %v11946_v14, %v10842_v60  ;;  %vm3959_vm4 = vcmp.eq.s32.totalorder %v11947_v15, %v10842_v60 }
 0x420   : > { %vm8065_vm6 = vmpackc.low %vm3959_vm4, %vm3957_vm2 }
 0x421   : > { %8048 = vmatpush1.bf16.msk.msra.mxu0 %vm8047_vm9, %v11860_v3  ;;  %vm3948_vm9 = vcmp.eq.s32.totalorder %v11861_v61, %v10845_v30  ;;  %v11990_v61 = vld [vmem:[#allocation54_spill] sm:$0xff] }
 0x422   : > { %8050 = vmatprep.subr.msk.bf16.mxu0 %vm8049_vm10, %v11860_v3  ;;  %vm3950_vm10 = vcmp.eq.s32.totalorder %v11943_v4, %v10845_v30  ;;  %v11998_v4 = vld [vmem:[#allocation62_spill] sm:$0xff] }
 0x423   : > { %vm8059_vm13 = vmpackc.low %vm3950_vm10, %vm3948_vm9  ;;  %vm3961_vm9 = vcmp.eq.s32.totalorder %v11948_v16, %v10842_v60  ;;  %vm3963_vm10 = vcmp.eq.s32.totalorder %v11949_v17, %v10842_v60 }
 0x424   : > { %vm8069_vm12 = vmpackc.low %vm3963_vm10, %vm3961_vm9 }
 0x425   : > { %8052 = vmatpush1.bf16.msk.msra.mxu0 %vm8051_vm15, %v11860_v3  ;;  %vm3952_vm15 = vcmp.eq.s32.totalorder %v11944_v7, %v10845_v30  ;;  %v11999_v7 = vld [vmem:[#allocation63_spill] sm:$0xff] }
 0x426   : > { %8054 = vmatprep.subr.msk.bf16.mxu0 %vm8053_vm1, %v11860_v3  ;;  %vm3954_vm1 = vcmp.eq.s32.totalorder %v11945_v8, %v10845_v30  ;;  %v12000_v8 = vld [vmem:[#allocation64_spill] sm:$0xff] }
 0x427   : > { %vm8063_vm5 = vmpackc.low %vm3954_vm1, %vm3952_vm15  ;;  %vm3965_vm15 = vcmp.eq.s32.totalorder %v11950_v18, %v10842_v60  ;;  %vm3967_vm1 = vcmp.eq.s32.totalorder %v11951_v19, %v10842_v60 }
 0x428   : > { %vm8073_vm4 = vmpackc.low %vm3967_vm1, %vm3965_vm15 }
 0x429   : > { %8056 = vmatpush1.bf16.msk.msra.mxu0 %vm8055_vm7, %v11860_v3  ;;  %vm3956_vm7 = vcmp.eq.s32.totalorder %v11946_v14, %v10845_v30  ;;  %v12001_v14 = vld [vmem:[#allocation65_spill] sm:$0xff] }
 0x42a   : > { %8058 = vmatprep.subr.msk.bf16.mxu0 %vm8057_vm8, %v11860_v3  ;;  %vm3958_vm8 = vcmp.eq.s32.totalorder %v11947_v15, %v10845_v30  ;;  %v12002_v15 = vld [vmem:[#allocation66_spill] sm:$0xff] }
 0x42b   : > { %vm8067_vm11 = vmpackc.low %vm3958_vm8, %vm3956_vm7  ;;  %vm3969_vm7 = vcmp.eq.s32.totalorder %v11952_v20, %v10842_v60  ;;  %vm3971_vm8 = vcmp.eq.s32.totalorder %v11953_v21, %v10842_v60 }
 0x42c   : > { %vm8077_vm10 = vmpackc.low %vm3971_vm8, %vm3969_vm7 }
 0x42d   : > { %8060 = vmatpush1.bf16.msk.msra.mxu0 %vm8059_vm13, %v11860_v3  ;;  %vm3960_vm13 = vcmp.eq.s32.totalorder %v11948_v16, %v10845_v30  ;;  %v12003_v16 = vld [vmem:[#allocation67_spill] sm:$0xff] }
 0x42e   : > { %8062 = vmatprep.subr.msk.bf16.mxu0 %vm8061_vm14, %v11860_v3  ;;  %vm3962_vm14 = vcmp.eq.s32.totalorder %v11949_v17, %v10845_v30  ;;  %v12004_v17 = vld [vmem:[#allocation70_spill] sm:$0xff] }
 0x42f   : > { %vm8071_vm2 = vmpackc.low %vm3962_vm14, %vm3960_vm13  ;;  %vm3973_vm13 = vcmp.eq.s32.totalorder %v11954_v22, %v10842_v60  ;;  %vm3975_vm14 = vcmp.eq.s32.totalorder %v11955_v23, %v10842_v60 }
 0x430   : > { %vm8081_vm1 = vmpackc.low %vm3975_vm14, %vm3973_vm13 }
 0x431   : > { %8064 = vmatpush1.bf16.msk.msra.mxu0 %vm8063_vm5, %v11860_v3  ;;  %vm3964_vm5 = vcmp.eq.s32.totalorder %v11950_v18, %v10845_v30  ;;  %v12005_v18 = vld [vmem:[#allocation71_spill] sm:$0xff] }
 0x432   : > { %8066 = vmatprep.subr.msk.bf16.mxu0 %vm8065_vm6, %v11860_v3  ;;  %vm3966_vm6 = vcmp.eq.s32.totalorder %v11951_v19, %v10845_v30  ;;  %v12008_v19 = vld [vmem:[#allocation74_spill] sm:$0xff] }
 0x433   : > { %vm8075_vm9 = vmpackc.low %vm3966_vm6, %vm3964_vm5  ;;  %vm3977_vm5 = vcmp.eq.s32.totalorder %v11956_v24, %v10842_v60  ;;  %vm3979_vm6 = vcmp.eq.s32.totalorder %v11957_v25, %v10842_v60 }
 0x434   : > { %vm8085_vm8 = vmpackc.low %vm3979_vm6, %vm3977_vm5 }
 0x435   : > { %8068 = vmatpush1.bf16.msk.msra.mxu0 %vm8067_vm11, %v11860_v3  ;;  %vm3968_vm11 = vcmp.eq.s32.totalorder %v11952_v20, %v10845_v30  ;;  %v12009_v20 = vld [vmem:[#allocation75_spill] sm:$0xff] }
 0x436   : > { %8070 = vmatprep.subr.msk.bf16.mxu0 %vm8069_vm12, %v11860_v3  ;;  %vm3970_vm12 = vcmp.eq.s32.totalorder %v11953_v21, %v10845_v30  ;;  %v12010_v21 = vld [vmem:[#allocation76_spill] sm:$0xff] }
 0x437   : > { %vm8079_vm15 = vmpackc.low %vm3970_vm12, %vm3968_vm11  ;;  %vm3981_vm11 = vcmp.eq.s32.totalorder %v11958_v26, %v10842_v60  ;;  %vm3983_vm12 = vcmp.eq.s32.totalorder %v11959_v27, %v10842_v60 }
 0x438   : > { %vm8089_vm14 = vmpackc.low %vm3983_vm12, %vm3981_vm11 }
 0x439   : > { %8072 = vmatpush1.bf16.msk.msra.mxu0 %vm8071_vm2, %v11860_v3  ;;  %vm3972_vm2 = vcmp.eq.s32.totalorder %v11954_v22, %v10845_v30  ;;  %v12011_v22 = vld [vmem:[#allocation77_spill] sm:$0xff] }
 0x43a   : > { %8074 = vmatprep.subr.msk.bf16.mxu0 %vm8073_vm4, %v11860_v3  ;;  %vm3974_vm4 = vcmp.eq.s32.totalorder %v11955_v23, %v10845_v30  ;;  %v12012_v23 = vld [vmem:[#allocation79_spill] sm:$0xff] }
 0x43b   : > { %vm8083_vm7 = vmpackc.low %vm3974_vm4, %vm3972_vm2  ;;  %vm3985_vm2 = vcmp.eq.s32.totalorder %v11960_v28, %v10842_v60  ;;  %vm3987_vm4 = vcmp.eq.s32.totalorder %v11961_v29, %v10842_v60 }
 0x43c   : > { %vm8093_vm6 = vmpackc.low %vm3987_vm4, %vm3985_vm2 }
 0x43d   : > { %8076 = vmatpush1.bf16.msk.msra.mxu0 %vm8075_vm9, %v11860_v3  ;;  %vm3976_vm9 = vcmp.eq.s32.totalorder %v11956_v24, %v10845_v30  ;;  %v12013_v24 = vld [vmem:[#allocation80_spill] sm:$0xff] }
 0x43e   : > { %8078 = vmatprep.subr.msk.bf16.mxu0 %vm8077_vm10, %v11860_v3  ;;  %vm3978_vm10 = vcmp.eq.s32.totalorder %v11957_v25, %v10845_v30  ;;  %v12014_v25 = vld [vmem:[#allocation81_spill] sm:$0xff] }
 0x43f   : > { %vm8087_vm13 = vmpackc.low %vm3978_vm10, %vm3976_vm9  ;;  %vm3989_vm9 = vcmp.eq.s32.totalorder %v11881_v13, %v10842_v60  ;;  %vm3991_vm10 = vcmp.eq.s32.totalorder %v11962_v31, %v10842_v60 }
 0x440   : > { %vm8097_vm12 = vmpackc.low %vm3991_vm10, %vm3989_vm9 }
 0x441   : > { %8080 = vmatpush1.bf16.msk.msra.mxu0 %vm8079_vm15, %v11860_v3  ;;  %vm3980_vm15 = vcmp.eq.s32.totalorder %v11958_v26, %v10845_v30  ;;  %v12016_v26 = vld [vmem:[#allocation83_spill] sm:$0xff] }
 0x442   : > { %8082 = vmatprep.subr.msk.bf16.mxu0 %vm8081_vm1, %v11860_v3  ;;  %vm3982_vm1 = vcmp.eq.s32.totalorder %v11959_v27, %v10845_v30  ;;  %v12017_v27 = vld [vmem:[#allocation84_spill] sm:$0xff] }
 0x443   : > { %vm8091_vm5 = vmpackc.low %vm3982_vm1, %vm3980_vm15  ;;  %vm3993_vm15 = vcmp.eq.s32.totalorder %v11883_v5, %v10842_v60  ;;  %vm3995_vm1 = vcmp.eq.s32.totalorder %v11963_v33, %v10842_v60 }
 0x444   : > { %vm8101_vm4 = vmpackc.low %vm3995_vm1, %vm3993_vm15 }
 0x445   : > { %8084 = vmatpush1.bf16.msk.msra.mxu0 %vm8083_vm7, %v11860_v3  ;;  %vm3984_vm7 = vcmp.eq.s32.totalorder %v11960_v28, %v10845_v30  ;;  %v12018_v28 = vld [vmem:[#allocation85_spill] sm:$0xff] }
 0x446   : > { %8086 = vmatprep.subr.msk.bf16.mxu0 %vm8085_vm8, %v11860_v3  ;;  %vm3986_vm8 = vcmp.eq.s32.totalorder %v11961_v29, %v10845_v30  ;;  %v12019_v29 = vld [vmem:[#allocation86_spill] sm:$0xff] }
 0x447   : > { %vm8095_vm11 = vmpackc.low %vm3986_vm8, %vm3984_vm7  ;;  %vm3997_vm7 = vcmp.eq.s32.totalorder %v11965_v35, %v10842_v60  ;;  %vm3999_vm8 = vcmp.eq.s32.totalorder %v11966_v36, %v10842_v60 }
 0x448   : > { %vm8105_vm10 = vmpackc.low %vm3999_vm8, %vm3997_vm7 }
 0x449   : > { %8088 = vmatpush1.bf16.msk.msra.mxu0 %vm8087_vm13, %v11860_v3  ;;  %vm3988_vm13 = vcmp.eq.s32.totalorder %v11881_v13, %v10845_v30  ;;  %v11992_v13 = vld [vmem:[#allocation56_spill] sm:$0xff] }
 0x44a   : > { %8090 = vmatprep.subr.msk.bf16.mxu0 %vm8089_vm14, %v11860_v3  ;;  %vm3990_vm14 = vcmp.eq.s32.totalorder %v11962_v31, %v10845_v30  ;;  %v12020_v31 = vmov 0.0  }
 0x44b   : > { %vm8099_vm2 = vmpackc.low %vm3990_vm14, %vm3988_vm13  ;;  %vm4003_vm14 = vcmp.eq.s32.totalorder %v11968_v37, %v10842_v60 }
 0x44d   : > { %8092 = vmatpush1.bf16.msk.msra.mxu0 %vm8091_vm5, %v11860_v3  ;;  %vm3992_vm5 = vcmp.eq.s32.totalorder %v11883_v5, %v10845_v30  ;;  %v11967_v5 = vld [vmem:[#allocation31_spill] sm:$0xff] }
 0x44e   : > { %8094 = vmatprep.subr.msk.bf16.mxu0 %vm8093_vm6, %v11860_v3  ;;  %vm3994_vm6 = vcmp.eq.s32.totalorder %v11963_v33, %v10845_v30  ;;  %vm4001_vm13 = vcmp.eq.s32.totalorder %v11967_v5, %v10842_v60  ;;  %v8319_v33 = vmov 0  }
 0x44f   : > { %vm8103_vm9 = vmpackc.low %vm3994_vm6, %vm3992_vm5  ;;  %vm4005_vm5 = vcmp.eq.s32.totalorder %v11969_v38, %v10842_v60  ;;  %vm4007_vm6 = vcmp.eq.s32.totalorder %v11970_v39, %v10842_v60  ;;  %8278 = vset.pattern.permute.xlu0 %v8319_v33 }
 0x450   : > { %4760 = vmatmul.mubr.f32.vlgmr.msra.gmra.mrb[4].mxu0 %v8290_v32  ;;  %vm8109_vm1 = vmpackc.low %vm4003_vm14, %vm4001_vm13  ;;  %v5003_v32 = vld [vmem:[%s11528_s2] sm:$0xff] }
 0x451   : > { %8096 = vmatpush1.bf16.msk.msra.mxu0 %vm8095_vm11, %v11860_v3  ;;  %4830 = vmatprep.mubr.f32.mxu0 %v11964_v34  ;;  %vm3996_vm11 = vcmp.eq.s32.totalorder %v11965_v35, %v10845_v30  ;;  %vm8113_vm8 = vmpackc.low %vm4007_vm6, %vm4005_vm5  ;;  %v7189_v34 = vld [vmem:[%s11527_s1 + $0x18] sm:$0xff] }
 0x452   : > { %8098 = vmatprep.subr.msk.bf16.mxu0 %vm8097_vm12, %v11860_v3  ;;  %vm3998_vm12 = vcmp.eq.s32.totalorder %v11966_v36, %v10845_v30  ;;  %5006 = vperm.xlu0 %8278, %v5003_v32   ;;  %v12021_v36 = vld [vmem:[#allocation4_spill] sm:$0xff] }
 0x453   : > { %vm8107_vm15 = vmpackc.low %vm3998_vm12, %vm3996_vm11  ;;  %vm4009_vm11 = vcmp.eq.s32.totalorder %v11971_v40, %v10842_v60  ;;  %vm4011_vm12 = vcmp.eq.s32.totalorder %v11972_v41, %v10842_v60 }
 0x454   : > { %vm8117_vm14 = vmpackc.low %vm4011_vm12, %vm4009_vm11 }
 0x455   : > { %8100 = vmatpush1.bf16.msk.msra.mxu0 %vm8099_vm2, %v11860_v3  ;;  %vm4000_vm2 = vcmp.eq.s32.totalorder %v11967_v5, %v10845_v30 }
 0x456   : > { %8102 = vmatprep.subr.msk.bf16.mxu0 %vm8101_vm4, %v11860_v3  ;;  %vm4002_vm4 = vcmp.eq.s32.totalorder %v11968_v37, %v10845_v30 }
 0x457   : > { %vm8111_vm7 = vmpackc.low %vm4002_vm4, %vm4000_vm2  ;;  %vm4013_vm2 = vcmp.eq.s32.totalorder %v11973_v42, %v10842_v60  ;;  %vm4015_vm4 = vcmp.eq.s32.totalorder %v11974_v43, %v10842_v60 }
 0x458   : > { %vm8121_vm6 = vmpackc.low %vm4015_vm4, %vm4013_vm2 }
 0x459   : > { %8104 = vmatpush1.bf16.msk.msra.mxu0 %vm8103_vm9, %v11860_v3  ;;  %vm4004_vm9 = vcmp.eq.s32.totalorder %v11969_v38, %v10845_v30  ;;  %v12022_v38 = vld [vmem:[#allocation24_spill] sm:$0xff] }
 0x45a   : > { %8106 = vmatprep.subr.msk.bf16.mxu0 %vm8105_vm10, %v11860_v3  ;;  %vm4006_vm10 = vcmp.eq.s32.totalorder %v11970_v39, %v10845_v30 }
 0x45b   : > { %vm8115_vm13 = vmpackc.low %vm4006_vm10, %vm4004_vm9  ;;  %vm4017_vm9 = vcmp.eq.s32.totalorder %v11975_v44, %v10842_v60  ;;  %vm4019_vm10 = vcmp.eq.s32.totalorder %v11976_v45, %v10842_v60 }
 0x45c   : > { %vm8125_vm12 = vmpackc.low %vm4019_vm10, %vm4017_vm9 }
 0x45d   : > { %8108 = vmatpush1.bf16.msk.msra.mxu0 %vm8107_vm15, %v11860_v3  ;;  %vm4008_vm15 = vcmp.eq.s32.totalorder %v11971_v40, %v10845_v30 }
 0x45e   : > { %8110 = vmatprep.subr.msk.bf16.mxu0 %vm8109_vm1, %v11860_v3  ;;  %vm4010_vm1 = vcmp.eq.s32.totalorder %v11972_v41, %v10845_v30 }
 0x45f   : > { %vm8119_vm5 = vmpackc.low %vm4010_vm1, %vm4008_vm15  ;;  %vm4021_vm15 = vcmp.eq.s32.totalorder %v11977_v46, %v10842_v60  ;;  %vm4023_vm1 = vcmp.eq.s32.totalorder %v11978_v47, %v10842_v60 }
 0x460   : > { %vm8129_vm4 = vmpackc.low %vm4023_vm1, %vm4021_vm15 }
 0x461   : > { %8112 = vmatpush1.bf16.msk.msra.mxu0 %vm8111_vm7, %v11860_v3  ;;  %vm4012_vm7 = vcmp.eq.s32.totalorder %v11973_v42, %v10845_v30 }
 0x462   : > { %8114 = vmatprep.subr.msk.bf16.mxu0 %vm8113_vm8, %v11860_v3  ;;  %vm4014_vm8 = vcmp.eq.s32.totalorder %v11974_v43, %v10845_v30 }
 0x463   : > { %vm8123_vm11 = vmpackc.low %vm4014_vm8, %vm4012_vm7  ;;  %vm4025_vm7 = vcmp.eq.s32.totalorder %v11979_v48, %v10842_v60  ;;  %vm4027_vm8 = vcmp.eq.s32.totalorder %v11980_v49, %v10842_v60 }
 0x464   : > { %vm8133_vm10 = vmpackc.low %vm4027_vm8, %vm4025_vm7 }
 0x465   : > { %8116 = vmatpush1.bf16.msk.msra.mxu0 %vm8115_vm13, %v11860_v3  ;;  %vm4016_vm13 = vcmp.eq.s32.totalorder %v11975_v44, %v10845_v30 }
 0x466   : > { %8118 = vmatprep.subr.msk.bf16.mxu0 %vm8117_vm14, %v11860_v3  ;;  %vm4018_vm14 = vcmp.eq.s32.totalorder %v11976_v45, %v10845_v30 }
 0x467   : > { %vm8127_vm2 = vmpackc.low %vm4018_vm14, %vm4016_vm13  ;;  %vm4029_vm13 = vcmp.eq.s32.totalorder %v11981_v50, %v10842_v60  ;;  %vm4031_vm14 = vcmp.eq.s32.totalorder %v11982_v51, %v10842_v60 }
 0x468   : > { %vm8137_vm1 = vmpackc.low %vm4031_vm14, %vm4029_vm13 }
 0x469   : > { %8120 = vmatpush1.bf16.msk.msra.mxu0 %vm8119_vm5, %v11860_v3  ;;  %vm4020_vm5 = vcmp.eq.s32.totalorder %v11977_v46, %v10845_v30 }
 0x46a   : > { %8122 = vmatprep.subr.msk.bf16.mxu0 %vm8121_vm6, %v11860_v3  ;;  %vm4022_vm6 = vcmp.eq.s32.totalorder %v11978_v47, %v10845_v30 }
 0x46b   : > { %vm8131_vm9 = vmpackc.low %vm4022_vm6, %vm4020_vm5  ;;  %vm4033_vm5 = vcmp.eq.s32.totalorder %v11983_v53, %v10842_v60  ;;  %vm4035_vm6 = vcmp.eq.s32.totalorder %v11984_v54, %v10842_v60 }
 0x46c   : > { %vm8141_vm8 = vmpackc.low %vm4035_vm6, %vm4033_vm5 }
 0x46d   : > { %8124 = vmatpush1.bf16.msk.msra.mxu0 %vm8123_vm11, %v11860_v3  ;;  %vm4024_vm11 = vcmp.eq.s32.totalorder %v11979_v48, %v10845_v30 }
 0x46e   : > { %8126 = vmatprep.subr.msk.bf16.mxu0 %vm8125_vm12, %v11860_v3  ;;  %vm4026_vm12 = vcmp.eq.s32.totalorder %v11980_v49, %v10845_v30 }
 0x46f   : > { %vm8135_vm15 = vmpackc.low %vm4026_vm12, %vm4024_vm11  ;;  %vm4037_vm11 = vcmp.eq.s32.totalorder %v11985_v55, %v10842_v60  ;;  %vm4039_vm12 = vcmp.eq.s32.totalorder %v11986_v56, %v10842_v60 }
 0x470   : > { %vm8145_vm14 = vmpackc.low %vm4039_vm12, %vm4037_vm11 }
 0x471   : > { %8128 = vmatpush1.bf16.msk.msra.mxu0 %vm8127_vm2, %v11860_v3  ;;  %vm4028_vm2 = vcmp.eq.s32.totalorder %v11981_v50, %v10845_v30 }
 0x472   : > { %8130 = vmatprep.subr.msk.bf16.mxu0 %vm8129_vm4, %v11860_v3  ;;  %vm4030_vm4 = vcmp.eq.s32.totalorder %v11982_v51, %v10845_v30 }
 0x473   : > { %vm8139_vm7 = vmpackc.low %vm4030_vm4, %vm4028_vm2  ;;  %vm4041_vm2 = vcmp.eq.s32.totalorder %v11987_v57, %v10842_v60  ;;  %vm4043_vm4 = vcmp.eq.s32.totalorder %v11988_v58, %v10842_v60 }
 0x474   : > { %vm8149_vm6 = vmpackc.low %vm4043_vm4, %vm4041_vm2 }
 0x475   : > { %8132 = vmatpush1.bf16.msk.msra.mxu0 %vm8131_vm9, %v11860_v3  ;;  %vm4032_vm9 = vcmp.eq.s32.totalorder %v11983_v53, %v10845_v30 }
 0x476   : > { %8134 = vmatprep.subr.msk.bf16.mxu0 %vm8133_vm10, %v11860_v3  ;;  %vm4034_vm10 = vcmp.eq.s32.totalorder %v11984_v54, %v10845_v30 }
 0x477   : > { %vm8143_vm13 = vmpackc.low %vm4034_vm10, %vm4032_vm9  ;;  %vm4045_vm9 = vcmp.eq.s32.totalorder %v11989_v59, %v10842_v60  ;;  %vm4047_vm10 = vcmp.eq.s32.totalorder %v11990_v61, %v10842_v60 }
 0x478   : > { %vm8153_vm12 = vmpackc.low %vm4047_vm10, %vm4045_vm9 }
 0x479   : > { %8136 = vmatpush1.bf16.msk.msra.mxu0 %vm8135_vm15, %v11860_v3  ;;  %vm4036_vm15 = vcmp.eq.s32.totalorder %v11985_v55, %v10845_v30 }
 0x47a   : > { %8138 = vmatprep.subr.msk.bf16.mxu0 %vm8137_vm1, %v11860_v3  ;;  %vm4038_vm1 = vcmp.eq.s32.totalorder %v11986_v56, %v10845_v30 }
 0x47b   : > { %vm8147_vm5 = vmpackc.low %vm4038_vm1, %vm4036_vm15  ;;  %vm4049_vm15 = vcmp.eq.s32.totalorder %v11991_v9, %v10842_v60  ;;  %vm4051_vm1 = vcmp.eq.s32.totalorder %v11992_v13, %v10842_v60 }
 0x47c   : > { %vm8157_vm4 = vmpackc.low %vm4051_vm1, %vm4049_vm15 }
 0x47d   : > { %8140 = vmatpush1.bf16.msk.msra.mxu0 %vm8139_vm7, %v11860_v3  ;;  %vm4040_vm7 = vcmp.eq.s32.totalorder %v11987_v57, %v10845_v30 }
 0x47e   : > { %8142 = vmatprep.subr.msk.bf16.mxu0 %vm8141_vm8, %v11860_v3  ;;  %vm4042_vm8 = vcmp.eq.s32.totalorder %v11988_v58, %v10845_v30 }
 0x47f   : > { %vm8151_vm11 = vmpackc.low %vm4042_vm8, %vm4040_vm7  ;;  %vm4053_vm7 = vcmp.eq.s32.totalorder %v11993_v1, %v10842_v60  ;;  %vm4055_vm8 = vcmp.eq.s32.totalorder %v11994_v12, %v10842_v60 }
 0x480   : > { %vm8161_vm10 = vmpackc.low %vm4055_vm8, %vm4053_vm7 }
 0x481   : > { %8144 = vmatpush1.bf16.msk.msra.mxu0 %vm8143_vm13, %v11860_v3  ;;  %vm4044_vm13 = vcmp.eq.s32.totalorder %v11989_v59, %v10845_v30 }
 0x482   : > { %8146 = vmatprep.subr.msk.bf16.mxu0 %vm8145_vm14, %v11860_v3  ;;  %vm4046_vm14 = vcmp.eq.s32.totalorder %v11990_v61, %v10845_v30 }
 0x483   : > { %vm8155_vm2 = vmpackc.low %vm4046_vm14, %vm4044_vm13  ;;  %vm4057_vm13 = vcmp.eq.s32.totalorder %v11995_v6, %v10842_v60  ;;  %vm4059_vm14 = vcmp.eq.s32.totalorder %v11996_v52, %v10842_v60 }
 0x484   : > { %vm8165_vm1 = vmpackc.low %vm4059_vm14, %vm4057_vm13 }
 0x485   : > { %8148 = vmatpush1.bf16.msk.msra.mxu0 %vm8147_vm5, %v11860_v3  ;;  %vm4048_vm5 = vcmp.eq.s32.totalorder %v11991_v9, %v10845_v30 }
 0x486   : > { %8150 = vmatprep.subr.msk.bf16.mxu0 %vm8149_vm6, %v11860_v3  ;;  %vm4050_vm6 = vcmp.eq.s32.totalorder %v11992_v13, %v10845_v30 }
 0x487   : > { %vm8159_vm9 = vmpackc.low %vm4050_vm6, %vm4048_vm5  ;;  %vm4061_vm5 = vcmp.eq.s32.totalorder %v11998_v4, %v10842_v60  ;;  %vm4063_vm6 = vcmp.eq.s32.totalorder %v11999_v7, %v10842_v60 }
 0x488   : > { %vm8169_vm8 = vmpackc.low %vm4063_vm6, %vm4061_vm5 }
 0x489   : > { %8152 = vmatpush1.bf16.msk.msra.mxu0 %vm8151_vm11, %v11860_v3  ;;  %vm4052_vm11 = vcmp.eq.s32.totalorder %v11993_v1, %v10845_v30 }
 0x48a   : > { %8154 = vmatprep.subr.msk.bf16.mxu0 %vm8153_vm12, %v11860_v3  ;;  %vm4054_vm12 = vcmp.eq.s32.totalorder %v11994_v12, %v10845_v30 }
 0x48b   : > { %vm8163_vm15 = vmpackc.low %vm4054_vm12, %vm4052_vm11  ;;  %vm4065_vm11 = vcmp.eq.s32.totalorder %v12000_v8, %v10842_v60  ;;  %vm4067_vm12 = vcmp.eq.s32.totalorder %v12001_v14, %v10842_v60 }
 0x48c   : > { %vm8173_vm14 = vmpackc.low %vm4067_vm12, %vm4065_vm11 }
 0x48d   : > { %8156 = vmatpush1.bf16.msk.msra.mxu0 %vm8155_vm2, %v11860_v3  ;;  %vm4056_vm2 = vcmp.eq.s32.totalorder %v11995_v6, %v10845_v30 }
 0x48e   : > { %8158 = vmatprep.subr.msk.bf16.mxu0 %vm8157_vm4, %v11860_v3  ;;  %vm4058_vm4 = vcmp.eq.s32.totalorder %v11996_v52, %v10845_v30 }
 0x48f   : > { %vm8167_vm7 = vmpackc.low %vm4058_vm4, %vm4056_vm2  ;;  %vm4069_vm2 = vcmp.eq.s32.totalorder %v12002_v15, %v10842_v60  ;;  %vm4071_vm4 = vcmp.eq.s32.totalorder %v12003_v16, %v10842_v60 }
 0x490   : > { %4831 = vmatmul.mubr.f32.vlgmr.msra.gmra.mrb[4].mxu0 %v8291_v10  ;;  %vm8177_vm6 = vmpackc.low %vm4071_vm4, %vm4069_vm2 }
 0x491   : > { %8160 = vmatpush1.bf16.msk.msra.mxu0 %vm8159_vm9, %v11860_v3  ;;  %4901 = vmatprep.mubr.f32.mxu0 %v11997_v2  ;;  %vm4060_vm9 = vcmp.eq.s32.totalorder %v11998_v4, %v10845_v30 }
 0x492   : > { %8162 = vmatprep.subr.msk.bf16.mxu0 %vm8161_vm10, %v11860_v3  ;;  %vm4062_vm10 = vcmp.eq.s32.totalorder %v11999_v7, %v10845_v30 }
 0x493   : > { %vm8171_vm13 = vmpackc.low %vm4062_vm10, %vm4060_vm9  ;;  %vm4073_vm9 = vcmp.eq.s32.totalorder %v11923_v63, %v10842_v60  ;;  %vm4075_vm10 = vcmp.eq.s32.totalorder %v11924_v11, %v10842_v60 }
 0x494   : > { %vm8181_vm12 = vmpackc.low %vm4075_vm10, %vm4073_vm9 }
 0x495   : > { %8164 = vmatpush1.bf16.msk.msra.mxu0 %vm8163_vm15, %v11860_v3  ;;  %vm4064_vm15 = vcmp.eq.s32.totalorder %v12000_v8, %v10845_v30 }
 0x496   : > { %8166 = vmatprep.subr.msk.bf16.mxu0 %vm8165_vm1, %v11860_v3  ;;  %vm4066_vm1 = vcmp.eq.s32.totalorder %v12001_v14, %v10845_v30 }
 0x497   : > { %vm8175_vm5 = vmpackc.low %vm4066_vm1, %vm4064_vm15  ;;  %vm4077_vm15 = vcmp.eq.s32.totalorder %v12004_v17, %v10842_v60  ;;  %vm4079_vm1 = vcmp.eq.s32.totalorder %v12005_v18, %v10842_v60 }
 0x498   : > { %vm8185_vm4 = vmpackc.low %vm4079_vm1, %vm4077_vm15 }
 0x499   : > { %8168 = vmatpush1.bf16.msk.msra.mxu0 %vm8167_vm7, %v11860_v3  ;;  %vm4068_vm7 = vcmp.eq.s32.totalorder %v12002_v15, %v10845_v30 }
 0x49a   : > { %8170 = vmatprep.subr.msk.bf16.mxu0 %vm8169_vm8, %v11860_v3  ;;  %vm4070_vm8 = vcmp.eq.s32.totalorder %v12003_v16, %v10845_v30 }
 0x49b   : > { %vm8179_vm11 = vmpackc.low %vm4070_vm8, %vm4068_vm7 }
 0x49d   : > { %8172 = vmatpush1.bf16.msk.msra.mxu0 %vm8171_vm13, %v11860_v3  ;;  %vm4072_vm13 = vcmp.eq.s32.totalorder %v11923_v63, %v10845_v30  ;;  %v12007_v63 = vld [vmem:[#allocation73_spill] sm:$0xff] }
 0x49e   : > { %8174 = vmatprep.subr.msk.bf16.mxu0 %vm8173_vm14, %v11860_v3  ;;  %vm4074_vm14 = vcmp.eq.s32.totalorder %v11924_v11, %v10845_v30  ;;  %v12006_v11 = vld [vmem:[#allocation72_spill] sm:$0xff]  ;;  %vm4083_vm8 = vcmp.eq.s32.totalorder %v12007_v63, %v10842_v60 }
 0x49f   : > { %vm8183_vm2 = vmpackc.low %vm4074_vm14, %vm4072_vm13  ;;  %vm4081_vm7 = vcmp.eq.s32.totalorder %v12006_v11, %v10842_v60  ;;  %vm4085_vm13 = vcmp.eq.s32.totalorder %v12008_v19, %v10842_v60  ;;  %vm4087_vm14 = vcmp.eq.s32.totalorder %v12009_v20, %v10842_v60 }
 0x4a0   : > { %vm8189_vm10 = vmpackc.low %vm4083_vm8, %vm4081_vm7 }
 0x4a1   : > { %8176 = vmatpush1.bf16.msk.msra.mxu0 %vm8175_vm5, %v11860_v3  ;;  %vm4076_vm5 = vcmp.eq.s32.totalorder %v12004_v17, %v10845_v30  ;;  %vm8193_vm1 = vmpackc.low %vm4087_vm14, %vm4085_vm13 }
 0x4a2   : > { %8178 = vmatprep.subr.msk.bf16.mxu0 %vm8177_vm6, %v11860_v3  ;;  %vm4078_vm6 = vcmp.eq.s32.totalorder %v12005_v18, %v10845_v30 }
 0x4a3   : > { %vm8187_vm9 = vmpackc.low %vm4078_vm6, %vm4076_vm5  ;;  %vm4089_vm5 = vcmp.eq.s32.totalorder %v12010_v21, %v10842_v60  ;;  %vm4091_vm6 = vcmp.eq.s32.totalorder %v12011_v22, %v10842_v60 }
 0x4a4   : > { %vm8197_vm8 = vmpackc.low %vm4091_vm6, %vm4089_vm5 }
 0x4a5   : > { %8180 = vmatpush1.bf16.msk.msra.mxu0 %vm8179_vm11, %v11860_v3  ;;  %vm4080_vm11 = vcmp.eq.s32.totalorder %v12006_v11, %v10845_v30 }
 0x4a6   : > { %8182 = vmatprep.subr.msk.bf16.mxu0 %vm8181_vm12, %v11860_v3  ;;  %vm4082_vm12 = vcmp.eq.s32.totalorder %v12007_v63, %v10845_v30 }
 0x4a7   : > { %vm8191_vm15 = vmpackc.low %vm4082_vm12, %vm4080_vm11  ;;  %vm4093_vm11 = vcmp.eq.s32.totalorder %v11935_v62, %v10842_v60  ;;  %vm4095_vm12 = vcmp.eq.s32.totalorder %v12012_v23, %v10842_v60 }
 0x4a8   : > { %vm8201_vm14 = vmpackc.low %vm4095_vm12, %vm4093_vm11 }
 0x4a9   : > { %8184 = vmatpush1.bf16.msk.msra.mxu0 %vm8183_vm2, %v11860_v3  ;;  %vm4084_vm2 = vcmp.eq.s32.totalorder %v12008_v19, %v10845_v30 }
 0x4aa   : > { %8186 = vmatprep.subr.msk.bf16.mxu0 %vm8185_vm4, %v11860_v3  ;;  %vm4086_vm4 = vcmp.eq.s32.totalorder %v12009_v20, %v10845_v30 }
 0x4ab   : > { %vm8195_vm7 = vmpackc.low %vm4086_vm4, %vm4084_vm2  ;;  %vm4097_vm2 = vcmp.eq.s32.totalorder %v12013_v24, %v10842_v60  ;;  %vm4099_vm4 = vcmp.eq.s32.totalorder %v12014_v25, %v10842_v60 }
 0x4ac   : > { %vm8205_vm6 = vmpackc.low %vm4099_vm4, %vm4097_vm2 }
 0x4ad   : > { %8188 = vmatpush1.bf16.msk.msra.mxu0 %vm8187_vm9, %v11860_v3  ;;  %vm4088_vm9 = vcmp.eq.s32.totalorder %v12010_v21, %v10845_v30 }
 0x4ae   : > { %8190 = vmatprep.subr.msk.bf16.mxu0 %vm8189_vm10, %v11860_v3  ;;  %vm4090_vm10 = vcmp.eq.s32.totalorder %v12011_v22, %v10845_v30 }
 0x4af   : > { %vm8199_vm13 = vmpackc.low %vm4090_vm10, %vm4088_vm9  ;;  %vm4103_vm10 = vcmp.eq.s32.totalorder %v12016_v26, %v10842_v60 }
 0x4b1   : > { %8192 = vmatpush1.bf16.msk.msra.mxu0 %vm8191_vm15, %v11860_v3  ;;  %vm4092_vm15 = vcmp.eq.s32.totalorder %v11935_v62, %v10845_v30  ;;  %v12015_v62 = vld [vmem:[#allocation82_spill] sm:$0xff] }
 0x4b2   : > { %8194 = vmatprep.subr.msk.bf16.mxu0 %vm8193_vm1, %v11860_v3  ;;  %vm4094_vm1 = vcmp.eq.s32.totalorder %v12012_v23, %v10845_v30  ;;  %vm4101_vm9 = vcmp.eq.s32.totalorder %v12015_v62, %v10842_v60 }
 0x4b3   : > { %vm8203_vm5 = vmpackc.low %vm4094_vm1, %vm4092_vm15  ;;  %vm4105_vm15 = vcmp.eq.s32.totalorder %v12017_v27, %v10842_v60  ;;  %vm4107_vm1 = vcmp.eq.s32.totalorder %v12018_v28, %v10842_v60 }
 0x4b4   : > { %vm8209_vm12 = vmpackc.low %vm4103_vm10, %vm4101_vm9 }
 0x4b5   : > { %8196 = vmatpush1.bf16.msk.msra.mxu0 %vm8195_vm7, %v11860_v3  ;;  %vm4096_vm7 = vcmp.eq.s32.totalorder %v12013_v24, %v10845_v30  ;;  %vm8213_vm4 = vmpackc.low %vm4107_vm1, %vm4105_vm15 }
 0x4b6   : > { %8198 = vmatprep.subr.msk.bf16.mxu0 %vm8197_vm8, %v11860_v3  ;;  %vm4098_vm8 = vcmp.eq.s32.totalorder %v12014_v25, %v10845_v30 }
 0x4b7   : > { %vm8207_vm11 = vmpackc.low %vm4098_vm8, %vm4096_vm7  ;;  %vm4109_vm7 = vcmp.eq.s32.totalorder %v12019_v29, %v10842_v60  ;;  %vm4111_vm8 = vcmp.eq.s32.totalorder %v11941_v0, %v10842_v60  ;;  %v8292_v60 = vld [vmem:[%s8616_s24 + $0x18] sm:$0xff] }
 0x4b8   : > { %vm8217_vm10 = vmpackc.low %vm4111_vm8, %vm4109_vm7 }
 0x4b9   : > { %8200 = vmatpush1.bf16.msk.msra.mxu0 %vm8199_vm13, %v11860_v3  ;;  %vm4100_vm13 = vcmp.eq.s32.totalorder %v12015_v62, %v10845_v30 }
 0x4ba   : > { %8202 = vmatprep.subr.msk.bf16.mxu0 %vm8201_vm14, %v11860_v3  ;;  %vm4102_vm14 = vcmp.eq.s32.totalorder %v12016_v26, %v10845_v30 }
 0x4bb   : > { %vm8211_vm2 = vmpackc.low %vm4102_vm14, %vm4100_vm13 }
 0x4bd   : > { %8204 = vmatpush1.bf16.msk.msra.mxu0 %vm8203_vm5, %v11860_v3  ;;  %vm4104_vm5 = vcmp.eq.s32.totalorder %v12017_v27, %v10845_v30 }
 0x4be   : > { %8206 = vmatprep.subr.msk.bf16.mxu0 %vm8205_vm6, %v11860_v3  ;;  %vm4106_vm6 = vcmp.eq.s32.totalorder %v12018_v28, %v10845_v30 }
 0x4bf   : > { %vm8215_vm9 = vmpackc.low %vm4106_vm6, %vm4104_vm5 }
 0x4c1   : > { %8208 = vmatpush1.bf16.msk.msra.mxu0 %vm8207_vm11, %v11860_v3  ;;  %vm4108_vm11 = vcmp.eq.s32.totalorder %v12019_v29, %v10845_v30 }
 0x4c2   : > { %8210 = vmatprep.subr.msk.bf16.mxu0 %vm8209_vm12, %v11860_v3  ;;  %vm4110_vm12 = vcmp.eq.s32.totalorder %v11941_v0, %v10845_v30 }
 0x4c3   : > { %vm8219_vm13 = vmpackc.low %vm4110_vm12, %vm4108_vm11 }
 0x4c5   : > { %8212 = vmatpush1.bf16.msk.msra.mxu0 %vm8211_vm2, %v11860_v3 }
 0x4c6   : > { %8214 = vmatprep.subr.msk.bf16.mxu0 %vm8213_vm4, %v11860_v3 }
 0x4c9   : > { %8216 = vmatpush1.bf16.msk.msra.mxu0 %vm8215_vm9, %v11860_v3 }
 0x4ca   : > { %8218 = vmatprep.subr.msk.bf16.mxu0 %vm8217_vm10, %v11860_v3 }
 0x4cd   : > { %8220 = vmatpush1.bf16.msk.msra.mxu0 %vm8219_vm13, %v11860_v3 }
 0x4d0   : > { %4902 = vmatmul.mubr.f32.vlgmr.msra.gmra.mrb[4].mxu0 %v8292_v60 }
 0x4d1   : > { %4983 = vmatprep.mubr.f32.mxu0 %v12020_v31  ;;  %v5007_v35 = vpop.permute.xlu0 %5006 }
 0x5a3   : > { %v4903_v0 = vpop.f32.mrb[4].mxu0 }
 0x5a4   : > { %v4905_v30 = vpop.f32.mrb[5].mxu0 }
 0x5a5   : > { %7190 = vmatprep.subr.msk.mxu0 %vm2544_vm0, %v4905_v30 }
 0x5a6   : > { %7191 = vmatpush1.msk.msra.mxu0 %vm2544_vm0, %v4903_v0 }
 0x5a7   : > { %7192 = vmatmul.mubr.msk.f32.vlgmr.msra.gmra.mrb[2].mxu0 %vm2540_vm3, %v7189_v34 }
 0x67a   : > { %v4985_v3 = vpop.f32.mrb[2].mxu0 }
 0x67b   : > { %v8221_v5 = vadd.f32 %v4985_v3, %v12021_v36  ;;  %v4987_v37 = vpop.f32.mrb[3].mxu0 }
 0x67c   : > { %v8222_v39 = vadd.f32 %v4987_v37, %v12022_v38 }
 0x67d   : > { %v5009_v40 = vadd.f32 %v8221_v5, %v5007_v35 }
 0x67e   : > { %v5010_v41 = vadd.f32 %v8222_v39, %v5007_v35 }
 0x67f   : > { %v5011_v42 = vmax.f32 %v5009_v40, 0.0 }
 0x680   : > { %v5012_v43 = vmax.f32 %v5010_v41, 0.0 }
 0x681   : > { %5013 = vst [vmem:[%s262_s20] sm:$0xff] %v5011_v42 }
 0x682   : > { %5014 = vst [vmem:[%s262_s20 + $0x8] sm:$0xff] %v5012_v43 }
 0x683 PF: > { %s14_s17 = sadd.s32 1, %s8315_s17   ;;  %s12023_s15 = smov %s8311_s16 }
 0x684   : > { %p11_p5 = scmp.ge.s32.totalorder %s14_s17, 4   ;;  %s12024_s16 = smov %s12026_s18 }
 0x686   :  { %13 = sbr.rel (!%p11_p5) target bundleno = 2 (0x2), region = 80 }

// kernel: convolution_downsample.2
= control target key start
LH: loop header
LB: loop body
LE: loop exit
PB: predicated region body
PF: predicated region fallthrough
CT: control target
= control target key end

     0   :  { %s8386_s15 = smov 0   ;;  %s8388_s16 = smov 0   ;;  %s11567_s0 = inlined_call_operand.vmem [shape: s32[1,256], index: 0, kind: input, shape index: {}]   ;;  %s11568_s1 = inlined_call_operand.vmem [shape: f32[1,4,8,4], index: 1, kind: input, shape index: {}]   ;;  %s11569_s2 = inlined_call_operand.vmem [shape: f32[2,4,1024], index: 2, kind: input, shape index: {}]   ;;  %s11570_s3 = inlined_call_operand.vmem [shape: f32[2,1,8,1], index: 3, kind: output, shape index: {0}]   ;;  %s11571_s4 = inlined_call_operand.vmem [shape: f32[2,1,8,1], index: 4, kind: output, shape index: {1}]  }
   0x1   :  { %s8390_s17 = smov 0  }
   0x2 LB: > { %s34_s18 = sadd.s32 1, %s8353_s16  ;;  %p5170_p0 = scmp.ge.s32.totalorder %s8357_s17, 1  ;;  %s8357_s17 = sphi %s8390_s17, %s15_s17   ;;  %s8353_s16 = sphi %s8388_s16, %s12065_s16   ;;  %s8349_s15 = sphi %s8386_s15, %s12064_s15  }
   0x3   : > { %p36_p1 = scmp.ge.s32.totalorder %s34_s18, 2  ;;  %p205_p2 = scmp.lt.s32.totalorder %s8357_s17, 3 }
   0x5   : > { %s12067_s18 = smov (%p36_p1, %s34_s18), 0  ;;  %p206_p3 = pnand %p5170_p0, %p205_p2 }
   0x7   : > { %209 = sbr.rel (%p206_p3) target bundleno = 1811 (0x713), region = 32 }
   0xe   : > { %v288_v0 = vld [vmem:[%s11567_s0] sm:$0x3]  ;;  %v289_v1 = vlaneseq  ;;  %v11726_v13 = vmov 1.0|1.0   ;;  %p255_p4 = scmp.lt.s32.totalorder %s8349_s15, 1 }
   0xf   : > { %v1491_v3 = vadd.s32 1, %v288_v0 }
  0x10   : > { %v8409_v2 = vshrl.u32 %v289_v1, 7  ;;  %s12069_s15 = smov (!%p255_p4, %s8349_s15), 1 }
  0x11   : > { %s7240_s21 = sshll.u32 %s12069_s15, 5  ;;  %s5173_s11 = sshll.u32 %s12069_s15, 3 }
  0x12   : > { %v8412_v4 = vadd.s32 8, %v8409_v2  ;;  %v8415_v5 = vsub.s32 1, %v8409_v2  ;;  %v8418_v6 = vsub.s32 0, %v8409_v2  ;;  %v8421_v7 = vadd.s32 16, %v8409_v2  ;;  %s8657_s24 = scalar_lea.vmem %s11569_s2, %s7240_s21  ;;  %s270_s14 = scalar_lea.vmem %s11570_s3, %s5173_s11 }
  0x13   : > { %v8424_v8 = vadd.s32 24, %v8409_v2  ;;  %v8460_v14 = vadd.s32 32, %v8409_v2  ;;  %v8463_v15 = vadd.s32 40, %v8409_v2  ;;  %v8486_v16 = vadd.s32 48, %v8409_v2  ;;  %v8675_v30 = vld [vmem:[%s8657_s24] sm:$0xff]  ;;  %v8951_v52 = vld [vmem:[%s8657_s24 + $0x8] sm:$0xff]  ;;  %s277_s21 = scalar_lea.vmem %s11571_s4, %s5173_s11 }
  0x14   : > { %11815 = vst [vmem:[#allocation3_spill] sm:$0xff] %v8415_v5  ;;  %v8427_v9 = vrot.slane %v288_v0, %v8415_v5  ;;  %v8430_v10 = vrot.slane %v1491_v3, %v8415_v5  ;;  %v8433_v11 = vrot.slane %v288_v0, %v8418_v6  ;;  %v8436_v12 = vrot.slane %v1491_v3, %v8418_v6 }
  0x15   : > { %v8489_v17 = vadd.s32 56, %v8409_v2  ;;  %v8512_v18 = vadd.s32 64, %v8409_v2  ;;  %v8515_v19 = vadd.s32 72, %v8409_v2  ;;  %v8538_v20 = vadd.s32 80, %v8409_v2 }
  0x16   : > { %vm427_vm0 = vcmp.eq.s32.totalorder %v8409_v2, %v8427_v9  ;;  %vm429_vm1 = vcmp.eq.s32.totalorder %v8412_v4, %v8427_v9  ;;  %vm1501_vm2 = vcmp.eq.s32.totalorder %v8409_v2, %v8430_v10  ;;  %vm1503_vm3 = vcmp.eq.s32.totalorder %v8412_v4, %v8430_v10 }
  0x17   : > { %vm7241_vm4 = vmpackc.low %vm429_vm1, %vm427_vm0  ;;  %vm426_vm5 = vcmp.eq.s32.totalorder %v8409_v2, %v8433_v11  ;;  %vm428_vm6 = vcmp.eq.s32.totalorder %v8412_v4, %v8433_v11  ;;  %vm1500_vm7 = vcmp.eq.s32.totalorder %v8409_v2, %v8436_v12  ;;  %vm1502_vm8 = vcmp.eq.s32.totalorder %v8412_v4, %v8436_v12 }
  0x18   : > { %7242 = vmatprep.subr.msk.bf16.mxu0 %vm7241_vm4, %v11726_v13  ;;  %vm7497_vm9 = vmpackc.low %vm1503_vm3, %vm1501_vm2  ;;  %vm431_vm10 = vcmp.eq.s32.totalorder %v8421_v7, %v8427_v9  ;;  %vm433_vm11 = vcmp.eq.s32.totalorder %v8424_v8, %v8427_v9  ;;  %vm1505_vm13 = vcmp.eq.s32.totalorder %v8421_v7, %v8430_v10  ;;  %vm1507_vm14 = vcmp.eq.s32.totalorder %v8424_v8, %v8430_v10 }
  0x19   : > { %7498 = vmatprep.subr.msk.bf16.mxu1 %vm7497_vm9, %v11726_v13  ;;  %vm7243_vm12 = vmpackc.low %vm428_vm6, %vm426_vm5  ;;  %vm430_vm0 = vcmp.eq.s32.totalorder %v8421_v7, %v8433_v11  ;;  %vm432_vm1 = vcmp.eq.s32.totalorder %v8424_v8, %v8433_v11  ;;  %vm1504_vm3 = vcmp.eq.s32.totalorder %v8421_v7, %v8436_v12  ;;  %vm1506_vm4 = vcmp.eq.s32.totalorder %v8424_v8, %v8436_v12 }
  0x1a   : > { %7244 = vmatpush1.bf16.msk.msra.mxu0 %vm7243_vm12, %v11726_v13  ;;  %vm7499_vm15 = vmpackc.low %vm1502_vm8, %vm1500_vm7  ;;  %vm435_vm6 = vcmp.eq.s32.totalorder %v8460_v14, %v8427_v9  ;;  %vm437_vm7 = vcmp.eq.s32.totalorder %v8463_v15, %v8427_v9  ;;  %vm1509_vm9 = vcmp.eq.s32.totalorder %v8460_v14, %v8430_v10  ;;  %vm434_vm12 = vcmp.eq.s32.totalorder %v8460_v14, %v8433_v11 }
  0x1b   : > { %7500 = vmatpush1.bf16.msk.msra.mxu1 %vm7499_vm15, %v11726_v13  ;;  %vm7245_vm2 = vmpackc.low %vm433_vm11, %vm431_vm10  ;;  %vm1511_vm10 = vcmp.eq.s32.totalorder %v8463_v15, %v8430_v10  ;;  %vm1508_vm15 = vcmp.eq.s32.totalorder %v8460_v14, %v8436_v12  ;;  %v8541_v21 = vadd.s32 88, %v8409_v2  ;;  %v8564_v22 = vadd.s32 96, %v8409_v2 }
  0x1c   : > { %7246 = vmatprep.subr.msk.bf16.mxu0 %vm7245_vm2, %v11726_v13  ;;  %vm7501_vm5 = vmpackc.low %vm1507_vm14, %vm1505_vm13  ;;  %vm436_vm13 = vcmp.eq.s32.totalorder %v8463_v15, %v8433_v11  ;;  %vm439_vm2 = vcmp.eq.s32.totalorder %v8486_v16, %v8427_v9  ;;  %v8567_v23 = vadd.s32 104, %v8409_v2  ;;  %v8591_v24 = vadd.s32 112, %v8409_v2 }
  0x1d   : > { %7502 = vmatprep.subr.msk.bf16.mxu1 %vm7501_vm5, %v11726_v13  ;;  %vm7247_vm8 = vmpackc.low %vm432_vm1, %vm430_vm0  ;;  %vm1510_vm0 = vcmp.eq.s32.totalorder %v8463_v15, %v8436_v12  ;;  %vm1513_vm5 = vcmp.eq.s32.totalorder %v8486_v16, %v8430_v10  ;;  %v8594_v25 = vadd.s32 120, %v8409_v2  ;;  %v8622_v26 = vadd.s32 128, %v8409_v2 }
  0x1e   : > { %7248 = vmatpush1.bf16.msk.msra.mxu0 %vm7247_vm8, %v11726_v13  ;;  %vm7503_vm11 = vmpackc.low %vm1506_vm4, %vm1504_vm3  ;;  %vm441_vm3 = vcmp.eq.s32.totalorder %v8489_v17, %v8427_v9  ;;  %vm438_vm8 = vcmp.eq.s32.totalorder %v8486_v16, %v8433_v11  ;;  %v8625_v27 = vadd.s32 136, %v8409_v2  ;;  %v8649_v28 = vadd.s32 144, %v8409_v2 }
  0x1f   : > { %7504 = vmatpush1.bf16.msk.msra.mxu1 %vm7503_vm11, %v11726_v13  ;;  %vm7249_vm14 = vmpackc.low %vm437_vm7, %vm435_vm6  ;;  %vm1515_vm6 = vcmp.eq.s32.totalorder %v8489_v17, %v8430_v10  ;;  %vm1512_vm11 = vcmp.eq.s32.totalorder %v8486_v16, %v8436_v12  ;;  %v8652_v29 = vadd.s32 152, %v8409_v2  ;;  %v8683_v31 = vadd.s32 160, %v8409_v2 }
  0x20   : > { %7250 = vmatprep.subr.msk.bf16.mxu0 %vm7249_vm14, %v11726_v13  ;;  %vm7505_vm1 = vmpackc.low %vm1511_vm10, %vm1509_vm9  ;;  %vm440_vm9 = vcmp.eq.s32.totalorder %v8489_v17, %v8433_v11  ;;  %vm443_vm14 = vcmp.eq.s32.totalorder %v8512_v18, %v8427_v9  ;;  %v8686_v32 = vadd.s32 168, %v8409_v2  ;;  %v8700_v33 = vcombine.high %v8675_v30, %v8675_v30 }
  0x21   : > { %7506 = vmatprep.subr.msk.bf16.mxu1 %vm7505_vm1, %v11726_v13  ;;  %vm7251_vm4 = vmpackc.low %vm436_vm13, %vm434_vm12  ;;  %vm1514_vm12 = vcmp.eq.s32.totalorder %v8489_v17, %v8436_v12  ;;  %vm1517_vm1 = vcmp.eq.s32.totalorder %v8512_v18, %v8430_v10  ;;  %v8713_v34 = vadd.s32 176, %v8409_v2  ;;  %v8716_v35 = vadd.s32 184, %v8409_v2 }
  0x22   : > { %7252 = vmatpush1.bf16.msk.msra.mxu0 %vm7251_vm4, %v11726_v13  ;;  %vm7507_vm7 = vmpackc.low %vm1510_vm0, %vm1508_vm15  ;;  %vm445_vm15 = vcmp.eq.s32.totalorder %v8515_v19, %v8427_v9  ;;  %vm442_vm4 = vcmp.eq.s32.totalorder %v8512_v18, %v8433_v11  ;;  %1270 = vmatprep.mubr.f32.mxu0 %v8700_v33  ;;  %v8750_v36 = vadd.s32 192, %v8409_v2  ;;  %v8753_v37 = vadd.s32 200, %v8409_v2 }
  0x23   : > { %7508 = vmatpush1.bf16.msk.msra.mxu1 %vm7507_vm7, %v11726_v13  ;;  %vm7253_vm10 = vmpackc.low %vm441_vm3, %vm439_vm2  ;;  %vm1519_vm2 = vcmp.eq.s32.totalorder %v8515_v19, %v8430_v10  ;;  %vm1516_vm7 = vcmp.eq.s32.totalorder %v8512_v18, %v8436_v12  ;;  %2332 = vmatprep.mubr.f32.mxu1 %v8700_v33  ;;  %v8776_v38 = vadd.s32 208, %v8409_v2  ;;  %v8779_v39 = vadd.s32 216, %v8409_v2 }
  0x24   : > { %7254 = vmatprep.subr.msk.bf16.mxu0 %vm7253_vm10, %v11726_v13  ;;  %vm7509_vm13 = vmpackc.low %vm1515_vm6, %vm1513_vm5  ;;  %vm444_vm5 = vcmp.eq.s32.totalorder %v8515_v19, %v8433_v11  ;;  %vm447_vm10 = vcmp.eq.s32.totalorder %v8538_v20, %v8427_v9  ;;  %v8802_v40 = vadd.s32 224, %v8409_v2  ;;  %v8805_v41 = vadd.s32 232, %v8409_v2 }
  0x25   : > { %7510 = vmatprep.subr.msk.bf16.mxu1 %vm7509_vm13, %v11726_v13  ;;  %vm7255_vm0 = vmpackc.low %vm440_vm9, %vm438_vm8  ;;  %vm1518_vm8 = vcmp.eq.s32.totalorder %v8515_v19, %v8436_v12  ;;  %vm1521_vm13 = vcmp.eq.s32.totalorder %v8538_v20, %v8430_v10  ;;  %v8828_v42 = vadd.s32 240, %v8409_v2  ;;  %v8831_v43 = vadd.s32 248, %v8409_v2 }
  0x26   : > { %7256 = vmatpush1.bf16.msk.msra.mxu0 %vm7255_vm0, %v11726_v13  ;;  %vm7511_vm3 = vmpackc.low %vm1514_vm12, %vm1512_vm11  ;;  %vm449_vm11 = vcmp.eq.s32.totalorder %v8541_v21, %v8427_v9  ;;  %vm446_vm0 = vcmp.eq.s32.totalorder %v8538_v20, %v8433_v11  ;;  %v8854_v44 = vadd.s32 256, %v8409_v2  ;;  %v8857_v45 = vadd.s32 264, %v8409_v2 }
  0x27   : > { %7512 = vmatpush1.bf16.msk.msra.mxu1 %vm7511_vm3, %v11726_v13  ;;  %vm7257_vm6 = vmpackc.low %vm445_vm15, %vm443_vm14  ;;  %vm1523_vm14 = vcmp.eq.s32.totalorder %v8541_v21, %v8430_v10  ;;  %vm1520_vm3 = vcmp.eq.s32.totalorder %v8538_v20, %v8436_v12  ;;  %v8880_v46 = vadd.s32 272, %v8409_v2  ;;  %v8883_v47 = vadd.s32 280, %v8409_v2 }
  0x28   : > { %7258 = vmatprep.subr.msk.bf16.mxu0 %vm7257_vm6, %v11726_v13  ;;  %vm7513_vm9 = vmpackc.low %vm1519_vm2, %vm1517_vm1  ;;  %vm448_vm1 = vcmp.eq.s32.totalorder %v8541_v21, %v8433_v11  ;;  %vm451_vm6 = vcmp.eq.s32.totalorder %v8564_v22, %v8427_v9  ;;  %v8906_v48 = vadd.s32 288, %v8409_v2  ;;  %v8909_v49 = vadd.s32 296, %v8409_v2 }
  0x29   : > { %7514 = vmatprep.subr.msk.bf16.mxu1 %vm7513_vm9, %v11726_v13  ;;  %vm7259_vm12 = vmpackc.low %vm444_vm5, %vm442_vm4  ;;  %vm1522_vm4 = vcmp.eq.s32.totalorder %v8541_v21, %v8436_v12  ;;  %vm1525_vm9 = vcmp.eq.s32.totalorder %v8564_v22, %v8430_v10  ;;  %v8940_v50 = vadd.s32 304, %v8409_v2  ;;  %v8943_v51 = vadd.s32 312, %v8409_v2 }
  0x2a   : > { %7260 = vmatpush1.bf16.msk.msra.mxu0 %vm7259_vm12, %v11726_v13  ;;  %vm7515_vm15 = vmpackc.low %vm1518_vm8, %vm1516_vm7  ;;  %vm453_vm7 = vcmp.eq.s32.totalorder %v8567_v23, %v8427_v9  ;;  %vm450_vm12 = vcmp.eq.s32.totalorder %v8564_v22, %v8433_v11  ;;  %v8964_v53 = vadd.s32 320, %v8409_v2  ;;  %v8972_v54 = vadd.s32 328, %v8409_v2 }
  0x2b   : > { %7516 = vmatpush1.bf16.msk.msra.mxu1 %vm7515_vm15, %v11726_v13  ;;  %vm7261_vm2 = vmpackc.low %vm449_vm11, %vm447_vm10  ;;  %vm1527_vm10 = vcmp.eq.s32.totalorder %v8567_v23, %v8430_v10  ;;  %vm1524_vm15 = vcmp.eq.s32.totalorder %v8564_v22, %v8436_v12  ;;  %v8976_v55 = vcombine.high %v8951_v52, %v8951_v52  ;;  %v8999_v56 = vadd.s32 336, %v8409_v2 }
  0x2c   : > { %7262 = vmatprep.subr.msk.bf16.mxu0 %vm7261_vm2, %v11726_v13  ;;  %vm7517_vm5 = vmpackc.low %vm1523_vm14, %vm1521_vm13  ;;  %vm452_vm13 = vcmp.eq.s32.totalorder %v8567_v23, %v8433_v11  ;;  %vm455_vm2 = vcmp.eq.s32.totalorder %v8591_v24, %v8427_v9  ;;  %v9002_v57 = vadd.s32 344, %v8409_v2  ;;  %v9033_v58 = vadd.s32 352, %v8409_v2 }
  0x2d   : > { %7518 = vmatprep.subr.msk.bf16.mxu1 %vm7517_vm5, %v11726_v13  ;;  %vm7263_vm8 = vmpackc.low %vm448_vm1, %vm446_vm0  ;;  %vm1526_vm0 = vcmp.eq.s32.totalorder %v8567_v23, %v8436_v12  ;;  %vm1529_vm5 = vcmp.eq.s32.totalorder %v8591_v24, %v8430_v10  ;;  %v9036_v59 = vadd.s32 360, %v8409_v2  ;;  %v9059_v60 = vadd.s32 368, %v8409_v2 }
  0x2e   : > { %7264 = vmatpush1.bf16.msk.msra.mxu0 %vm7263_vm8, %v11726_v13  ;;  %vm7519_vm11 = vmpackc.low %vm1522_vm4, %vm1520_vm3  ;;  %vm457_vm3 = vcmp.eq.s32.totalorder %v8594_v25, %v8427_v9  ;;  %vm454_vm8 = vcmp.eq.s32.totalorder %v8591_v24, %v8433_v11  ;;  %v9062_v61 = vadd.s32 376, %v8409_v2  ;;  %v9085_v62 = vadd.s32 384, %v8409_v2 }
  0x2f   : > { %7520 = vmatpush1.bf16.msk.msra.mxu1 %vm7519_vm11, %v11726_v13  ;;  %vm7265_vm14 = vmpackc.low %vm453_vm7, %vm451_vm6  ;;  %vm1531_vm6 = vcmp.eq.s32.totalorder %v8594_v25, %v8430_v10  ;;  %vm1528_vm11 = vcmp.eq.s32.totalorder %v8591_v24, %v8436_v12  ;;  %11816 = vst [vmem:[#allocation4_spill] sm:$0xff] %v9059_v60  ;;  %v9088_v63 = vadd.s32 392, %v8409_v2  ;;  %v9111_v0 = vadd.s32 400, %v8409_v2 }
  0x30   : > { %7266 = vmatprep.subr.msk.bf16.mxu0 %vm7265_vm14, %v11726_v13  ;;  %vm7521_vm1 = vmpackc.low %vm1527_vm10, %vm1525_vm9  ;;  %vm456_vm9 = vcmp.eq.s32.totalorder %v8594_v25, %v8433_v11  ;;  %vm459_vm14 = vcmp.eq.s32.totalorder %v8622_v26, %v8427_v9  ;;  %11817 = vst [vmem:[#allocation5_spill] sm:$0xff] %v9062_v61  ;;  %v9114_v1 = vadd.s32 408, %v8409_v2  ;;  %v9137_v3 = vadd.s32 416, %v8409_v2 }
  0x31   : > { %7522 = vmatprep.subr.msk.bf16.mxu1 %vm7521_vm1, %v11726_v13  ;;  %vm7267_vm4 = vmpackc.low %vm452_vm13, %vm450_vm12  ;;  %vm1530_vm12 = vcmp.eq.s32.totalorder %v8594_v25, %v8436_v12  ;;  %vm1533_vm1 = vcmp.eq.s32.totalorder %v8622_v26, %v8430_v10  ;;  %11818 = vst [vmem:[#allocation6_spill] sm:$0xff] %v9085_v62 }
  0x32   : > { %7268 = vmatpush1.bf16.msk.msra.mxu0 %vm7267_vm4, %v11726_v13  ;;  %vm7523_vm7 = vmpackc.low %vm1526_vm0, %vm1524_vm15  ;;  %vm461_vm15 = vcmp.eq.s32.totalorder %v8625_v27, %v8427_v9  ;;  %vm458_vm4 = vcmp.eq.s32.totalorder %v8622_v26, %v8433_v11  ;;  %11819 = vst [vmem:[#allocation7_spill] sm:$0xff] %v9088_v63 }
  0x33   : > { %7524 = vmatpush1.bf16.msk.msra.mxu1 %vm7523_vm7, %v11726_v13  ;;  %vm7269_vm10 = vmpackc.low %vm457_vm3, %vm455_vm2  ;;  %vm1535_vm2 = vcmp.eq.s32.totalorder %v8625_v27, %v8430_v10  ;;  %vm1532_vm7 = vcmp.eq.s32.totalorder %v8622_v26, %v8436_v12  ;;  %11820 = vst [vmem:[#allocation8_spill] sm:$0xff] %v9111_v0 }
  0x34   : > { %7270 = vmatprep.subr.msk.bf16.mxu0 %vm7269_vm10, %v11726_v13  ;;  %vm7525_vm13 = vmpackc.low %vm1531_vm6, %vm1529_vm5  ;;  %vm460_vm5 = vcmp.eq.s32.totalorder %v8625_v27, %v8433_v11  ;;  %vm463_vm10 = vcmp.eq.s32.totalorder %v8649_v28, %v8427_v9  ;;  %11821 = vst [vmem:[#allocation9_spill] sm:$0xff] %v9114_v1 }
  0x35   : > { %7526 = vmatprep.subr.msk.bf16.mxu1 %vm7525_vm13, %v11726_v13  ;;  %vm7271_vm0 = vmpackc.low %vm456_vm9, %vm454_vm8  ;;  %vm1534_vm8 = vcmp.eq.s32.totalorder %v8625_v27, %v8436_v12  ;;  %vm1537_vm13 = vcmp.eq.s32.totalorder %v8649_v28, %v8430_v10  ;;  %11822 = vst [vmem:[#allocation10_spill] sm:$0xff] %v9137_v3 }
  0x36   : > { %7272 = vmatpush1.bf16.msk.msra.mxu0 %vm7271_vm0, %v11726_v13  ;;  %vm7527_vm3 = vmpackc.low %vm1530_vm12, %vm1528_vm11  ;;  %vm465_vm11 = vcmp.eq.s32.totalorder %v8652_v29, %v8427_v9  ;;  %vm462_vm0 = vcmp.eq.s32.totalorder %v8649_v28, %v8433_v11 }
  0x37   : > { %7528 = vmatpush1.bf16.msk.msra.mxu1 %vm7527_vm3, %v11726_v13  ;;  %vm7273_vm6 = vmpackc.low %vm461_vm15, %vm459_vm14  ;;  %vm1539_vm14 = vcmp.eq.s32.totalorder %v8652_v29, %v8430_v10  ;;  %vm1536_vm3 = vcmp.eq.s32.totalorder %v8649_v28, %v8436_v12 }
  0x38   : > { %7274 = vmatprep.subr.msk.bf16.mxu0 %vm7273_vm6, %v11726_v13  ;;  %vm7529_vm9 = vmpackc.low %vm1535_vm2, %vm1533_vm1  ;;  %vm464_vm1 = vcmp.eq.s32.totalorder %v8652_v29, %v8433_v11  ;;  %vm467_vm6 = vcmp.eq.s32.totalorder %v8683_v31, %v8427_v9 }
  0x39   : > { %7530 = vmatprep.subr.msk.bf16.mxu1 %vm7529_vm9, %v11726_v13  ;;  %vm7275_vm12 = vmpackc.low %vm460_vm5, %vm458_vm4  ;;  %vm1538_vm4 = vcmp.eq.s32.totalorder %v8652_v29, %v8436_v12  ;;  %vm1541_vm9 = vcmp.eq.s32.totalorder %v8683_v31, %v8430_v10 }
  0x3a   : > { %7276 = vmatpush1.bf16.msk.msra.mxu0 %vm7275_vm12, %v11726_v13  ;;  %vm7531_vm15 = vmpackc.low %vm1534_vm8, %vm1532_vm7  ;;  %vm469_vm7 = vcmp.eq.s32.totalorder %v8686_v32, %v8427_v9  ;;  %vm466_vm12 = vcmp.eq.s32.totalorder %v8683_v31, %v8433_v11 }
  0x3b   : > { %7532 = vmatpush1.bf16.msk.msra.mxu1 %vm7531_vm15, %v11726_v13  ;;  %vm7277_vm2 = vmpackc.low %vm465_vm11, %vm463_vm10  ;;  %vm1543_vm10 = vcmp.eq.s32.totalorder %v8686_v32, %v8430_v10  ;;  %vm1540_vm15 = vcmp.eq.s32.totalorder %v8683_v31, %v8436_v12 }
  0x3c   : > { %7278 = vmatprep.subr.msk.bf16.mxu0 %vm7277_vm2, %v11726_v13  ;;  %vm7533_vm5 = vmpackc.low %vm1539_vm14, %vm1537_vm13  ;;  %vm468_vm13 = vcmp.eq.s32.totalorder %v8686_v32, %v8433_v11  ;;  %vm471_vm2 = vcmp.eq.s32.totalorder %v8713_v34, %v8427_v9 }
  0x3d   : > { %7534 = vmatprep.subr.msk.bf16.mxu1 %vm7533_vm5, %v11726_v13  ;;  %vm7279_vm8 = vmpackc.low %vm464_vm1, %vm462_vm0  ;;  %vm1542_vm0 = vcmp.eq.s32.totalorder %v8686_v32, %v8436_v12  ;;  %vm1545_vm5 = vcmp.eq.s32.totalorder %v8713_v34, %v8430_v10 }
  0x3e   : > { %7280 = vmatpush1.bf16.msk.msra.mxu0 %vm7279_vm8, %v11726_v13  ;;  %vm7535_vm11 = vmpackc.low %vm1538_vm4, %vm1536_vm3  ;;  %vm473_vm3 = vcmp.eq.s32.totalorder %v8716_v35, %v8427_v9  ;;  %vm470_vm8 = vcmp.eq.s32.totalorder %v8713_v34, %v8433_v11 }
  0x3f   : > { %7536 = vmatpush1.bf16.msk.msra.mxu1 %vm7535_vm11, %v11726_v13  ;;  %vm7281_vm14 = vmpackc.low %vm469_vm7, %vm467_vm6  ;;  %vm1547_vm6 = vcmp.eq.s32.totalorder %v8716_v35, %v8430_v10  ;;  %vm1544_vm11 = vcmp.eq.s32.totalorder %v8713_v34, %v8436_v12 }
  0x40   : > { %7282 = vmatprep.subr.msk.bf16.mxu0 %vm7281_vm14, %v11726_v13  ;;  %vm7537_vm1 = vmpackc.low %vm1543_vm10, %vm1541_vm9  ;;  %vm472_vm9 = vcmp.eq.s32.totalorder %v8716_v35, %v8433_v11  ;;  %vm475_vm14 = vcmp.eq.s32.totalorder %v8750_v36, %v8427_v9 }
  0x41   : > { %7538 = vmatprep.subr.msk.bf16.mxu1 %vm7537_vm1, %v11726_v13  ;;  %vm7283_vm4 = vmpackc.low %vm468_vm13, %vm466_vm12  ;;  %vm1546_vm12 = vcmp.eq.s32.totalorder %v8716_v35, %v8436_v12  ;;  %vm1549_vm1 = vcmp.eq.s32.totalorder %v8750_v36, %v8430_v10 }
  0x42   : > { %7284 = vmatpush1.bf16.msk.msra.mxu0 %vm7283_vm4, %v11726_v13  ;;  %vm7539_vm7 = vmpackc.low %vm1542_vm0, %vm1540_vm15  ;;  %vm477_vm15 = vcmp.eq.s32.totalorder %v8753_v37, %v8427_v9  ;;  %vm474_vm4 = vcmp.eq.s32.totalorder %v8750_v36, %v8433_v11 }
  0x43   : > { %7540 = vmatpush1.bf16.msk.msra.mxu1 %vm7539_vm7, %v11726_v13  ;;  %vm7285_vm10 = vmpackc.low %vm473_vm3, %vm471_vm2  ;;  %vm1551_vm2 = vcmp.eq.s32.totalorder %v8753_v37, %v8430_v10  ;;  %vm1548_vm7 = vcmp.eq.s32.totalorder %v8750_v36, %v8436_v12 }
  0x44   : > { %7286 = vmatprep.subr.msk.bf16.mxu0 %vm7285_vm10, %v11726_v13  ;;  %vm7541_vm13 = vmpackc.low %vm1547_vm6, %vm1545_vm5  ;;  %vm476_vm5 = vcmp.eq.s32.totalorder %v8753_v37, %v8433_v11  ;;  %vm479_vm10 = vcmp.eq.s32.totalorder %v8776_v38, %v8427_v9 }
  0x45   : > { %7542 = vmatprep.subr.msk.bf16.mxu1 %vm7541_vm13, %v11726_v13  ;;  %vm7287_vm0 = vmpackc.low %vm472_vm9, %vm470_vm8  ;;  %vm1550_vm8 = vcmp.eq.s32.totalorder %v8753_v37, %v8436_v12  ;;  %vm1553_vm13 = vcmp.eq.s32.totalorder %v8776_v38, %v8430_v10 }
  0x46   : > { %7288 = vmatpush1.bf16.msk.msra.mxu0 %vm7287_vm0, %v11726_v13  ;;  %vm7543_vm3 = vmpackc.low %vm1546_vm12, %vm1544_vm11  ;;  %vm481_vm11 = vcmp.eq.s32.totalorder %v8779_v39, %v8427_v9  ;;  %vm478_vm0 = vcmp.eq.s32.totalorder %v8776_v38, %v8433_v11 }
  0x47   : > { %7544 = vmatpush1.bf16.msk.msra.mxu1 %vm7543_vm3, %v11726_v13  ;;  %vm7289_vm6 = vmpackc.low %vm477_vm15, %vm475_vm14  ;;  %vm1555_vm14 = vcmp.eq.s32.totalorder %v8779_v39, %v8430_v10  ;;  %vm1552_vm3 = vcmp.eq.s32.totalorder %v8776_v38, %v8436_v12 }
  0x48   : > { %7290 = vmatprep.subr.msk.bf16.mxu0 %vm7289_vm6, %v11726_v13  ;;  %vm7545_vm9 = vmpackc.low %vm1551_vm2, %vm1549_vm1  ;;  %vm480_vm1 = vcmp.eq.s32.totalorder %v8779_v39, %v8433_v11  ;;  %vm483_vm6 = vcmp.eq.s32.totalorder %v8802_v40, %v8427_v9 }
  0x49   : > { %7546 = vmatprep.subr.msk.bf16.mxu1 %vm7545_vm9, %v11726_v13  ;;  %vm7291_vm12 = vmpackc.low %vm476_vm5, %vm474_vm4  ;;  %vm1554_vm4 = vcmp.eq.s32.totalorder %v8779_v39, %v8436_v12  ;;  %vm1557_vm9 = vcmp.eq.s32.totalorder %v8802_v40, %v8430_v10 }
  0x4a   : > { %7292 = vmatpush1.bf16.msk.msra.mxu0 %vm7291_vm12, %v11726_v13  ;;  %vm7547_vm15 = vmpackc.low %vm1550_vm8, %vm1548_vm7  ;;  %vm485_vm7 = vcmp.eq.s32.totalorder %v8805_v41, %v8427_v9  ;;  %vm482_vm12 = vcmp.eq.s32.totalorder %v8802_v40, %v8433_v11 }
  0x4b   : > { %7548 = vmatpush1.bf16.msk.msra.mxu1 %vm7547_vm15, %v11726_v13  ;;  %vm7293_vm2 = vmpackc.low %vm481_vm11, %vm479_vm10  ;;  %vm1559_vm10 = vcmp.eq.s32.totalorder %v8805_v41, %v8430_v10  ;;  %vm1556_vm15 = vcmp.eq.s32.totalorder %v8802_v40, %v8436_v12 }
  0x4c   : > { %7294 = vmatprep.subr.msk.bf16.mxu0 %vm7293_vm2, %v11726_v13  ;;  %vm7549_vm5 = vmpackc.low %vm1555_vm14, %vm1553_vm13  ;;  %vm484_vm13 = vcmp.eq.s32.totalorder %v8805_v41, %v8433_v11  ;;  %vm487_vm2 = vcmp.eq.s32.totalorder %v8828_v42, %v8427_v9 }
  0x4d   : > { %7550 = vmatprep.subr.msk.bf16.mxu1 %vm7549_vm5, %v11726_v13  ;;  %vm7295_vm8 = vmpackc.low %vm480_vm1, %vm478_vm0  ;;  %vm1558_vm0 = vcmp.eq.s32.totalorder %v8805_v41, %v8436_v12  ;;  %vm1561_vm5 = vcmp.eq.s32.totalorder %v8828_v42, %v8430_v10 }
  0x4e   : > { %7296 = vmatpush1.bf16.msk.msra.mxu0 %vm7295_vm8, %v11726_v13  ;;  %vm7551_vm11 = vmpackc.low %vm1554_vm4, %vm1552_vm3  ;;  %vm489_vm3 = vcmp.eq.s32.totalorder %v8831_v43, %v8427_v9  ;;  %vm486_vm8 = vcmp.eq.s32.totalorder %v8828_v42, %v8433_v11 }
  0x4f   : > { %7552 = vmatpush1.bf16.msk.msra.mxu1 %vm7551_vm11, %v11726_v13  ;;  %vm7297_vm14 = vmpackc.low %vm485_vm7, %vm483_vm6  ;;  %vm1563_vm6 = vcmp.eq.s32.totalorder %v8831_v43, %v8430_v10  ;;  %vm1560_vm11 = vcmp.eq.s32.totalorder %v8828_v42, %v8436_v12 }
  0x50   : > { %7298 = vmatprep.subr.msk.bf16.mxu0 %vm7297_vm14, %v11726_v13  ;;  %vm7553_vm1 = vmpackc.low %vm1559_vm10, %vm1557_vm9  ;;  %vm488_vm9 = vcmp.eq.s32.totalorder %v8831_v43, %v8433_v11  ;;  %vm491_vm14 = vcmp.eq.s32.totalorder %v8854_v44, %v8427_v9 }
  0x51   : > { %7554 = vmatprep.subr.msk.bf16.mxu1 %vm7553_vm1, %v11726_v13  ;;  %vm7299_vm4 = vmpackc.low %vm484_vm13, %vm482_vm12  ;;  %vm1562_vm12 = vcmp.eq.s32.totalorder %v8831_v43, %v8436_v12  ;;  %vm1565_vm1 = vcmp.eq.s32.totalorder %v8854_v44, %v8430_v10 }
  0x52   : > { %7300 = vmatpush1.bf16.msk.msra.mxu0 %vm7299_vm4, %v11726_v13  ;;  %vm7555_vm7 = vmpackc.low %vm1558_vm0, %vm1556_vm15  ;;  %vm493_vm15 = vcmp.eq.s32.totalorder %v8857_v45, %v8427_v9  ;;  %vm490_vm4 = vcmp.eq.s32.totalorder %v8854_v44, %v8433_v11 }
  0x53   : > { %7556 = vmatpush1.bf16.msk.msra.mxu1 %vm7555_vm7, %v11726_v13  ;;  %vm7301_vm10 = vmpackc.low %vm489_vm3, %vm487_vm2  ;;  %vm1567_vm2 = vcmp.eq.s32.totalorder %v8857_v45, %v8430_v10  ;;  %vm1564_vm7 = vcmp.eq.s32.totalorder %v8854_v44, %v8436_v12 }
  0x54   : > { %7302 = vmatprep.subr.msk.bf16.mxu0 %vm7301_vm10, %v11726_v13  ;;  %vm7557_vm13 = vmpackc.low %vm1563_vm6, %vm1561_vm5  ;;  %vm492_vm5 = vcmp.eq.s32.totalorder %v8857_v45, %v8433_v11  ;;  %vm495_vm10 = vcmp.eq.s32.totalorder %v8880_v46, %v8427_v9 }
  0x55   : > { %7558 = vmatprep.subr.msk.bf16.mxu1 %vm7557_vm13, %v11726_v13  ;;  %vm7303_vm0 = vmpackc.low %vm488_vm9, %vm486_vm8  ;;  %vm1566_vm8 = vcmp.eq.s32.totalorder %v8857_v45, %v8436_v12  ;;  %vm1569_vm13 = vcmp.eq.s32.totalorder %v8880_v46, %v8430_v10 }
  0x56   : > { %7304 = vmatpush1.bf16.msk.msra.mxu0 %vm7303_vm0, %v11726_v13  ;;  %vm7559_vm3 = vmpackc.low %vm1562_vm12, %vm1560_vm11  ;;  %vm497_vm11 = vcmp.eq.s32.totalorder %v8883_v47, %v8427_v9  ;;  %vm494_vm0 = vcmp.eq.s32.totalorder %v8880_v46, %v8433_v11 }
  0x57   : > { %7560 = vmatpush1.bf16.msk.msra.mxu1 %vm7559_vm3, %v11726_v13  ;;  %vm7305_vm6 = vmpackc.low %vm493_vm15, %vm491_vm14  ;;  %vm1571_vm14 = vcmp.eq.s32.totalorder %v8883_v47, %v8430_v10  ;;  %vm1568_vm3 = vcmp.eq.s32.totalorder %v8880_v46, %v8436_v12 }
  0x58   : > { %7306 = vmatprep.subr.msk.bf16.mxu0 %vm7305_vm6, %v11726_v13  ;;  %vm7561_vm9 = vmpackc.low %vm1567_vm2, %vm1565_vm1  ;;  %vm496_vm1 = vcmp.eq.s32.totalorder %v8883_v47, %v8433_v11  ;;  %vm499_vm6 = vcmp.eq.s32.totalorder %v8906_v48, %v8427_v9 }
  0x59   : > { %7562 = vmatprep.subr.msk.bf16.mxu1 %vm7561_vm9, %v11726_v13  ;;  %1271 = vmatmul.mubr.f32.vlgmr.msra.gmra.mrb[0].mxu0 %v8675_v30  ;;  %vm7307_vm12 = vmpackc.low %vm492_vm5, %vm490_vm4  ;;  %vm1570_vm4 = vcmp.eq.s32.totalorder %v8883_v47, %v8436_v12  ;;  %vm1573_vm9 = vcmp.eq.s32.totalorder %v8906_v48, %v8430_v10 }
  0x5a   : > { %7308 = vmatpush1.bf16.msk.msra.mxu0 %vm7307_vm12, %v11726_v13  ;;  %2333 = vmatmul.mubr.f32.vlgmr.msra.gmra.mrb[0].mxu1 %v8675_v30  ;;  %vm7563_vm15 = vmpackc.low %vm1566_vm8, %vm1564_vm7  ;;  %vm501_vm7 = vcmp.eq.s32.totalorder %v8909_v49, %v8427_v9  ;;  %vm498_vm12 = vcmp.eq.s32.totalorder %v8906_v48, %v8433_v11  ;;  %v9140_v30 = vadd.s32 424, %v8409_v2 }
  0x5b   : > { %7564 = vmatpush1.bf16.msk.msra.mxu1 %vm7563_vm15, %v11726_v13  ;;  %vm7309_vm2 = vmpackc.low %vm497_vm11, %vm495_vm10  ;;  %vm1575_vm10 = vcmp.eq.s32.totalorder %v8909_v49, %v8430_v10  ;;  %vm1572_vm15 = vcmp.eq.s32.totalorder %v8906_v48, %v8436_v12  ;;  %1341 = vmatprep.mubr.f32.mxu0 %v8976_v55 }
  0x5c   : > { %7310 = vmatprep.subr.msk.bf16.mxu0 %vm7309_vm2, %v11726_v13  ;;  %vm7565_vm5 = vmpackc.low %vm1571_vm14, %vm1569_vm13  ;;  %vm500_vm13 = vcmp.eq.s32.totalorder %v8909_v49, %v8433_v11  ;;  %vm503_vm2 = vcmp.eq.s32.totalorder %v8940_v50, %v8427_v9  ;;  %2403 = vmatprep.mubr.f32.mxu1 %v8976_v55  ;;  %11823 = vst [vmem:[#allocation11_spill] sm:$0xff] %v9140_v30 }
  0x5d   : > { %7566 = vmatprep.subr.msk.bf16.mxu1 %vm7565_vm5, %v11726_v13  ;;  %vm7311_vm8 = vmpackc.low %vm496_vm1, %vm494_vm0  ;;  %vm1574_vm0 = vcmp.eq.s32.totalorder %v8909_v49, %v8436_v12  ;;  %vm1577_vm5 = vcmp.eq.s32.totalorder %v8940_v50, %v8430_v10 }
  0x5e   : > { %7312 = vmatpush1.bf16.msk.msra.mxu0 %vm7311_vm8, %v11726_v13  ;;  %vm7567_vm11 = vmpackc.low %vm1570_vm4, %vm1568_vm3  ;;  %vm505_vm3 = vcmp.eq.s32.totalorder %v8943_v51, %v8427_v9  ;;  %vm502_vm8 = vcmp.eq.s32.totalorder %v8940_v50, %v8433_v11 }
  0x5f   : > { %7568 = vmatpush1.bf16.msk.msra.mxu1 %vm7567_vm11, %v11726_v13  ;;  %vm7313_vm14 = vmpackc.low %vm501_vm7, %vm499_vm6  ;;  %vm1579_vm6 = vcmp.eq.s32.totalorder %v8943_v51, %v8430_v10  ;;  %vm1576_vm11 = vcmp.eq.s32.totalorder %v8940_v50, %v8436_v12 }
  0x60   : > { %7314 = vmatprep.subr.msk.bf16.mxu0 %vm7313_vm14, %v11726_v13  ;;  %vm7569_vm1 = vmpackc.low %vm1575_vm10, %vm1573_vm9  ;;  %vm504_vm9 = vcmp.eq.s32.totalorder %v8943_v51, %v8433_v11  ;;  %vm507_vm14 = vcmp.eq.s32.totalorder %v8964_v53, %v8427_v9 }
  0x61   : > { %7570 = vmatprep.subr.msk.bf16.mxu1 %vm7569_vm1, %v11726_v13  ;;  %vm7315_vm4 = vmpackc.low %vm500_vm13, %vm498_vm12  ;;  %vm1578_vm12 = vcmp.eq.s32.totalorder %v8943_v51, %v8436_v12  ;;  %vm1581_vm1 = vcmp.eq.s32.totalorder %v8964_v53, %v8430_v10 }
  0x62   : > { %7316 = vmatpush1.bf16.msk.msra.mxu0 %vm7315_vm4, %v11726_v13  ;;  %vm7571_vm7 = vmpackc.low %vm1574_vm0, %vm1572_vm15  ;;  %vm509_vm15 = vcmp.eq.s32.totalorder %v8972_v54, %v8427_v9  ;;  %vm506_vm4 = vcmp.eq.s32.totalorder %v8964_v53, %v8433_v11 }
  0x63   : > { %7572 = vmatpush1.bf16.msk.msra.mxu1 %vm7571_vm7, %v11726_v13  ;;  %vm7317_vm10 = vmpackc.low %vm505_vm3, %vm503_vm2  ;;  %vm1583_vm2 = vcmp.eq.s32.totalorder %v8972_v54, %v8430_v10  ;;  %vm1580_vm7 = vcmp.eq.s32.totalorder %v8964_v53, %v8436_v12 }
  0x64   : > { %7318 = vmatprep.subr.msk.bf16.mxu0 %vm7317_vm10, %v11726_v13  ;;  %vm7573_vm13 = vmpackc.low %vm1579_vm6, %vm1577_vm5  ;;  %vm508_vm5 = vcmp.eq.s32.totalorder %v8972_v54, %v8433_v11  ;;  %vm511_vm10 = vcmp.eq.s32.totalorder %v8999_v56, %v8427_v9 }
  0x65   : > { %7574 = vmatprep.subr.msk.bf16.mxu1 %vm7573_vm13, %v11726_v13  ;;  %vm7319_vm0 = vmpackc.low %vm504_vm9, %vm502_vm8  ;;  %vm1582_vm8 = vcmp.eq.s32.totalorder %v8972_v54, %v8436_v12  ;;  %vm1585_vm13 = vcmp.eq.s32.totalorder %v8999_v56, %v8430_v10 }
  0x66   : > { %7320 = vmatpush1.bf16.msk.msra.mxu0 %vm7319_vm0, %v11726_v13  ;;  %vm7575_vm3 = vmpackc.low %vm1578_vm12, %vm1576_vm11  ;;  %vm513_vm11 = vcmp.eq.s32.totalorder %v9002_v57, %v8427_v9  ;;  %vm510_vm0 = vcmp.eq.s32.totalorder %v8999_v56, %v8433_v11 }
  0x67   : > { %7576 = vmatpush1.bf16.msk.msra.mxu1 %vm7575_vm3, %v11726_v13  ;;  %vm7321_vm6 = vmpackc.low %vm509_vm15, %vm507_vm14  ;;  %vm1587_vm14 = vcmp.eq.s32.totalorder %v9002_v57, %v8430_v10  ;;  %vm1584_vm3 = vcmp.eq.s32.totalorder %v8999_v56, %v8436_v12 }
  0x68   : > { %7322 = vmatprep.subr.msk.bf16.mxu0 %vm7321_vm6, %v11726_v13  ;;  %vm7577_vm9 = vmpackc.low %vm1583_vm2, %vm1581_vm1  ;;  %vm512_vm1 = vcmp.eq.s32.totalorder %v9002_v57, %v8433_v11  ;;  %vm515_vm6 = vcmp.eq.s32.totalorder %v9033_v58, %v8427_v9 }
  0x69   : > { %7578 = vmatprep.subr.msk.bf16.mxu1 %vm7577_vm9, %v11726_v13  ;;  %vm7323_vm12 = vmpackc.low %vm508_vm5, %vm506_vm4  ;;  %vm1586_vm4 = vcmp.eq.s32.totalorder %v9002_v57, %v8436_v12  ;;  %vm1589_vm9 = vcmp.eq.s32.totalorder %v9033_v58, %v8430_v10 }
  0x6a   : > { %7324 = vmatpush1.bf16.msk.msra.mxu0 %vm7323_vm12, %v11726_v13  ;;  %vm7579_vm15 = vmpackc.low %vm1582_vm8, %vm1580_vm7  ;;  %vm517_vm7 = vcmp.eq.s32.totalorder %v9036_v59, %v8427_v9  ;;  %vm514_vm12 = vcmp.eq.s32.totalorder %v9033_v58, %v8433_v11 }
  0x6b   : > { %7580 = vmatpush1.bf16.msk.msra.mxu1 %vm7579_vm15, %v11726_v13  ;;  %vm7325_vm2 = vmpackc.low %vm513_vm11, %vm511_vm10  ;;  %vm1591_vm10 = vcmp.eq.s32.totalorder %v9036_v59, %v8430_v10  ;;  %vm1588_vm15 = vcmp.eq.s32.totalorder %v9033_v58, %v8436_v12 }
  0x6c   : > { %7326 = vmatprep.subr.msk.bf16.mxu0 %vm7325_vm2, %v11726_v13  ;;  %vm7581_vm5 = vmpackc.low %vm1587_vm14, %vm1585_vm13  ;;  %vm516_vm13 = vcmp.eq.s32.totalorder %v9036_v59, %v8433_v11  ;;  %vm519_vm2 = vcmp.eq.s32.totalorder %v9059_v60, %v8427_v9 }
  0x6d   : > { %7582 = vmatprep.subr.msk.bf16.mxu1 %vm7581_vm5, %v11726_v13  ;;  %vm7327_vm8 = vmpackc.low %vm512_vm1, %vm510_vm0  ;;  %vm1590_vm0 = vcmp.eq.s32.totalorder %v9036_v59, %v8436_v12  ;;  %vm1593_vm5 = vcmp.eq.s32.totalorder %v9059_v60, %v8430_v10 }
  0x6e   : > { %7328 = vmatpush1.bf16.msk.msra.mxu0 %vm7327_vm8, %v11726_v13  ;;  %vm7583_vm11 = vmpackc.low %vm1586_vm4, %vm1584_vm3  ;;  %vm521_vm3 = vcmp.eq.s32.totalorder %v9062_v61, %v8427_v9  ;;  %vm518_vm8 = vcmp.eq.s32.totalorder %v9059_v60, %v8433_v11 }
  0x6f   : > { %7584 = vmatpush1.bf16.msk.msra.mxu1 %vm7583_vm11, %v11726_v13  ;;  %vm7329_vm14 = vmpackc.low %vm517_vm7, %vm515_vm6  ;;  %vm1595_vm6 = vcmp.eq.s32.totalorder %v9062_v61, %v8430_v10  ;;  %vm1592_vm11 = vcmp.eq.s32.totalorder %v9059_v60, %v8436_v12  ;;  %v9355_v60 = vadd.s32 552, %v8409_v2 }
  0x70   : > { %7330 = vmatprep.subr.msk.bf16.mxu0 %vm7329_vm14, %v11726_v13  ;;  %vm7585_vm1 = vmpackc.low %vm1591_vm10, %vm1589_vm9  ;;  %vm520_vm9 = vcmp.eq.s32.totalorder %v9062_v61, %v8433_v11  ;;  %vm523_vm14 = vcmp.eq.s32.totalorder %v9085_v62, %v8427_v9 }
  0x71   : > { %7586 = vmatprep.subr.msk.bf16.mxu1 %vm7585_vm1, %v11726_v13  ;;  %vm7331_vm4 = vmpackc.low %vm516_vm13, %vm514_vm12  ;;  %vm1594_vm12 = vcmp.eq.s32.totalorder %v9062_v61, %v8436_v12  ;;  %vm1597_vm1 = vcmp.eq.s32.totalorder %v9085_v62, %v8430_v10  ;;  %v9325_v61 = vld [vmem:[%s8657_s24 + $0x10] sm:$0xff]  ;;  %11840 = vst [vmem:[#allocation28_spill] sm:$0xff] %v9355_v60 }
  0x72   : > { %7332 = vmatpush1.bf16.msk.msra.mxu0 %vm7331_vm4, %v11726_v13  ;;  %vm7587_vm7 = vmpackc.low %vm1590_vm0, %vm1588_vm15  ;;  %vm525_vm15 = vcmp.eq.s32.totalorder %v9088_v63, %v8427_v9  ;;  %vm522_vm4 = vcmp.eq.s32.totalorder %v9085_v62, %v8433_v11 }
  0x73   : > { %7588 = vmatpush1.bf16.msk.msra.mxu1 %vm7587_vm7, %v11726_v13  ;;  %vm7333_vm10 = vmpackc.low %vm521_vm3, %vm519_vm2  ;;  %vm1599_vm2 = vcmp.eq.s32.totalorder %v9088_v63, %v8430_v10  ;;  %vm1596_vm7 = vcmp.eq.s32.totalorder %v9085_v62, %v8436_v12  ;;  %v9166_v62 = vadd.s32 440, %v8409_v2 }
  0x74   : > { %7334 = vmatprep.subr.msk.bf16.mxu0 %vm7333_vm10, %v11726_v13  ;;  %vm7589_vm13 = vmpackc.low %vm1595_vm6, %vm1593_vm5  ;;  %vm524_vm5 = vcmp.eq.s32.totalorder %v9088_v63, %v8433_v11  ;;  %vm527_vm10 = vcmp.eq.s32.totalorder %v9111_v0, %v8427_v9 }
  0x75   : > { %7590 = vmatprep.subr.msk.bf16.mxu1 %vm7589_vm13, %v11726_v13  ;;  %vm7335_vm0 = vmpackc.low %vm520_vm9, %vm518_vm8  ;;  %vm1598_vm8 = vcmp.eq.s32.totalorder %v9088_v63, %v8436_v12  ;;  %vm1601_vm13 = vcmp.eq.s32.totalorder %v9111_v0, %v8430_v10  ;;  %v9163_v63 = vadd.s32 432, %v8409_v2  ;;  %11825 = vst [vmem:[#allocation13_spill] sm:$0xff] %v9166_v62 }
  0x76   : > { %7336 = vmatpush1.bf16.msk.msra.mxu0 %vm7335_vm0, %v11726_v13  ;;  %vm7591_vm3 = vmpackc.low %vm1594_vm12, %vm1592_vm11  ;;  %vm529_vm11 = vcmp.eq.s32.totalorder %v9114_v1, %v8427_v9  ;;  %vm526_vm0 = vcmp.eq.s32.totalorder %v9111_v0, %v8433_v11 }
  0x77   : > { %7592 = vmatpush1.bf16.msk.msra.mxu1 %vm7591_vm3, %v11726_v13  ;;  %vm7337_vm6 = vmpackc.low %vm525_vm15, %vm523_vm14  ;;  %vm1603_vm14 = vcmp.eq.s32.totalorder %v9114_v1, %v8430_v10  ;;  %vm1600_vm3 = vcmp.eq.s32.totalorder %v9111_v0, %v8436_v12  ;;  %11824 = vst [vmem:[#allocation12_spill] sm:$0xff] %v9163_v63  ;;  %v9192_v0 = vadd.s32 456, %v8409_v2 }
  0x78   : > { %7338 = vmatprep.subr.msk.bf16.mxu0 %vm7337_vm6, %v11726_v13  ;;  %vm7593_vm9 = vmpackc.low %vm1599_vm2, %vm1597_vm1  ;;  %vm528_vm1 = vcmp.eq.s32.totalorder %v9114_v1, %v8433_v11  ;;  %vm531_vm6 = vcmp.eq.s32.totalorder %v9137_v3, %v8427_v9 }
  0x79   : > { %7594 = vmatprep.subr.msk.bf16.mxu1 %vm7593_vm9, %v11726_v13  ;;  %vm7339_vm12 = vmpackc.low %vm524_vm5, %vm522_vm4  ;;  %vm1602_vm4 = vcmp.eq.s32.totalorder %v9114_v1, %v8436_v12  ;;  %vm1605_vm9 = vcmp.eq.s32.totalorder %v9137_v3, %v8430_v10  ;;  %v9189_v1 = vadd.s32 448, %v8409_v2  ;;  %11827 = vst [vmem:[#allocation15_spill] sm:$0xff] %v9192_v0 }
  0x7a   : > { %7340 = vmatpush1.bf16.msk.msra.mxu0 %vm7339_vm12, %v11726_v13  ;;  %vm7595_vm15 = vmpackc.low %vm1598_vm8, %vm1596_vm7  ;;  %vm533_vm7 = vcmp.eq.s32.totalorder %v9140_v30, %v8427_v9  ;;  %vm530_vm12 = vcmp.eq.s32.totalorder %v9137_v3, %v8433_v11 }
  0x7b   : > { %7596 = vmatpush1.bf16.msk.msra.mxu1 %vm7595_vm15, %v11726_v13  ;;  %vm7341_vm2 = vmpackc.low %vm529_vm11, %vm527_vm10  ;;  %vm1607_vm10 = vcmp.eq.s32.totalorder %v9140_v30, %v8430_v10  ;;  %vm1604_vm15 = vcmp.eq.s32.totalorder %v9137_v3, %v8436_v12  ;;  %11826 = vst [vmem:[#allocation14_spill] sm:$0xff] %v9189_v1  ;;  %v9218_v3 = vadd.s32 472, %v8409_v2 }
  0x7c   : > { %7342 = vmatprep.subr.msk.bf16.mxu0 %vm7341_vm2, %v11726_v13  ;;  %vm7597_vm5 = vmpackc.low %vm1603_vm14, %vm1601_vm13  ;;  %vm532_vm13 = vcmp.eq.s32.totalorder %v9140_v30, %v8433_v11  ;;  %vm535_vm2 = vcmp.eq.s32.totalorder %v9163_v63, %v8427_v9 }
  0x7d   : > { %7598 = vmatprep.subr.msk.bf16.mxu1 %vm7597_vm5, %v11726_v13  ;;  %vm7343_vm8 = vmpackc.low %vm528_vm1, %vm526_vm0  ;;  %vm1606_vm0 = vcmp.eq.s32.totalorder %v9140_v30, %v8436_v12  ;;  %vm1609_vm5 = vcmp.eq.s32.totalorder %v9163_v63, %v8430_v10  ;;  %v9215_v30 = vadd.s32 464, %v8409_v2  ;;  %11829 = vst [vmem:[#allocation17_spill] sm:$0xff] %v9218_v3 }
  0x7e   : > { %7344 = vmatpush1.bf16.msk.msra.mxu0 %vm7343_vm8, %v11726_v13  ;;  %vm7599_vm11 = vmpackc.low %vm1602_vm4, %vm1600_vm3  ;;  %vm537_vm3 = vcmp.eq.s32.totalorder %v9166_v62, %v8427_v9  ;;  %vm534_vm8 = vcmp.eq.s32.totalorder %v9163_v63, %v8433_v11 }
  0x7f   : > { %7600 = vmatpush1.bf16.msk.msra.mxu1 %vm7599_vm11, %v11726_v13  ;;  %vm7345_vm14 = vmpackc.low %vm533_vm7, %vm531_vm6  ;;  %vm1611_vm6 = vcmp.eq.s32.totalorder %v9166_v62, %v8430_v10  ;;  %vm1608_vm11 = vcmp.eq.s32.totalorder %v9163_v63, %v8436_v12  ;;  %11828 = vst [vmem:[#allocation16_spill] sm:$0xff] %v9215_v30  ;;  %v9244_v63 = vadd.s32 488, %v8409_v2 }
  0x80   : > { %7346 = vmatprep.subr.msk.bf16.mxu0 %vm7345_vm14, %v11726_v13  ;;  %vm7601_vm1 = vmpackc.low %vm1607_vm10, %vm1605_vm9  ;;  %vm536_vm9 = vcmp.eq.s32.totalorder %v9166_v62, %v8433_v11  ;;  %vm539_vm14 = vcmp.eq.s32.totalorder %v9189_v1, %v8427_v9 }
  0x81   : > { %7602 = vmatprep.subr.msk.bf16.mxu1 %vm7601_vm1, %v11726_v13  ;;  %vm7347_vm4 = vmpackc.low %vm532_vm13, %vm530_vm12  ;;  %vm1610_vm12 = vcmp.eq.s32.totalorder %v9166_v62, %v8436_v12  ;;  %vm1613_vm1 = vcmp.eq.s32.totalorder %v9189_v1, %v8430_v10  ;;  %v9241_v62 = vadd.s32 480, %v8409_v2  ;;  %11831 = vst [vmem:[#allocation19_spill] sm:$0xff] %v9244_v63 }
  0x82   : > { %7348 = vmatpush1.bf16.msk.msra.mxu0 %vm7347_vm4, %v11726_v13  ;;  %vm7603_vm7 = vmpackc.low %vm1606_vm0, %vm1604_vm15  ;;  %vm541_vm15 = vcmp.eq.s32.totalorder %v9192_v0, %v8427_v9  ;;  %vm538_vm4 = vcmp.eq.s32.totalorder %v9189_v1, %v8433_v11 }
  0x83   : > { %7604 = vmatpush1.bf16.msk.msra.mxu1 %vm7603_vm7, %v11726_v13  ;;  %vm7349_vm10 = vmpackc.low %vm537_vm3, %vm535_vm2  ;;  %vm1615_vm2 = vcmp.eq.s32.totalorder %v9192_v0, %v8430_v10  ;;  %vm1612_vm7 = vcmp.eq.s32.totalorder %v9189_v1, %v8436_v12  ;;  %11830 = vst [vmem:[#allocation18_spill] sm:$0xff] %v9241_v62  ;;  %v9270_v1 = vadd.s32 504, %v8409_v2 }
  0x84   : > { %7350 = vmatprep.subr.msk.bf16.mxu0 %vm7349_vm10, %v11726_v13  ;;  %vm7605_vm13 = vmpackc.low %vm1611_vm6, %vm1609_vm5  ;;  %vm540_vm5 = vcmp.eq.s32.totalorder %v9192_v0, %v8433_v11  ;;  %vm543_vm10 = vcmp.eq.s32.totalorder %v9215_v30, %v8427_v9 }
  0x85   : > { %7606 = vmatprep.subr.msk.bf16.mxu1 %vm7605_vm13, %v11726_v13  ;;  %vm7351_vm0 = vmpackc.low %vm536_vm9, %vm534_vm8  ;;  %vm1614_vm8 = vcmp.eq.s32.totalorder %v9192_v0, %v8436_v12  ;;  %vm1617_vm13 = vcmp.eq.s32.totalorder %v9215_v30, %v8430_v10  ;;  %v9267_v0 = vadd.s32 496, %v8409_v2  ;;  %11833 = vst [vmem:[#allocation21_spill] sm:$0xff] %v9270_v1 }
  0x86   : > { %7352 = vmatpush1.bf16.msk.msra.mxu0 %vm7351_vm0, %v11726_v13  ;;  %vm7607_vm3 = vmpackc.low %vm1610_vm12, %vm1608_vm11  ;;  %vm545_vm11 = vcmp.eq.s32.totalorder %v9218_v3, %v8427_v9  ;;  %vm542_vm0 = vcmp.eq.s32.totalorder %v9215_v30, %v8433_v11 }
  0x87   : > { %7608 = vmatpush1.bf16.msk.msra.mxu1 %vm7607_vm3, %v11726_v13  ;;  %vm7353_vm6 = vmpackc.low %vm541_vm15, %vm539_vm14  ;;  %vm1619_vm14 = vcmp.eq.s32.totalorder %v9218_v3, %v8430_v10  ;;  %vm1616_vm3 = vcmp.eq.s32.totalorder %v9215_v30, %v8436_v12  ;;  %11832 = vst [vmem:[#allocation20_spill] sm:$0xff] %v9267_v0  ;;  %v9296_v30 = vadd.s32 520, %v8409_v2 }
  0x88   : > { %7354 = vmatprep.subr.msk.bf16.mxu0 %vm7353_vm6, %v11726_v13  ;;  %vm7609_vm9 = vmpackc.low %vm1615_vm2, %vm1613_vm1  ;;  %vm544_vm1 = vcmp.eq.s32.totalorder %v9218_v3, %v8433_v11  ;;  %vm547_vm6 = vcmp.eq.s32.totalorder %v9241_v62, %v8427_v9 }
  0x89   : > { %7610 = vmatprep.subr.msk.bf16.mxu1 %vm7609_vm9, %v11726_v13  ;;  %vm7355_vm12 = vmpackc.low %vm540_vm5, %vm538_vm4  ;;  %vm1618_vm4 = vcmp.eq.s32.totalorder %v9218_v3, %v8436_v12  ;;  %vm1621_vm9 = vcmp.eq.s32.totalorder %v9241_v62, %v8430_v10  ;;  %v9293_v3 = vadd.s32 512, %v8409_v2  ;;  %11835 = vst [vmem:[#allocation23_spill] sm:$0xff] %v9296_v30 }
  0x8a   : > { %7356 = vmatpush1.bf16.msk.msra.mxu0 %vm7355_vm12, %v11726_v13  ;;  %vm7611_vm15 = vmpackc.low %vm1614_vm8, %vm1612_vm7  ;;  %vm549_vm7 = vcmp.eq.s32.totalorder %v9244_v63, %v8427_v9  ;;  %vm546_vm12 = vcmp.eq.s32.totalorder %v9241_v62, %v8433_v11 }
  0x8b   : > { %7612 = vmatpush1.bf16.msk.msra.mxu1 %vm7611_vm15, %v11726_v13  ;;  %vm7357_vm2 = vmpackc.low %vm545_vm11, %vm543_vm10  ;;  %vm1623_vm10 = vcmp.eq.s32.totalorder %v9244_v63, %v8430_v10  ;;  %vm1620_vm15 = vcmp.eq.s32.totalorder %v9241_v62, %v8436_v12  ;;  %11834 = vst [vmem:[#allocation22_spill] sm:$0xff] %v9293_v3  ;;  %v9322_v62 = vadd.s32 536, %v8409_v2 }
  0x8c   : > { %7358 = vmatprep.subr.msk.bf16.mxu0 %vm7357_vm2, %v11726_v13  ;;  %vm7613_vm5 = vmpackc.low %vm1619_vm14, %vm1617_vm13  ;;  %vm548_vm13 = vcmp.eq.s32.totalorder %v9244_v63, %v8433_v11  ;;  %vm551_vm2 = vcmp.eq.s32.totalorder %v9267_v0, %v8427_v9 }
  0x8d   : > { %7614 = vmatprep.subr.msk.bf16.mxu1 %vm7613_vm5, %v11726_v13  ;;  %vm7359_vm8 = vmpackc.low %vm544_vm1, %vm542_vm0  ;;  %vm1622_vm0 = vcmp.eq.s32.totalorder %v9244_v63, %v8436_v12  ;;  %vm1625_vm5 = vcmp.eq.s32.totalorder %v9267_v0, %v8430_v10  ;;  %v9319_v63 = vadd.s32 528, %v8409_v2  ;;  %11837 = vst [vmem:[#allocation25_spill] sm:$0xff] %v9322_v62 }
  0x8e   : > { %7360 = vmatpush1.bf16.msk.msra.mxu0 %vm7359_vm8, %v11726_v13  ;;  %vm7615_vm11 = vmpackc.low %vm1618_vm4, %vm1616_vm3  ;;  %vm553_vm3 = vcmp.eq.s32.totalorder %v9270_v1, %v8427_v9  ;;  %vm550_vm8 = vcmp.eq.s32.totalorder %v9267_v0, %v8433_v11 }
  0x8f   : > { %7616 = vmatpush1.bf16.msk.msra.mxu1 %vm7615_vm11, %v11726_v13  ;;  %vm7361_vm14 = vmpackc.low %vm549_vm7, %vm547_vm6  ;;  %vm1627_vm6 = vcmp.eq.s32.totalorder %v9270_v1, %v8430_v10  ;;  %vm1624_vm11 = vcmp.eq.s32.totalorder %v9267_v0, %v8436_v12  ;;  %11836 = vst [vmem:[#allocation24_spill] sm:$0xff] %v9319_v63  ;;  %v9352_v0 = vadd.s32 544, %v8409_v2 }
  0x90   : > { %7362 = vmatprep.subr.msk.bf16.mxu0 %vm7361_vm14, %v11726_v13  ;;  %vm7617_vm1 = vmpackc.low %vm1623_vm10, %vm1621_vm9  ;;  %vm552_vm9 = vcmp.eq.s32.totalorder %v9270_v1, %v8433_v11  ;;  %vm555_vm14 = vcmp.eq.s32.totalorder %v9293_v3, %v8427_v9 }
  0x91   : > { %7618 = vmatprep.subr.msk.bf16.mxu1 %vm7617_vm1, %v11726_v13  ;;  %vm7363_vm4 = vmpackc.low %vm548_vm13, %vm546_vm12  ;;  %vm1626_vm12 = vcmp.eq.s32.totalorder %v9270_v1, %v8436_v12  ;;  %vm1629_vm1 = vcmp.eq.s32.totalorder %v9293_v3, %v8430_v10  ;;  %v9344_v1 = vcombine.high %v9325_v61, %v9325_v61  ;;  %11839 = vst [vmem:[#allocation27_spill] sm:$0xff] %v9352_v0 }
  0x92   : > { %7364 = vmatpush1.bf16.msk.msra.mxu0 %vm7363_vm4, %v11726_v13  ;;  %vm7619_vm7 = vmpackc.low %vm1622_vm0, %vm1620_vm15  ;;  %vm557_vm15 = vcmp.eq.s32.totalorder %v9296_v30, %v8427_v9  ;;  %vm554_vm4 = vcmp.eq.s32.totalorder %v9293_v3, %v8433_v11 }
  0x93   : > { %7620 = vmatpush1.bf16.msk.msra.mxu1 %vm7619_vm7, %v11726_v13  ;;  %vm7365_vm10 = vmpackc.low %vm553_vm3, %vm551_vm2  ;;  %vm1631_vm2 = vcmp.eq.s32.totalorder %v9296_v30, %v8430_v10  ;;  %vm1628_vm7 = vcmp.eq.s32.totalorder %v9293_v3, %v8436_v12  ;;  %11838 = vst [vmem:[#allocation26_spill] sm:$0xff] %v9344_v1  ;;  %v9800_v3 = vadd.s32 808, %v8409_v2 }
  0x94   : > { %7366 = vmatprep.subr.msk.bf16.mxu0 %vm7365_vm10, %v11726_v13  ;;  %vm7621_vm13 = vmpackc.low %vm1627_vm6, %vm1625_vm5  ;;  %vm556_vm5 = vcmp.eq.s32.totalorder %v9296_v30, %v8433_v11  ;;  %vm559_vm10 = vcmp.eq.s32.totalorder %v9319_v63, %v8427_v9 }
  0x95   : > { %7622 = vmatprep.subr.msk.bf16.mxu1 %vm7621_vm13, %v11726_v13  ;;  %vm7367_vm0 = vmpackc.low %vm552_vm9, %vm550_vm8  ;;  %vm1630_vm8 = vcmp.eq.s32.totalorder %v9296_v30, %v8436_v12  ;;  %vm1633_vm13 = vcmp.eq.s32.totalorder %v9319_v63, %v8430_v10  ;;  %v9396_v30 = vadd.s32 568, %v8409_v2  ;;  %11873 = vst [vmem:[#allocation61_spill] sm:$0xff] %v9800_v3 }
  0x96   : > { %7368 = vmatpush1.bf16.msk.msra.mxu0 %vm7367_vm0, %v11726_v13  ;;  %vm7623_vm3 = vmpackc.low %vm1626_vm12, %vm1624_vm11  ;;  %vm561_vm11 = vcmp.eq.s32.totalorder %v9322_v62, %v8427_v9  ;;  %vm558_vm0 = vcmp.eq.s32.totalorder %v9319_v63, %v8433_v11 }
  0x97   : > { %7624 = vmatpush1.bf16.msk.msra.mxu1 %vm7623_vm3, %v11726_v13  ;;  %vm7369_vm6 = vmpackc.low %vm557_vm15, %vm555_vm14  ;;  %vm1635_vm14 = vcmp.eq.s32.totalorder %v9322_v62, %v8430_v10  ;;  %vm1632_vm3 = vcmp.eq.s32.totalorder %v9319_v63, %v8436_v12  ;;  %11842 = vst [vmem:[#allocation30_spill] sm:$0xff] %v9396_v30  ;;  %v9770_v63 = vld [vmem:[%s8657_s24 + $0x18] sm:$0xff] }
  0x98   : > { %7370 = vmatprep.subr.msk.bf16.mxu0 %vm7369_vm6, %v11726_v13  ;;  %vm7625_vm9 = vmpackc.low %vm1631_vm2, %vm1629_vm1  ;;  %vm560_vm1 = vcmp.eq.s32.totalorder %v9322_v62, %v8433_v11  ;;  %vm563_vm6 = vcmp.eq.s32.totalorder %v9352_v0, %v8427_v9 }
  0x99   : > { %7626 = vmatprep.subr.msk.bf16.mxu1 %vm7625_vm9, %v11726_v13  ;;  %1342 = vmatmul.mubr.f32.vlgmr.msra.gmra.mrb[0].mxu0 %v8951_v52  ;;  %vm7371_vm12 = vmpackc.low %vm556_vm5, %vm554_vm4  ;;  %vm1634_vm4 = vcmp.eq.s32.totalorder %v9322_v62, %v8436_v12  ;;  %vm1637_vm9 = vcmp.eq.s32.totalorder %v9352_v0, %v8430_v10  ;;  %v9429_v62 = vadd.s32 584, %v8409_v2 }
  0x9a   : > { %7372 = vmatpush1.bf16.msk.msra.mxu0 %vm7371_vm12, %v11726_v13  ;;  %2404 = vmatmul.mubr.f32.vlgmr.msra.gmra.mrb[0].mxu1 %v8951_v52  ;;  %vm7627_vm15 = vmpackc.low %vm1630_vm8, %vm1628_vm7  ;;  %vm565_vm7 = vcmp.eq.s32.totalorder %v9355_v60, %v8427_v9  ;;  %v9393_v52 = vadd.s32 560, %v8409_v2  ;;  %vm562_vm12 = vcmp.eq.s32.totalorder %v9352_v0, %v8433_v11 }
  0x9b   : > { %7628 = vmatpush1.bf16.msk.msra.mxu1 %vm7627_vm15, %v11726_v13  ;;  %vm7373_vm2 = vmpackc.low %vm561_vm11, %vm559_vm10  ;;  %1412 = vmatprep.mubr.f32.mxu0 %v9344_v1  ;;  %vm1639_vm10 = vcmp.eq.s32.totalorder %v9355_v60, %v8430_v10  ;;  %vm1636_vm15 = vcmp.eq.s32.totalorder %v9352_v0, %v8436_v12  ;;  %11844 = vst [vmem:[#allocation32_spill] sm:$0xff] %v9429_v62  ;;  %v9455_v0 = vadd.s32 600, %v8409_v2 }
  0x9c   : > { %7374 = vmatprep.subr.msk.bf16.mxu0 %vm7373_vm2, %v11726_v13  ;;  %vm7629_vm5 = vmpackc.low %vm1635_vm14, %vm1633_vm13  ;;  %11841 = vst [vmem:[#allocation29_spill] sm:$0xff] %v9393_v52  ;;  %2474 = vmatprep.mubr.f32.mxu1 %v9344_v1  ;;  %vm564_vm13 = vcmp.eq.s32.totalorder %v9355_v60, %v8433_v11  ;;  %vm567_vm2 = vcmp.eq.s32.totalorder %v9393_v52, %v8427_v9  ;;  %v9426_v1 = vadd.s32 576, %v8409_v2 }
  0x9d   : > { %7630 = vmatprep.subr.msk.bf16.mxu1 %vm7629_vm5, %v11726_v13  ;;  %vm7375_vm8 = vmpackc.low %vm560_vm1, %vm558_vm0  ;;  %vm1638_vm0 = vcmp.eq.s32.totalorder %v9355_v60, %v8436_v12  ;;  %vm1641_vm5 = vcmp.eq.s32.totalorder %v9393_v52, %v8430_v10  ;;  %v9452_v60 = vadd.s32 592, %v8409_v2  ;;  %11846 = vst [vmem:[#allocation34_spill] sm:$0xff] %v9455_v0 }
  0x9e   : > { %7376 = vmatpush1.bf16.msk.msra.mxu0 %vm7375_vm8, %v11726_v13  ;;  %vm7631_vm11 = vmpackc.low %vm1634_vm4, %vm1632_vm3  ;;  %vm569_vm3 = vcmp.eq.s32.totalorder %v9396_v30, %v8427_v9  ;;  %11843 = vst [vmem:[#allocation31_spill] sm:$0xff] %v9426_v1  ;;  %vm566_vm8 = vcmp.eq.s32.totalorder %v9393_v52, %v8433_v11 }
  0x9f   : > { %7632 = vmatpush1.bf16.msk.msra.mxu1 %vm7631_vm11, %v11726_v13  ;;  %vm7377_vm14 = vmpackc.low %vm565_vm7, %vm563_vm6  ;;  %vm1643_vm6 = vcmp.eq.s32.totalorder %v9396_v30, %v8430_v10  ;;  %vm1640_vm11 = vcmp.eq.s32.totalorder %v9393_v52, %v8436_v12  ;;  %11845 = vst [vmem:[#allocation33_spill] sm:$0xff] %v9452_v60  ;;  %v9481_v52 = vadd.s32 616, %v8409_v2 }
  0xa0   : > { %7378 = vmatprep.subr.msk.bf16.mxu0 %vm7377_vm14, %v11726_v13  ;;  %vm7633_vm1 = vmpackc.low %vm1639_vm10, %vm1637_vm9  ;;  %vm568_vm9 = vcmp.eq.s32.totalorder %v9396_v30, %v8433_v11  ;;  %vm571_vm14 = vcmp.eq.s32.totalorder %v9426_v1, %v8427_v9 }
  0xa1   : > { %7634 = vmatprep.subr.msk.bf16.mxu1 %vm7633_vm1, %v11726_v13  ;;  %vm7379_vm4 = vmpackc.low %vm564_vm13, %vm562_vm12  ;;  %vm1642_vm12 = vcmp.eq.s32.totalorder %v9396_v30, %v8436_v12  ;;  %vm1645_vm1 = vcmp.eq.s32.totalorder %v9426_v1, %v8430_v10  ;;  %v9478_v30 = vadd.s32 608, %v8409_v2  ;;  %11848 = vst [vmem:[#allocation36_spill] sm:$0xff] %v9481_v52 }
  0xa2   : > { %7380 = vmatpush1.bf16.msk.msra.mxu0 %vm7379_vm4, %v11726_v13  ;;  %vm7635_vm7 = vmpackc.low %vm1638_vm0, %vm1636_vm15  ;;  %vm573_vm15 = vcmp.eq.s32.totalorder %v9429_v62, %v8427_v9  ;;  %vm570_vm4 = vcmp.eq.s32.totalorder %v9426_v1, %v8433_v11 }
  0xa3   : > { %7636 = vmatpush1.bf16.msk.msra.mxu1 %vm7635_vm7, %v11726_v13  ;;  %vm7381_vm10 = vmpackc.low %vm569_vm3, %vm567_vm2  ;;  %vm1647_vm2 = vcmp.eq.s32.totalorder %v9429_v62, %v8430_v10  ;;  %vm1644_vm7 = vcmp.eq.s32.totalorder %v9426_v1, %v8436_v12  ;;  %11847 = vst [vmem:[#allocation35_spill] sm:$0xff] %v9478_v30  ;;  %v9507_v1 = vadd.s32 632, %v8409_v2 }
  0xa4   : > { %7382 = vmatprep.subr.msk.bf16.mxu0 %vm7381_vm10, %v11726_v13  ;;  %vm7637_vm13 = vmpackc.low %vm1643_vm6, %vm1641_vm5  ;;  %vm572_vm5 = vcmp.eq.s32.totalorder %v9429_v62, %v8433_v11  ;;  %vm575_vm10 = vcmp.eq.s32.totalorder %v9452_v60, %v8427_v9 }
  0xa5   : > { %7638 = vmatprep.subr.msk.bf16.mxu1 %vm7637_vm13, %v11726_v13  ;;  %vm7383_vm0 = vmpackc.low %vm568_vm9, %vm566_vm8  ;;  %vm1646_vm8 = vcmp.eq.s32.totalorder %v9429_v62, %v8436_v12  ;;  %vm1649_vm13 = vcmp.eq.s32.totalorder %v9452_v60, %v8430_v10  ;;  %v9504_v62 = vadd.s32 624, %v8409_v2  ;;  %11850 = vst [vmem:[#allocation38_spill] sm:$0xff] %v9507_v1 }
  0xa6   : > { %7384 = vmatpush1.bf16.msk.msra.mxu0 %vm7383_vm0, %v11726_v13  ;;  %vm7639_vm3 = vmpackc.low %vm1642_vm12, %vm1640_vm11  ;;  %vm577_vm11 = vcmp.eq.s32.totalorder %v9455_v0, %v8427_v9  ;;  %vm574_vm0 = vcmp.eq.s32.totalorder %v9452_v60, %v8433_v11 }
  0xa7   : > { %7640 = vmatpush1.bf16.msk.msra.mxu1 %vm7639_vm3, %v11726_v13  ;;  %vm7385_vm6 = vmpackc.low %vm573_vm15, %vm571_vm14  ;;  %vm1651_vm14 = vcmp.eq.s32.totalorder %v9455_v0, %v8430_v10  ;;  %vm1648_vm3 = vcmp.eq.s32.totalorder %v9452_v60, %v8436_v12  ;;  %11849 = vst [vmem:[#allocation37_spill] sm:$0xff] %v9504_v62  ;;  %v9533_v60 = vadd.s32 648, %v8409_v2 }
  0xa8   : > { %7386 = vmatprep.subr.msk.bf16.mxu0 %vm7385_vm6, %v11726_v13  ;;  %vm7641_vm9 = vmpackc.low %vm1647_vm2, %vm1645_vm1  ;;  %vm576_vm1 = vcmp.eq.s32.totalorder %v9455_v0, %v8433_v11  ;;  %vm579_vm6 = vcmp.eq.s32.totalorder %v9478_v30, %v8427_v9 }
  0xa9   : > { %7642 = vmatprep.subr.msk.bf16.mxu1 %vm7641_vm9, %v11726_v13  ;;  %vm7387_vm12 = vmpackc.low %vm572_vm5, %vm570_vm4  ;;  %vm1650_vm4 = vcmp.eq.s32.totalorder %v9455_v0, %v8436_v12  ;;  %vm1653_vm9 = vcmp.eq.s32.totalorder %v9478_v30, %v8430_v10  ;;  %v9530_v0 = vadd.s32 640, %v8409_v2  ;;  %11852 = vst [vmem:[#allocation40_spill] sm:$0xff] %v9533_v60 }
  0xaa   : > { %7388 = vmatpush1.bf16.msk.msra.mxu0 %vm7387_vm12, %v11726_v13  ;;  %vm7643_vm15 = vmpackc.low %vm1646_vm8, %vm1644_vm7  ;;  %vm581_vm7 = vcmp.eq.s32.totalorder %v9481_v52, %v8427_v9  ;;  %vm578_vm12 = vcmp.eq.s32.totalorder %v9478_v30, %v8433_v11 }
  0xab   : > { %7644 = vmatpush1.bf16.msk.msra.mxu1 %vm7643_vm15, %v11726_v13  ;;  %vm7389_vm2 = vmpackc.low %vm577_vm11, %vm575_vm10  ;;  %vm1655_vm10 = vcmp.eq.s32.totalorder %v9481_v52, %v8430_v10  ;;  %vm1652_vm15 = vcmp.eq.s32.totalorder %v9478_v30, %v8436_v12  ;;  %11851 = vst [vmem:[#allocation39_spill] sm:$0xff] %v9530_v0  ;;  %v9559_v30 = vadd.s32 664, %v8409_v2 }
  0xac   : > { %7390 = vmatprep.subr.msk.bf16.mxu0 %vm7389_vm2, %v11726_v13  ;;  %vm7645_vm5 = vmpackc.low %vm1651_vm14, %vm1649_vm13  ;;  %vm580_vm13 = vcmp.eq.s32.totalorder %v9481_v52, %v8433_v11  ;;  %vm583_vm2 = vcmp.eq.s32.totalorder %v9504_v62, %v8427_v9 }
  0xad   : > { %7646 = vmatprep.subr.msk.bf16.mxu1 %vm7645_vm5, %v11726_v13  ;;  %vm7391_vm8 = vmpackc.low %vm576_vm1, %vm574_vm0  ;;  %vm1654_vm0 = vcmp.eq.s32.totalorder %v9481_v52, %v8436_v12  ;;  %vm1657_vm5 = vcmp.eq.s32.totalorder %v9504_v62, %v8430_v10  ;;  %v9556_v52 = vadd.s32 656, %v8409_v2  ;;  %11854 = vst [vmem:[#allocation42_spill] sm:$0xff] %v9559_v30 }
  0xae   : > { %7392 = vmatpush1.bf16.msk.msra.mxu0 %vm7391_vm8, %v11726_v13  ;;  %vm7647_vm11 = vmpackc.low %vm1650_vm4, %vm1648_vm3  ;;  %vm585_vm3 = vcmp.eq.s32.totalorder %v9507_v1, %v8427_v9  ;;  %vm582_vm8 = vcmp.eq.s32.totalorder %v9504_v62, %v8433_v11 }
  0xaf   : > { %7648 = vmatpush1.bf16.msk.msra.mxu1 %vm7647_vm11, %v11726_v13  ;;  %vm7393_vm14 = vmpackc.low %vm581_vm7, %vm579_vm6  ;;  %vm1659_vm6 = vcmp.eq.s32.totalorder %v9507_v1, %v8430_v10  ;;  %vm1656_vm11 = vcmp.eq.s32.totalorder %v9504_v62, %v8436_v12  ;;  %11853 = vst [vmem:[#allocation41_spill] sm:$0xff] %v9556_v52  ;;  %v9585_v62 = vadd.s32 680, %v8409_v2 }
  0xb0   : > { %7394 = vmatprep.subr.msk.bf16.mxu0 %vm7393_vm14, %v11726_v13  ;;  %vm7649_vm1 = vmpackc.low %vm1655_vm10, %vm1653_vm9  ;;  %vm584_vm9 = vcmp.eq.s32.totalorder %v9507_v1, %v8433_v11  ;;  %vm587_vm14 = vcmp.eq.s32.totalorder %v9530_v0, %v8427_v9 }
  0xb1   : > { %7650 = vmatprep.subr.msk.bf16.mxu1 %vm7649_vm1, %v11726_v13  ;;  %vm7395_vm4 = vmpackc.low %vm580_vm13, %vm578_vm12  ;;  %vm1658_vm12 = vcmp.eq.s32.totalorder %v9507_v1, %v8436_v12  ;;  %vm1661_vm1 = vcmp.eq.s32.totalorder %v9530_v0, %v8430_v10  ;;  %v9582_v1 = vadd.s32 672, %v8409_v2  ;;  %11856 = vst [vmem:[#allocation44_spill] sm:$0xff] %v9585_v62 }
  0xb2   : > { %7396 = vmatpush1.bf16.msk.msra.mxu0 %vm7395_vm4, %v11726_v13  ;;  %vm7651_vm7 = vmpackc.low %vm1654_vm0, %vm1652_vm15  ;;  %vm589_vm15 = vcmp.eq.s32.totalorder %v9533_v60, %v8427_v9  ;;  %vm586_vm4 = vcmp.eq.s32.totalorder %v9530_v0, %v8433_v11 }
  0xb3   : > { %7652 = vmatpush1.bf16.msk.msra.mxu1 %vm7651_vm7, %v11726_v13  ;;  %vm7397_vm10 = vmpackc.low %vm585_vm3, %vm583_vm2  ;;  %vm1663_vm2 = vcmp.eq.s32.totalorder %v9533_v60, %v8430_v10  ;;  %vm1660_vm7 = vcmp.eq.s32.totalorder %v9530_v0, %v8436_v12  ;;  %11855 = vst [vmem:[#allocation43_spill] sm:$0xff] %v9582_v1  ;;  %v9611_v0 = vadd.s32 696, %v8409_v2 }
  0xb4   : > { %7398 = vmatprep.subr.msk.bf16.mxu0 %vm7397_vm10, %v11726_v13  ;;  %vm7653_vm13 = vmpackc.low %vm1659_vm6, %vm1657_vm5  ;;  %vm588_vm5 = vcmp.eq.s32.totalorder %v9533_v60, %v8433_v11  ;;  %vm591_vm10 = vcmp.eq.s32.totalorder %v9556_v52, %v8427_v9 }
  0xb5   : > { %7654 = vmatprep.subr.msk.bf16.mxu1 %vm7653_vm13, %v11726_v13  ;;  %vm7399_vm0 = vmpackc.low %vm584_vm9, %vm582_vm8  ;;  %vm1662_vm8 = vcmp.eq.s32.totalorder %v9533_v60, %v8436_v12  ;;  %vm1665_vm13 = vcmp.eq.s32.totalorder %v9556_v52, %v8430_v10  ;;  %v9608_v60 = vadd.s32 688, %v8409_v2  ;;  %11858 = vst [vmem:[#allocation46_spill] sm:$0xff] %v9611_v0 }
  0xb6   : > { %7400 = vmatpush1.bf16.msk.msra.mxu0 %vm7399_vm0, %v11726_v13  ;;  %vm7655_vm3 = vmpackc.low %vm1658_vm12, %vm1656_vm11  ;;  %vm593_vm11 = vcmp.eq.s32.totalorder %v9559_v30, %v8427_v9  ;;  %vm590_vm0 = vcmp.eq.s32.totalorder %v9556_v52, %v8433_v11 }
  0xb7   : > { %7656 = vmatpush1.bf16.msk.msra.mxu1 %vm7655_vm3, %v11726_v13  ;;  %vm7401_vm6 = vmpackc.low %vm589_vm15, %vm587_vm14  ;;  %vm1667_vm14 = vcmp.eq.s32.totalorder %v9559_v30, %v8430_v10  ;;  %vm1664_vm3 = vcmp.eq.s32.totalorder %v9556_v52, %v8436_v12  ;;  %11857 = vst [vmem:[#allocation45_spill] sm:$0xff] %v9608_v60  ;;  %v9637_v52 = vadd.s32 712, %v8409_v2 }
  0xb8   : > { %7402 = vmatprep.subr.msk.bf16.mxu0 %vm7401_vm6, %v11726_v13  ;;  %vm7657_vm9 = vmpackc.low %vm1663_vm2, %vm1661_vm1  ;;  %vm592_vm1 = vcmp.eq.s32.totalorder %v9559_v30, %v8433_v11  ;;  %vm595_vm6 = vcmp.eq.s32.totalorder %v9582_v1, %v8427_v9 }
  0xb9   : > { %7658 = vmatprep.subr.msk.bf16.mxu1 %vm7657_vm9, %v11726_v13  ;;  %vm7403_vm12 = vmpackc.low %vm588_vm5, %vm586_vm4  ;;  %vm1666_vm4 = vcmp.eq.s32.totalorder %v9559_v30, %v8436_v12  ;;  %vm1669_vm9 = vcmp.eq.s32.totalorder %v9582_v1, %v8430_v10  ;;  %v9634_v30 = vadd.s32 704, %v8409_v2  ;;  %11860 = vst [vmem:[#allocation48_spill] sm:$0xff] %v9637_v52 }
  0xba   : > { %7404 = vmatpush1.bf16.msk.msra.mxu0 %vm7403_vm12, %v11726_v13  ;;  %vm7659_vm15 = vmpackc.low %vm1662_vm8, %vm1660_vm7  ;;  %vm597_vm7 = vcmp.eq.s32.totalorder %v9585_v62, %v8427_v9  ;;  %vm594_vm12 = vcmp.eq.s32.totalorder %v9582_v1, %v8433_v11 }
  0xbb   : > { %7660 = vmatpush1.bf16.msk.msra.mxu1 %vm7659_vm15, %v11726_v13  ;;  %vm7405_vm2 = vmpackc.low %vm593_vm11, %vm591_vm10  ;;  %vm1671_vm10 = vcmp.eq.s32.totalorder %v9585_v62, %v8430_v10  ;;  %vm1668_vm15 = vcmp.eq.s32.totalorder %v9582_v1, %v8436_v12  ;;  %11859 = vst [vmem:[#allocation47_spill] sm:$0xff] %v9634_v30  ;;  %v9663_v1 = vadd.s32 728, %v8409_v2 }
  0xbc   : > { %7406 = vmatprep.subr.msk.bf16.mxu0 %vm7405_vm2, %v11726_v13  ;;  %vm7661_vm5 = vmpackc.low %vm1667_vm14, %vm1665_vm13  ;;  %vm596_vm13 = vcmp.eq.s32.totalorder %v9585_v62, %v8433_v11  ;;  %vm599_vm2 = vcmp.eq.s32.totalorder %v9608_v60, %v8427_v9 }
  0xbd   : > { %7662 = vmatprep.subr.msk.bf16.mxu1 %vm7661_vm5, %v11726_v13  ;;  %vm7407_vm8 = vmpackc.low %vm592_vm1, %vm590_vm0  ;;  %vm1670_vm0 = vcmp.eq.s32.totalorder %v9585_v62, %v8436_v12  ;;  %vm1673_vm5 = vcmp.eq.s32.totalorder %v9608_v60, %v8430_v10  ;;  %v9660_v62 = vadd.s32 720, %v8409_v2  ;;  %11862 = vst [vmem:[#allocation50_spill] sm:$0xff] %v9663_v1 }
  0xbe   : > { %7408 = vmatpush1.bf16.msk.msra.mxu0 %vm7407_vm8, %v11726_v13  ;;  %vm7663_vm11 = vmpackc.low %vm1666_vm4, %vm1664_vm3  ;;  %vm601_vm3 = vcmp.eq.s32.totalorder %v9611_v0, %v8427_v9  ;;  %vm598_vm8 = vcmp.eq.s32.totalorder %v9608_v60, %v8433_v11 }
  0xbf   : > { %7664 = vmatpush1.bf16.msk.msra.mxu1 %vm7663_vm11, %v11726_v13  ;;  %vm7409_vm14 = vmpackc.low %vm597_vm7, %vm595_vm6  ;;  %vm1675_vm6 = vcmp.eq.s32.totalorder %v9611_v0, %v8430_v10  ;;  %vm1672_vm11 = vcmp.eq.s32.totalorder %v9608_v60, %v8436_v12  ;;  %11861 = vst [vmem:[#allocation49_spill] sm:$0xff] %v9660_v62  ;;  %v9689_v60 = vadd.s32 744, %v8409_v2 }
  0xc0   : > { %7410 = vmatprep.subr.msk.bf16.mxu0 %vm7409_vm14, %v11726_v13  ;;  %vm7665_vm1 = vmpackc.low %vm1671_vm10, %vm1669_vm9  ;;  %vm600_vm9 = vcmp.eq.s32.totalorder %v9611_v0, %v8433_v11  ;;  %vm603_vm14 = vcmp.eq.s32.totalorder %v9634_v30, %v8427_v9 }
  0xc1   : > { %7666 = vmatprep.subr.msk.bf16.mxu1 %vm7665_vm1, %v11726_v13  ;;  %vm7411_vm4 = vmpackc.low %vm596_vm13, %vm594_vm12  ;;  %vm1674_vm12 = vcmp.eq.s32.totalorder %v9611_v0, %v8436_v12  ;;  %vm1677_vm1 = vcmp.eq.s32.totalorder %v9634_v30, %v8430_v10  ;;  %v9686_v0 = vadd.s32 736, %v8409_v2  ;;  %11864 = vst [vmem:[#allocation52_spill] sm:$0xff] %v9689_v60 }
  0xc2   : > { %7412 = vmatpush1.bf16.msk.msra.mxu0 %vm7411_vm4, %v11726_v13  ;;  %vm7667_vm7 = vmpackc.low %vm1670_vm0, %vm1668_vm15  ;;  %vm605_vm15 = vcmp.eq.s32.totalorder %v9637_v52, %v8427_v9  ;;  %vm602_vm4 = vcmp.eq.s32.totalorder %v9634_v30, %v8433_v11 }
  0xc3   : > { %7668 = vmatpush1.bf16.msk.msra.mxu1 %vm7667_vm7, %v11726_v13  ;;  %vm7413_vm10 = vmpackc.low %vm601_vm3, %vm599_vm2  ;;  %vm1679_vm2 = vcmp.eq.s32.totalorder %v9637_v52, %v8430_v10  ;;  %vm1676_vm7 = vcmp.eq.s32.totalorder %v9634_v30, %v8436_v12  ;;  %11863 = vst [vmem:[#allocation51_spill] sm:$0xff] %v9686_v0  ;;  %v9715_v30 = vadd.s32 760, %v8409_v2 }
  0xc4   : > { %7414 = vmatprep.subr.msk.bf16.mxu0 %vm7413_vm10, %v11726_v13  ;;  %vm7669_vm13 = vmpackc.low %vm1675_vm6, %vm1673_vm5  ;;  %vm604_vm5 = vcmp.eq.s32.totalorder %v9637_v52, %v8433_v11  ;;  %vm607_vm10 = vcmp.eq.s32.totalorder %v9660_v62, %v8427_v9 }
  0xc5   : > { %7670 = vmatprep.subr.msk.bf16.mxu1 %vm7669_vm13, %v11726_v13  ;;  %vm7415_vm0 = vmpackc.low %vm600_vm9, %vm598_vm8  ;;  %vm1678_vm8 = vcmp.eq.s32.totalorder %v9637_v52, %v8436_v12  ;;  %vm1681_vm13 = vcmp.eq.s32.totalorder %v9660_v62, %v8430_v10  ;;  %v9712_v52 = vadd.s32 752, %v8409_v2  ;;  %11866 = vst [vmem:[#allocation54_spill] sm:$0xff] %v9715_v30 }
  0xc6   : > { %7416 = vmatpush1.bf16.msk.msra.mxu0 %vm7415_vm0, %v11726_v13  ;;  %vm7671_vm3 = vmpackc.low %vm1674_vm12, %vm1672_vm11  ;;  %vm609_vm11 = vcmp.eq.s32.totalorder %v9663_v1, %v8427_v9  ;;  %vm606_vm0 = vcmp.eq.s32.totalorder %v9660_v62, %v8433_v11 }
  0xc7   : > { %7672 = vmatpush1.bf16.msk.msra.mxu1 %vm7671_vm3, %v11726_v13  ;;  %vm7417_vm6 = vmpackc.low %vm605_vm15, %vm603_vm14  ;;  %vm1683_vm14 = vcmp.eq.s32.totalorder %v9663_v1, %v8430_v10  ;;  %vm1680_vm3 = vcmp.eq.s32.totalorder %v9660_v62, %v8436_v12  ;;  %11865 = vst [vmem:[#allocation53_spill] sm:$0xff] %v9712_v52  ;;  %v9741_v62 = vadd.s32 776, %v8409_v2 }
  0xc8   : > { %7418 = vmatprep.subr.msk.bf16.mxu0 %vm7417_vm6, %v11726_v13  ;;  %vm7673_vm9 = vmpackc.low %vm1679_vm2, %vm1677_vm1  ;;  %vm608_vm1 = vcmp.eq.s32.totalorder %v9663_v1, %v8433_v11  ;;  %vm611_vm6 = vcmp.eq.s32.totalorder %v9686_v0, %v8427_v9 }
  0xc9   : > { %7674 = vmatprep.subr.msk.bf16.mxu1 %vm7673_vm9, %v11726_v13  ;;  %vm7419_vm12 = vmpackc.low %vm604_vm5, %vm602_vm4  ;;  %vm1682_vm4 = vcmp.eq.s32.totalorder %v9663_v1, %v8436_v12  ;;  %vm1685_vm9 = vcmp.eq.s32.totalorder %v9686_v0, %v8430_v10  ;;  %v9738_v1 = vadd.s32 768, %v8409_v2  ;;  %11868 = vst [vmem:[#allocation56_spill] sm:$0xff] %v9741_v62 }
  0xca   : > { %7420 = vmatpush1.bf16.msk.msra.mxu0 %vm7419_vm12, %v11726_v13  ;;  %vm7675_vm15 = vmpackc.low %vm1678_vm8, %vm1676_vm7  ;;  %vm613_vm7 = vcmp.eq.s32.totalorder %v9689_v60, %v8427_v9  ;;  %vm610_vm12 = vcmp.eq.s32.totalorder %v9686_v0, %v8433_v11 }
  0xcb   : > { %7676 = vmatpush1.bf16.msk.msra.mxu1 %vm7675_vm15, %v11726_v13  ;;  %vm7421_vm2 = vmpackc.low %vm609_vm11, %vm607_vm10  ;;  %vm1687_vm10 = vcmp.eq.s32.totalorder %v9689_v60, %v8430_v10  ;;  %vm1684_vm15 = vcmp.eq.s32.totalorder %v9686_v0, %v8436_v12  ;;  %11867 = vst [vmem:[#allocation55_spill] sm:$0xff] %v9738_v1  ;;  %v9767_v0 = vadd.s32 792, %v8409_v2 }
  0xcc   : > { %7422 = vmatprep.subr.msk.bf16.mxu0 %vm7421_vm2, %v11726_v13  ;;  %vm7677_vm5 = vmpackc.low %vm1683_vm14, %vm1681_vm13  ;;  %vm612_vm13 = vcmp.eq.s32.totalorder %v9689_v60, %v8433_v11  ;;  %vm615_vm2 = vcmp.eq.s32.totalorder %v9712_v52, %v8427_v9 }
  0xcd   : > { %7678 = vmatprep.subr.msk.bf16.mxu1 %vm7677_vm5, %v11726_v13  ;;  %vm7423_vm8 = vmpackc.low %vm608_vm1, %vm606_vm0  ;;  %vm1686_vm0 = vcmp.eq.s32.totalorder %v9689_v60, %v8436_v12  ;;  %vm1689_vm5 = vcmp.eq.s32.totalorder %v9712_v52, %v8430_v10  ;;  %v9764_v60 = vadd.s32 784, %v8409_v2  ;;  %11870 = vst [vmem:[#allocation58_spill] sm:$0xff] %v9767_v0 }
  0xce   : > { %7424 = vmatpush1.bf16.msk.msra.mxu0 %vm7423_vm8, %v11726_v13  ;;  %vm7679_vm11 = vmpackc.low %vm1682_vm4, %vm1680_vm3  ;;  %vm617_vm3 = vcmp.eq.s32.totalorder %v9715_v30, %v8427_v9  ;;  %vm614_vm8 = vcmp.eq.s32.totalorder %v9712_v52, %v8433_v11 }
  0xcf   : > { %7680 = vmatpush1.bf16.msk.msra.mxu1 %vm7679_vm11, %v11726_v13  ;;  %vm7425_vm14 = vmpackc.low %vm613_vm7, %vm611_vm6  ;;  %vm1691_vm6 = vcmp.eq.s32.totalorder %v9715_v30, %v8430_v10  ;;  %vm1688_vm11 = vcmp.eq.s32.totalorder %v9712_v52, %v8436_v12  ;;  %11869 = vst [vmem:[#allocation57_spill] sm:$0xff] %v9764_v60  ;;  %v9797_v52 = vadd.s32 800, %v8409_v2 }
  0xd0   : > { %7426 = vmatprep.subr.msk.bf16.mxu0 %vm7425_vm14, %v11726_v13  ;;  %vm7681_vm1 = vmpackc.low %vm1687_vm10, %vm1685_vm9  ;;  %vm616_vm9 = vcmp.eq.s32.totalorder %v9715_v30, %v8433_v11  ;;  %vm619_vm14 = vcmp.eq.s32.totalorder %v9738_v1, %v8427_v9 }
  0xd1   : > { %7682 = vmatprep.subr.msk.bf16.mxu1 %vm7681_vm1, %v11726_v13  ;;  %vm7427_vm4 = vmpackc.low %vm612_vm13, %vm610_vm12  ;;  %vm1690_vm12 = vcmp.eq.s32.totalorder %v9715_v30, %v8436_v12  ;;  %vm1693_vm1 = vcmp.eq.s32.totalorder %v9738_v1, %v8430_v10  ;;  %v9789_v30 = vcombine.high %v9770_v63, %v9770_v63  ;;  %11872 = vst [vmem:[#allocation60_spill] sm:$0xff] %v9797_v52 }
  0xd2   : > { %7428 = vmatpush1.bf16.msk.msra.mxu0 %vm7427_vm4, %v11726_v13  ;;  %vm7683_vm7 = vmpackc.low %vm1686_vm0, %vm1684_vm15  ;;  %vm621_vm15 = vcmp.eq.s32.totalorder %v9741_v62, %v8427_v9  ;;  %vm618_vm4 = vcmp.eq.s32.totalorder %v9738_v1, %v8433_v11 }
  0xd3   : > { %7684 = vmatpush1.bf16.msk.msra.mxu1 %vm7683_vm7, %v11726_v13  ;;  %vm7429_vm10 = vmpackc.low %vm617_vm3, %vm615_vm2  ;;  %vm1695_vm2 = vcmp.eq.s32.totalorder %v9741_v62, %v8430_v10  ;;  %vm1692_vm7 = vcmp.eq.s32.totalorder %v9738_v1, %v8436_v12  ;;  %11871 = vst [vmem:[#allocation59_spill] sm:$0xff] %v9789_v30 }
  0xd4   : > { %7430 = vmatprep.subr.msk.bf16.mxu0 %vm7429_vm10, %v11726_v13  ;;  %vm7685_vm13 = vmpackc.low %vm1691_vm6, %vm1689_vm5  ;;  %vm620_vm5 = vcmp.eq.s32.totalorder %v9741_v62, %v8433_v11  ;;  %vm623_vm10 = vcmp.eq.s32.totalorder %v9764_v60, %v8427_v9 }
  0xd5   : > { %7686 = vmatprep.subr.msk.bf16.mxu1 %vm7685_vm13, %v11726_v13  ;;  %vm7431_vm0 = vmpackc.low %vm616_vm9, %vm614_vm8  ;;  %vm1694_vm8 = vcmp.eq.s32.totalorder %v9741_v62, %v8436_v12  ;;  %vm1697_vm13 = vcmp.eq.s32.totalorder %v9764_v60, %v8430_v10  ;;  %v9841_v62 = vadd.s32 824, %v8409_v2 }
  0xd6   : > { %7432 = vmatpush1.bf16.msk.msra.mxu0 %vm7431_vm0, %v11726_v13  ;;  %vm7687_vm3 = vmpackc.low %vm1690_vm12, %vm1688_vm11  ;;  %vm625_vm11 = vcmp.eq.s32.totalorder %v9767_v0, %v8427_v9  ;;  %vm622_vm0 = vcmp.eq.s32.totalorder %v9764_v60, %v8433_v11 }
  0xd7   : > { %7688 = vmatpush1.bf16.msk.msra.mxu1 %vm7687_vm3, %v11726_v13  ;;  %vm7433_vm6 = vmpackc.low %vm621_vm15, %vm619_vm14  ;;  %vm1699_vm14 = vcmp.eq.s32.totalorder %v9767_v0, %v8430_v10  ;;  %vm1696_vm3 = vcmp.eq.s32.totalorder %v9764_v60, %v8436_v12  ;;  %11875 = vst [vmem:[#allocation63_spill] sm:$0xff] %v9841_v62 }
  0xd8   : > { %7434 = vmatprep.subr.msk.bf16.mxu0 %vm7433_vm6, %v11726_v13  ;;  %vm7689_vm9 = vmpackc.low %vm1695_vm2, %vm1693_vm1  ;;  %vm624_vm1 = vcmp.eq.s32.totalorder %v9767_v0, %v8433_v11  ;;  %vm627_vm6 = vcmp.eq.s32.totalorder %v9797_v52, %v8427_v9 }
  0xd9   : > { %7690 = vmatprep.subr.msk.bf16.mxu1 %vm7689_vm9, %v11726_v13  ;;  %1413 = vmatmul.mubr.f32.vlgmr.msra.gmra.mrb[0].mxu0 %v9325_v61  ;;  %vm7435_vm12 = vmpackc.low %vm620_vm5, %vm618_vm4  ;;  %vm1698_vm4 = vcmp.eq.s32.totalorder %v9767_v0, %v8436_v12  ;;  %vm1701_vm9 = vcmp.eq.s32.totalorder %v9797_v52, %v8430_v10  ;;  %v9874_v0 = vadd.s32 840, %v8409_v2 }
  0xda   : > { %7436 = vmatpush1.bf16.msk.msra.mxu0 %vm7435_vm12, %v11726_v13  ;;  %2475 = vmatmul.mubr.f32.vlgmr.msra.gmra.mrb[0].mxu1 %v9325_v61  ;;  %vm7691_vm15 = vmpackc.low %vm1694_vm8, %vm1692_vm7  ;;  %vm629_vm7 = vcmp.eq.s32.totalorder %v9800_v3, %v8427_v9  ;;  %v9838_v61 = vadd.s32 816, %v8409_v2  ;;  %vm626_vm12 = vcmp.eq.s32.totalorder %v9797_v52, %v8433_v11 }
  0xdb   : > { %7692 = vmatpush1.bf16.msk.msra.mxu1 %vm7691_vm15, %v11726_v13  ;;  %vm7437_vm2 = vmpackc.low %vm625_vm11, %vm623_vm10  ;;  %1483 = vmatprep.mubr.f32.mxu0 %v9789_v30  ;;  %vm1703_vm10 = vcmp.eq.s32.totalorder %v9800_v3, %v8430_v10  ;;  %vm1700_vm15 = vcmp.eq.s32.totalorder %v9797_v52, %v8436_v12  ;;  %11877 = vst [vmem:[#allocation65_spill] sm:$0xff] %v9874_v0  ;;  %v9900_v52 = vadd.s32 856, %v8409_v2 }
  0xdc   : > { %7438 = vmatprep.subr.msk.bf16.mxu0 %vm7437_vm2, %v11726_v13  ;;  %vm7693_vm5 = vmpackc.low %vm1699_vm14, %vm1697_vm13  ;;  %11874 = vst [vmem:[#allocation62_spill] sm:$0xff] %v9838_v61  ;;  %2545 = vmatprep.mubr.f32.mxu1 %v9789_v30  ;;  %vm628_vm13 = vcmp.eq.s32.totalorder %v9800_v3, %v8433_v11  ;;  %vm631_vm2 = vcmp.eq.s32.totalorder %v9838_v61, %v8427_v9  ;;  %v9871_v30 = vadd.s32 832, %v8409_v2 }
  0xdd   : > { %7694 = vmatprep.subr.msk.bf16.mxu1 %vm7693_vm5, %v11726_v13  ;;  %vm7439_vm8 = vmpackc.low %vm624_vm1, %vm622_vm0  ;;  %vm1702_vm0 = vcmp.eq.s32.totalorder %v9800_v3, %v8436_v12  ;;  %vm1705_vm5 = vcmp.eq.s32.totalorder %v9838_v61, %v8430_v10  ;;  %v9897_v3 = vadd.s32 848, %v8409_v2  ;;  %11879 = vst [vmem:[#allocation67_spill] sm:$0xff] %v9900_v52 }
  0xde   : > { %7440 = vmatpush1.bf16.msk.msra.mxu0 %vm7439_vm8, %v11726_v13  ;;  %vm7695_vm11 = vmpackc.low %vm1698_vm4, %vm1696_vm3  ;;  %vm633_vm3 = vcmp.eq.s32.totalorder %v9841_v62, %v8427_v9  ;;  %11876 = vst [vmem:[#allocation64_spill] sm:$0xff] %v9871_v30  ;;  %vm630_vm8 = vcmp.eq.s32.totalorder %v9838_v61, %v8433_v11 }
  0xdf   : > { %7696 = vmatpush1.bf16.msk.msra.mxu1 %vm7695_vm11, %v11726_v13  ;;  %vm7441_vm14 = vmpackc.low %vm629_vm7, %vm627_vm6  ;;  %vm1707_vm6 = vcmp.eq.s32.totalorder %v9841_v62, %v8430_v10  ;;  %vm1704_vm11 = vcmp.eq.s32.totalorder %v9838_v61, %v8436_v12  ;;  %11878 = vst [vmem:[#allocation66_spill] sm:$0xff] %v9897_v3  ;;  %v9926_v61 = vadd.s32 872, %v8409_v2 }
  0xe0   : > { %7442 = vmatprep.subr.msk.bf16.mxu0 %vm7441_vm14, %v11726_v13  ;;  %vm7697_vm1 = vmpackc.low %vm1703_vm10, %vm1701_vm9  ;;  %vm632_vm9 = vcmp.eq.s32.totalorder %v9841_v62, %v8433_v11  ;;  %vm635_vm14 = vcmp.eq.s32.totalorder %v9871_v30, %v8427_v9 }
  0xe1   : > { %7698 = vmatprep.subr.msk.bf16.mxu1 %vm7697_vm1, %v11726_v13  ;;  %vm7443_vm4 = vmpackc.low %vm628_vm13, %vm626_vm12  ;;  %vm1706_vm12 = vcmp.eq.s32.totalorder %v9841_v62, %v8436_v12  ;;  %vm1709_vm1 = vcmp.eq.s32.totalorder %v9871_v30, %v8430_v10  ;;  %v9923_v62 = vadd.s32 864, %v8409_v2  ;;  %11881 = vst [vmem:[#allocation69_spill] sm:$0xff] %v9926_v61 }
  0xe2   : > { %7444 = vmatpush1.bf16.msk.msra.mxu0 %vm7443_vm4, %v11726_v13  ;;  %vm7699_vm7 = vmpackc.low %vm1702_vm0, %vm1700_vm15  ;;  %vm637_vm15 = vcmp.eq.s32.totalorder %v9874_v0, %v8427_v9  ;;  %vm634_vm4 = vcmp.eq.s32.totalorder %v9871_v30, %v8433_v11 }
  0xe3   : > { %7700 = vmatpush1.bf16.msk.msra.mxu1 %vm7699_vm7, %v11726_v13  ;;  %vm7445_vm10 = vmpackc.low %vm633_vm3, %vm631_vm2  ;;  %vm1711_vm2 = vcmp.eq.s32.totalorder %v9874_v0, %v8430_v10  ;;  %vm1708_vm7 = vcmp.eq.s32.totalorder %v9871_v30, %v8436_v12  ;;  %11880 = vst [vmem:[#allocation68_spill] sm:$0xff] %v9923_v62  ;;  %v9952_v30 = vadd.s32 888, %v8409_v2 }
  0xe4   : > { %7446 = vmatprep.subr.msk.bf16.mxu0 %vm7445_vm10, %v11726_v13  ;;  %vm7701_vm13 = vmpackc.low %vm1707_vm6, %vm1705_vm5  ;;  %vm636_vm5 = vcmp.eq.s32.totalorder %v9874_v0, %v8433_v11  ;;  %vm639_vm10 = vcmp.eq.s32.totalorder %v9897_v3, %v8427_v9 }
  0xe5   : > { %7702 = vmatprep.subr.msk.bf16.mxu1 %vm7701_vm13, %v11726_v13  ;;  %vm7447_vm0 = vmpackc.low %vm632_vm9, %vm630_vm8  ;;  %vm1710_vm8 = vcmp.eq.s32.totalorder %v9874_v0, %v8436_v12  ;;  %vm1713_vm13 = vcmp.eq.s32.totalorder %v9897_v3, %v8430_v10  ;;  %v9949_v0 = vadd.s32 880, %v8409_v2  ;;  %11883 = vst [vmem:[#allocation71_spill] sm:$0xff] %v9952_v30 }
  0xe6   : > { %7448 = vmatpush1.bf16.msk.msra.mxu0 %vm7447_vm0, %v11726_v13  ;;  %vm7703_vm3 = vmpackc.low %vm1706_vm12, %vm1704_vm11  ;;  %vm641_vm11 = vcmp.eq.s32.totalorder %v9900_v52, %v8427_v9  ;;  %vm638_vm0 = vcmp.eq.s32.totalorder %v9897_v3, %v8433_v11 }
  0xe7   : > { %7704 = vmatpush1.bf16.msk.msra.mxu1 %vm7703_vm3, %v11726_v13  ;;  %vm7449_vm6 = vmpackc.low %vm637_vm15, %vm635_vm14  ;;  %vm1715_vm14 = vcmp.eq.s32.totalorder %v9900_v52, %v8430_v10  ;;  %vm1712_vm3 = vcmp.eq.s32.totalorder %v9897_v3, %v8436_v12  ;;  %11882 = vst [vmem:[#allocation70_spill] sm:$0xff] %v9949_v0  ;;  %v9978_v3 = vadd.s32 904, %v8409_v2 }
  0xe8   : > { %7450 = vmatprep.subr.msk.bf16.mxu0 %vm7449_vm6, %v11726_v13  ;;  %vm7705_vm9 = vmpackc.low %vm1711_vm2, %vm1709_vm1  ;;  %vm640_vm1 = vcmp.eq.s32.totalorder %v9900_v52, %v8433_v11  ;;  %vm643_vm6 = vcmp.eq.s32.totalorder %v9923_v62, %v8427_v9 }
  0xe9   : > { %7706 = vmatprep.subr.msk.bf16.mxu1 %vm7705_vm9, %v11726_v13  ;;  %vm7451_vm12 = vmpackc.low %vm636_vm5, %vm634_vm4  ;;  %vm1714_vm4 = vcmp.eq.s32.totalorder %v9900_v52, %v8436_v12  ;;  %vm1717_vm9 = vcmp.eq.s32.totalorder %v9923_v62, %v8430_v10  ;;  %v9975_v52 = vadd.s32 896, %v8409_v2  ;;  %11885 = vst [vmem:[#allocation73_spill] sm:$0xff] %v9978_v3 }
  0xea   : > { %7452 = vmatpush1.bf16.msk.msra.mxu0 %vm7451_vm12, %v11726_v13  ;;  %vm7707_vm15 = vmpackc.low %vm1710_vm8, %vm1708_vm7  ;;  %vm645_vm7 = vcmp.eq.s32.totalorder %v9926_v61, %v8427_v9  ;;  %vm642_vm12 = vcmp.eq.s32.totalorder %v9923_v62, %v8433_v11 }
  0xeb   : > { %7708 = vmatpush1.bf16.msk.msra.mxu1 %vm7707_vm15, %v11726_v13  ;;  %vm7453_vm2 = vmpackc.low %vm641_vm11, %vm639_vm10  ;;  %vm1719_vm10 = vcmp.eq.s32.totalorder %v9926_v61, %v8430_v10  ;;  %vm1716_vm15 = vcmp.eq.s32.totalorder %v9923_v62, %v8436_v12  ;;  %11884 = vst [vmem:[#allocation72_spill] sm:$0xff] %v9975_v52  ;;  %v10004_v62 = vadd.s32 920, %v8409_v2 }
  0xec   : > { %7454 = vmatprep.subr.msk.bf16.mxu0 %vm7453_vm2, %v11726_v13  ;;  %vm7709_vm5 = vmpackc.low %vm1715_vm14, %vm1713_vm13  ;;  %vm644_vm13 = vcmp.eq.s32.totalorder %v9926_v61, %v8433_v11  ;;  %vm647_vm2 = vcmp.eq.s32.totalorder %v9949_v0, %v8427_v9 }
  0xed   : > { %7710 = vmatprep.subr.msk.bf16.mxu1 %vm7709_vm5, %v11726_v13  ;;  %vm7455_vm8 = vmpackc.low %vm640_vm1, %vm638_vm0  ;;  %vm1718_vm0 = vcmp.eq.s32.totalorder %v9926_v61, %v8436_v12  ;;  %vm1721_vm5 = vcmp.eq.s32.totalorder %v9949_v0, %v8430_v10  ;;  %v10001_v61 = vadd.s32 912, %v8409_v2  ;;  %11887 = vst [vmem:[#allocation75_spill] sm:$0xff] %v10004_v62 }
  0xee   : > { %7456 = vmatpush1.bf16.msk.msra.mxu0 %vm7455_vm8, %v11726_v13  ;;  %vm7711_vm11 = vmpackc.low %vm1714_vm4, %vm1712_vm3  ;;  %vm649_vm3 = vcmp.eq.s32.totalorder %v9952_v30, %v8427_v9  ;;  %vm646_vm8 = vcmp.eq.s32.totalorder %v9949_v0, %v8433_v11 }
  0xef   : > { %7712 = vmatpush1.bf16.msk.msra.mxu1 %vm7711_vm11, %v11726_v13  ;;  %vm7457_vm14 = vmpackc.low %vm645_vm7, %vm643_vm6  ;;  %vm1723_vm6 = vcmp.eq.s32.totalorder %v9952_v30, %v8430_v10  ;;  %vm1720_vm11 = vcmp.eq.s32.totalorder %v9949_v0, %v8436_v12  ;;  %11886 = vst [vmem:[#allocation74_spill] sm:$0xff] %v10001_v61  ;;  %v10030_v0 = vadd.s32 936, %v8409_v2 }
  0xf0   : > { %7458 = vmatprep.subr.msk.bf16.mxu0 %vm7457_vm14, %v11726_v13  ;;  %vm7713_vm1 = vmpackc.low %vm1719_vm10, %vm1717_vm9  ;;  %vm648_vm9 = vcmp.eq.s32.totalorder %v9952_v30, %v8433_v11  ;;  %vm651_vm14 = vcmp.eq.s32.totalorder %v9975_v52, %v8427_v9 }
  0xf1   : > { %7714 = vmatprep.subr.msk.bf16.mxu1 %vm7713_vm1, %v11726_v13  ;;  %vm7459_vm4 = vmpackc.low %vm644_vm13, %vm642_vm12  ;;  %vm1722_vm12 = vcmp.eq.s32.totalorder %v9952_v30, %v8436_v12  ;;  %vm1725_vm1 = vcmp.eq.s32.totalorder %v9975_v52, %v8430_v10  ;;  %v10027_v30 = vadd.s32 928, %v8409_v2  ;;  %11889 = vst [vmem:[#allocation77_spill] sm:$0xff] %v10030_v0 }
  0xf2   : > { %7460 = vmatpush1.bf16.msk.msra.mxu0 %vm7459_vm4, %v11726_v13  ;;  %vm7715_vm7 = vmpackc.low %vm1718_vm0, %vm1716_vm15  ;;  %vm653_vm15 = vcmp.eq.s32.totalorder %v9978_v3, %v8427_v9  ;;  %vm650_vm4 = vcmp.eq.s32.totalorder %v9975_v52, %v8433_v11 }
  0xf3   : > { %7716 = vmatpush1.bf16.msk.msra.mxu1 %vm7715_vm7, %v11726_v13  ;;  %vm7461_vm10 = vmpackc.low %vm649_vm3, %vm647_vm2  ;;  %vm1727_vm2 = vcmp.eq.s32.totalorder %v9978_v3, %v8430_v10  ;;  %vm1724_vm7 = vcmp.eq.s32.totalorder %v9975_v52, %v8436_v12  ;;  %11888 = vst [vmem:[#allocation76_spill] sm:$0xff] %v10027_v30  ;;  %v10056_v52 = vadd.s32 952, %v8409_v2 }
  0xf4   : > { %7462 = vmatprep.subr.msk.bf16.mxu0 %vm7461_vm10, %v11726_v13  ;;  %vm7717_vm13 = vmpackc.low %vm1723_vm6, %vm1721_vm5  ;;  %vm652_vm5 = vcmp.eq.s32.totalorder %v9978_v3, %v8433_v11  ;;  %vm655_vm10 = vcmp.eq.s32.totalorder %v10001_v61, %v8427_v9 }
  0xf5   : > { %7718 = vmatprep.subr.msk.bf16.mxu1 %vm7717_vm13, %v11726_v13  ;;  %vm7463_vm0 = vmpackc.low %vm648_vm9, %vm646_vm8  ;;  %vm1726_vm8 = vcmp.eq.s32.totalorder %v9978_v3, %v8436_v12  ;;  %vm1729_vm13 = vcmp.eq.s32.totalorder %v10001_v61, %v8430_v10  ;;  %v10053_v3 = vadd.s32 944, %v8409_v2  ;;  %11891 = vst [vmem:[#allocation79_spill] sm:$0xff] %v10056_v52 }
  0xf6   : > { %7464 = vmatpush1.bf16.msk.msra.mxu0 %vm7463_vm0, %v11726_v13  ;;  %vm7719_vm3 = vmpackc.low %vm1722_vm12, %vm1720_vm11  ;;  %vm657_vm11 = vcmp.eq.s32.totalorder %v10004_v62, %v8427_v9  ;;  %vm654_vm0 = vcmp.eq.s32.totalorder %v10001_v61, %v8433_v11 }
  0xf7   : > { %7720 = vmatpush1.bf16.msk.msra.mxu1 %vm7719_vm3, %v11726_v13  ;;  %vm7465_vm6 = vmpackc.low %vm653_vm15, %vm651_vm14  ;;  %vm1731_vm14 = vcmp.eq.s32.totalorder %v10004_v62, %v8430_v10  ;;  %vm1728_vm3 = vcmp.eq.s32.totalorder %v10001_v61, %v8436_v12  ;;  %11890 = vst [vmem:[#allocation78_spill] sm:$0xff] %v10053_v3  ;;  %v10082_v61 = vadd.s32 968, %v8409_v2 }
  0xf8   : > { %7466 = vmatprep.subr.msk.bf16.mxu0 %vm7465_vm6, %v11726_v13  ;;  %vm7721_vm9 = vmpackc.low %vm1727_vm2, %vm1725_vm1  ;;  %vm656_vm1 = vcmp.eq.s32.totalorder %v10004_v62, %v8433_v11  ;;  %vm659_vm6 = vcmp.eq.s32.totalorder %v10027_v30, %v8427_v9 }
  0xf9   : > { %7722 = vmatprep.subr.msk.bf16.mxu1 %vm7721_vm9, %v11726_v13  ;;  %vm7467_vm12 = vmpackc.low %vm652_vm5, %vm650_vm4  ;;  %vm1730_vm4 = vcmp.eq.s32.totalorder %v10004_v62, %v8436_v12  ;;  %vm1733_vm9 = vcmp.eq.s32.totalorder %v10027_v30, %v8430_v10  ;;  %v10079_v62 = vadd.s32 960, %v8409_v2  ;;  %11893 = vst [vmem:[#allocation81_spill] sm:$0xff] %v10082_v61 }
  0xfa   : > { %7468 = vmatpush1.bf16.msk.msra.mxu0 %vm7467_vm12, %v11726_v13  ;;  %vm7723_vm15 = vmpackc.low %vm1726_vm8, %vm1724_vm7  ;;  %vm661_vm7 = vcmp.eq.s32.totalorder %v10030_v0, %v8427_v9  ;;  %vm658_vm12 = vcmp.eq.s32.totalorder %v10027_v30, %v8433_v11 }
  0xfb   : > { %7724 = vmatpush1.bf16.msk.msra.mxu1 %vm7723_vm15, %v11726_v13  ;;  %vm7469_vm2 = vmpackc.low %vm657_vm11, %vm655_vm10  ;;  %vm1735_vm10 = vcmp.eq.s32.totalorder %v10030_v0, %v8430_v10  ;;  %vm1732_vm15 = vcmp.eq.s32.totalorder %v10027_v30, %v8436_v12  ;;  %11892 = vst [vmem:[#allocation80_spill] sm:$0xff] %v10079_v62  ;;  %v10108_v30 = vadd.s32 984, %v8409_v2 }
  0xfc   : > { %7470 = vmatprep.subr.msk.bf16.mxu0 %vm7469_vm2, %v11726_v13  ;;  %vm7725_vm5 = vmpackc.low %vm1731_vm14, %vm1729_vm13  ;;  %vm660_vm13 = vcmp.eq.s32.totalorder %v10030_v0, %v8433_v11  ;;  %vm663_vm2 = vcmp.eq.s32.totalorder %v10053_v3, %v8427_v9 }
  0xfd   : > { %7726 = vmatprep.subr.msk.bf16.mxu1 %vm7725_vm5, %v11726_v13  ;;  %vm7471_vm8 = vmpackc.low %vm656_vm1, %vm654_vm0  ;;  %vm1734_vm0 = vcmp.eq.s32.totalorder %v10030_v0, %v8436_v12  ;;  %vm1737_vm5 = vcmp.eq.s32.totalorder %v10053_v3, %v8430_v10  ;;  %v10105_v0 = vadd.s32 976, %v8409_v2  ;;  %11895 = vst [vmem:[#allocation83_spill] sm:$0xff] %v10108_v30 }
  0xfe   : > { %7472 = vmatpush1.bf16.msk.msra.mxu0 %vm7471_vm8, %v11726_v13  ;;  %vm7727_vm11 = vmpackc.low %vm1730_vm4, %vm1728_vm3  ;;  %vm665_vm3 = vcmp.eq.s32.totalorder %v10056_v52, %v8427_v9  ;;  %vm662_vm8 = vcmp.eq.s32.totalorder %v10053_v3, %v8433_v11 }
  0xff   : > { %7728 = vmatpush1.bf16.msk.msra.mxu1 %vm7727_vm11, %v11726_v13  ;;  %vm7473_vm14 = vmpackc.low %vm661_vm7, %vm659_vm6  ;;  %vm1739_vm6 = vcmp.eq.s32.totalorder %v10056_v52, %v8430_v10  ;;  %vm1736_vm11 = vcmp.eq.s32.totalorder %v10053_v3, %v8436_v12  ;;  %11894 = vst [vmem:[#allocation82_spill] sm:$0xff] %v10105_v0  ;;  %v10134_v3 = vadd.s32 1000, %v8409_v2 }
 0x100   : > { %7474 = vmatprep.subr.msk.bf16.mxu0 %vm7473_vm14, %v11726_v13  ;;  %vm7729_vm1 = vmpackc.low %vm1735_vm10, %vm1733_vm9  ;;  %vm664_vm9 = vcmp.eq.s32.totalorder %v10056_v52, %v8433_v11  ;;  %vm667_vm14 = vcmp.eq.s32.totalorder %v10079_v62, %v8427_v9 }
 0x101   : > { %7730 = vmatprep.subr.msk.bf16.mxu1 %vm7729_vm1, %v11726_v13  ;;  %vm7475_vm4 = vmpackc.low %vm660_vm13, %vm658_vm12  ;;  %vm1738_vm12 = vcmp.eq.s32.totalorder %v10056_v52, %v8436_v12  ;;  %vm1741_vm1 = vcmp.eq.s32.totalorder %v10079_v62, %v8430_v10  ;;  %v10131_v52 = vadd.s32 992, %v8409_v2  ;;  %11897 = vst [vmem:[#allocation85_spill] sm:$0xff] %v10134_v3 }
 0x102   : > { %7476 = vmatpush1.bf16.msk.msra.mxu0 %vm7475_vm4, %v11726_v13  ;;  %vm7731_vm7 = vmpackc.low %vm1734_vm0, %vm1732_vm15  ;;  %vm669_vm15 = vcmp.eq.s32.totalorder %v10082_v61, %v8427_v9  ;;  %vm666_vm4 = vcmp.eq.s32.totalorder %v10079_v62, %v8433_v11 }
 0x103   : > { %7732 = vmatpush1.bf16.msk.msra.mxu1 %vm7731_vm7, %v11726_v13  ;;  %vm7477_vm10 = vmpackc.low %vm665_vm3, %vm663_vm2  ;;  %vm1743_vm2 = vcmp.eq.s32.totalorder %v10082_v61, %v8430_v10  ;;  %vm1740_vm7 = vcmp.eq.s32.totalorder %v10079_v62, %v8436_v12  ;;  %11896 = vst [vmem:[#allocation84_spill] sm:$0xff] %v10131_v52  ;;  %v10160_v62 = vadd.s32 1016, %v8409_v2 }
 0x104   : > { %7478 = vmatprep.subr.msk.bf16.mxu0 %vm7477_vm10, %v11726_v13  ;;  %vm7733_vm13 = vmpackc.low %vm1739_vm6, %vm1737_vm5  ;;  %vm668_vm5 = vcmp.eq.s32.totalorder %v10082_v61, %v8433_v11  ;;  %vm671_vm10 = vcmp.eq.s32.totalorder %v10105_v0, %v8427_v9 }
 0x105   : > { %7734 = vmatprep.subr.msk.bf16.mxu1 %vm7733_vm13, %v11726_v13  ;;  %vm7479_vm0 = vmpackc.low %vm664_vm9, %vm662_vm8  ;;  %vm1742_vm8 = vcmp.eq.s32.totalorder %v10082_v61, %v8436_v12  ;;  %vm1745_vm13 = vcmp.eq.s32.totalorder %v10105_v0, %v8430_v10  ;;  %v10157_v61 = vadd.s32 1008, %v8409_v2  ;;  %11899 = vst [vmem:[#allocation87_spill] sm:$0xff] %v10160_v62 }
 0x106   : > { %7480 = vmatpush1.bf16.msk.msra.mxu0 %vm7479_vm0, %v11726_v13  ;;  %vm7735_vm3 = vmpackc.low %vm1738_vm12, %vm1736_vm11  ;;  %vm673_vm11 = vcmp.eq.s32.totalorder %v10108_v30, %v8427_v9  ;;  %vm670_vm0 = vcmp.eq.s32.totalorder %v10105_v0, %v8433_v11 }
 0x107   : > { %7736 = vmatpush1.bf16.msk.msra.mxu1 %vm7735_vm3, %v11726_v13  ;;  %vm7481_vm6 = vmpackc.low %vm669_vm15, %vm667_vm14  ;;  %vm1747_vm14 = vcmp.eq.s32.totalorder %v10108_v30, %v8430_v10  ;;  %vm1744_vm3 = vcmp.eq.s32.totalorder %v10105_v0, %v8436_v12  ;;  %11898 = vst [vmem:[#allocation86_spill] sm:$0xff] %v10157_v61 }
 0x108   : > { %7482 = vmatprep.subr.msk.bf16.mxu0 %vm7481_vm6, %v11726_v13  ;;  %vm7737_vm9 = vmpackc.low %vm1743_vm2, %vm1741_vm1  ;;  %vm672_vm1 = vcmp.eq.s32.totalorder %v10108_v30, %v8433_v11  ;;  %vm675_vm6 = vcmp.eq.s32.totalorder %v10131_v52, %v8427_v9 }
 0x109   : > { %7738 = vmatprep.subr.msk.bf16.mxu1 %vm7737_vm9, %v11726_v13  ;;  %vm7483_vm12 = vmpackc.low %vm668_vm5, %vm666_vm4  ;;  %vm1746_vm4 = vcmp.eq.s32.totalorder %v10108_v30, %v8436_v12  ;;  %vm1749_vm9 = vcmp.eq.s32.totalorder %v10131_v52, %v8430_v10 }
 0x10a   : > { %7484 = vmatpush1.bf16.msk.msra.mxu0 %vm7483_vm12, %v11726_v13  ;;  %vm7739_vm15 = vmpackc.low %vm1742_vm8, %vm1740_vm7  ;;  %vm677_vm7 = vcmp.eq.s32.totalorder %v10134_v3, %v8427_v9  ;;  %vm674_vm12 = vcmp.eq.s32.totalorder %v10131_v52, %v8433_v11 }
 0x10b   : > { %7740 = vmatpush1.bf16.msk.msra.mxu1 %vm7739_vm15, %v11726_v13  ;;  %vm7485_vm2 = vmpackc.low %vm673_vm11, %vm671_vm10  ;;  %vm1751_vm10 = vcmp.eq.s32.totalorder %v10134_v3, %v8430_v10  ;;  %vm1748_vm15 = vcmp.eq.s32.totalorder %v10131_v52, %v8436_v12 }
 0x10c   : > { %7486 = vmatprep.subr.msk.bf16.mxu0 %vm7485_vm2, %v11726_v13  ;;  %vm7741_vm5 = vmpackc.low %vm1747_vm14, %vm1745_vm13  ;;  %vm676_vm13 = vcmp.eq.s32.totalorder %v10134_v3, %v8433_v11  ;;  %vm679_vm2 = vcmp.eq.s32.totalorder %v10157_v61, %v8427_v9 }
 0x10d   : > { %7742 = vmatprep.subr.msk.bf16.mxu1 %vm7741_vm5, %v11726_v13  ;;  %vm7487_vm8 = vmpackc.low %vm672_vm1, %vm670_vm0  ;;  %vm1750_vm0 = vcmp.eq.s32.totalorder %v10134_v3, %v8436_v12  ;;  %vm1753_vm5 = vcmp.eq.s32.totalorder %v10157_v61, %v8430_v10  ;;  %v11901_v3 = vmov 1.0|1.0  }
 0x10e   : > { %7488 = vmatpush1.bf16.msk.msra.mxu0 %vm7487_vm8, %v11726_v13  ;;  %vm7743_vm11 = vmpackc.low %vm1746_vm4, %vm1744_vm3  ;;  %vm681_vm3 = vcmp.eq.s32.totalorder %v10160_v62, %v8427_v9  ;;  %vm678_vm8 = vcmp.eq.s32.totalorder %v10157_v61, %v8433_v11  ;;  %v11730_v9 = vmov 0.0  }
 0x10f   : > { %7744 = vmatpush1.bf16.msk.msra.mxu1 %vm7743_vm11, %v11726_v13  ;;  %vm7489_vm14 = vmpackc.low %vm677_vm7, %vm675_vm6  ;;  %vm1755_vm6 = vcmp.eq.s32.totalorder %v10160_v62, %v8430_v10  ;;  %vm1752_vm11 = vcmp.eq.s32.totalorder %v10157_v61, %v8436_v12  ;;  %v8325_v10 = vld [vmem:[%s11567_s0] sm:$0x3] }
 0x110   : > { %7490 = vmatprep.subr.msk.bf16.mxu0 %vm7489_vm14, %v11726_v13  ;;  %vm7745_vm1 = vmpackc.low %vm1751_vm10, %vm1749_vm9  ;;  %vm680_vm9 = vcmp.eq.s32.totalorder %v10160_v62, %v8433_v11  ;;  %v2716_v11 = vadd.s32 16, %v8325_v10 }
 0x111   : > { %7746 = vmatprep.subr.msk.bf16.mxu1 %vm7745_vm1, %v11726_v13  ;;  %vm7491_vm4 = vmpackc.low %vm676_vm13, %vm674_vm12  ;;  %vm1754_vm12 = vcmp.eq.s32.totalorder %v10160_v62, %v8436_v12 }
 0x112   : > { %7492 = vmatpush1.bf16.msk.msra.mxu0 %vm7491_vm4, %v11726_v13  ;;  %vm7747_vm7 = vmpackc.low %vm1750_vm0, %vm1748_vm15  ;;  %v10209_v12 = vrot.slane %v2716_v11, %v8415_v5  ;;  %vm2558_vm0 = vcmask 1043456   ;;  %v10221_v10 = vrot.slane %v2716_v11, %v8418_v6  ;;  %v11900_v5 = vmov 0.0   ;;  %v11904_v11 = vld [vmem:[#allocation6_spill] sm:$0xff] }
 0x113   : > { %7748 = vmatpush1.bf16.msk.msra.mxu1 %vm7747_vm7, %v11726_v13  ;;  %vm7493_vm10 = vmpackc.low %vm681_vm3, %vm679_vm2  ;;  %vm2554_vm3 = vcmask 31744  }
 0x114   : > { %7494 = vmatprep.subr.msk.bf16.mxu0 %vm7493_vm10, %v11726_v13  ;;  %vm7749_vm13 = vmpackc.low %vm1755_vm6, %vm1753_vm5  ;;  %vm2726_vm1 = vcmp.eq.s32.totalorder %v8409_v2, %v10209_v12  ;;  %vm2728_vm2 = vcmp.eq.s32.totalorder %v8412_v4, %v10209_v12  ;;  %vm2725_vm5 = vcmp.eq.s32.totalorder %v8409_v2, %v10221_v10  ;;  %vm2727_vm6 = vcmp.eq.s32.totalorder %v8412_v4, %v10221_v10 }
 0x115   : > { %7750 = vmatprep.subr.msk.bf16.mxu1 %vm7749_vm13, %v11726_v13  ;;  %vm7495_vm14 = vmpackc.low %vm680_vm9, %vm678_vm8  ;;  %vm2730_vm7 = vcmp.eq.s32.totalorder %v8421_v7, %v10209_v12  ;;  %vm2732_vm8 = vcmp.eq.s32.totalorder %v8424_v8, %v10209_v12  ;;  %vm2734_vm13 = vcmp.eq.s32.totalorder %v8460_v14, %v10209_v12 }
 0x116   : > { %7496 = vmatpush1.bf16.msk.msra.mxu0 %vm7495_vm14, %v11726_v13  ;;  %vm7751_vm15 = vmpackc.low %vm1754_vm12, %vm1752_vm11  ;;  %vm2729_vm11 = vcmp.eq.s32.totalorder %v8421_v7, %v10221_v10  ;;  %vm2731_vm12 = vcmp.eq.s32.totalorder %v8424_v8, %v10221_v10  ;;  %vm2736_vm14 = vcmp.eq.s32.totalorder %v8463_v15, %v10209_v12 }
 0x117   : > { %7752 = vmatpush1.bf16.msk.msra.mxu1 %vm7751_vm15, %v11726_v13  ;;  %vm7753_vm4 = vmpackc.low %vm2728_vm2, %vm2726_vm1  ;;  %vm2733_vm2 = vcmp.eq.s32.totalorder %v8460_v14, %v10221_v10 }
 0x118   : > { %vm7755_vm9 = vmpackc.low %vm2727_vm6, %vm2725_vm5  ;;  %vm2738_vm5 = vcmp.eq.s32.totalorder %v8486_v16, %v10209_v12  ;;  %vm2740_vm6 = vcmp.eq.s32.totalorder %v8489_v17, %v10209_v12 }
 0x119   : > { %1484 = vmatmul.mubr.f32.vlgmr.msra.gmra.mrb[0].mxu0 %v9770_v63  ;;  %vm7757_vm10 = vmpackc.low %vm2732_vm8, %vm2730_vm7 }
 0x11a   : > { %2546 = vmatmul.mubr.f32.vlgmr.msra.gmra.mrb[0].mxu1 %v9770_v63  ;;  %3852 = vmatprep.mubr.f32.mxu0 %v11730_v9  ;;  %vm7759_vm15 = vmpackc.low %vm2731_vm12, %vm2729_vm11  ;;  %vm2742_vm11 = vcmp.eq.s32.totalorder %v8512_v18, %v10209_v12  ;;  %vm2744_vm12 = vcmp.eq.s32.totalorder %v8515_v19, %v10209_v12 }
 0x11b   : > { %2629 = vmatprep.mubr.f32.mxu1 %v11730_v9  ;;  %v6199_v9 = vld [vmem:[%s11568_s1 + $0x8] sm:$0xff]  ;;  %vm7761_vm1 = vmpackc.low %vm2736_vm14, %vm2734_vm13 }
 0x11c   : > { %vm7765_vm8 = vmpackc.low %vm2740_vm6, %vm2738_vm5 }
 0x11d   : > { %vm7769_vm14 = vmpackc.low %vm2744_vm12, %vm2742_vm11 }
 0x1ec   : > { %v1485_v62 = vpop.f32.mrb[0].mxu0 }
 0x1ed   : > { %v2547_v13 = vpop.f32.mrb[0].mxu1  ;;  %v1487_v61 = vpop.f32.mrb[1].mxu0 }
 0x1ee   : > { %v2549_v63 = vpop.f32.mrb[1].mxu1 }
 0x1ef   : > { %6200 = vmatprep.subr.msk.mxu1 %vm2558_vm0, %v2549_v63  ;;  %v11905_v63 = vld [vmem:[#allocation7_spill] sm:$0xff] }
 0x1f0   : > { %6201 = vmatpush1.msk.msra.mxu1 %vm2558_vm0, %v2547_v13  ;;  %v1490_v13 = vld [vmem:[%s11568_s1] sm:$0xff] }
 0x1f1   : > { %6202 = vmatmul.mubr.msk.f32.vlgmr.msra.gmra.mrb[2].mxu1 %vm2554_vm3, %v6199_v9  ;;  %6203 = vmatprep.subr.msk.mxu1 %vm2558_vm0, %v1487_v61  ;;  %v11902_v61 = vld [vmem:[#allocation4_spill] sm:$0xff]  ;;  %v11903_v9 = vld [vmem:[#allocation5_spill] sm:$0xff] }
 0x1f2   : > { %6204 = vmatpush1.msk.msra.mxu1 %vm2558_vm0, %v1485_v62  ;;  %2709 = vmatprep.mubr.f32.mxu1 %v11900_v5  ;;  %v8326_v62 = vld [vmem:[%s8657_s24] sm:$0xff]  ;;  %v11908_v5 = vld [vmem:[#allocation10_spill] sm:$0xff] }
 0x1f3   : > { %7754 = vmatprep.subr.msk.bf16.mxu1 %vm7753_vm4, %v11901_v3  ;;  %vm2735_vm4 = vcmp.eq.s32.totalorder %v8463_v15, %v10221_v10 }
 0x1f4   : > { %vm7763_vm7 = vmpackc.low %vm2735_vm4, %vm2733_vm2  ;;  %vm2746_vm2 = vcmp.eq.s32.totalorder %v8538_v20, %v10209_v12  ;;  %vm2748_vm4 = vcmp.eq.s32.totalorder %v8541_v21, %v10209_v12 }
 0x1f5   : > { %vm7773_vm6 = vmpackc.low %vm2748_vm4, %vm2746_vm2 }
 0x1f9   : > { %6205 = vmatmul.mubr.msk.f32.vlgmr.msra.gmra.mrb[2].mxu1 %vm2554_vm3, %v1490_v13  ;;  %v11906_v13 = vld [vmem:[#allocation8_spill] sm:$0xff] }
 0x1fa   : > { %7756 = vmatpush1.bf16.msk.msra.mxu1 %vm7755_vm9, %v11901_v3  ;;  %3557 = vmatprep.mubr.f32.mxu1 %v8700_v33  ;;  %vm2737_vm9 = vcmp.eq.s32.totalorder %v8486_v16, %v10221_v10 }
 0x1fb   : > { %7758 = vmatprep.subr.msk.bf16.mxu1 %vm7757_vm10, %v11901_v3  ;;  %vm2739_vm10 = vcmp.eq.s32.totalorder %v8489_v17, %v10221_v10 }
 0x1fc   : > { %vm7767_vm13 = vmpackc.low %vm2739_vm10, %vm2737_vm9  ;;  %vm2750_vm9 = vcmp.eq.s32.totalorder %v8564_v22, %v10209_v12  ;;  %vm2752_vm10 = vcmp.eq.s32.totalorder %v8567_v23, %v10209_v12 }
 0x1fd   : > { %vm7777_vm12 = vmpackc.low %vm2752_vm10, %vm2750_vm9 }
 0x1fe   : > { %7760 = vmatpush1.bf16.msk.msra.mxu1 %vm7759_vm15, %v11901_v3  ;;  %vm2741_vm15 = vcmp.eq.s32.totalorder %v8512_v18, %v10221_v10 }
 0x1ff   : > { %7762 = vmatprep.subr.msk.bf16.mxu1 %vm7761_vm1, %v11901_v3  ;;  %vm2743_vm1 = vcmp.eq.s32.totalorder %v8515_v19, %v10221_v10 }
 0x200   : > { %vm7771_vm5 = vmpackc.low %vm2743_vm1, %vm2741_vm15  ;;  %vm2754_vm15 = vcmp.eq.s32.totalorder %v8591_v24, %v10209_v12  ;;  %vm2756_vm1 = vcmp.eq.s32.totalorder %v8594_v25, %v10209_v12 }
 0x201   : > { %vm7781_vm4 = vmpackc.low %vm2756_vm1, %vm2754_vm15 }
 0x202   : > { %7764 = vmatpush1.bf16.msk.msra.mxu1 %vm7763_vm7, %v11901_v3  ;;  %vm2745_vm7 = vcmp.eq.s32.totalorder %v8538_v20, %v10221_v10 }
 0x203   : > { %7766 = vmatprep.subr.msk.bf16.mxu1 %vm7765_vm8, %v11901_v3  ;;  %vm2747_vm8 = vcmp.eq.s32.totalorder %v8541_v21, %v10221_v10 }
 0x204   : > { %vm7775_vm11 = vmpackc.low %vm2747_vm8, %vm2745_vm7  ;;  %vm2758_vm7 = vcmp.eq.s32.totalorder %v8622_v26, %v10209_v12  ;;  %vm2760_vm8 = vcmp.eq.s32.totalorder %v8625_v27, %v10209_v12 }
 0x205   : > { %vm7785_vm10 = vmpackc.low %vm2760_vm8, %vm2758_vm7 }
 0x206   : > { %7768 = vmatpush1.bf16.msk.msra.mxu1 %vm7767_vm13, %v11901_v3  ;;  %vm2749_vm13 = vcmp.eq.s32.totalorder %v8564_v22, %v10221_v10 }
 0x207   : > { %7770 = vmatprep.subr.msk.bf16.mxu1 %vm7769_vm14, %v11901_v3  ;;  %vm2751_vm14 = vcmp.eq.s32.totalorder %v8567_v23, %v10221_v10 }
 0x208   : > { %vm7779_vm2 = vmpackc.low %vm2751_vm14, %vm2749_vm13  ;;  %vm2762_vm13 = vcmp.eq.s32.totalorder %v8649_v28, %v10209_v12  ;;  %vm2764_vm14 = vcmp.eq.s32.totalorder %v8652_v29, %v10209_v12 }
 0x209   : > { %vm7789_vm1 = vmpackc.low %vm2764_vm14, %vm2762_vm13 }
 0x20a   : > { %7772 = vmatpush1.bf16.msk.msra.mxu1 %vm7771_vm5, %v11901_v3  ;;  %vm2753_vm5 = vcmp.eq.s32.totalorder %v8591_v24, %v10221_v10 }
 0x20b   : > { %7774 = vmatprep.subr.msk.bf16.mxu1 %vm7773_vm6, %v11901_v3  ;;  %vm2755_vm6 = vcmp.eq.s32.totalorder %v8594_v25, %v10221_v10 }
 0x20c   : > { %vm7783_vm9 = vmpackc.low %vm2755_vm6, %vm2753_vm5  ;;  %vm2766_vm5 = vcmp.eq.s32.totalorder %v8683_v31, %v10209_v12  ;;  %vm2768_vm6 = vcmp.eq.s32.totalorder %v8686_v32, %v10209_v12 }
 0x20d   : > { %vm7793_vm8 = vmpackc.low %vm2768_vm6, %vm2766_vm5 }
 0x20e   : > { %7776 = vmatpush1.bf16.msk.msra.mxu1 %vm7775_vm11, %v11901_v3  ;;  %vm2757_vm11 = vcmp.eq.s32.totalorder %v8622_v26, %v10221_v10 }
 0x20f   : > { %7778 = vmatprep.subr.msk.bf16.mxu1 %vm7777_vm12, %v11901_v3  ;;  %vm2759_vm12 = vcmp.eq.s32.totalorder %v8625_v27, %v10221_v10 }
 0x210   : > { %vm7787_vm15 = vmpackc.low %vm2759_vm12, %vm2757_vm11  ;;  %vm2770_vm11 = vcmp.eq.s32.totalorder %v8713_v34, %v10209_v12  ;;  %vm2772_vm12 = vcmp.eq.s32.totalorder %v8716_v35, %v10209_v12 }
 0x211   : > { %vm7797_vm14 = vmpackc.low %vm2772_vm12, %vm2770_vm11 }
 0x212   : > { %7780 = vmatpush1.bf16.msk.msra.mxu1 %vm7779_vm2, %v11901_v3  ;;  %vm2761_vm2 = vcmp.eq.s32.totalorder %v8649_v28, %v10221_v10 }
 0x213   : > { %7782 = vmatprep.subr.msk.bf16.mxu1 %vm7781_vm4, %v11901_v3  ;;  %vm2763_vm4 = vcmp.eq.s32.totalorder %v8652_v29, %v10221_v10 }
 0x214   : > { %vm7791_vm7 = vmpackc.low %vm2763_vm4, %vm2761_vm2  ;;  %vm2774_vm2 = vcmp.eq.s32.totalorder %v8750_v36, %v10209_v12  ;;  %vm2776_vm4 = vcmp.eq.s32.totalorder %v8753_v37, %v10209_v12 }
 0x215   : > { %vm7801_vm6 = vmpackc.low %vm2776_vm4, %vm2774_vm2 }
 0x216   : > { %7784 = vmatpush1.bf16.msk.msra.mxu1 %vm7783_vm9, %v11901_v3  ;;  %vm2765_vm9 = vcmp.eq.s32.totalorder %v8683_v31, %v10221_v10 }
 0x217   : > { %7786 = vmatprep.subr.msk.bf16.mxu1 %vm7785_vm10, %v11901_v3  ;;  %vm2767_vm10 = vcmp.eq.s32.totalorder %v8686_v32, %v10221_v10 }
 0x218   : > { %vm7795_vm13 = vmpackc.low %vm2767_vm10, %vm2765_vm9  ;;  %vm2778_vm9 = vcmp.eq.s32.totalorder %v8776_v38, %v10209_v12  ;;  %vm2780_vm10 = vcmp.eq.s32.totalorder %v8779_v39, %v10209_v12 }
 0x219   : > { %vm7805_vm12 = vmpackc.low %vm2780_vm10, %vm2778_vm9 }
 0x21a   : > { %7788 = vmatpush1.bf16.msk.msra.mxu1 %vm7787_vm15, %v11901_v3  ;;  %vm2769_vm15 = vcmp.eq.s32.totalorder %v8713_v34, %v10221_v10 }
 0x21b   : > { %7790 = vmatprep.subr.msk.bf16.mxu1 %vm7789_vm1, %v11901_v3  ;;  %vm2771_vm1 = vcmp.eq.s32.totalorder %v8716_v35, %v10221_v10 }
 0x21c   : > { %vm7799_vm5 = vmpackc.low %vm2771_vm1, %vm2769_vm15  ;;  %vm2782_vm15 = vcmp.eq.s32.totalorder %v8802_v40, %v10209_v12  ;;  %vm2784_vm1 = vcmp.eq.s32.totalorder %v8805_v41, %v10209_v12 }
 0x21d   : > { %vm7809_vm4 = vmpackc.low %vm2784_vm1, %vm2782_vm15 }
 0x21e   : > { %7792 = vmatpush1.bf16.msk.msra.mxu1 %vm7791_vm7, %v11901_v3  ;;  %vm2773_vm7 = vcmp.eq.s32.totalorder %v8750_v36, %v10221_v10 }
 0x21f   : > { %7794 = vmatprep.subr.msk.bf16.mxu1 %vm7793_vm8, %v11901_v3  ;;  %vm2775_vm8 = vcmp.eq.s32.totalorder %v8753_v37, %v10221_v10 }
 0x220   : > { %vm7803_vm11 = vmpackc.low %vm2775_vm8, %vm2773_vm7  ;;  %vm2786_vm7 = vcmp.eq.s32.totalorder %v8828_v42, %v10209_v12  ;;  %vm2788_vm8 = vcmp.eq.s32.totalorder %v8831_v43, %v10209_v12 }
 0x221   : > { %vm7813_vm10 = vmpackc.low %vm2788_vm8, %vm2786_vm7 }
 0x222   : > { %7796 = vmatpush1.bf16.msk.msra.mxu1 %vm7795_vm13, %v11901_v3  ;;  %vm2777_vm13 = vcmp.eq.s32.totalorder %v8776_v38, %v10221_v10 }
 0x223   : > { %7798 = vmatprep.subr.msk.bf16.mxu1 %vm7797_vm14, %v11901_v3  ;;  %vm2779_vm14 = vcmp.eq.s32.totalorder %v8779_v39, %v10221_v10 }
 0x224   : > { %vm7807_vm2 = vmpackc.low %vm2779_vm14, %vm2777_vm13  ;;  %vm2790_vm13 = vcmp.eq.s32.totalorder %v8854_v44, %v10209_v12  ;;  %vm2792_vm14 = vcmp.eq.s32.totalorder %v8857_v45, %v10209_v12 }
 0x225   : > { %vm7817_vm1 = vmpackc.low %vm2792_vm14, %vm2790_vm13 }
 0x226   : > { %7800 = vmatpush1.bf16.msk.msra.mxu1 %vm7799_vm5, %v11901_v3  ;;  %vm2781_vm5 = vcmp.eq.s32.totalorder %v8802_v40, %v10221_v10 }
 0x227   : > { %7802 = vmatprep.subr.msk.bf16.mxu1 %vm7801_vm6, %v11901_v3  ;;  %vm2783_vm6 = vcmp.eq.s32.totalorder %v8805_v41, %v10221_v10 }
 0x228   : > { %vm7811_vm9 = vmpackc.low %vm2783_vm6, %vm2781_vm5  ;;  %vm2794_vm5 = vcmp.eq.s32.totalorder %v8880_v46, %v10209_v12  ;;  %vm2796_vm6 = vcmp.eq.s32.totalorder %v8883_v47, %v10209_v12 }
 0x229   : > { %vm7821_vm8 = vmpackc.low %vm2796_vm6, %vm2794_vm5 }
 0x22a   : > { %7804 = vmatpush1.bf16.msk.msra.mxu1 %vm7803_vm11, %v11901_v3  ;;  %vm2785_vm11 = vcmp.eq.s32.totalorder %v8828_v42, %v10221_v10 }
 0x22b   : > { %7806 = vmatprep.subr.msk.bf16.mxu1 %vm7805_vm12, %v11901_v3  ;;  %vm2787_vm12 = vcmp.eq.s32.totalorder %v8831_v43, %v10221_v10 }
 0x22c   : > { %vm7815_vm15 = vmpackc.low %vm2787_vm12, %vm2785_vm11  ;;  %vm2798_vm11 = vcmp.eq.s32.totalorder %v8906_v48, %v10209_v12  ;;  %vm2800_vm12 = vcmp.eq.s32.totalorder %v8909_v49, %v10209_v12 }
 0x22d   : > { %vm7825_vm14 = vmpackc.low %vm2800_vm12, %vm2798_vm11 }
 0x22e   : > { %7808 = vmatpush1.bf16.msk.msra.mxu1 %vm7807_vm2, %v11901_v3  ;;  %vm2789_vm2 = vcmp.eq.s32.totalorder %v8854_v44, %v10221_v10 }
 0x22f   : > { %7810 = vmatprep.subr.msk.bf16.mxu1 %vm7809_vm4, %v11901_v3  ;;  %vm2791_vm4 = vcmp.eq.s32.totalorder %v8857_v45, %v10221_v10 }
 0x230   : > { %vm7819_vm7 = vmpackc.low %vm2791_vm4, %vm2789_vm2  ;;  %vm2802_vm2 = vcmp.eq.s32.totalorder %v8940_v50, %v10209_v12  ;;  %vm2804_vm4 = vcmp.eq.s32.totalorder %v8943_v51, %v10209_v12 }
 0x231   : > { %vm7829_vm6 = vmpackc.low %vm2804_vm4, %vm2802_vm2 }
 0x232   : > { %7812 = vmatpush1.bf16.msk.msra.mxu1 %vm7811_vm9, %v11901_v3  ;;  %vm2793_vm9 = vcmp.eq.s32.totalorder %v8880_v46, %v10221_v10 }
 0x233   : > { %7814 = vmatprep.subr.msk.bf16.mxu1 %vm7813_vm10, %v11901_v3  ;;  %vm2795_vm10 = vcmp.eq.s32.totalorder %v8883_v47, %v10221_v10 }
 0x234   : > { %vm7823_vm13 = vmpackc.low %vm2795_vm10, %vm2793_vm9  ;;  %vm2806_vm9 = vcmp.eq.s32.totalorder %v8964_v53, %v10209_v12  ;;  %vm2808_vm10 = vcmp.eq.s32.totalorder %v8972_v54, %v10209_v12 }
 0x235   : > { %vm7833_vm12 = vmpackc.low %vm2808_vm10, %vm2806_vm9 }
 0x236   : > { %7816 = vmatpush1.bf16.msk.msra.mxu1 %vm7815_vm15, %v11901_v3  ;;  %vm2797_vm15 = vcmp.eq.s32.totalorder %v8906_v48, %v10221_v10 }
 0x237   : > { %7818 = vmatprep.subr.msk.bf16.mxu1 %vm7817_vm1, %v11901_v3  ;;  %vm2799_vm1 = vcmp.eq.s32.totalorder %v8909_v49, %v10221_v10 }
 0x238   : > { %vm7827_vm5 = vmpackc.low %vm2799_vm1, %vm2797_vm15  ;;  %vm2810_vm15 = vcmp.eq.s32.totalorder %v8999_v56, %v10209_v12  ;;  %vm2812_vm1 = vcmp.eq.s32.totalorder %v9002_v57, %v10209_v12 }
 0x239   : > { %3558 = vmatmul.mubr.f32.vlgmr.msra.gmra.mrb[4].mxu1 %v8326_v62  ;;  %vm7837_vm4 = vmpackc.low %vm2812_vm1, %vm2810_vm15  ;;  %v11907_v62 = vld [vmem:[#allocation9_spill] sm:$0xff] }
 0x23a   : > { %7820 = vmatpush1.bf16.msk.msra.mxu1 %vm7819_vm7, %v11901_v3  ;;  %3628 = vmatprep.mubr.f32.mxu1 %v8976_v55  ;;  %vm2801_vm7 = vcmp.eq.s32.totalorder %v8940_v50, %v10221_v10 }
 0x23b   : > { %7822 = vmatprep.subr.msk.bf16.mxu1 %vm7821_vm8, %v11901_v3  ;;  %vm2803_vm8 = vcmp.eq.s32.totalorder %v8943_v51, %v10221_v10 }
 0x23c   : > { %vm7831_vm11 = vmpackc.low %vm2803_vm8, %vm2801_vm7  ;;  %vm2814_vm7 = vcmp.eq.s32.totalorder %v9033_v58, %v10209_v12  ;;  %vm2816_vm8 = vcmp.eq.s32.totalorder %v9036_v59, %v10209_v12 }
 0x23d   : > { %vm7841_vm10 = vmpackc.low %vm2816_vm8, %vm2814_vm7 }
 0x23e   : > { %7824 = vmatpush1.bf16.msk.msra.mxu1 %vm7823_vm13, %v11901_v3  ;;  %vm2805_vm13 = vcmp.eq.s32.totalorder %v8964_v53, %v10221_v10 }
 0x23f   : > { %7826 = vmatprep.subr.msk.bf16.mxu1 %vm7825_vm14, %v11901_v3  ;;  %vm2807_vm14 = vcmp.eq.s32.totalorder %v8972_v54, %v10221_v10 }
 0x240   : > { %vm7835_vm2 = vmpackc.low %vm2807_vm14, %vm2805_vm13  ;;  %vm2818_vm13 = vcmp.eq.s32.totalorder %v11902_v61, %v10209_v12  ;;  %vm2820_vm14 = vcmp.eq.s32.totalorder %v11903_v9, %v10209_v12 }
 0x241   : > { %vm7845_vm1 = vmpackc.low %vm2820_vm14, %vm2818_vm13 }
 0x242   : > { %7828 = vmatpush1.bf16.msk.msra.mxu1 %vm7827_vm5, %v11901_v3  ;;  %vm2809_vm5 = vcmp.eq.s32.totalorder %v8999_v56, %v10221_v10 }
 0x243   : > { %7830 = vmatprep.subr.msk.bf16.mxu1 %vm7829_vm6, %v11901_v3  ;;  %vm2811_vm6 = vcmp.eq.s32.totalorder %v9002_v57, %v10221_v10 }
 0x244   : > { %vm7839_vm9 = vmpackc.low %vm2811_vm6, %vm2809_vm5  ;;  %vm2822_vm5 = vcmp.eq.s32.totalorder %v11904_v11, %v10209_v12  ;;  %vm2824_vm6 = vcmp.eq.s32.totalorder %v11905_v63, %v10209_v12 }
 0x245   : > { %vm7849_vm8 = vmpackc.low %vm2824_vm6, %vm2822_vm5 }
 0x246   : > { %7832 = vmatpush1.bf16.msk.msra.mxu1 %vm7831_vm11, %v11901_v3  ;;  %vm2813_vm11 = vcmp.eq.s32.totalorder %v9033_v58, %v10221_v10 }
 0x247   : > { %7834 = vmatprep.subr.msk.bf16.mxu1 %vm7833_vm12, %v11901_v3  ;;  %vm2815_vm12 = vcmp.eq.s32.totalorder %v9036_v59, %v10221_v10 }
 0x248   : > { %vm7843_vm15 = vmpackc.low %vm2815_vm12, %vm2813_vm11  ;;  %vm2826_vm11 = vcmp.eq.s32.totalorder %v11906_v13, %v10209_v12  ;;  %vm2828_vm12 = vcmp.eq.s32.totalorder %v11907_v62, %v10209_v12 }
 0x249   : > { %vm7853_vm14 = vmpackc.low %vm2828_vm12, %vm2826_vm11 }
 0x24a   : > { %7836 = vmatpush1.bf16.msk.msra.mxu1 %vm7835_vm2, %v11901_v3  ;;  %vm2817_vm2 = vcmp.eq.s32.totalorder %v11902_v61, %v10221_v10 }
 0x24b   : > { %7838 = vmatprep.subr.msk.bf16.mxu1 %vm7837_vm4, %v11901_v3  ;;  %vm2819_vm4 = vcmp.eq.s32.totalorder %v11903_v9, %v10221_v10  ;;  %v11926_v9 = vld [vmem:[#allocation26_spill] sm:$0xff] }
 0x24c   : > { %vm7847_vm7 = vmpackc.low %vm2819_vm4, %vm2817_vm2  ;;  %vm2830_vm2 = vcmp.eq.s32.totalorder %v11908_v5, %v10209_v12 }
 0x24e   : > { %7840 = vmatpush1.bf16.msk.msra.mxu1 %vm7839_vm9, %v11901_v3  ;;  %vm2821_vm9 = vcmp.eq.s32.totalorder %v11904_v11, %v10221_v10  ;;  %v11925_v11 = vld [vmem:[#allocation28_spill] sm:$0xff] }
 0x24f   : > { %7842 = vmatprep.subr.msk.bf16.mxu1 %vm7841_vm10, %v11901_v3  ;;  %vm2823_vm10 = vcmp.eq.s32.totalorder %v11905_v63, %v10221_v10  ;;  %v11909_v63 = vld [vmem:[#allocation11_spill] sm:$0xff] }
 0x250   : > { %vm7851_vm13 = vmpackc.low %vm2823_vm10, %vm2821_vm9  ;;  %vm2832_vm4 = vcmp.eq.s32.totalorder %v11909_v63, %v10209_v12 }
 0x251   : > { %vm7857_vm6 = vmpackc.low %vm2832_vm4, %vm2830_vm2 }
 0x252   : > { %7844 = vmatpush1.bf16.msk.msra.mxu1 %vm7843_vm15, %v11901_v3  ;;  %vm2825_vm15 = vcmp.eq.s32.totalorder %v11906_v13, %v10221_v10  ;;  %v11911_v13 = vld [vmem:[#allocation13_spill] sm:$0xff] }
 0x253   : > { %7846 = vmatprep.subr.msk.bf16.mxu1 %vm7845_vm1, %v11901_v3  ;;  %vm2827_vm1 = vcmp.eq.s32.totalorder %v11907_v62, %v10221_v10  ;;  %v11910_v62 = vld [vmem:[#allocation12_spill] sm:$0xff]  ;;  %vm2836_vm10 = vcmp.eq.s32.totalorder %v11911_v13, %v10209_v12 }
 0x254   : > { %vm7855_vm5 = vmpackc.low %vm2827_vm1, %vm2825_vm15  ;;  %vm2834_vm9 = vcmp.eq.s32.totalorder %v11910_v62, %v10209_v12 }
 0x255   : > { %vm7861_vm12 = vmpackc.low %vm2836_vm10, %vm2834_vm9 }
 0x256   : > { %7848 = vmatpush1.bf16.msk.msra.mxu1 %vm7847_vm7, %v11901_v3  ;;  %vm2829_vm7 = vcmp.eq.s32.totalorder %v11908_v5, %v10221_v10  ;;  %v11913_v5 = vld [vmem:[#allocation15_spill] sm:$0xff] }
 0x257   : > { %7850 = vmatprep.subr.msk.bf16.mxu1 %vm7849_vm8, %v11901_v3  ;;  %vm2831_vm8 = vcmp.eq.s32.totalorder %v11909_v63, %v10221_v10  ;;  %v11912_v63 = vld [vmem:[#allocation14_spill] sm:$0xff]  ;;  %vm2840_vm1 = vcmp.eq.s32.totalorder %v11913_v5, %v10209_v12 }
 0x258   : > { %vm7859_vm11 = vmpackc.low %vm2831_vm8, %vm2829_vm7  ;;  %vm2838_vm15 = vcmp.eq.s32.totalorder %v11912_v63, %v10209_v12 }
 0x259   : > { %vm7865_vm4 = vmpackc.low %vm2840_vm1, %vm2838_vm15 }
 0x25a   : > { %7852 = vmatpush1.bf16.msk.msra.mxu1 %vm7851_vm13, %v11901_v3  ;;  %vm2833_vm13 = vcmp.eq.s32.totalorder %v11910_v62, %v10221_v10  ;;  %v11915_v62 = vld [vmem:[#allocation17_spill] sm:$0xff] }
 0x25b   : > { %7854 = vmatprep.subr.msk.bf16.mxu1 %vm7853_vm14, %v11901_v3  ;;  %vm2835_vm14 = vcmp.eq.s32.totalorder %v11911_v13, %v10221_v10  ;;  %v11914_v13 = vld [vmem:[#allocation16_spill] sm:$0xff]  ;;  %vm2844_vm8 = vcmp.eq.s32.totalorder %v11915_v62, %v10209_v12 }
 0x25c   : > { %vm7863_vm2 = vmpackc.low %vm2835_vm14, %vm2833_vm13  ;;  %vm2842_vm7 = vcmp.eq.s32.totalorder %v11914_v13, %v10209_v12 }
 0x25d   : > { %vm7869_vm10 = vmpackc.low %vm2844_vm8, %vm2842_vm7 }
 0x25e   : > { %7856 = vmatpush1.bf16.msk.msra.mxu1 %vm7855_vm5, %v11901_v3  ;;  %vm2837_vm5 = vcmp.eq.s32.totalorder %v11912_v63, %v10221_v10  ;;  %v11917_v63 = vld [vmem:[#allocation19_spill] sm:$0xff] }
 0x25f   : > { %7858 = vmatprep.subr.msk.bf16.mxu1 %vm7857_vm6, %v11901_v3  ;;  %vm2839_vm6 = vcmp.eq.s32.totalorder %v11913_v5, %v10221_v10  ;;  %v11916_v5 = vld [vmem:[#allocation18_spill] sm:$0xff]  ;;  %vm2848_vm14 = vcmp.eq.s32.totalorder %v11917_v63, %v10209_v12 }
 0x260   : > { %vm7867_vm9 = vmpackc.low %vm2839_vm6, %vm2837_vm5  ;;  %vm2846_vm13 = vcmp.eq.s32.totalorder %v11916_v5, %v10209_v12 }
 0x261   : > { %vm7873_vm1 = vmpackc.low %vm2848_vm14, %vm2846_vm13 }
 0x262   : > { %7860 = vmatpush1.bf16.msk.msra.mxu1 %vm7859_vm11, %v11901_v3  ;;  %vm2841_vm11 = vcmp.eq.s32.totalorder %v11914_v13, %v10221_v10  ;;  %v11919_v13 = vld [vmem:[#allocation21_spill] sm:$0xff] }
 0x263   : > { %7862 = vmatprep.subr.msk.bf16.mxu1 %vm7861_vm12, %v11901_v3  ;;  %vm2843_vm12 = vcmp.eq.s32.totalorder %v11915_v62, %v10221_v10  ;;  %v11918_v62 = vld [vmem:[#allocation20_spill] sm:$0xff]  ;;  %vm2852_vm6 = vcmp.eq.s32.totalorder %v11919_v13, %v10209_v12 }
 0x264   : > { %vm7871_vm15 = vmpackc.low %vm2843_vm12, %vm2841_vm11  ;;  %vm2850_vm5 = vcmp.eq.s32.totalorder %v11918_v62, %v10209_v12 }
 0x265   : > { %vm7877_vm8 = vmpackc.low %vm2852_vm6, %vm2850_vm5 }
 0x266   : > { %7864 = vmatpush1.bf16.msk.msra.mxu1 %vm7863_vm2, %v11901_v3  ;;  %vm2845_vm2 = vcmp.eq.s32.totalorder %v11916_v5, %v10221_v10  ;;  %v11921_v5 = vld [vmem:[#allocation23_spill] sm:$0xff] }
 0x267   : > { %7866 = vmatprep.subr.msk.bf16.mxu1 %vm7865_vm4, %v11901_v3  ;;  %vm2847_vm4 = vcmp.eq.s32.totalorder %v11917_v63, %v10221_v10  ;;  %v11920_v63 = vld [vmem:[#allocation22_spill] sm:$0xff]  ;;  %vm2856_vm12 = vcmp.eq.s32.totalorder %v11921_v5, %v10209_v12 }
 0x268   : > { %vm7875_vm7 = vmpackc.low %vm2847_vm4, %vm2845_vm2  ;;  %vm2854_vm11 = vcmp.eq.s32.totalorder %v11920_v63, %v10209_v12 }
 0x269   : > { %vm7881_vm14 = vmpackc.low %vm2856_vm12, %vm2854_vm11 }
 0x26a   : > { %7868 = vmatpush1.bf16.msk.msra.mxu1 %vm7867_vm9, %v11901_v3  ;;  %vm2849_vm9 = vcmp.eq.s32.totalorder %v11918_v62, %v10221_v10  ;;  %v11923_v62 = vld [vmem:[#allocation25_spill] sm:$0xff] }
 0x26b   : > { %7870 = vmatprep.subr.msk.bf16.mxu1 %vm7869_vm10, %v11901_v3  ;;  %vm2851_vm10 = vcmp.eq.s32.totalorder %v11919_v13, %v10221_v10  ;;  %v11922_v13 = vld [vmem:[#allocation24_spill] sm:$0xff]  ;;  %vm2860_vm4 = vcmp.eq.s32.totalorder %v11923_v62, %v10209_v12 }
 0x26c   : > { %vm7879_vm13 = vmpackc.low %vm2851_vm10, %vm2849_vm9  ;;  %vm2858_vm2 = vcmp.eq.s32.totalorder %v11922_v13, %v10209_v12  ;;  %vm2864_vm10 = vcmp.eq.s32.totalorder %v11925_v11, %v10209_v12 }
 0x26d   : > { %vm7885_vm6 = vmpackc.low %vm2860_vm4, %vm2858_vm2 }
 0x26e   : > { %7872 = vmatpush1.bf16.msk.msra.mxu1 %vm7871_vm15, %v11901_v3  ;;  %vm2853_vm15 = vcmp.eq.s32.totalorder %v11920_v63, %v10221_v10  ;;  %v8327_v63 = vld [vmem:[%s8657_s24 + $0x8] sm:$0xff] }
 0x26f   : > { %7874 = vmatprep.subr.msk.bf16.mxu1 %vm7873_vm1, %v11901_v3  ;;  %vm2855_vm1 = vcmp.eq.s32.totalorder %v11921_v5, %v10221_v10  ;;  %v11924_v5 = vld [vmem:[#allocation27_spill] sm:$0xff] }
 0x270   : > { %vm7883_vm5 = vmpackc.low %vm2855_vm1, %vm2853_vm15  ;;  %vm2862_vm9 = vcmp.eq.s32.totalorder %v11924_v5, %v10209_v12 }
 0x271   : > { %vm7889_vm12 = vmpackc.low %vm2864_vm10, %vm2862_vm9 }
 0x272   : > { %7876 = vmatpush1.bf16.msk.msra.mxu1 %vm7875_vm7, %v11901_v3  ;;  %vm2857_vm7 = vcmp.eq.s32.totalorder %v11922_v13, %v10221_v10 }
 0x273   : > { %7878 = vmatprep.subr.msk.bf16.mxu1 %vm7877_vm8, %v11901_v3  ;;  %vm2859_vm8 = vcmp.eq.s32.totalorder %v11923_v62, %v10221_v10  ;;  %v11928_v62 = vld [vmem:[#allocation30_spill] sm:$0xff] }
 0x274   : > { %vm7887_vm11 = vmpackc.low %vm2859_vm8, %vm2857_vm7  ;;  %vm2868_vm1 = vcmp.eq.s32.totalorder %v11928_v62, %v10209_v12 }
 0x276   : > { %7880 = vmatpush1.bf16.msk.msra.mxu1 %vm7879_vm13, %v11901_v3  ;;  %vm2861_vm13 = vcmp.eq.s32.totalorder %v11924_v5, %v10221_v10 }
 0x277   : > { %7882 = vmatprep.subr.msk.bf16.mxu1 %vm7881_vm14, %v11901_v3  ;;  %vm2863_vm14 = vcmp.eq.s32.totalorder %v11925_v11, %v10221_v10  ;;  %v11930_v11 = vld [vmem:[#allocation32_spill] sm:$0xff] }
 0x278   : > { %vm7891_vm2 = vmpackc.low %vm2863_vm14, %vm2861_vm13  ;;  %vm2872_vm8 = vcmp.eq.s32.totalorder %v11930_v11, %v10209_v12 }
 0x279   : > { %3629 = vmatmul.mubr.f32.vlgmr.msra.gmra.mrb[4].mxu1 %v8327_v63  ;;  %v11927_v63 = vld [vmem:[#allocation29_spill] sm:$0xff] }
 0x27a   : > { %7884 = vmatpush1.bf16.msk.msra.mxu1 %vm7883_vm5, %v11901_v3  ;;  %3699 = vmatprep.mubr.f32.mxu1 %v11926_v9  ;;  %vm2866_vm15 = vcmp.eq.s32.totalorder %v11927_v63, %v10209_v12  ;;  %vm2865_vm5 = vcmp.eq.s32.totalorder %v11927_v63, %v10221_v10  ;;  %v11929_v9 = vld [vmem:[#allocation31_spill] sm:$0xff]  ;;  %v11932_v63 = vld [vmem:[#allocation34_spill] sm:$0xff] }
 0x27b   : > { %7886 = vmatprep.subr.msk.bf16.mxu1 %vm7885_vm6, %v11901_v3  ;;  %vm7893_vm4 = vmpackc.low %vm2868_vm1, %vm2866_vm15  ;;  %vm2867_vm6 = vcmp.eq.s32.totalorder %v11928_v62, %v10221_v10  ;;  %vm2870_vm7 = vcmp.eq.s32.totalorder %v11929_v9, %v10209_v12  ;;  %v11931_v62 = vld [vmem:[#allocation33_spill] sm:$0xff]  ;;  %vm2876_vm14 = vcmp.eq.s32.totalorder %v11932_v63, %v10209_v12 }
 0x27c   : > { %vm7895_vm9 = vmpackc.low %vm2867_vm6, %vm2865_vm5  ;;  %vm2874_vm13 = vcmp.eq.s32.totalorder %v11931_v62, %v10209_v12 }
 0x27d   : > { %vm7897_vm10 = vmpackc.low %vm2872_vm8, %vm2870_vm7 }
 0x27e   : > { %7888 = vmatpush1.bf16.msk.msra.mxu1 %vm7887_vm11, %v11901_v3  ;;  %vm2869_vm11 = vcmp.eq.s32.totalorder %v11929_v9, %v10221_v10  ;;  %vm7901_vm1 = vmpackc.low %vm2876_vm14, %vm2874_vm13  ;;  %v11934_v9 = vld [vmem:[#allocation36_spill] sm:$0xff] }
 0x27f   : > { %7890 = vmatprep.subr.msk.bf16.mxu1 %vm7889_vm12, %v11901_v3  ;;  %vm2871_vm12 = vcmp.eq.s32.totalorder %v11930_v11, %v10221_v10  ;;  %v11933_v11 = vld [vmem:[#allocation35_spill] sm:$0xff]  ;;  %vm2880_vm6 = vcmp.eq.s32.totalorder %v11934_v9, %v10209_v12 }
 0x280   : > { %vm7899_vm15 = vmpackc.low %vm2871_vm12, %vm2869_vm11  ;;  %vm2878_vm5 = vcmp.eq.s32.totalorder %v11933_v11, %v10209_v12 }
 0x281   : > { %vm7905_vm8 = vmpackc.low %vm2880_vm6, %vm2878_vm5 }
 0x282   : > { %7892 = vmatpush1.bf16.msk.msra.mxu1 %vm7891_vm2, %v11901_v3  ;;  %vm2873_vm2 = vcmp.eq.s32.totalorder %v11931_v62, %v10221_v10  ;;  %v11936_v62 = vld [vmem:[#allocation38_spill] sm:$0xff] }
 0x283   : > { %7894 = vmatprep.subr.msk.bf16.mxu1 %vm7893_vm4, %v11901_v3  ;;  %vm2875_vm4 = vcmp.eq.s32.totalorder %v11932_v63, %v10221_v10  ;;  %v11935_v63 = vld [vmem:[#allocation37_spill] sm:$0xff]  ;;  %vm2884_vm12 = vcmp.eq.s32.totalorder %v11936_v62, %v10209_v12 }
 0x284   : > { %vm7903_vm7 = vmpackc.low %vm2875_vm4, %vm2873_vm2  ;;  %vm2882_vm11 = vcmp.eq.s32.totalorder %v11935_v63, %v10209_v12 }
 0x285   : > { %vm7909_vm14 = vmpackc.low %vm2884_vm12, %vm2882_vm11 }
 0x286   : > { %7896 = vmatpush1.bf16.msk.msra.mxu1 %vm7895_vm9, %v11901_v3  ;;  %vm2877_vm9 = vcmp.eq.s32.totalorder %v11933_v11, %v10221_v10  ;;  %v11938_v11 = vld [vmem:[#allocation40_spill] sm:$0xff] }
 0x287   : > { %7898 = vmatprep.subr.msk.bf16.mxu1 %vm7897_vm10, %v11901_v3  ;;  %vm2879_vm10 = vcmp.eq.s32.totalorder %v11934_v9, %v10221_v10  ;;  %v11937_v9 = vld [vmem:[#allocation39_spill] sm:$0xff]  ;;  %vm2888_vm4 = vcmp.eq.s32.totalorder %v11938_v11, %v10209_v12 }
 0x288   : > { %vm7907_vm13 = vmpackc.low %vm2879_vm10, %vm2877_vm9  ;;  %vm2886_vm2 = vcmp.eq.s32.totalorder %v11937_v9, %v10209_v12 }
 0x289   : > { %vm7913_vm6 = vmpackc.low %vm2888_vm4, %vm2886_vm2 }
 0x28a   : > { %7900 = vmatpush1.bf16.msk.msra.mxu1 %vm7899_vm15, %v11901_v3  ;;  %vm2881_vm15 = vcmp.eq.s32.totalorder %v11935_v63, %v10221_v10  ;;  %v11940_v63 = vld [vmem:[#allocation42_spill] sm:$0xff] }
 0x28b   : > { %7902 = vmatprep.subr.msk.bf16.mxu1 %vm7901_vm1, %v11901_v3  ;;  %vm2883_vm1 = vcmp.eq.s32.totalorder %v11936_v62, %v10221_v10  ;;  %v11939_v62 = vld [vmem:[#allocation41_spill] sm:$0xff]  ;;  %vm2892_vm10 = vcmp.eq.s32.totalorder %v11940_v63, %v10209_v12 }
 0x28c   : > { %vm7911_vm5 = vmpackc.low %vm2883_vm1, %vm2881_vm15  ;;  %vm2890_vm9 = vcmp.eq.s32.totalorder %v11939_v62, %v10209_v12 }
 0x28d   : > { %vm7917_vm12 = vmpackc.low %vm2892_vm10, %vm2890_vm9 }
 0x28e   : > { %7904 = vmatpush1.bf16.msk.msra.mxu1 %vm7903_vm7, %v11901_v3  ;;  %vm2885_vm7 = vcmp.eq.s32.totalorder %v11937_v9, %v10221_v10  ;;  %v11942_v9 = vld [vmem:[#allocation44_spill] sm:$0xff] }
 0x28f   : > { %7906 = vmatprep.subr.msk.bf16.mxu1 %vm7905_vm8, %v11901_v3  ;;  %vm2887_vm8 = vcmp.eq.s32.totalorder %v11938_v11, %v10221_v10  ;;  %v11941_v11 = vld [vmem:[#allocation43_spill] sm:$0xff]  ;;  %vm2896_vm1 = vcmp.eq.s32.totalorder %v11942_v9, %v10209_v12 }
 0x290   : > { %vm7915_vm11 = vmpackc.low %vm2887_vm8, %vm2885_vm7  ;;  %vm2894_vm15 = vcmp.eq.s32.totalorder %v11941_v11, %v10209_v12 }
 0x291   : > { %vm7921_vm4 = vmpackc.low %vm2896_vm1, %vm2894_vm15 }
 0x292   : > { %7908 = vmatpush1.bf16.msk.msra.mxu1 %vm7907_vm13, %v11901_v3  ;;  %vm2889_vm13 = vcmp.eq.s32.totalorder %v11939_v62, %v10221_v10  ;;  %v11944_v62 = vld [vmem:[#allocation46_spill] sm:$0xff] }
 0x293   : > { %7910 = vmatprep.subr.msk.bf16.mxu1 %vm7909_vm14, %v11901_v3  ;;  %vm2891_vm14 = vcmp.eq.s32.totalorder %v11940_v63, %v10221_v10  ;;  %v11943_v63 = vld [vmem:[#allocation45_spill] sm:$0xff]  ;;  %vm2900_vm8 = vcmp.eq.s32.totalorder %v11944_v62, %v10209_v12 }
 0x294   : > { %vm7919_vm2 = vmpackc.low %vm2891_vm14, %vm2889_vm13  ;;  %vm2898_vm7 = vcmp.eq.s32.totalorder %v11943_v63, %v10209_v12 }
 0x295   : > { %vm7925_vm10 = vmpackc.low %vm2900_vm8, %vm2898_vm7 }
 0x296   : > { %7912 = vmatpush1.bf16.msk.msra.mxu1 %vm7911_vm5, %v11901_v3  ;;  %vm2893_vm5 = vcmp.eq.s32.totalorder %v11941_v11, %v10221_v10  ;;  %v11946_v11 = vld [vmem:[#allocation48_spill] sm:$0xff] }
 0x297   : > { %7914 = vmatprep.subr.msk.bf16.mxu1 %vm7913_vm6, %v11901_v3  ;;  %vm2895_vm6 = vcmp.eq.s32.totalorder %v11942_v9, %v10221_v10  ;;  %v11945_v9 = vld [vmem:[#allocation47_spill] sm:$0xff]  ;;  %vm2904_vm14 = vcmp.eq.s32.totalorder %v11946_v11, %v10209_v12 }
 0x298   : > { %vm7923_vm9 = vmpackc.low %vm2895_vm6, %vm2893_vm5  ;;  %vm2902_vm13 = vcmp.eq.s32.totalorder %v11945_v9, %v10209_v12 }
 0x299   : > { %vm7929_vm1 = vmpackc.low %vm2904_vm14, %vm2902_vm13 }
 0x29a   : > { %7916 = vmatpush1.bf16.msk.msra.mxu1 %vm7915_vm11, %v11901_v3  ;;  %vm2897_vm11 = vcmp.eq.s32.totalorder %v11943_v63, %v10221_v10  ;;  %v11948_v63 = vld [vmem:[#allocation50_spill] sm:$0xff] }
 0x29b   : > { %7918 = vmatprep.subr.msk.bf16.mxu1 %vm7917_vm12, %v11901_v3  ;;  %vm2899_vm12 = vcmp.eq.s32.totalorder %v11944_v62, %v10221_v10  ;;  %v11947_v62 = vld [vmem:[#allocation49_spill] sm:$0xff]  ;;  %vm2908_vm6 = vcmp.eq.s32.totalorder %v11948_v63, %v10209_v12 }
 0x29c   : > { %vm7927_vm15 = vmpackc.low %vm2899_vm12, %vm2897_vm11  ;;  %vm2906_vm5 = vcmp.eq.s32.totalorder %v11947_v62, %v10209_v12 }
 0x29d   : > { %vm7933_vm8 = vmpackc.low %vm2908_vm6, %vm2906_vm5 }
 0x29e   : > { %7920 = vmatpush1.bf16.msk.msra.mxu1 %vm7919_vm2, %v11901_v3  ;;  %vm2901_vm2 = vcmp.eq.s32.totalorder %v11945_v9, %v10221_v10  ;;  %v11950_v9 = vld [vmem:[#allocation52_spill] sm:$0xff] }
 0x29f   : > { %7922 = vmatprep.subr.msk.bf16.mxu1 %vm7921_vm4, %v11901_v3  ;;  %vm2903_vm4 = vcmp.eq.s32.totalorder %v11946_v11, %v10221_v10  ;;  %v11949_v11 = vld [vmem:[#allocation51_spill] sm:$0xff]  ;;  %vm2912_vm12 = vcmp.eq.s32.totalorder %v11950_v9, %v10209_v12 }
 0x2a0   : > { %vm7931_vm7 = vmpackc.low %vm2903_vm4, %vm2901_vm2  ;;  %vm2910_vm11 = vcmp.eq.s32.totalorder %v11949_v11, %v10209_v12 }
 0x2a1   : > { %vm7937_vm14 = vmpackc.low %vm2912_vm12, %vm2910_vm11 }
 0x2a2   : > { %7924 = vmatpush1.bf16.msk.msra.mxu1 %vm7923_vm9, %v11901_v3  ;;  %vm2905_vm9 = vcmp.eq.s32.totalorder %v11947_v62, %v10221_v10  ;;  %v11952_v62 = vld [vmem:[#allocation54_spill] sm:$0xff] }
 0x2a3   : > { %7926 = vmatprep.subr.msk.bf16.mxu1 %vm7925_vm10, %v11901_v3  ;;  %vm2907_vm10 = vcmp.eq.s32.totalorder %v11948_v63, %v10221_v10  ;;  %v11951_v63 = vld [vmem:[#allocation53_spill] sm:$0xff]  ;;  %vm2916_vm4 = vcmp.eq.s32.totalorder %v11952_v62, %v10209_v12 }
 0x2a4   : > { %vm7935_vm13 = vmpackc.low %vm2907_vm10, %vm2905_vm9  ;;  %vm2914_vm2 = vcmp.eq.s32.totalorder %v11951_v63, %v10209_v12  ;;  %vm2918_vm9 = vcmp.eq.s32.totalorder %v9738_v1, %v10209_v12 }
 0x2a5   : > { %vm7941_vm6 = vmpackc.low %vm2916_vm4, %vm2914_vm2 }
 0x2a6   : > { %7928 = vmatpush1.bf16.msk.msra.mxu1 %vm7927_vm15, %v11901_v3  ;;  %vm2909_vm15 = vcmp.eq.s32.totalorder %v11949_v11, %v10221_v10  ;;  %v11957_v11 = vld [vmem:[#allocation59_spill] sm:$0xff] }
 0x2a7   : > { %7930 = vmatprep.subr.msk.bf16.mxu1 %vm7929_vm1, %v11901_v3  ;;  %vm2911_vm1 = vcmp.eq.s32.totalorder %v11950_v9, %v10221_v10  ;;  %v11953_v9 = vld [vmem:[#allocation56_spill] sm:$0xff] }
 0x2a8   : > { %vm7939_vm5 = vmpackc.low %vm2911_vm1, %vm2909_vm15  ;;  %vm2920_vm10 = vcmp.eq.s32.totalorder %v11953_v9, %v10209_v12  ;;  %vm2922_vm15 = vcmp.eq.s32.totalorder %v9764_v60, %v10209_v12 }
 0x2a9   : > { %vm7945_vm12 = vmpackc.low %vm2920_vm10, %vm2918_vm9 }
 0x2aa   : > { %7932 = vmatpush1.bf16.msk.msra.mxu1 %vm7931_vm7, %v11901_v3  ;;  %vm2913_vm7 = vcmp.eq.s32.totalorder %v11951_v63, %v10221_v10  ;;  %v11956_v63 = vld [vmem:[#allocation61_spill] sm:$0xff] }
 0x2ab   : > { %7934 = vmatprep.subr.msk.bf16.mxu1 %vm7933_vm8, %v11901_v3  ;;  %vm2915_vm8 = vcmp.eq.s32.totalorder %v11952_v62, %v10221_v10  ;;  %v11954_v62 = vld [vmem:[#allocation58_spill] sm:$0xff] }
 0x2ac   : > { %vm7943_vm11 = vmpackc.low %vm2915_vm8, %vm2913_vm7  ;;  %vm2924_vm1 = vcmp.eq.s32.totalorder %v11954_v62, %v10209_v12  ;;  %vm2928_vm8 = vcmp.eq.s32.totalorder %v11956_v63, %v10209_v12 }
 0x2ad   : > { %vm7949_vm4 = vmpackc.low %vm2924_vm1, %vm2922_vm15 }
 0x2ae   : > { %7936 = vmatpush1.bf16.msk.msra.mxu1 %vm7935_vm13, %v11901_v3  ;;  %vm2917_vm13 = vcmp.eq.s32.totalorder %v9738_v1, %v10221_v10  ;;  %v8328_v1 = vld [vmem:[%s8657_s24 + $0x10] sm:$0xff] }
 0x2af   : > { %7938 = vmatprep.subr.msk.bf16.mxu1 %vm7937_vm14, %v11901_v3  ;;  %vm2919_vm14 = vcmp.eq.s32.totalorder %v11953_v9, %v10221_v10  ;;  %v11955_v9 = vld [vmem:[#allocation60_spill] sm:$0xff] }
 0x2b0   : > { %vm7947_vm2 = vmpackc.low %vm2919_vm14, %vm2917_vm13  ;;  %vm2926_vm7 = vcmp.eq.s32.totalorder %v11955_v9, %v10209_v12 }
 0x2b1   : > { %vm7953_vm10 = vmpackc.low %vm2928_vm8, %vm2926_vm7 }
 0x2b2   : > { %7940 = vmatpush1.bf16.msk.msra.mxu1 %vm7939_vm5, %v11901_v3  ;;  %vm2921_vm5 = vcmp.eq.s32.totalorder %v9764_v60, %v10221_v10  ;;  %v11969_v60 = vld [vmem:[#allocation71_spill] sm:$0xff] }
 0x2b3   : > { %7942 = vmatprep.subr.msk.bf16.mxu1 %vm7941_vm6, %v11901_v3  ;;  %vm2923_vm6 = vcmp.eq.s32.totalorder %v11954_v62, %v10221_v10  ;;  %v11959_v62 = vld [vmem:[#allocation63_spill] sm:$0xff] }
 0x2b4   : > { %vm7951_vm9 = vmpackc.low %vm2923_vm6, %vm2921_vm5  ;;  %vm2932_vm14 = vcmp.eq.s32.totalorder %v11959_v62, %v10209_v12 }
 0x2b6   : > { %7944 = vmatpush1.bf16.msk.msra.mxu1 %vm7943_vm11, %v11901_v3  ;;  %vm2925_vm11 = vcmp.eq.s32.totalorder %v11955_v9, %v10221_v10 }
 0x2b7   : > { %7946 = vmatprep.subr.msk.bf16.mxu1 %vm7945_vm12, %v11901_v3  ;;  %vm2927_vm12 = vcmp.eq.s32.totalorder %v11956_v63, %v10221_v10  ;;  %v11961_v63 = vld [vmem:[#allocation65_spill] sm:$0xff] }
 0x2b8   : > { %vm7955_vm15 = vmpackc.low %vm2927_vm12, %vm2925_vm11  ;;  %vm2936_vm6 = vcmp.eq.s32.totalorder %v11961_v63, %v10209_v12 }
 0x2b9   : > { %3700 = vmatmul.mubr.f32.vlgmr.msra.gmra.mrb[4].mxu1 %v8328_v1  ;;  %v11958_v1 = vld [vmem:[#allocation62_spill] sm:$0xff] }
 0x2ba   : > { %7948 = vmatpush1.bf16.msk.msra.mxu1 %vm7947_vm2, %v11901_v3  ;;  %3770 = vmatprep.mubr.f32.mxu1 %v11957_v11  ;;  %vm2930_vm13 = vcmp.eq.s32.totalorder %v11958_v1, %v10209_v12  ;;  %vm2929_vm2 = vcmp.eq.s32.totalorder %v11958_v1, %v10221_v10  ;;  %v11960_v11 = vld [vmem:[#allocation64_spill] sm:$0xff]  ;;  %v11963_v1 = vld [vmem:[#allocation67_spill] sm:$0xff] }
 0x2bb   : > { %7950 = vmatprep.subr.msk.bf16.mxu1 %vm7949_vm4, %v11901_v3  ;;  %vm7957_vm1 = vmpackc.low %vm2932_vm14, %vm2930_vm13  ;;  %vm2931_vm4 = vcmp.eq.s32.totalorder %v11959_v62, %v10221_v10  ;;  %vm2934_vm5 = vcmp.eq.s32.totalorder %v11960_v11, %v10209_v12  ;;  %v11962_v62 = vld [vmem:[#allocation66_spill] sm:$0xff]  ;;  %vm2940_vm12 = vcmp.eq.s32.totalorder %v11963_v1, %v10209_v12 }
 0x2bc   : > { %vm7959_vm7 = vmpackc.low %vm2931_vm4, %vm2929_vm2  ;;  %vm2938_vm11 = vcmp.eq.s32.totalorder %v11962_v62, %v10209_v12 }
 0x2bd   : > { %vm7961_vm8 = vmpackc.low %vm2936_vm6, %vm2934_vm5 }
 0x2be   : > { %7952 = vmatpush1.bf16.msk.msra.mxu1 %vm7951_vm9, %v11901_v3  ;;  %vm2933_vm9 = vcmp.eq.s32.totalorder %v11960_v11, %v10221_v10  ;;  %vm7965_vm14 = vmpackc.low %vm2940_vm12, %vm2938_vm11  ;;  %v11965_v11 = vld [vmem:[#allocation69_spill] sm:$0xff] }
 0x2bf   : > { %7954 = vmatprep.subr.msk.bf16.mxu1 %vm7953_vm10, %v11901_v3  ;;  %vm2935_vm10 = vcmp.eq.s32.totalorder %v11961_v63, %v10221_v10  ;;  %v11964_v63 = vld [vmem:[#allocation68_spill] sm:$0xff]  ;;  %vm2944_vm4 = vcmp.eq.s32.totalorder %v11965_v11, %v10209_v12 }
 0x2c0   : > { %vm7963_vm13 = vmpackc.low %vm2935_vm10, %vm2933_vm9  ;;  %vm2942_vm2 = vcmp.eq.s32.totalorder %v11964_v63, %v10209_v12  ;;  %vm2948_vm10 = vcmp.eq.s32.totalorder %v11969_v60, %v10209_v12 }
 0x2c1   : > { %vm7969_vm6 = vmpackc.low %vm2944_vm4, %vm2942_vm2 }
 0x2c2   : > { %7956 = vmatpush1.bf16.msk.msra.mxu1 %vm7955_vm15, %v11901_v3  ;;  %vm2937_vm15 = vcmp.eq.s32.totalorder %v11962_v62, %v10221_v10  ;;  %v11968_v62 = vld [vmem:[#allocation70_spill] sm:$0xff] }
 0x2c3   : > { %7958 = vmatprep.subr.msk.bf16.mxu1 %vm7957_vm1, %v11901_v3  ;;  %vm2939_vm1 = vcmp.eq.s32.totalorder %v11963_v1, %v10221_v10  ;;  %vm2946_vm9 = vcmp.eq.s32.totalorder %v11968_v62, %v10209_v12 }
 0x2c4   : > { %vm7967_vm5 = vmpackc.low %vm2939_vm1, %vm2937_vm15 }
 0x2c5   : > { %vm7973_vm12 = vmpackc.low %vm2948_vm10, %vm2946_vm9 }
 0x2c6   : > { %7960 = vmatpush1.bf16.msk.msra.mxu1 %vm7959_vm7, %v11901_v3  ;;  %vm2941_vm7 = vcmp.eq.s32.totalorder %v11964_v63, %v10221_v10 }
 0x2c7   : > { %7962 = vmatprep.subr.msk.bf16.mxu1 %vm7961_vm8, %v11901_v3  ;;  %vm2943_vm8 = vcmp.eq.s32.totalorder %v11965_v11, %v10221_v10 }
 0x2c8   : > { %vm7971_vm11 = vmpackc.low %vm2943_vm8, %vm2941_vm7 }
 0x2ca   : > { %7964 = vmatpush1.bf16.msk.msra.mxu1 %vm7963_vm13, %v11901_v3  ;;  %vm2945_vm13 = vcmp.eq.s32.totalorder %v11968_v62, %v10221_v10  ;;  %v11973_v62 = vld [vmem:[#allocation75_spill] sm:$0xff] }
 0x2cb   : > { %7966 = vmatprep.subr.msk.bf16.mxu1 %vm7965_vm14, %v11901_v3  ;;  %vm2947_vm14 = vcmp.eq.s32.totalorder %v11969_v60, %v10221_v10  ;;  %v11972_v60 = vld [vmem:[#allocation74_spill] sm:$0xff]  ;;  %vm2956_vm8 = vcmp.eq.s32.totalorder %v11973_v62, %v10209_v12 }
 0x2cc   : > { %v10777_v9 = vpop.f32.mrb[2].mxu1  ;;  %vm7975_vm2 = vmpackc.low %vm2947_vm14, %vm2945_vm13  ;;  %vm2954_vm7 = vcmp.eq.s32.totalorder %v11972_v60, %v10209_v12 }
 0x2cd   : > { %11966 = vst [vmem:[#allocation4_spill] sm:$0xff] %v10777_v9  ;;  %v10783_v1 = vpop.f32.mrb[3].mxu1  ;;  %v11971_v9 = vld [vmem:[#allocation73_spill] sm:$0xff]  ;;  %vm7981_vm10 = vmpackc.low %vm2956_vm8, %vm2954_vm7 }
 0x2ce   : > { %11967 = vst [vmem:[#allocation24_spill] sm:$0xff] %v10783_v1  ;;  %7968 = vmatpush1.bf16.msk.msra.mxu1 %vm7967_vm5, %v11901_v3  ;;  %v11970_v1 = vld [vmem:[#allocation72_spill] sm:$0xff]  ;;  %vm2952_vm1 = vcmp.eq.s32.totalorder %v11971_v9, %v10209_v12 }
 0x2cf   : > { %7970 = vmatprep.subr.msk.bf16.mxu1 %vm7969_vm6, %v11901_v3  ;;  %vm2950_vm15 = vcmp.eq.s32.totalorder %v11970_v1, %v10209_v12  ;;  %vm2949_vm5 = vcmp.eq.s32.totalorder %v11970_v1, %v10221_v10  ;;  %vm2951_vm6 = vcmp.eq.s32.totalorder %v11971_v9, %v10221_v10  ;;  %v11974_v9 = vld [vmem:[#allocation76_spill] sm:$0xff]  ;;  %v11975_v1 = vld [vmem:[#allocation77_spill] sm:$0xff] }
 0x2d0   : > { %vm7977_vm4 = vmpackc.low %vm2952_vm1, %vm2950_vm15  ;;  %vm2958_vm13 = vcmp.eq.s32.totalorder %v11974_v9, %v10209_v12  ;;  %vm2960_vm14 = vcmp.eq.s32.totalorder %v11975_v1, %v10209_v12 }
 0x2d1   : > { %vm7979_vm9 = vmpackc.low %vm2951_vm6, %vm2949_vm5 }
 0x2d2   : > { %7972 = vmatpush1.bf16.msk.msra.mxu1 %vm7971_vm11, %v11901_v3  ;;  %vm2953_vm11 = vcmp.eq.s32.totalorder %v11972_v60, %v10221_v10  ;;  %vm7985_vm1 = vmpackc.low %vm2960_vm14, %vm2958_vm13  ;;  %v11977_v60 = vld [vmem:[#allocation79_spill] sm:$0xff] }
 0x2d3   : > { %7974 = vmatprep.subr.msk.bf16.mxu1 %vm7973_vm12, %v11901_v3  ;;  %vm2955_vm12 = vcmp.eq.s32.totalorder %v11973_v62, %v10221_v10  ;;  %v11976_v62 = vld [vmem:[#allocation78_spill] sm:$0xff]  ;;  %vm2964_vm6 = vcmp.eq.s32.totalorder %v11977_v60, %v10209_v12 }
 0x2d4   : > { %vm7983_vm15 = vmpackc.low %vm2955_vm12, %vm2953_vm11  ;;  %vm2962_vm5 = vcmp.eq.s32.totalorder %v11976_v62, %v10209_v12 }
 0x2d5   : > { %vm7989_vm8 = vmpackc.low %vm2964_vm6, %vm2962_vm5 }
 0x2d6   : > { %7976 = vmatpush1.bf16.msk.msra.mxu1 %vm7975_vm2, %v11901_v3  ;;  %vm2957_vm2 = vcmp.eq.s32.totalorder %v11974_v9, %v10221_v10  ;;  %v11979_v9 = vld [vmem:[#allocation81_spill] sm:$0xff] }
 0x2d7   : > { %7978 = vmatprep.subr.msk.bf16.mxu1 %vm7977_vm4, %v11901_v3  ;;  %vm2959_vm4 = vcmp.eq.s32.totalorder %v11975_v1, %v10221_v10  ;;  %v11978_v1 = vld [vmem:[#allocation80_spill] sm:$0xff]  ;;  %vm2968_vm12 = vcmp.eq.s32.totalorder %v11979_v9, %v10209_v12 }
 0x2d8   : > { %vm7987_vm7 = vmpackc.low %vm2959_vm4, %vm2957_vm2  ;;  %vm2966_vm11 = vcmp.eq.s32.totalorder %v11978_v1, %v10209_v12  ;;  %vm2970_vm2 = vcmp.eq.s32.totalorder %v10105_v0, %v10209_v12  ;;  %vm2972_vm4 = vcmp.eq.s32.totalorder %v10108_v30, %v10209_v12 }
 0x2d9   : > { %vm7993_vm14 = vmpackc.low %vm2968_vm12, %vm2966_vm11 }
 0x2da   : > { %7980 = vmatpush1.bf16.msk.msra.mxu1 %vm7979_vm9, %v11901_v3  ;;  %vm2961_vm9 = vcmp.eq.s32.totalorder %v11976_v62, %v10221_v10  ;;  %vm7997_vm6 = vmpackc.low %vm2972_vm4, %vm2970_vm2 }
 0x2db   : > { %7982 = vmatprep.subr.msk.bf16.mxu1 %vm7981_vm10, %v11901_v3  ;;  %vm2963_vm10 = vcmp.eq.s32.totalorder %v11977_v60, %v10221_v10 }
 0x2dc   : > { %vm7991_vm13 = vmpackc.low %vm2963_vm10, %vm2961_vm9  ;;  %vm2974_vm9 = vcmp.eq.s32.totalorder %v10131_v52, %v10209_v12 }
 0x2de   : > { %7984 = vmatpush1.bf16.msk.msra.mxu1 %vm7983_vm15, %v11901_v3  ;;  %vm2965_vm15 = vcmp.eq.s32.totalorder %v11978_v1, %v10221_v10  ;;  %v11983_v1 = vld [vmem:[#allocation3_spill] sm:$0xff] }
 0x2df   : > { %7986 = vmatprep.subr.msk.bf16.mxu1 %vm7985_vm1, %v11901_v3  ;;  %vm2967_vm1 = vcmp.eq.s32.totalorder %v11979_v9, %v10221_v10  ;;  %v11980_v9 = vld [vmem:[#allocation85_spill] sm:$0xff] }
 0x2e0   : > { %vm7995_vm5 = vmpackc.low %vm2967_vm1, %vm2965_vm15  ;;  %vm2976_vm10 = vcmp.eq.s32.totalorder %v11980_v9, %v10209_v12 }
 0x2e1   : > { %vm8001_vm12 = vmpackc.low %vm2976_vm10, %vm2974_vm9 }
 0x2e2   : > { %7988 = vmatpush1.bf16.msk.msra.mxu1 %vm7987_vm7, %v11901_v3  ;;  %vm2969_vm7 = vcmp.eq.s32.totalorder %v10105_v0, %v10221_v10  ;;  %v11982_v0 = vld [vmem:[#allocation87_spill] sm:$0xff] }
 0x2e3   : > { %7990 = vmatprep.subr.msk.bf16.mxu1 %vm7989_vm8, %v11901_v3  ;;  %vm2971_vm8 = vcmp.eq.s32.totalorder %v10108_v30, %v10221_v10  ;;  %v11981_v30 = vld [vmem:[#allocation86_spill] sm:$0xff]  ;;  %vm2980_vm1 = vcmp.eq.s32.totalorder %v11982_v0, %v10209_v12 }
 0x2e4   : > { %vm7999_vm11 = vmpackc.low %vm2971_vm8, %vm2969_vm7  ;;  %vm2978_vm15 = vcmp.eq.s32.totalorder %v11981_v30, %v10209_v12  ;;  %v8329_v12 = vld [vmem:[%s8657_s24 + $0x18] sm:$0xff] }
 0x2e5   : > { %vm8005_vm4 = vmpackc.low %vm2980_vm1, %vm2978_vm15 }
 0x2e6   : > { %7992 = vmatpush1.bf16.msk.msra.mxu1 %vm7991_vm13, %v11901_v3  ;;  %vm2973_vm13 = vcmp.eq.s32.totalorder %v10131_v52, %v10221_v10 }
 0x2e7   : > { %7994 = vmatprep.subr.msk.bf16.mxu1 %vm7993_vm14, %v11901_v3  ;;  %vm2975_vm14 = vcmp.eq.s32.totalorder %v11980_v9, %v10221_v10  ;;  %v8330_v9 = vld [vmem:[%s11567_s0] sm:$0x3] }
 0x2e8   : > { %vm8003_vm2 = vmpackc.low %vm2975_vm14, %vm2973_vm13  ;;  %v3861_v52 = vadd.s32 17, %v8330_v9  ;;  %v12032_v9 = vld [vmem:[#allocation55_spill] sm:$0xff] }
 0x2ea   : > { %7996 = vmatpush1.bf16.msk.msra.mxu1 %vm7995_vm5, %v11901_v3  ;;  %vm2977_vm5 = vcmp.eq.s32.totalorder %v11981_v30, %v10221_v10  ;;  %v10883_v60 = vrot.slane %v3861_v52, %v11983_v1  ;;  %v10886_v30 = vrot.slane %v3861_v52, %v8418_v6  ;;  %v6718_v52 = vld [vmem:[%s11568_s1 + $0x10] sm:$0xff] }
 0x2eb   : > { %7998 = vmatprep.subr.msk.bf16.mxu1 %vm7997_vm6, %v11901_v3  ;;  %vm2979_vm6 = vcmp.eq.s32.totalorder %v11982_v0, %v10221_v10  ;;  %v12034_v1 = vld [vmem:[#allocation57_spill] sm:$0xff] }
 0x2ec   : > { %vm8007_vm7 = vmpackc.low %vm2979_vm6, %vm2977_vm5  ;;  %vm3871_vm8 = vcmp.eq.s32.totalorder %v8409_v2, %v10883_v60  ;;  %vm3873_vm9 = vcmp.eq.s32.totalorder %v8412_v4, %v10883_v60  ;;  %vm3870_vm10 = vcmp.eq.s32.totalorder %v8409_v2, %v10886_v30  ;;  %vm3877_vm13 = vcmp.eq.s32.totalorder %v8424_v8, %v10883_v60  ;;  %v8331_v2 = vld [vmem:[%s8657_s24] sm:$0xff] }
 0x2ed   : > { %vm8009_vm14 = vmpackc.low %vm3873_vm9, %vm3871_vm8  ;;  %vm3879_vm5 = vcmp.eq.s32.totalorder %v8460_v14, %v10883_v60  ;;  %vm3881_vm6 = vcmp.eq.s32.totalorder %v8463_v15, %v10883_v60  ;;  %vm3878_vm9 = vcmp.eq.s32.totalorder %v8460_v14, %v10886_v30  ;;  %v11987_v14 = vld [vmem:[#allocation8_spill] sm:$0xff] }
 0x2ee   : > { %8000 = vmatpush1.bf16.msk.msra.mxu1 %vm7999_vm11, %v11901_v3  ;;  %vm3872_vm11 = vcmp.eq.s32.totalorder %v8412_v4, %v10886_v30  ;;  %vm8017_vm8 = vmpackc.low %vm3881_vm6, %vm3879_vm5  ;;  %v11984_v4 = vld [vmem:[#allocation5_spill] sm:$0xff] }
 0x2ef   : > { %8002 = vmatprep.subr.msk.bf16.mxu1 %vm8001_vm12, %v11901_v3  ;;  %vm3875_vm12 = vcmp.eq.s32.totalorder %v8421_v7, %v10883_v60  ;;  %vm8011_vm15 = vmpackc.low %vm3872_vm11, %vm3870_vm10  ;;  %vm3880_vm10 = vcmp.eq.s32.totalorder %v8463_v15, %v10886_v30  ;;  %vm3883_vm11 = vcmp.eq.s32.totalorder %v8486_v16, %v10883_v60  ;;  %v11988_v15 = vld [vmem:[#allocation9_spill] sm:$0xff] }
 0x2f0   : > { %vm8013_vm1 = vmpackc.low %vm3877_vm13, %vm3875_vm12  ;;  %vm3885_vm12 = vcmp.eq.s32.totalorder %v8489_v17, %v10883_v60 }
 0x2f1   : > { %vm8019_vm13 = vmpackc.low %vm3880_vm10, %vm3878_vm9  ;;  %vm3891_vm9 = vcmp.eq.s32.totalorder %v8538_v20, %v10883_v60  ;;  %vm3893_vm10 = vcmp.eq.s32.totalorder %v8541_v21, %v10883_v60 }
 0x2f2   : > { %8004 = vmatpush1.bf16.msk.msra.mxu1 %vm8003_vm2, %v11901_v3  ;;  %vm3874_vm2 = vcmp.eq.s32.totalorder %v8421_v7, %v10886_v30  ;;  %v11985_v7 = vld [vmem:[#allocation6_spill] sm:$0xff] }
 0x2f3   : > { %8006 = vmatprep.subr.msk.bf16.mxu1 %vm8005_vm4, %v11901_v3  ;;  %vm3876_vm4 = vcmp.eq.s32.totalorder %v8424_v8, %v10886_v30  ;;  %v11986_v8 = vld [vmem:[#allocation7_spill] sm:$0xff] }
 0x2f6   : > { %8008 = vmatpush1.bf16.msk.msra.mxu1 %vm8007_vm7, %v11901_v3  ;;  %vm8015_vm7 = vmpackc.low %vm3876_vm4, %vm3874_vm2  ;;  %vm3887_vm2 = vcmp.eq.s32.totalorder %v8512_v18, %v10883_v60  ;;  %vm3889_vm4 = vcmp.eq.s32.totalorder %v8515_v19, %v10883_v60 }
 0x2f7   : > { %vm8025_vm6 = vmpackc.low %vm3889_vm4, %vm3887_vm2 }
 0x2f9   : > { %3771 = vmatmul.mubr.f32.vlgmr.msra.gmra.mrb[4].mxu1 %v8329_v12  ;;  %v12035_v12 = vld [vmem:[#allocation58_spill] sm:$0xff] }
 0x3cc   : > { %v3772_v10 = vpop.f32.mrb[4].mxu1 }
 0x3cd   : > { %v3774_v6 = vpop.f32.mrb[5].mxu1 }
 0x3ce   : > { %6719 = vmatprep.subr.msk.mxu0 %vm2558_vm0, %v3774_v6  ;;  %v12036_v6 = vld [vmem:[#allocation60_spill] sm:$0xff] }
 0x3cf   : > { %6720 = vmatpush1.msk.msra.mxu0 %vm2558_vm0, %v3772_v10  ;;  %v8333_v10 = vld [vmem:[%s8657_s24 + $0x10] sm:$0xff] }
 0x3d0   : > { %8010 = vmatprep.subr.msk.bf16.mxu0 %vm8009_vm14, %v11901_v3  ;;  %6721 = vmatmul.mubr.msk.f32.vlgmr.msra.gmra.mrb[2].mxu0 %vm2554_vm3, %v6718_v52  ;;  %vm8021_vm14 = vmpackc.low %vm3885_vm12, %vm3883_vm11  ;;  %v12037_v52 = vld [vmem:[#allocation61_spill] sm:$0xff] }
 0x3d1   : > { %8012 = vmatpush1.bf16.msk.msra.mxu0 %vm8011_vm15, %v11901_v3  ;;  %4702 = vmatprep.mubr.f32.mxu0 %v8700_v33  ;;  %vm3882_vm15 = vcmp.eq.s32.totalorder %v8486_v16, %v10886_v30  ;;  %vm8029_vm12 = vmpackc.low %vm3893_vm10, %vm3891_vm9  ;;  %v11989_v16 = vld [vmem:[#allocation10_spill] sm:$0xff]  ;;  %v12004_v33 = vld [vmem:[#allocation28_spill] sm:$0xff] }
 0x3d2   : > { %8014 = vmatprep.subr.msk.bf16.mxu0 %vm8013_vm1, %v11901_v3  ;;  %vm3884_vm1 = vcmp.eq.s32.totalorder %v8489_v17, %v10886_v30  ;;  %v11990_v17 = vld [vmem:[#allocation11_spill] sm:$0xff] }
 0x3d3   : > { %vm8023_vm5 = vmpackc.low %vm3884_vm1, %vm3882_vm15  ;;  %vm3895_vm15 = vcmp.eq.s32.totalorder %v8564_v22, %v10883_v60  ;;  %vm3897_vm1 = vcmp.eq.s32.totalorder %v8567_v23, %v10883_v60 }
 0x3d4   : > { %vm8033_vm4 = vmpackc.low %vm3897_vm1, %vm3895_vm15 }
 0x3d5   : > { %8016 = vmatpush1.bf16.msk.msra.mxu0 %vm8015_vm7, %v11901_v3  ;;  %vm3886_vm7 = vcmp.eq.s32.totalorder %v8512_v18, %v10886_v30  ;;  %v11991_v18 = vld [vmem:[#allocation12_spill] sm:$0xff] }
 0x3d6   : > { %8018 = vmatprep.subr.msk.bf16.mxu0 %vm8017_vm8, %v11901_v3  ;;  %vm3888_vm8 = vcmp.eq.s32.totalorder %v8515_v19, %v10886_v30  ;;  %v11992_v19 = vld [vmem:[#allocation13_spill] sm:$0xff] }
 0x3d7   : > { %vm8027_vm11 = vmpackc.low %vm3888_vm8, %vm3886_vm7  ;;  %vm3899_vm7 = vcmp.eq.s32.totalorder %v8591_v24, %v10883_v60  ;;  %vm3901_vm8 = vcmp.eq.s32.totalorder %v8594_v25, %v10883_v60 }
 0x3d8   : > { %vm8037_vm10 = vmpackc.low %vm3901_vm8, %vm3899_vm7 }
 0x3d9   : > { %8020 = vmatpush1.bf16.msk.msra.mxu0 %vm8019_vm13, %v11901_v3  ;;  %vm3890_vm13 = vcmp.eq.s32.totalorder %v8538_v20, %v10886_v30  ;;  %v11993_v20 = vld [vmem:[#allocation14_spill] sm:$0xff] }
 0x3da   : > { %8022 = vmatprep.subr.msk.bf16.mxu0 %vm8021_vm14, %v11901_v3  ;;  %vm3892_vm14 = vcmp.eq.s32.totalorder %v8541_v21, %v10886_v30  ;;  %v11994_v21 = vld [vmem:[#allocation15_spill] sm:$0xff] }
 0x3db   : > { %vm8031_vm2 = vmpackc.low %vm3892_vm14, %vm3890_vm13  ;;  %vm3903_vm13 = vcmp.eq.s32.totalorder %v8622_v26, %v10883_v60  ;;  %vm3905_vm14 = vcmp.eq.s32.totalorder %v8625_v27, %v10883_v60 }
 0x3dc   : > { %vm8041_vm1 = vmpackc.low %vm3905_vm14, %vm3903_vm13 }
 0x3dd   : > { %8024 = vmatpush1.bf16.msk.msra.mxu0 %vm8023_vm5, %v11901_v3  ;;  %vm3894_vm5 = vcmp.eq.s32.totalorder %v8564_v22, %v10886_v30  ;;  %v11995_v22 = vld [vmem:[#allocation16_spill] sm:$0xff] }
 0x3de   : > { %8026 = vmatprep.subr.msk.bf16.mxu0 %vm8025_vm6, %v11901_v3  ;;  %vm3896_vm6 = vcmp.eq.s32.totalorder %v8567_v23, %v10886_v30  ;;  %v11996_v23 = vld [vmem:[#allocation17_spill] sm:$0xff] }
 0x3df   : > { %vm8035_vm9 = vmpackc.low %vm3896_vm6, %vm3894_vm5  ;;  %vm3907_vm5 = vcmp.eq.s32.totalorder %v8649_v28, %v10883_v60  ;;  %vm3909_vm6 = vcmp.eq.s32.totalorder %v8652_v29, %v10883_v60 }
 0x3e0   : > { %vm8045_vm8 = vmpackc.low %vm3909_vm6, %vm3907_vm5 }
 0x3e1   : > { %8028 = vmatpush1.bf16.msk.msra.mxu0 %vm8027_vm11, %v11901_v3  ;;  %vm3898_vm11 = vcmp.eq.s32.totalorder %v8591_v24, %v10886_v30  ;;  %v11997_v24 = vld [vmem:[#allocation18_spill] sm:$0xff] }
 0x3e2   : > { %8030 = vmatprep.subr.msk.bf16.mxu0 %vm8029_vm12, %v11901_v3  ;;  %vm3900_vm12 = vcmp.eq.s32.totalorder %v8594_v25, %v10886_v30  ;;  %v11998_v25 = vld [vmem:[#allocation19_spill] sm:$0xff] }
 0x3e3   : > { %vm8039_vm15 = vmpackc.low %vm3900_vm12, %vm3898_vm11  ;;  %vm3911_vm11 = vcmp.eq.s32.totalorder %v8683_v31, %v10883_v60  ;;  %vm3913_vm12 = vcmp.eq.s32.totalorder %v8686_v32, %v10883_v60 }
 0x3e4   : > { %vm8049_vm14 = vmpackc.low %vm3913_vm12, %vm3911_vm11 }
 0x3e5   : > { %8032 = vmatpush1.bf16.msk.msra.mxu0 %vm8031_vm2, %v11901_v3  ;;  %vm3902_vm2 = vcmp.eq.s32.totalorder %v8622_v26, %v10886_v30  ;;  %v11999_v26 = vld [vmem:[#allocation20_spill] sm:$0xff] }
 0x3e6   : > { %8034 = vmatprep.subr.msk.bf16.mxu0 %vm8033_vm4, %v11901_v3  ;;  %vm3904_vm4 = vcmp.eq.s32.totalorder %v8625_v27, %v10886_v30  ;;  %v12000_v27 = vld [vmem:[#allocation21_spill] sm:$0xff] }
 0x3e7   : > { %vm8043_vm7 = vmpackc.low %vm3904_vm4, %vm3902_vm2  ;;  %vm3915_vm2 = vcmp.eq.s32.totalorder %v8713_v34, %v10883_v60  ;;  %vm3917_vm4 = vcmp.eq.s32.totalorder %v8716_v35, %v10883_v60 }
 0x3e8   : > { %vm8053_vm6 = vmpackc.low %vm3917_vm4, %vm3915_vm2 }
 0x3e9   : > { %8036 = vmatpush1.bf16.msk.msra.mxu0 %vm8035_vm9, %v11901_v3  ;;  %vm3906_vm9 = vcmp.eq.s32.totalorder %v8649_v28, %v10886_v30  ;;  %v12001_v28 = vld [vmem:[#allocation22_spill] sm:$0xff] }
 0x3ea   : > { %8038 = vmatprep.subr.msk.bf16.mxu0 %vm8037_vm10, %v11901_v3  ;;  %vm3908_vm10 = vcmp.eq.s32.totalorder %v8652_v29, %v10886_v30  ;;  %v12002_v29 = vld [vmem:[#allocation23_spill] sm:$0xff] }
 0x3eb   : > { %vm8047_vm13 = vmpackc.low %vm3908_vm10, %vm3906_vm9  ;;  %vm3919_vm9 = vcmp.eq.s32.totalorder %v8750_v36, %v10883_v60  ;;  %vm3921_vm10 = vcmp.eq.s32.totalorder %v8753_v37, %v10883_v60 }
 0x3ec   : > { %vm8057_vm12 = vmpackc.low %vm3921_vm10, %vm3919_vm9 }
 0x3ed   : > { %8040 = vmatpush1.bf16.msk.msra.mxu0 %vm8039_vm15, %v11901_v3  ;;  %vm3910_vm15 = vcmp.eq.s32.totalorder %v8683_v31, %v10886_v30  ;;  %v12003_v31 = vld [vmem:[#allocation25_spill] sm:$0xff] }
 0x3ee   : > { %8042 = vmatprep.subr.msk.bf16.mxu0 %vm8041_vm1, %v11901_v3  ;;  %vm3912_vm1 = vcmp.eq.s32.totalorder %v8686_v32, %v10886_v30  ;;  %v8332_v32 = vld [vmem:[%s8657_s24 + $0x8] sm:$0xff] }
 0x3ef   : > { %vm8051_vm5 = vmpackc.low %vm3912_vm1, %vm3910_vm15  ;;  %vm3923_vm15 = vcmp.eq.s32.totalorder %v8776_v38, %v10883_v60  ;;  %vm3925_vm1 = vcmp.eq.s32.totalorder %v8779_v39, %v10883_v60 }
 0x3f0   : > { %vm8061_vm4 = vmpackc.low %vm3925_vm1, %vm3923_vm15 }
 0x3f1   : > { %8044 = vmatpush1.bf16.msk.msra.mxu0 %vm8043_vm7, %v11901_v3  ;;  %vm3914_vm7 = vcmp.eq.s32.totalorder %v8713_v34, %v10886_v30  ;;  %v12005_v34 = vld [vmem:[#allocation26_spill] sm:$0xff] }
 0x3f2   : > { %8046 = vmatprep.subr.msk.bf16.mxu0 %vm8045_vm8, %v11901_v3  ;;  %vm3916_vm8 = vcmp.eq.s32.totalorder %v8716_v35, %v10886_v30  ;;  %v12006_v35 = vld [vmem:[#allocation29_spill] sm:$0xff] }
 0x3f3   : > { %vm8055_vm11 = vmpackc.low %vm3916_vm8, %vm3914_vm7  ;;  %vm3927_vm7 = vcmp.eq.s32.totalorder %v8802_v40, %v10883_v60  ;;  %vm3929_vm8 = vcmp.eq.s32.totalorder %v8805_v41, %v10883_v60 }
 0x3f4   : > { %vm8065_vm10 = vmpackc.low %vm3929_vm8, %vm3927_vm7 }
 0x3f5   : > { %8048 = vmatpush1.bf16.msk.msra.mxu0 %vm8047_vm13, %v11901_v3  ;;  %vm3918_vm13 = vcmp.eq.s32.totalorder %v8750_v36, %v10886_v30  ;;  %v12007_v36 = vld [vmem:[#allocation30_spill] sm:$0xff] }
 0x3f6   : > { %8050 = vmatprep.subr.msk.bf16.mxu0 %vm8049_vm14, %v11901_v3  ;;  %vm3920_vm14 = vcmp.eq.s32.totalorder %v8753_v37, %v10886_v30  ;;  %v12009_v37 = vld [vmem:[#allocation32_spill] sm:$0xff] }
 0x3f7   : > { %vm8059_vm2 = vmpackc.low %vm3920_vm14, %vm3918_vm13  ;;  %vm3931_vm13 = vcmp.eq.s32.totalorder %v8828_v42, %v10883_v60  ;;  %vm3933_vm14 = vcmp.eq.s32.totalorder %v8831_v43, %v10883_v60 }
 0x3f8   : > { %vm8069_vm1 = vmpackc.low %vm3933_vm14, %vm3931_vm13 }
 0x3f9   : > { %8052 = vmatpush1.bf16.msk.msra.mxu0 %vm8051_vm5, %v11901_v3  ;;  %vm3922_vm5 = vcmp.eq.s32.totalorder %v8776_v38, %v10886_v30  ;;  %v12010_v38 = vld [vmem:[#allocation33_spill] sm:$0xff] }
 0x3fa   : > { %8054 = vmatprep.subr.msk.bf16.mxu0 %vm8053_vm6, %v11901_v3  ;;  %vm3924_vm6 = vcmp.eq.s32.totalorder %v8779_v39, %v10886_v30  ;;  %v12011_v39 = vld [vmem:[#allocation34_spill] sm:$0xff] }
 0x3fb   : > { %vm8063_vm9 = vmpackc.low %vm3924_vm6, %vm3922_vm5  ;;  %vm3935_vm5 = vcmp.eq.s32.totalorder %v8854_v44, %v10883_v60  ;;  %vm3937_vm6 = vcmp.eq.s32.totalorder %v8857_v45, %v10883_v60 }
 0x3fc   : > { %vm8073_vm8 = vmpackc.low %vm3937_vm6, %vm3935_vm5 }
 0x3fd   : > { %8056 = vmatpush1.bf16.msk.msra.mxu0 %vm8055_vm11, %v11901_v3  ;;  %vm3926_vm11 = vcmp.eq.s32.totalorder %v8802_v40, %v10886_v30  ;;  %v12012_v40 = vld [vmem:[#allocation35_spill] sm:$0xff] }
 0x3fe   : > { %8058 = vmatprep.subr.msk.bf16.mxu0 %vm8057_vm12, %v11901_v3  ;;  %vm3928_vm12 = vcmp.eq.s32.totalorder %v8805_v41, %v10886_v30  ;;  %v12013_v41 = vld [vmem:[#allocation36_spill] sm:$0xff] }
 0x3ff   : > { %vm8067_vm15 = vmpackc.low %vm3928_vm12, %vm3926_vm11  ;;  %vm3939_vm11 = vcmp.eq.s32.totalorder %v8880_v46, %v10883_v60  ;;  %vm3941_vm12 = vcmp.eq.s32.totalorder %v8883_v47, %v10883_v60 }
 0x400   : > { %vm8077_vm14 = vmpackc.low %vm3941_vm12, %vm3939_vm11 }
 0x401   : > { %8060 = vmatpush1.bf16.msk.msra.mxu0 %vm8059_vm2, %v11901_v3  ;;  %vm3930_vm2 = vcmp.eq.s32.totalorder %v8828_v42, %v10886_v30  ;;  %v12014_v42 = vld [vmem:[#allocation37_spill] sm:$0xff] }
 0x402   : > { %8062 = vmatprep.subr.msk.bf16.mxu0 %vm8061_vm4, %v11901_v3  ;;  %vm3932_vm4 = vcmp.eq.s32.totalorder %v8831_v43, %v10886_v30  ;;  %v12015_v43 = vld [vmem:[#allocation38_spill] sm:$0xff] }
 0x403   : > { %vm8071_vm7 = vmpackc.low %vm3932_vm4, %vm3930_vm2  ;;  %vm3943_vm2 = vcmp.eq.s32.totalorder %v8906_v48, %v10883_v60  ;;  %vm3945_vm4 = vcmp.eq.s32.totalorder %v8909_v49, %v10883_v60 }
 0x404   : > { %vm8081_vm6 = vmpackc.low %vm3945_vm4, %vm3943_vm2 }
 0x405   : > { %8064 = vmatpush1.bf16.msk.msra.mxu0 %vm8063_vm9, %v11901_v3  ;;  %vm3934_vm9 = vcmp.eq.s32.totalorder %v8854_v44, %v10886_v30  ;;  %v12016_v44 = vld [vmem:[#allocation39_spill] sm:$0xff] }
 0x406   : > { %8066 = vmatprep.subr.msk.bf16.mxu0 %vm8065_vm10, %v11901_v3  ;;  %vm3936_vm10 = vcmp.eq.s32.totalorder %v8857_v45, %v10886_v30  ;;  %v12017_v45 = vld [vmem:[#allocation40_spill] sm:$0xff] }
 0x407   : > { %vm8075_vm13 = vmpackc.low %vm3936_vm10, %vm3934_vm9  ;;  %vm3947_vm9 = vcmp.eq.s32.totalorder %v8940_v50, %v10883_v60  ;;  %vm3949_vm10 = vcmp.eq.s32.totalorder %v8943_v51, %v10883_v60 }
 0x408   : > { %vm8085_vm12 = vmpackc.low %vm3949_vm10, %vm3947_vm9 }
 0x409   : > { %8068 = vmatpush1.bf16.msk.msra.mxu0 %vm8067_vm15, %v11901_v3  ;;  %vm3938_vm15 = vcmp.eq.s32.totalorder %v8880_v46, %v10886_v30  ;;  %v12018_v46 = vld [vmem:[#allocation41_spill] sm:$0xff] }
 0x40a   : > { %8070 = vmatprep.subr.msk.bf16.mxu0 %vm8069_vm1, %v11901_v3  ;;  %vm3940_vm1 = vcmp.eq.s32.totalorder %v8883_v47, %v10886_v30  ;;  %v12019_v47 = vld [vmem:[#allocation42_spill] sm:$0xff] }
 0x40b   : > { %vm8079_vm5 = vmpackc.low %vm3940_vm1, %vm3938_vm15  ;;  %vm3951_vm15 = vcmp.eq.s32.totalorder %v8964_v53, %v10883_v60  ;;  %vm3953_vm1 = vcmp.eq.s32.totalorder %v8972_v54, %v10883_v60 }
 0x40c   : > { %vm8089_vm4 = vmpackc.low %vm3953_vm1, %vm3951_vm15 }
 0x40d   : > { %8072 = vmatpush1.bf16.msk.msra.mxu0 %vm8071_vm7, %v11901_v3  ;;  %vm3942_vm7 = vcmp.eq.s32.totalorder %v8906_v48, %v10886_v30  ;;  %v12020_v48 = vld [vmem:[#allocation43_spill] sm:$0xff] }
 0x40e   : > { %8074 = vmatprep.subr.msk.bf16.mxu0 %vm8073_vm8, %v11901_v3  ;;  %vm3944_vm8 = vcmp.eq.s32.totalorder %v8909_v49, %v10886_v30  ;;  %v12021_v49 = vld [vmem:[#allocation44_spill] sm:$0xff] }
 0x40f   : > { %vm8083_vm11 = vmpackc.low %vm3944_vm8, %vm3942_vm7  ;;  %vm3955_vm7 = vcmp.eq.s32.totalorder %v8999_v56, %v10883_v60  ;;  %vm3957_vm8 = vcmp.eq.s32.totalorder %v9002_v57, %v10883_v60 }
 0x410   : > { %4703 = vmatmul.mubr.f32.vlgmr.msra.gmra.mrb[4].mxu0 %v8331_v2  ;;  %vm8093_vm10 = vmpackc.low %vm3957_vm8, %vm3955_vm7  ;;  %v12038_v2 = vld [vmem:[#allocation59_spill] sm:$0xff] }
 0x411   : > { %8076 = vmatpush1.bf16.msk.msra.mxu0 %vm8075_vm13, %v11901_v3  ;;  %4773 = vmatprep.mubr.f32.mxu0 %v8976_v55  ;;  %vm3946_vm13 = vcmp.eq.s32.totalorder %v8940_v50, %v10886_v30  ;;  %v12022_v50 = vld [vmem:[#allocation45_spill] sm:$0xff] }
 0x412   : > { %8078 = vmatprep.subr.msk.bf16.mxu0 %vm8077_vm14, %v11901_v3  ;;  %vm3948_vm14 = vcmp.eq.s32.totalorder %v8943_v51, %v10886_v30  ;;  %v12023_v51 = vld [vmem:[#allocation46_spill] sm:$0xff]  ;;  %v12026_v55 = vld [vmem:[#allocation49_spill] sm:$0xff] }
 0x413   : > { %vm8087_vm2 = vmpackc.low %vm3948_vm14, %vm3946_vm13  ;;  %vm3959_vm13 = vcmp.eq.s32.totalorder %v9033_v58, %v10883_v60  ;;  %vm3961_vm14 = vcmp.eq.s32.totalorder %v9036_v59, %v10883_v60 }
 0x414   : > { %vm8097_vm1 = vmpackc.low %vm3961_vm14, %vm3959_vm13 }
 0x415   : > { %8080 = vmatpush1.bf16.msk.msra.mxu0 %vm8079_vm5, %v11901_v3  ;;  %vm3950_vm5 = vcmp.eq.s32.totalorder %v8964_v53, %v10886_v30  ;;  %v12024_v53 = vld [vmem:[#allocation47_spill] sm:$0xff] }
 0x416   : > { %8082 = vmatprep.subr.msk.bf16.mxu0 %vm8081_vm6, %v11901_v3  ;;  %vm3952_vm6 = vcmp.eq.s32.totalorder %v8972_v54, %v10886_v30  ;;  %v12025_v54 = vld [vmem:[#allocation48_spill] sm:$0xff] }
 0x417   : > { %vm8091_vm9 = vmpackc.low %vm3952_vm6, %vm3950_vm5  ;;  %vm3963_vm5 = vcmp.eq.s32.totalorder %v11902_v61, %v10883_v60  ;;  %vm3965_vm6 = vcmp.eq.s32.totalorder %v11984_v4, %v10883_v60 }
 0x418   : > { %vm8101_vm8 = vmpackc.low %vm3965_vm6, %vm3963_vm5 }
 0x419   : > { %8084 = vmatpush1.bf16.msk.msra.mxu0 %vm8083_vm11, %v11901_v3  ;;  %vm3954_vm11 = vcmp.eq.s32.totalorder %v8999_v56, %v10886_v30  ;;  %v12027_v56 = vld [vmem:[#allocation50_spill] sm:$0xff] }
 0x41a   : > { %8086 = vmatprep.subr.msk.bf16.mxu0 %vm8085_vm12, %v11901_v3  ;;  %vm3956_vm12 = vcmp.eq.s32.totalorder %v9002_v57, %v10886_v30  ;;  %v12028_v57 = vld [vmem:[#allocation51_spill] sm:$0xff] }
 0x41b   : > { %vm8095_vm15 = vmpackc.low %vm3956_vm12, %vm3954_vm11  ;;  %vm3967_vm11 = vcmp.eq.s32.totalorder %v11985_v7, %v10883_v60  ;;  %vm3969_vm12 = vcmp.eq.s32.totalorder %v11986_v8, %v10883_v60 }
 0x41c   : > { %vm8105_vm14 = vmpackc.low %vm3969_vm12, %vm3967_vm11 }
 0x41d   : > { %8088 = vmatpush1.bf16.msk.msra.mxu0 %vm8087_vm2, %v11901_v3  ;;  %vm3958_vm2 = vcmp.eq.s32.totalorder %v9033_v58, %v10886_v30  ;;  %v12029_v58 = vld [vmem:[#allocation52_spill] sm:$0xff] }
 0x41e   : > { %8090 = vmatprep.subr.msk.bf16.mxu0 %vm8089_vm4, %v11901_v3  ;;  %vm3960_vm4 = vcmp.eq.s32.totalorder %v9036_v59, %v10886_v30  ;;  %v12030_v59 = vld [vmem:[#allocation53_spill] sm:$0xff] }
 0x41f   : > { %vm8099_vm7 = vmpackc.low %vm3960_vm4, %vm3958_vm2  ;;  %vm3971_vm2 = vcmp.eq.s32.totalorder %v11987_v14, %v10883_v60  ;;  %vm3973_vm4 = vcmp.eq.s32.totalorder %v11988_v15, %v10883_v60 }
 0x420   : > { %vm8109_vm6 = vmpackc.low %vm3973_vm4, %vm3971_vm2 }
 0x421   : > { %8092 = vmatpush1.bf16.msk.msra.mxu0 %vm8091_vm9, %v11901_v3  ;;  %vm3962_vm9 = vcmp.eq.s32.totalorder %v11902_v61, %v10886_v30  ;;  %v12031_v61 = vld [vmem:[#allocation54_spill] sm:$0xff] }
 0x422   : > { %8094 = vmatprep.subr.msk.bf16.mxu0 %vm8093_vm10, %v11901_v3  ;;  %vm3964_vm10 = vcmp.eq.s32.totalorder %v11984_v4, %v10886_v30  ;;  %v12039_v4 = vld [vmem:[#allocation62_spill] sm:$0xff] }
 0x423   : > { %vm8103_vm13 = vmpackc.low %vm3964_vm10, %vm3962_vm9  ;;  %vm3975_vm9 = vcmp.eq.s32.totalorder %v11989_v16, %v10883_v60  ;;  %vm3977_vm10 = vcmp.eq.s32.totalorder %v11990_v17, %v10883_v60 }
 0x424   : > { %vm8113_vm12 = vmpackc.low %vm3977_vm10, %vm3975_vm9 }
 0x425   : > { %8096 = vmatpush1.bf16.msk.msra.mxu0 %vm8095_vm15, %v11901_v3  ;;  %vm3966_vm15 = vcmp.eq.s32.totalorder %v11985_v7, %v10886_v30  ;;  %v12040_v7 = vld [vmem:[#allocation63_spill] sm:$0xff] }
 0x426   : > { %8098 = vmatprep.subr.msk.bf16.mxu0 %vm8097_vm1, %v11901_v3  ;;  %vm3968_vm1 = vcmp.eq.s32.totalorder %v11986_v8, %v10886_v30  ;;  %v12041_v8 = vld [vmem:[#allocation64_spill] sm:$0xff] }
 0x427   : > { %vm8107_vm5 = vmpackc.low %vm3968_vm1, %vm3966_vm15  ;;  %vm3979_vm15 = vcmp.eq.s32.totalorder %v11991_v18, %v10883_v60  ;;  %vm3981_vm1 = vcmp.eq.s32.totalorder %v11992_v19, %v10883_v60 }
 0x428   : > { %vm8117_vm4 = vmpackc.low %vm3981_vm1, %vm3979_vm15 }
 0x429   : > { %8100 = vmatpush1.bf16.msk.msra.mxu0 %vm8099_vm7, %v11901_v3  ;;  %vm3970_vm7 = vcmp.eq.s32.totalorder %v11987_v14, %v10886_v30  ;;  %v12042_v14 = vld [vmem:[#allocation65_spill] sm:$0xff] }
 0x42a   : > { %8102 = vmatprep.subr.msk.bf16.mxu0 %vm8101_vm8, %v11901_v3  ;;  %vm3972_vm8 = vcmp.eq.s32.totalorder %v11988_v15, %v10886_v30  ;;  %v12043_v15 = vld [vmem:[#allocation66_spill] sm:$0xff] }
 0x42b   : > { %vm8111_vm11 = vmpackc.low %vm3972_vm8, %vm3970_vm7  ;;  %vm3983_vm7 = vcmp.eq.s32.totalorder %v11993_v20, %v10883_v60  ;;  %vm3985_vm8 = vcmp.eq.s32.totalorder %v11994_v21, %v10883_v60 }
 0x42c   : > { %vm8121_vm10 = vmpackc.low %vm3985_vm8, %vm3983_vm7 }
 0x42d   : > { %8104 = vmatpush1.bf16.msk.msra.mxu0 %vm8103_vm13, %v11901_v3  ;;  %vm3974_vm13 = vcmp.eq.s32.totalorder %v11989_v16, %v10886_v30  ;;  %v12044_v16 = vld [vmem:[#allocation67_spill] sm:$0xff] }
 0x42e   : > { %8106 = vmatprep.subr.msk.bf16.mxu0 %vm8105_vm14, %v11901_v3  ;;  %vm3976_vm14 = vcmp.eq.s32.totalorder %v11990_v17, %v10886_v30  ;;  %v12045_v17 = vld [vmem:[#allocation70_spill] sm:$0xff] }
 0x42f   : > { %vm8115_vm2 = vmpackc.low %vm3976_vm14, %vm3974_vm13  ;;  %vm3987_vm13 = vcmp.eq.s32.totalorder %v11995_v22, %v10883_v60  ;;  %vm3989_vm14 = vcmp.eq.s32.totalorder %v11996_v23, %v10883_v60 }
 0x430   : > { %vm8125_vm1 = vmpackc.low %vm3989_vm14, %vm3987_vm13 }
 0x431   : > { %8108 = vmatpush1.bf16.msk.msra.mxu0 %vm8107_vm5, %v11901_v3  ;;  %vm3978_vm5 = vcmp.eq.s32.totalorder %v11991_v18, %v10886_v30  ;;  %v12046_v18 = vld [vmem:[#allocation71_spill] sm:$0xff] }
 0x432   : > { %8110 = vmatprep.subr.msk.bf16.mxu0 %vm8109_vm6, %v11901_v3  ;;  %vm3980_vm6 = vcmp.eq.s32.totalorder %v11992_v19, %v10886_v30  ;;  %v12049_v19 = vld [vmem:[#allocation74_spill] sm:$0xff] }
 0x433   : > { %vm8119_vm9 = vmpackc.low %vm3980_vm6, %vm3978_vm5  ;;  %vm3991_vm5 = vcmp.eq.s32.totalorder %v11997_v24, %v10883_v60  ;;  %vm3993_vm6 = vcmp.eq.s32.totalorder %v11998_v25, %v10883_v60 }
 0x434   : > { %vm8129_vm8 = vmpackc.low %vm3993_vm6, %vm3991_vm5 }
 0x435   : > { %8112 = vmatpush1.bf16.msk.msra.mxu0 %vm8111_vm11, %v11901_v3  ;;  %vm3982_vm11 = vcmp.eq.s32.totalorder %v11993_v20, %v10886_v30  ;;  %v12050_v20 = vld [vmem:[#allocation75_spill] sm:$0xff] }
 0x436   : > { %8114 = vmatprep.subr.msk.bf16.mxu0 %vm8113_vm12, %v11901_v3  ;;  %vm3984_vm12 = vcmp.eq.s32.totalorder %v11994_v21, %v10886_v30  ;;  %v12051_v21 = vld [vmem:[#allocation76_spill] sm:$0xff] }
 0x437   : > { %vm8123_vm15 = vmpackc.low %vm3984_vm12, %vm3982_vm11  ;;  %vm3995_vm11 = vcmp.eq.s32.totalorder %v11999_v26, %v10883_v60  ;;  %vm3997_vm12 = vcmp.eq.s32.totalorder %v12000_v27, %v10883_v60 }
 0x438   : > { %vm8133_vm14 = vmpackc.low %vm3997_vm12, %vm3995_vm11 }
 0x439   : > { %8116 = vmatpush1.bf16.msk.msra.mxu0 %vm8115_vm2, %v11901_v3  ;;  %vm3986_vm2 = vcmp.eq.s32.totalorder %v11995_v22, %v10886_v30  ;;  %v12052_v22 = vld [vmem:[#allocation77_spill] sm:$0xff] }
 0x43a   : > { %8118 = vmatprep.subr.msk.bf16.mxu0 %vm8117_vm4, %v11901_v3  ;;  %vm3988_vm4 = vcmp.eq.s32.totalorder %v11996_v23, %v10886_v30  ;;  %v12053_v23 = vld [vmem:[#allocation79_spill] sm:$0xff] }
 0x43b   : > { %vm8127_vm7 = vmpackc.low %vm3988_vm4, %vm3986_vm2  ;;  %vm3999_vm2 = vcmp.eq.s32.totalorder %v12001_v28, %v10883_v60  ;;  %vm4001_vm4 = vcmp.eq.s32.totalorder %v12002_v29, %v10883_v60 }
 0x43c   : > { %vm8137_vm6 = vmpackc.low %vm4001_vm4, %vm3999_vm2 }
 0x43d   : > { %8120 = vmatpush1.bf16.msk.msra.mxu0 %vm8119_vm9, %v11901_v3  ;;  %vm3990_vm9 = vcmp.eq.s32.totalorder %v11997_v24, %v10886_v30  ;;  %v12054_v24 = vld [vmem:[#allocation80_spill] sm:$0xff] }
 0x43e   : > { %8122 = vmatprep.subr.msk.bf16.mxu0 %vm8121_vm10, %v11901_v3  ;;  %vm3992_vm10 = vcmp.eq.s32.totalorder %v11998_v25, %v10886_v30  ;;  %v12055_v25 = vld [vmem:[#allocation81_spill] sm:$0xff] }
 0x43f   : > { %vm8131_vm13 = vmpackc.low %vm3992_vm10, %vm3990_vm9  ;;  %vm4003_vm9 = vcmp.eq.s32.totalorder %v11922_v13, %v10883_v60  ;;  %vm4005_vm10 = vcmp.eq.s32.totalorder %v12003_v31, %v10883_v60 }
 0x440   : > { %vm8141_vm12 = vmpackc.low %vm4005_vm10, %vm4003_vm9 }
 0x441   : > { %8124 = vmatpush1.bf16.msk.msra.mxu0 %vm8123_vm15, %v11901_v3  ;;  %vm3994_vm15 = vcmp.eq.s32.totalorder %v11999_v26, %v10886_v30  ;;  %v12057_v26 = vld [vmem:[#allocation83_spill] sm:$0xff] }
 0x442   : > { %8126 = vmatprep.subr.msk.bf16.mxu0 %vm8125_vm1, %v11901_v3  ;;  %vm3996_vm1 = vcmp.eq.s32.totalorder %v12000_v27, %v10886_v30  ;;  %v12058_v27 = vld [vmem:[#allocation84_spill] sm:$0xff] }
 0x443   : > { %vm8135_vm5 = vmpackc.low %vm3996_vm1, %vm3994_vm15  ;;  %vm4007_vm15 = vcmp.eq.s32.totalorder %v11924_v5, %v10883_v60  ;;  %vm4009_vm1 = vcmp.eq.s32.totalorder %v12004_v33, %v10883_v60 }
 0x444   : > { %vm8145_vm4 = vmpackc.low %vm4009_vm1, %vm4007_vm15 }
 0x445   : > { %8128 = vmatpush1.bf16.msk.msra.mxu0 %vm8127_vm7, %v11901_v3  ;;  %vm3998_vm7 = vcmp.eq.s32.totalorder %v12001_v28, %v10886_v30  ;;  %v12059_v28 = vld [vmem:[#allocation85_spill] sm:$0xff] }
 0x446   : > { %8130 = vmatprep.subr.msk.bf16.mxu0 %vm8129_vm8, %v11901_v3  ;;  %vm4000_vm8 = vcmp.eq.s32.totalorder %v12002_v29, %v10886_v30  ;;  %v12060_v29 = vld [vmem:[#allocation86_spill] sm:$0xff] }
 0x447   : > { %vm8139_vm11 = vmpackc.low %vm4000_vm8, %vm3998_vm7  ;;  %vm4011_vm7 = vcmp.eq.s32.totalorder %v12006_v35, %v10883_v60  ;;  %vm4013_vm8 = vcmp.eq.s32.totalorder %v12007_v36, %v10883_v60 }
 0x448   : > { %vm8149_vm10 = vmpackc.low %vm4013_vm8, %vm4011_vm7 }
 0x449   : > { %8132 = vmatpush1.bf16.msk.msra.mxu0 %vm8131_vm13, %v11901_v3  ;;  %vm4002_vm13 = vcmp.eq.s32.totalorder %v11922_v13, %v10886_v30  ;;  %v12033_v13 = vld [vmem:[#allocation56_spill] sm:$0xff] }
 0x44a   : > { %8134 = vmatprep.subr.msk.bf16.mxu0 %vm8133_vm14, %v11901_v3  ;;  %vm4004_vm14 = vcmp.eq.s32.totalorder %v12003_v31, %v10886_v30  ;;  %v12061_v31 = vmov 0.0  }
 0x44b   : > { %vm8143_vm2 = vmpackc.low %vm4004_vm14, %vm4002_vm13  ;;  %vm4017_vm14 = vcmp.eq.s32.totalorder %v12009_v37, %v10883_v60 }
 0x44d   : > { %8136 = vmatpush1.bf16.msk.msra.mxu0 %vm8135_vm5, %v11901_v3  ;;  %vm4006_vm5 = vcmp.eq.s32.totalorder %v11924_v5, %v10886_v30  ;;  %v12008_v5 = vld [vmem:[#allocation31_spill] sm:$0xff] }
 0x44e   : > { %8138 = vmatprep.subr.msk.bf16.mxu0 %vm8137_vm6, %v11901_v3  ;;  %vm4008_vm6 = vcmp.eq.s32.totalorder %v12004_v33, %v10886_v30  ;;  %vm4015_vm13 = vcmp.eq.s32.totalorder %v12008_v5, %v10883_v60 }
 0x44f   : > { %vm8147_vm9 = vmpackc.low %vm4008_vm6, %vm4006_vm5  ;;  %vm4019_vm5 = vcmp.eq.s32.totalorder %v12010_v38, %v10883_v60  ;;  %vm4021_vm6 = vcmp.eq.s32.totalorder %v12011_v39, %v10883_v60 }
 0x450   : > { %4774 = vmatmul.mubr.f32.vlgmr.msra.gmra.mrb[4].mxu0 %v8332_v32  ;;  %vm8153_vm1 = vmpackc.low %vm4017_vm14, %vm4015_vm13 }
 0x451   : > { %8140 = vmatpush1.bf16.msk.msra.mxu0 %vm8139_vm11, %v11901_v3  ;;  %4844 = vmatprep.mubr.f32.mxu0 %v12005_v34  ;;  %vm4010_vm11 = vcmp.eq.s32.totalorder %v12006_v35, %v10886_v30  ;;  %vm8157_vm8 = vmpackc.low %vm4021_vm6, %vm4019_vm5  ;;  %v7234_v34 = vld [vmem:[%s11568_s1 + $0x18] sm:$0xff] }
 0x452   : > { %8142 = vmatprep.subr.msk.bf16.mxu0 %vm8141_vm12, %v11901_v3  ;;  %vm4012_vm12 = vcmp.eq.s32.totalorder %v12007_v36, %v10886_v30  ;;  %v12063_v36 = vld [vmem:[#allocation24_spill] sm:$0xff] }
 0x453   : > { %vm8151_vm15 = vmpackc.low %vm4012_vm12, %vm4010_vm11  ;;  %vm4023_vm11 = vcmp.eq.s32.totalorder %v12012_v40, %v10883_v60  ;;  %vm4025_vm12 = vcmp.eq.s32.totalorder %v12013_v41, %v10883_v60 }
 0x454   : > { %vm8161_vm14 = vmpackc.low %vm4025_vm12, %vm4023_vm11 }
 0x455   : > { %8144 = vmatpush1.bf16.msk.msra.mxu0 %vm8143_vm2, %v11901_v3  ;;  %vm4014_vm2 = vcmp.eq.s32.totalorder %v12008_v5, %v10886_v30 }
 0x456   : > { %8146 = vmatprep.subr.msk.bf16.mxu0 %vm8145_vm4, %v11901_v3  ;;  %vm4016_vm4 = vcmp.eq.s32.totalorder %v12009_v37, %v10886_v30 }
 0x457   : > { %vm8155_vm7 = vmpackc.low %vm4016_vm4, %vm4014_vm2  ;;  %vm4027_vm2 = vcmp.eq.s32.totalorder %v12014_v42, %v10883_v60  ;;  %vm4029_vm4 = vcmp.eq.s32.totalorder %v12015_v43, %v10883_v60 }
 0x458   : > { %vm8165_vm6 = vmpackc.low %vm4029_vm4, %vm4027_vm2 }
 0x459   : > { %8148 = vmatpush1.bf16.msk.msra.mxu0 %vm8147_vm9, %v11901_v3  ;;  %vm4018_vm9 = vcmp.eq.s32.totalorder %v12010_v38, %v10886_v30 }
 0x45a   : > { %8150 = vmatprep.subr.msk.bf16.mxu0 %vm8149_vm10, %v11901_v3  ;;  %vm4020_vm10 = vcmp.eq.s32.totalorder %v12011_v39, %v10886_v30 }
 0x45b   : > { %vm8159_vm13 = vmpackc.low %vm4020_vm10, %vm4018_vm9  ;;  %vm4031_vm9 = vcmp.eq.s32.totalorder %v12016_v44, %v10883_v60  ;;  %vm4033_vm10 = vcmp.eq.s32.totalorder %v12017_v45, %v10883_v60 }
 0x45c   : > { %vm8169_vm12 = vmpackc.low %vm4033_vm10, %vm4031_vm9 }
 0x45d   : > { %8152 = vmatpush1.bf16.msk.msra.mxu0 %vm8151_vm15, %v11901_v3  ;;  %vm4022_vm15 = vcmp.eq.s32.totalorder %v12012_v40, %v10886_v30 }
 0x45e   : > { %8154 = vmatprep.subr.msk.bf16.mxu0 %vm8153_vm1, %v11901_v3  ;;  %vm4024_vm1 = vcmp.eq.s32.totalorder %v12013_v41, %v10886_v30 }
 0x45f   : > { %vm8163_vm5 = vmpackc.low %vm4024_vm1, %vm4022_vm15  ;;  %vm4035_vm15 = vcmp.eq.s32.totalorder %v12018_v46, %v10883_v60  ;;  %vm4037_vm1 = vcmp.eq.s32.totalorder %v12019_v47, %v10883_v60 }
 0x460   : > { %vm8173_vm4 = vmpackc.low %vm4037_vm1, %vm4035_vm15 }
 0x461   : > { %8156 = vmatpush1.bf16.msk.msra.mxu0 %vm8155_vm7, %v11901_v3  ;;  %vm4026_vm7 = vcmp.eq.s32.totalorder %v12014_v42, %v10886_v30 }
 0x462   : > { %8158 = vmatprep.subr.msk.bf16.mxu0 %vm8157_vm8, %v11901_v3  ;;  %vm4028_vm8 = vcmp.eq.s32.totalorder %v12015_v43, %v10886_v30 }
 0x463   : > { %vm8167_vm11 = vmpackc.low %vm4028_vm8, %vm4026_vm7  ;;  %vm4039_vm7 = vcmp.eq.s32.totalorder %v12020_v48, %v10883_v60  ;;  %vm4041_vm8 = vcmp.eq.s32.totalorder %v12021_v49, %v10883_v60 }
 0x464   : > { %vm8177_vm10 = vmpackc.low %vm4041_vm8, %vm4039_vm7 }
 0x465   : > { %8160 = vmatpush1.bf16.msk.msra.mxu0 %vm8159_vm13, %v11901_v3  ;;  %vm4030_vm13 = vcmp.eq.s32.totalorder %v12016_v44, %v10886_v30 }
 0x466   : > { %8162 = vmatprep.subr.msk.bf16.mxu0 %vm8161_vm14, %v11901_v3  ;;  %vm4032_vm14 = vcmp.eq.s32.totalorder %v12017_v45, %v10886_v30 }
 0x467   : > { %vm8171_vm2 = vmpackc.low %vm4032_vm14, %vm4030_vm13  ;;  %vm4043_vm13 = vcmp.eq.s32.totalorder %v12022_v50, %v10883_v60  ;;  %vm4045_vm14 = vcmp.eq.s32.totalorder %v12023_v51, %v10883_v60 }
 0x468   : > { %vm8181_vm1 = vmpackc.low %vm4045_vm14, %vm4043_vm13 }
 0x469   : > { %8164 = vmatpush1.bf16.msk.msra.mxu0 %vm8163_vm5, %v11901_v3  ;;  %vm4034_vm5 = vcmp.eq.s32.totalorder %v12018_v46, %v10886_v30 }
 0x46a   : > { %8166 = vmatprep.subr.msk.bf16.mxu0 %vm8165_vm6, %v11901_v3  ;;  %vm4036_vm6 = vcmp.eq.s32.totalorder %v12019_v47, %v10886_v30 }
 0x46b   : > { %vm8175_vm9 = vmpackc.low %vm4036_vm6, %vm4034_vm5  ;;  %vm4047_vm5 = vcmp.eq.s32.totalorder %v12024_v53, %v10883_v60  ;;  %vm4049_vm6 = vcmp.eq.s32.totalorder %v12025_v54, %v10883_v60 }
 0x46c   : > { %vm8185_vm8 = vmpackc.low %vm4049_vm6, %vm4047_vm5 }
 0x46d   : > { %8168 = vmatpush1.bf16.msk.msra.mxu0 %vm8167_vm11, %v11901_v3  ;;  %vm4038_vm11 = vcmp.eq.s32.totalorder %v12020_v48, %v10886_v30 }
 0x46e   : > { %8170 = vmatprep.subr.msk.bf16.mxu0 %vm8169_vm12, %v11901_v3  ;;  %vm4040_vm12 = vcmp.eq.s32.totalorder %v12021_v49, %v10886_v30 }
 0x46f   : > { %vm8179_vm15 = vmpackc.low %vm4040_vm12, %vm4038_vm11  ;;  %vm4051_vm11 = vcmp.eq.s32.totalorder %v12026_v55, %v10883_v60  ;;  %vm4053_vm12 = vcmp.eq.s32.totalorder %v12027_v56, %v10883_v60 }
 0x470   : > { %vm8189_vm14 = vmpackc.low %vm4053_vm12, %vm4051_vm11 }
 0x471   : > { %8172 = vmatpush1.bf16.msk.msra.mxu0 %vm8171_vm2, %v11901_v3  ;;  %vm4042_vm2 = vcmp.eq.s32.totalorder %v12022_v50, %v10886_v30 }
 0x472   : > { %8174 = vmatprep.subr.msk.bf16.mxu0 %vm8173_vm4, %v11901_v3  ;;  %vm4044_vm4 = vcmp.eq.s32.totalorder %v12023_v51, %v10886_v30 }
 0x473   : > { %vm8183_vm7 = vmpackc.low %vm4044_vm4, %vm4042_vm2  ;;  %vm4055_vm2 = vcmp.eq.s32.totalorder %v12028_v57, %v10883_v60  ;;  %vm4057_vm4 = vcmp.eq.s32.totalorder %v12029_v58, %v10883_v60 }
 0x474   : > { %vm8193_vm6 = vmpackc.low %vm4057_vm4, %vm4055_vm2 }
 0x475   : > { %8176 = vmatpush1.bf16.msk.msra.mxu0 %vm8175_vm9, %v11901_v3  ;;  %vm4046_vm9 = vcmp.eq.s32.totalorder %v12024_v53, %v10886_v30 }
 0x476   : > { %8178 = vmatprep.subr.msk.bf16.mxu0 %vm8177_vm10, %v11901_v3  ;;  %vm4048_vm10 = vcmp.eq.s32.totalorder %v12025_v54, %v10886_v30 }
 0x477   : > { %vm8187_vm13 = vmpackc.low %vm4048_vm10, %vm4046_vm9  ;;  %vm4059_vm9 = vcmp.eq.s32.totalorder %v12030_v59, %v10883_v60  ;;  %vm4061_vm10 = vcmp.eq.s32.totalorder %v12031_v61, %v10883_v60 }
 0x478   : > { %vm8197_vm12 = vmpackc.low %vm4061_vm10, %vm4059_vm9 }
 0x479   : > { %8180 = vmatpush1.bf16.msk.msra.mxu0 %vm8179_vm15, %v11901_v3  ;;  %vm4050_vm15 = vcmp.eq.s32.totalorder %v12026_v55, %v10886_v30 }
 0x47a   : > { %8182 = vmatprep.subr.msk.bf16.mxu0 %vm8181_vm1, %v11901_v3  ;;  %vm4052_vm1 = vcmp.eq.s32.totalorder %v12027_v56, %v10886_v30 }
 0x47b   : > { %vm8191_vm5 = vmpackc.low %vm4052_vm1, %vm4050_vm15  ;;  %vm4063_vm15 = vcmp.eq.s32.totalorder %v12032_v9, %v10883_v60  ;;  %vm4065_vm1 = vcmp.eq.s32.totalorder %v12033_v13, %v10883_v60 }
 0x47c   : > { %vm8201_vm4 = vmpackc.low %vm4065_vm1, %vm4063_vm15 }
 0x47d   : > { %8184 = vmatpush1.bf16.msk.msra.mxu0 %vm8183_vm7, %v11901_v3  ;;  %vm4054_vm7 = vcmp.eq.s32.totalorder %v12028_v57, %v10886_v30 }
 0x47e   : > { %8186 = vmatprep.subr.msk.bf16.mxu0 %vm8185_vm8, %v11901_v3  ;;  %vm4056_vm8 = vcmp.eq.s32.totalorder %v12029_v58, %v10886_v30 }
 0x47f   : > { %vm8195_vm11 = vmpackc.low %vm4056_vm8, %vm4054_vm7  ;;  %vm4067_vm7 = vcmp.eq.s32.totalorder %v12034_v1, %v10883_v60  ;;  %vm4069_vm8 = vcmp.eq.s32.totalorder %v12035_v12, %v10883_v60 }
 0x480   : > { %vm8205_vm10 = vmpackc.low %vm4069_vm8, %vm4067_vm7 }
 0x481   : > { %8188 = vmatpush1.bf16.msk.msra.mxu0 %vm8187_vm13, %v11901_v3  ;;  %vm4058_vm13 = vcmp.eq.s32.totalorder %v12030_v59, %v10886_v30 }
 0x482   : > { %8190 = vmatprep.subr.msk.bf16.mxu0 %vm8189_vm14, %v11901_v3  ;;  %vm4060_vm14 = vcmp.eq.s32.totalorder %v12031_v61, %v10886_v30 }
 0x483   : > { %vm8199_vm2 = vmpackc.low %vm4060_vm14, %vm4058_vm13  ;;  %vm4071_vm13 = vcmp.eq.s32.totalorder %v12036_v6, %v10883_v60  ;;  %vm4073_vm14 = vcmp.eq.s32.totalorder %v12037_v52, %v10883_v60 }
 0x484   : > { %vm8209_vm1 = vmpackc.low %vm4073_vm14, %vm4071_vm13 }
 0x485   : > { %8192 = vmatpush1.bf16.msk.msra.mxu0 %vm8191_vm5, %v11901_v3  ;;  %vm4062_vm5 = vcmp.eq.s32.totalorder %v12032_v9, %v10886_v30 }
 0x486   : > { %8194 = vmatprep.subr.msk.bf16.mxu0 %vm8193_vm6, %v11901_v3  ;;  %vm4064_vm6 = vcmp.eq.s32.totalorder %v12033_v13, %v10886_v30 }
 0x487   : > { %vm8203_vm9 = vmpackc.low %vm4064_vm6, %vm4062_vm5  ;;  %vm4075_vm5 = vcmp.eq.s32.totalorder %v12039_v4, %v10883_v60  ;;  %vm4077_vm6 = vcmp.eq.s32.totalorder %v12040_v7, %v10883_v60 }
 0x488   : > { %vm8213_vm8 = vmpackc.low %vm4077_vm6, %vm4075_vm5 }
 0x489   : > { %8196 = vmatpush1.bf16.msk.msra.mxu0 %vm8195_vm11, %v11901_v3  ;;  %vm4066_vm11 = vcmp.eq.s32.totalorder %v12034_v1, %v10886_v30 }
 0x48a   : > { %8198 = vmatprep.subr.msk.bf16.mxu0 %vm8197_vm12, %v11901_v3  ;;  %vm4068_vm12 = vcmp.eq.s32.totalorder %v12035_v12, %v10886_v30 }
 0x48b   : > { %vm8207_vm15 = vmpackc.low %vm4068_vm12, %vm4066_vm11  ;;  %vm4079_vm11 = vcmp.eq.s32.totalorder %v12041_v8, %v10883_v60  ;;  %vm4081_vm12 = vcmp.eq.s32.totalorder %v12042_v14, %v10883_v60 }
 0x48c   : > { %vm8217_vm14 = vmpackc.low %vm4081_vm12, %vm4079_vm11 }
 0x48d   : > { %8200 = vmatpush1.bf16.msk.msra.mxu0 %vm8199_vm2, %v11901_v3  ;;  %vm4070_vm2 = vcmp.eq.s32.totalorder %v12036_v6, %v10886_v30 }
 0x48e   : > { %8202 = vmatprep.subr.msk.bf16.mxu0 %vm8201_vm4, %v11901_v3  ;;  %vm4072_vm4 = vcmp.eq.s32.totalorder %v12037_v52, %v10886_v30 }
 0x48f   : > { %vm8211_vm7 = vmpackc.low %vm4072_vm4, %vm4070_vm2  ;;  %vm4083_vm2 = vcmp.eq.s32.totalorder %v12043_v15, %v10883_v60  ;;  %vm4085_vm4 = vcmp.eq.s32.totalorder %v12044_v16, %v10883_v60 }
 0x490   : > { %4845 = vmatmul.mubr.f32.vlgmr.msra.gmra.mrb[4].mxu0 %v8333_v10  ;;  %vm8221_vm6 = vmpackc.low %vm4085_vm4, %vm4083_vm2 }
 0x491   : > { %8204 = vmatpush1.bf16.msk.msra.mxu0 %vm8203_vm9, %v11901_v3  ;;  %4915 = vmatprep.mubr.f32.mxu0 %v12038_v2  ;;  %vm4074_vm9 = vcmp.eq.s32.totalorder %v12039_v4, %v10886_v30 }
 0x492   : > { %8206 = vmatprep.subr.msk.bf16.mxu0 %vm8205_vm10, %v11901_v3  ;;  %vm4076_vm10 = vcmp.eq.s32.totalorder %v12040_v7, %v10886_v30 }
 0x493   : > { %vm8215_vm13 = vmpackc.low %vm4076_vm10, %vm4074_vm9  ;;  %vm4087_vm9 = vcmp.eq.s32.totalorder %v11964_v63, %v10883_v60  ;;  %vm4089_vm10 = vcmp.eq.s32.totalorder %v11965_v11, %v10883_v60 }
 0x494   : > { %vm8225_vm12 = vmpackc.low %vm4089_vm10, %vm4087_vm9 }
 0x495   : > { %8208 = vmatpush1.bf16.msk.msra.mxu0 %vm8207_vm15, %v11901_v3  ;;  %vm4078_vm15 = vcmp.eq.s32.totalorder %v12041_v8, %v10886_v30 }
 0x496   : > { %8210 = vmatprep.subr.msk.bf16.mxu0 %vm8209_vm1, %v11901_v3  ;;  %vm4080_vm1 = vcmp.eq.s32.totalorder %v12042_v14, %v10886_v30 }
 0x497   : > { %vm8219_vm5 = vmpackc.low %vm4080_vm1, %vm4078_vm15  ;;  %vm4091_vm15 = vcmp.eq.s32.totalorder %v12045_v17, %v10883_v60  ;;  %vm4093_vm1 = vcmp.eq.s32.totalorder %v12046_v18, %v10883_v60 }
 0x498   : > { %vm8229_vm4 = vmpackc.low %vm4093_vm1, %vm4091_vm15 }
 0x499   : > { %8212 = vmatpush1.bf16.msk.msra.mxu0 %vm8211_vm7, %v11901_v3  ;;  %vm4082_vm7 = vcmp.eq.s32.totalorder %v12043_v15, %v10886_v30 }
 0x49a   : > { %8214 = vmatprep.subr.msk.bf16.mxu0 %vm8213_vm8, %v11901_v3  ;;  %vm4084_vm8 = vcmp.eq.s32.totalorder %v12044_v16, %v10886_v30 }
 0x49b   : > { %vm8223_vm11 = vmpackc.low %vm4084_vm8, %vm4082_vm7 }
 0x49d   : > { %8216 = vmatpush1.bf16.msk.msra.mxu0 %vm8215_vm13, %v11901_v3  ;;  %vm4086_vm13 = vcmp.eq.s32.totalorder %v11964_v63, %v10886_v30  ;;  %v12048_v63 = vld [vmem:[#allocation73_spill] sm:$0xff] }
 0x49e   : > { %8218 = vmatprep.subr.msk.bf16.mxu0 %vm8217_vm14, %v11901_v3  ;;  %vm4088_vm14 = vcmp.eq.s32.totalorder %v11965_v11, %v10886_v30  ;;  %v12047_v11 = vld [vmem:[#allocation72_spill] sm:$0xff]  ;;  %vm4097_vm8 = vcmp.eq.s32.totalorder %v12048_v63, %v10883_v60 }
 0x49f   : > { %vm8227_vm2 = vmpackc.low %vm4088_vm14, %vm4086_vm13  ;;  %vm4095_vm7 = vcmp.eq.s32.totalorder %v12047_v11, %v10883_v60  ;;  %vm4099_vm13 = vcmp.eq.s32.totalorder %v12049_v19, %v10883_v60  ;;  %vm4101_vm14 = vcmp.eq.s32.totalorder %v12050_v20, %v10883_v60 }
 0x4a0   : > { %vm8233_vm10 = vmpackc.low %vm4097_vm8, %vm4095_vm7 }
 0x4a1   : > { %8220 = vmatpush1.bf16.msk.msra.mxu0 %vm8219_vm5, %v11901_v3  ;;  %vm4090_vm5 = vcmp.eq.s32.totalorder %v12045_v17, %v10886_v30  ;;  %vm8237_vm1 = vmpackc.low %vm4101_vm14, %vm4099_vm13 }
 0x4a2   : > { %8222 = vmatprep.subr.msk.bf16.mxu0 %vm8221_vm6, %v11901_v3  ;;  %vm4092_vm6 = vcmp.eq.s32.totalorder %v12046_v18, %v10886_v30 }
 0x4a3   : > { %vm8231_vm9 = vmpackc.low %vm4092_vm6, %vm4090_vm5  ;;  %vm4103_vm5 = vcmp.eq.s32.totalorder %v12051_v21, %v10883_v60  ;;  %vm4105_vm6 = vcmp.eq.s32.totalorder %v12052_v22, %v10883_v60 }
 0x4a4   : > { %vm8241_vm8 = vmpackc.low %vm4105_vm6, %vm4103_vm5 }
 0x4a5   : > { %8224 = vmatpush1.bf16.msk.msra.mxu0 %vm8223_vm11, %v11901_v3  ;;  %vm4094_vm11 = vcmp.eq.s32.totalorder %v12047_v11, %v10886_v30 }
 0x4a6   : > { %8226 = vmatprep.subr.msk.bf16.mxu0 %vm8225_vm12, %v11901_v3  ;;  %vm4096_vm12 = vcmp.eq.s32.totalorder %v12048_v63, %v10886_v30 }
 0x4a7   : > { %vm8235_vm15 = vmpackc.low %vm4096_vm12, %vm4094_vm11  ;;  %vm4107_vm11 = vcmp.eq.s32.totalorder %v11976_v62, %v10883_v60  ;;  %vm4109_vm12 = vcmp.eq.s32.totalorder %v12053_v23, %v10883_v60 }
 0x4a8   : > { %vm8245_vm14 = vmpackc.low %vm4109_vm12, %vm4107_vm11 }
 0x4a9   : > { %8228 = vmatpush1.bf16.msk.msra.mxu0 %vm8227_vm2, %v11901_v3  ;;  %vm4098_vm2 = vcmp.eq.s32.totalorder %v12049_v19, %v10886_v30 }
 0x4aa   : > { %8230 = vmatprep.subr.msk.bf16.mxu0 %vm8229_vm4, %v11901_v3  ;;  %vm4100_vm4 = vcmp.eq.s32.totalorder %v12050_v20, %v10886_v30 }
 0x4ab   : > { %vm8239_vm7 = vmpackc.low %vm4100_vm4, %vm4098_vm2  ;;  %vm4111_vm2 = vcmp.eq.s32.totalorder %v12054_v24, %v10883_v60  ;;  %vm4113_vm4 = vcmp.eq.s32.totalorder %v12055_v25, %v10883_v60 }
 0x4ac   : > { %vm8249_vm6 = vmpackc.low %vm4113_vm4, %vm4111_vm2 }
 0x4ad   : > { %8232 = vmatpush1.bf16.msk.msra.mxu0 %vm8231_vm9, %v11901_v3  ;;  %vm4102_vm9 = vcmp.eq.s32.totalorder %v12051_v21, %v10886_v30 }
 0x4ae   : > { %8234 = vmatprep.subr.msk.bf16.mxu0 %vm8233_vm10, %v11901_v3  ;;  %vm4104_vm10 = vcmp.eq.s32.totalorder %v12052_v22, %v10886_v30 }
 0x4af   : > { %vm8243_vm13 = vmpackc.low %vm4104_vm10, %vm4102_vm9  ;;  %vm4117_vm10 = vcmp.eq.s32.totalorder %v12057_v26, %v10883_v60 }
 0x4b1   : > { %8236 = vmatpush1.bf16.msk.msra.mxu0 %vm8235_vm15, %v11901_v3  ;;  %vm4106_vm15 = vcmp.eq.s32.totalorder %v11976_v62, %v10886_v30  ;;  %v12056_v62 = vld [vmem:[#allocation82_spill] sm:$0xff] }
 0x4b2   : > { %8238 = vmatprep.subr.msk.bf16.mxu0 %vm8237_vm1, %v11901_v3  ;;  %vm4108_vm1 = vcmp.eq.s32.totalorder %v12053_v23, %v10886_v30  ;;  %vm4115_vm9 = vcmp.eq.s32.totalorder %v12056_v62, %v10883_v60 }
 0x4b3   : > { %vm8247_vm5 = vmpackc.low %vm4108_vm1, %vm4106_vm15  ;;  %vm4119_vm15 = vcmp.eq.s32.totalorder %v12058_v27, %v10883_v60  ;;  %vm4121_vm1 = vcmp.eq.s32.totalorder %v12059_v28, %v10883_v60 }
 0x4b4   : > { %vm8253_vm12 = vmpackc.low %vm4117_vm10, %vm4115_vm9 }
 0x4b5   : > { %8240 = vmatpush1.bf16.msk.msra.mxu0 %vm8239_vm7, %v11901_v3  ;;  %vm4110_vm7 = vcmp.eq.s32.totalorder %v12054_v24, %v10886_v30  ;;  %vm8257_vm4 = vmpackc.low %vm4121_vm1, %vm4119_vm15 }
 0x4b6   : > { %8242 = vmatprep.subr.msk.bf16.mxu0 %vm8241_vm8, %v11901_v3  ;;  %vm4112_vm8 = vcmp.eq.s32.totalorder %v12055_v25, %v10886_v30 }
 0x4b7   : > { %vm8251_vm11 = vmpackc.low %vm4112_vm8, %vm4110_vm7  ;;  %vm4123_vm7 = vcmp.eq.s32.totalorder %v12060_v29, %v10883_v60  ;;  %vm4125_vm8 = vcmp.eq.s32.totalorder %v11982_v0, %v10883_v60  ;;  %v8334_v60 = vld [vmem:[%s8657_s24 + $0x18] sm:$0xff] }
 0x4b8   : > { %vm8261_vm10 = vmpackc.low %vm4125_vm8, %vm4123_vm7 }
 0x4b9   : > { %8244 = vmatpush1.bf16.msk.msra.mxu0 %vm8243_vm13, %v11901_v3  ;;  %vm4114_vm13 = vcmp.eq.s32.totalorder %v12056_v62, %v10886_v30 }
 0x4ba   : > { %8246 = vmatprep.subr.msk.bf16.mxu0 %vm8245_vm14, %v11901_v3  ;;  %vm4116_vm14 = vcmp.eq.s32.totalorder %v12057_v26, %v10886_v30 }
 0x4bb   : > { %vm8255_vm2 = vmpackc.low %vm4116_vm14, %vm4114_vm13 }
 0x4bd   : > { %8248 = vmatpush1.bf16.msk.msra.mxu0 %vm8247_vm5, %v11901_v3  ;;  %vm4118_vm5 = vcmp.eq.s32.totalorder %v12058_v27, %v10886_v30 }
 0x4be   : > { %8250 = vmatprep.subr.msk.bf16.mxu0 %vm8249_vm6, %v11901_v3  ;;  %vm4120_vm6 = vcmp.eq.s32.totalorder %v12059_v28, %v10886_v30 }
 0x4bf   : > { %vm8259_vm9 = vmpackc.low %vm4120_vm6, %vm4118_vm5 }
 0x4c1   : > { %8252 = vmatpush1.bf16.msk.msra.mxu0 %vm8251_vm11, %v11901_v3  ;;  %vm4122_vm11 = vcmp.eq.s32.totalorder %v12060_v29, %v10886_v30 }
 0x4c2   : > { %8254 = vmatprep.subr.msk.bf16.mxu0 %vm8253_vm12, %v11901_v3  ;;  %vm4124_vm12 = vcmp.eq.s32.totalorder %v11982_v0, %v10886_v30  ;;  %v12062_v30 = vld [vmem:[#allocation4_spill] sm:$0xff] }
 0x4c3   : > { %vm8263_vm13 = vmpackc.low %vm4124_vm12, %vm4122_vm11 }
 0x4c5   : > { %8256 = vmatpush1.bf16.msk.msra.mxu0 %vm8255_vm2, %v11901_v3 }
 0x4c6   : > { %8258 = vmatprep.subr.msk.bf16.mxu0 %vm8257_vm4, %v11901_v3 }
 0x4c9   : > { %8260 = vmatpush1.bf16.msk.msra.mxu0 %vm8259_vm9, %v11901_v3 }
 0x4ca   : > { %8262 = vmatprep.subr.msk.bf16.mxu0 %vm8261_vm10, %v11901_v3 }
 0x4cd   : > { %8264 = vmatpush1.bf16.msk.msra.mxu0 %vm8263_vm13, %v11901_v3 }
 0x4d0   : > { %4916 = vmatmul.mubr.f32.vlgmr.msra.gmra.mrb[4].mxu0 %v8334_v60 }
 0x4d1   : > { %4997 = vmatprep.mubr.f32.mxu0 %v12061_v31 }
 0x5a3   : > { %v4917_v32 = vpop.f32.mrb[4].mxu0 }
 0x5a4   : > { %v4919_v33 = vpop.f32.mrb[5].mxu0 }
 0x5a5   : > { %7235 = vmatprep.subr.msk.mxu0 %vm2558_vm0, %v4919_v33 }
 0x5a6   : > { %7236 = vmatpush1.msk.msra.mxu0 %vm2558_vm0, %v4917_v32  ;;  %vm5020_vm0 = vcmask 7168  }
 0x5a7   : > { %7237 = vmatmul.mubr.msk.f32.vlgmr.msra.gmra.mrb[2].mxu0 %vm2554_vm3, %v7234_v34 }
 0x67a   : > { %v4999_v0 = vpop.f32.mrb[2].mxu0 }
 0x67b   : > { %v8265_v3 = vadd.f32 %v4999_v0, %v12062_v30  ;;  %v5001_v35 = vpop.f32.mrb[3].mxu0 }
 0x67c   : > { %v8266_v5 = vadd.f32 %v5001_v35, %v12063_v36 }
 0x67d   : > { %v5022_v37 = vmul.f32 %v8265_v3, %v8265_v3 }
 0x67e   : > { %v5023_v38 = vmul.f32 %v8266_v5, %v8266_v5  ;;  %v5017_v39 = vadd.f32 %v8266_v5, %v8265_v3 }
 0x680   : > { %5018 = vadd.xlane.f32.xlu0 %v5017_v39  ;;  %v5024_v40 = vadd.f32 %v5023_v38, %v5022_v37 }
 0x684   : > { %5025 = vadd.xlane.f32.xlu0 %v5024_v40 }
 0x70d   : > { %v5019_v41 = vpop.xlane.xlu0 %5018 }
 0x70e   : > { %5021 = vst.msk [vmem:[%s270_s14] sm:$0xff] %vm5020_vm0, %v5019_v41 }
 0x711   : > { %v5026_v42 = vpop.xlane.xlu0 %5025 }
 0x712   : > { %5027 = vst.msk [vmem:[%s277_s21] sm:$0xff] %vm5020_vm0, %v5026_v42 }
 0x713 PF: > { %s15_s17 = sadd.s32 1, %s8357_s17   ;;  %s12064_s15 = smov %s8353_s16 }
 0x714   : > { %p12_p5 = scmp.ge.s32.totalorder %s15_s17, 4   ;;  %s12065_s16 = smov %s12067_s18 }
 0x716   :  { %14 = sbr.rel (!%p12_p5) target bundleno = 2 (0x2), region = 88 }

</bundles_post_ra>
